<compile_context>
chip_gen: v6e
topology: v6e:2x2x1
jax: 0.10.0
libtpu: 0.0.40
codegen_flags: <defaults>
</compile_context>

<pallas_src>
import math
from functools import partial

import jax
import jax.numpy as jnp
from jax import lax
from jax.experimental import pallas as pl
from jax.experimental.pallas import tpu as pltpu


_PARAM_KEYS = ("ln_a", "ln_b", "sa_w", "sa_b", "ca_w", "ca_b", "w1", "b1", "w2", "b2")


# ---------------- shared math (used inside the kernel AND by the pure-JAX reference) ----------

def _layer_norm(v, a, b, in_kernel, eps=1e-6):
    # torch LayerNorm in the spec: mean(-1), std(-1) unbiased (/(D-1)), a*(x-mean)/(std+eps)+b
    d = v.shape[-1]
    mean = jnp.mean(v, axis=-1, keepdims=True)
    var = jnp.sum((v - mean) ** 2, axis=-1, keepdims=True) * (1.0 / (d - 1))
    denom = jnp.sqrt(var) + eps
    # one exact reciprocal per row instead of D divides per row (EUP slot, frees VALU)
    inv = pl.reciprocal(denom, approx=False) if in_kernel else 1.0 / denom
    return a * (v - mean) * inv + b


def _softmax_last(s, in_kernel):
    s = s - jnp.max(s, axis=-1, keepdims=True)
    p = jnp.exp(s)
    denom = jnp.sum(p, axis=-1, keepdims=True)
    # exact reciprocal: approx=True cost ~9e-3 absolute output error and failed the tolerance
    inv = pl.reciprocal(denom, approx=False) if in_kernel else 1.0 / denom
    return p * inv


def _mha(q_src, kv_src, w, b, mask, n_heads, bb, q_len, kv_len, in_kernel):
    """Multi-head attention on batch-flattened bf16 activations.

    q_src : (bb*q_len, D) bf16      kv_src : (bb*kv_len, D) bf16
    w     : (4, D, D) bf16 [Wq, Wk, Wv, Wo]     b : (4, D) f32
    mask  : None | "causal" | int array (q_len, kv_len)  (nonzero = attend)
    """
    d = q_src.shape[-1]
    dk = d // n_heads
    scale = 1.0 / math.sqrt(dk)

    # projections: bf16 x bf16 -> f32 (single-pass MXU), bias in f32, then one bf16 cast each
    q = jnp.dot(q_src, w[0], preferred_element_type=jnp.float32) + b[0:1, :]
    k = jnp.dot(kv_src, w[1], preferred_element_type=jnp.float32) + b[1:2, :]
    v = jnp.dot(kv_src, w[2], preferred_element_type=jnp.float32) + b[2:3, :]
    q = q.reshape(bb, q_len, d).astype(jnp.bfloat16)
    k = k.reshape(bb, kv_len, d).astype(jnp.bfloat16)
    v = v.reshape(bb, kv_len, d).astype(jnp.bfloat16)

    if mask is None:
        pred = None
    elif isinstance(mask, str):            # "causal": build predicate in-kernel, no (T,T) DMA
        rows = lax.broadcasted_iota(jnp.int32, (q_len, kv_len), 0)
        cols = lax.broadcasted_iota(jnp.int32, (q_len, kv_len), 1)
        pred = rows >= cols
    else:
        pred = mask != 0

    # static per-head loop: dk-wide column slices are lane-aligned zero-cost views; the folded
    # batch dim rides in the einsum batch axis (one MXU dispatch per head, not one per item)
    head_outs = []
    for h in range(n_heads):
        sl = slice(h * dk, (h + 1) * dk)
        # scores stay f32 (preferred_element_type) so the -1e9 fill below cannot overflow
        s = jnp.einsum("bqd,bkd->bqk", q[:, :, sl], k[:, :, sl],
                       preferred_element_type=jnp.float32) * scale
        if pred is not None:
            s = jnp.where(pred[None, :, :], s, -1e9)
        p = _softmax_last(s, in_kernel)
        head_outs.append(jnp.einsum("bqk,bkd->bqd", p.astype(jnp.bfloat16), v[:, :, sl],
                                    preferred_element_type=jnp.float32))
    ctx = head_outs[0] if n_heads == 1 else jnp.concatenate(head_outs, axis=-1)
    ctx = ctx.reshape(bb * q_len, d).astype(jnp.bfloat16)
    return jnp.dot(ctx, w[3], preferred_element_type=jnp.float32) + b[3:4, :]


def _decoder_math(x, m, mask, prm, n_heads, bb, t_len, s_len, in_kernel):
    """Full decoder layer on batch-flattened slabs x:(bb*T, D) f32, m:(bb*S, D) f32."""
    ln_a, ln_b = prm["ln_a"], prm["ln_b"]
    m_bf16 = m.astype(jnp.bfloat16)                      # hoisted: cast memory once (K and V)
    # sublayer 0: masked self-attention (pre-norm + residual; dropout = identity)
    xn = _layer_norm(x, ln_a[0:1, :], ln_b[0:1, :], in_kernel).astype(jnp.bfloat16)
    x = x + _mha(xn, xn, prm["sa_w"], prm["sa_b"], mask, n_heads, bb, t_len, t_len, in_kernel)
    # sublayer 1: cross-attention over encoder memory (no mask)
    xn = _layer_norm(x, ln_a[1:2, :], ln_b[1:2, :], in_kernel).astype(jnp.bfloat16)
    x = x + _mha(xn, m_bf16, prm["ca_w"], prm["ca_b"], None, n_heads, bb, t_len, s_len, in_kernel)
    # sublayer 2: position-wise feed-forward (Linear -> ReLU -> Linear)
    xn = _layer_norm(x, ln_a[2:3, :], ln_b[2:3, :], in_kernel).astype(jnp.bfloat16)
    h1 = jnp.maximum(jnp.dot(xn, prm["w1"], preferred_element_type=jnp.float32) + prm["b1"], 0.0)
    h1 = h1.astype(jnp.bfloat16)
    return x + jnp.dot(h1, prm["w2"], preferred_element_type=jnp.float32) + prm["b2"]


# ---------------- Pallas kernel ----------------

def _decoder_kernel(*refs, n_heads, causal):
    if causal:
        x_ref, m_ref = refs[0], refs[1]
        mask = "causal"
        param_refs = refs[2:-1]
    else:
        x_ref, m_ref, mask_ref = refs[0], refs[1], refs[2]
        mask = mask_ref[...]
        param_refs = refs[3:-1]
    o_ref = refs[-1]

    bb, t_len, d = x_ref.shape
    s_len = m_ref.shape[1]
    # flatten the folded batch rows so projections / FFN get a dense M dimension for the MXU
    x = x_ref[...].reshape(bb * t_len, d)
    m = m_ref[...].reshape(bb * s_len, d)
    prm = dict(zip(_PARAM_KEYS, (r[...] for r in param_refs)))
    out = _decoder_math(x, m, mask, prm, n_heads, bb, t_len, s_len, in_kernel=True)
    o_ref[...] = out.reshape(bb, t_len, d).astype(o_ref.dtype)


# ---------------- wrapper ----------------

def _pick_batch_block(B, T):
    """Fold enough batch items per grid step so bb*T approaches the 256-row MXU tile, while
    keeping the grid length even so ("parallel",) can shard steps across both v7x TCs."""
    divs = [d for d in range(1, B + 1) if B % d == 0]
    for bb in divs:                                   # smallest bb that already fills the MXU
        if bb * T >= 256 and (B // bb) % 2 == 0:
            return bb
    for bb in divs:
        if bb * T >= 256:
            return bb
    for bb in reversed(divs):                         # tiny problems: keep the grid even if we can
        if (B // bb) % 2 == 0:
            return bb
    return B


def _vmem_limit_bytes(requested):
    phys = 128 << 20                                  # v5e / v6e per-core VMEM
    try:
        phys = int(pltpu.get_tpu_info().vmem_capacity_bytes)   # 64 MiB per TC on v7x
    except Exception:
        pass
    # never below the 32 MiB scoped default, never above ~85% of physical (compiler headroom)
    return int(max(32 << 20, min(int(0.85 * phys), requested)))


def decoder_layer(x, memory, tgt_mask, params, n_heads, *,
                  batch_block=None, causal=False, single_buffer_weights=True):
    B, T, D = x.shape
    S = memory.shape[1]
    d_ff = params["w1"].shape[1]
    bb = _pick_batch_block(B, T) if batch_block is None else batch_block
    assert B % bb == 0, "batch_block must divide the batch size"

    weight_bytes = sum(int(params[k].size) * params[k].dtype.itemsize for k in _PARAM_KEYS)
    tmp_bytes = 4 * (n_heads * bb * T * max(T, S)        # f32 score / prob slabs
                     + bb * T * d_ff                      # f32 FFN hidden
                     + 8 * bb * T * D + 2 * bb * S * D)   # q/k/v/ctx/residual temporaries
    act_bytes = 2 * (2 * bb * T * D + bb * S * D) * x.dtype.itemsize   # double-buffered blocks
    mask_bytes = 0 if causal else 2 * T * T * 4
    vmem_limit = _vmem_limit_bytes(
        act_bytes + weight_bytes * (1 if single_buffer_weights else 2)
        + tmp_bytes + mask_bytes + (8 << 20))

    kernel = partial(_decoder_kernel, n_heads=n_heads, causal=causal)

    def build_and_run(single_buffer):
        def const_spec(shape):
            idx = lambda b, n=len(shape): (0,) * n
            if single_buffer:
                # constant index_map => second pipeline buffer is pure VMEM waste; single-buffer it
                return pl.BlockSpec(shape, idx, pipeline_mode=pl.Buffered(1))
            return pl.BlockSpec(shape, idx)

        in_specs = [pl.BlockSpec((bb, T, D), lambda b: (b, 0, 0)),      # x
                    pl.BlockSpec((bb, S, D), lambda b: (b, 0, 0))]      # memory
        args = [x, memory]
        if not causal:
            in_specs.append(const_spec((T, T)))                         # int32 mask (general path)
            args.append((tgt_mask != 0).astype(jnp.int32))
        in_specs += [const_spec(tuple(params[k].shape)) for k in _PARAM_KEYS]
        args += [params[k] for k in _PARAM_KEYS]

        grid_spec = pltpu.PrefetchScalarGridSpec(
            num_scalar_prefetch=0, grid=(B // bb,),
            in_specs=in_specs,
            out_specs=pl.BlockSpec((bb, T, D), lambda b: (b, 0, 0)))

        out = pl.pallas_call(
            kernel,
            out_shape=jax.ShapeDtypeStruct((B, T, D), x.dtype),
            grid_spec=grid_spec,
            compiler_params=pltpu.CompilerParams(
                dimension_semantics=("parallel",),       # batch steps independent -> 2 TCs on v7x
                vmem_limit_bytes=vmem_limit),
        )(*args)
        return jax.block_until_ready(out)

    if single_buffer_weights:
        try:
            return build_and_run(True)
        except Exception:
            # pipeline_mode=pl.Buffered(1) not supported by this jax version / backend.  The
            # fallback runs *identical math* (only the buffering hint differs), so this retry
            # cannot hide a numerical error -- the caller's tolerance check still applies.
            pass
    return build_and_run(False)


# ---------------- pure-JAX reference (same math, no Pallas primitives) ----------------

def reference(x, memory, tgt_mask, params, n_heads):
    B, T, D = x.shape
    S = memory.shape[1]
    mask = (tgt_mask != 0).astype(jnp.int32)
    out = _decoder_math(x.reshape(B * T, D), memory.reshape(B * S, D), mask, params,
                        n_heads, B, T, S, in_kernel=False)
    return out.reshape(B, T, D)


if __name__ == "__main__":
    B, T, S, D, H, DFF = 4, 8, 16, 256, 2, 512   # D, DFF multiples of 128; dk = 128 (lane-dense)

    key = jax.random.PRNGKey(0)
    ks = jax.random.split(key, 10)
    wscale = 0.05
    params = {
        "ln_a": jnp.ones((3, D), jnp.float32),       # LayerNorm a_2 init = ones
        "ln_b": jnp.zeros((3, D), jnp.float32),      # LayerNorm b_2 init = zeros
        "sa_w": (wscale * jax.random.normal(ks[0], (4, D, D), jnp.float32)).astype(jnp.bfloat16),
        "sa_b": 0.01 * jax.random.normal(ks[1], (4, D), jnp.float32),
        "ca_w": (wscale * jax.random.normal(ks[2], (4, D, D), jnp.float32)).astype(jnp.bfloat16),
        "ca_b": 0.01 * jax.random.normal(ks[3], (4, D), jnp.float32),
        "w1": (wscale * jax.random.normal(ks[4], (D, DFF), jnp.float32)).astype(jnp.bfloat16),
        "b1": 0.01 * jax.random.normal(ks[5], (1, DFF), jnp.float32),
        "w2": (wscale * jax.random.normal(ks[6], (DFF, D), jnp.float32)).astype(jnp.bfloat16),
        "b2": 0.01 * jax.random.normal(ks[7], (1, D), jnp.float32),
    }
    x = jax.random.normal(ks[8], (B, T, D), jnp.float32)
    memory = jax.random.normal(ks[9], (B, S, D), jnp.float32)
    tgt_mask = jnp.tril(jnp.ones((T, T), jnp.float32))   # causal mask, nonzero = attend

    ref = jax.block_until_ready(reference(x, memory, tgt_mask, params, H))

    TOL = 2e-3   # kernel math is exact bf16/f32 and mirrors the reference op-for-op

    # optimized path: causal predicate built in-kernel (no (T,T) mask DMA / residency)
    out = decoder_layer(x, memory, tgt_mask, params, H, causal=True)
    assert out.shape == (B, T, D) and out.dtype == jnp.float32
    err = float(jnp.max(jnp.abs(out - ref)))
    assert err < TOL, f"causal-path error {err}"

    # general path: arbitrary tgt_mask DMA'd as int32 (full module semantics preserved)
    out_m = decoder_layer(x, memory, tgt_mask, params, H, causal=False)
    err_m = float(jnp.max(jnp.abs(out_m - ref)))
    assert err_m < TOL, f"masked-path error {err_m}"

    print("KERNEL_OK")
</pallas_src>

<mosaic_0001>
module attributes {stable_mosaic.version = 11 : i64} {
  func.func @_decoder_kernel(%arg0: i32, %arg1: memref<2x8x256xf32, #tpu.memory_space<vmem>>, %arg2: memref<2x16x256xf32, #tpu.memory_space<vmem>>, %arg3: memref<3x256xf32, #tpu.memory_space<vmem>>, %arg4: memref<3x256xf32, #tpu.memory_space<vmem>>, %arg5: memref<4x256x256xbf16, #tpu.memory_space<vmem>>, %arg6: memref<4x256xf32, #tpu.memory_space<vmem>>, %arg7: memref<4x256x256xbf16, #tpu.memory_space<vmem>>, %arg8: memref<4x256xf32, #tpu.memory_space<vmem>>, %arg9: memref<256x512xbf16, #tpu.memory_space<vmem>>, %arg10: memref<1x512xf32, #tpu.memory_space<vmem>>, %arg11: memref<512x256xbf16, #tpu.memory_space<vmem>>, %arg12: memref<1x256xf32, #tpu.memory_space<vmem>>, %arg13: memref<2x8x256xf32, #tpu.memory_space<vmem>>) attributes {dimension_semantics = [#tpu.dimension_semantics<parallel>], iteration_bounds = array<i64: 2>, scalar_prefetch = 0 : i64, scratch_operands = 0 : i64, tpu.core_type = #tpu.core_type<tc>, window_params = [{transform_indices = @transform_0, window_bounds = array<i64: 2, 8, 256>}, {transform_indices = @transform_1, window_bounds = array<i64: 2, 16, 256>}, {pipeline_mode = #tpu.pipeline_mode<synchronous>, transform_indices = @transform_2, window_bounds = array<i64: 3, 256>}, {pipeline_mode = #tpu.pipeline_mode<synchronous>, transform_indices = @transform_3, window_bounds = array<i64: 3, 256>}, {pipeline_mode = #tpu.pipeline_mode<synchronous>, transform_indices = @transform_4, window_bounds = array<i64: 4, 256, 256>}, {pipeline_mode = #tpu.pipeline_mode<synchronous>, transform_indices = @transform_5, window_bounds = array<i64: 4, 256>}, {pipeline_mode = #tpu.pipeline_mode<synchronous>, transform_indices = @transform_6, window_bounds = array<i64: 4, 256, 256>}, {pipeline_mode = #tpu.pipeline_mode<synchronous>, transform_indices = @transform_7, window_bounds = array<i64: 4, 256>}, {pipeline_mode = #tpu.pipeline_mode<synchronous>, transform_indices = @transform_8, window_bounds = array<i64: 256, 512>}, {pipeline_mode = #tpu.pipeline_mode<synchronous>, transform_indices = @transform_9, window_bounds = array<i64: 1, 512>}, {pipeline_mode = #tpu.pipeline_mode<synchronous>, transform_indices = @transform_10, window_bounds = array<i64: 512, 256>}, {pipeline_mode = #tpu.pipeline_mode<synchronous>, transform_indices = @transform_11, window_bounds = array<i64: 1, 256>}, {transform_indices = @transform_12, window_bounds = array<i64: 2, 8, 256>}]} {
    %c0 = arith.constant 0 : index
    %c0_0 = arith.constant 0 : index
    %c0_1 = arith.constant 0 : index
    %0 = vector.load %arg1[%c0, %c0_0, %c0_1] : memref<2x8x256xf32, #tpu.memory_space<vmem>>, vector<2x8x256xf32>
    %1 = vector.shape_cast %0 : vector<2x8x256xf32> to vector<16x256xf32>
    %c0_2 = arith.constant 0 : index
    %c0_3 = arith.constant 0 : index
    %c0_4 = arith.constant 0 : index
    %2 = vector.load %arg2[%c0_2, %c0_3, %c0_4] : memref<2x16x256xf32, #tpu.memory_space<vmem>>, vector<2x16x256xf32>
    %3 = vector.shape_cast %2 : vector<2x16x256xf32> to vector<32x256xf32>
    %c0_5 = arith.constant 0 : index
    %c0_6 = arith.constant 0 : index
    %4 = vector.load %arg3[%c0_5, %c0_6] : memref<3x256xf32, #tpu.memory_space<vmem>>, vector<3x256xf32>
    %c0_7 = arith.constant 0 : index
    %c0_8 = arith.constant 0 : index
    %5 = vector.load %arg4[%c0_7, %c0_8] : memref<3x256xf32, #tpu.memory_space<vmem>>, vector<3x256xf32>
    %c0_9 = arith.constant 0 : index
    %c0_10 = arith.constant 0 : index
    %c0_11 = arith.constant 0 : index
    %6 = vector.load %arg5[%c0_9, %c0_10, %c0_11] : memref<4x256x256xbf16, #tpu.memory_space<vmem>>, vector<4x256x256xbf16>
    %c0_12 = arith.constant 0 : index
    %c0_13 = arith.constant 0 : index
    %7 = vector.load %arg6[%c0_12, %c0_13] : memref<4x256xf32, #tpu.memory_space<vmem>>, vector<4x256xf32>
    %c0_14 = arith.constant 0 : index
    %c0_15 = arith.constant 0 : index
    %c0_16 = arith.constant 0 : index
    %8 = vector.load %arg7[%c0_14, %c0_15, %c0_16] : memref<4x256x256xbf16, #tpu.memory_space<vmem>>, vector<4x256x256xbf16>
    %c0_17 = arith.constant 0 : index
    %c0_18 = arith.constant 0 : index
    %9 = vector.load %arg8[%c0_17, %c0_18] : memref<4x256xf32, #tpu.memory_space<vmem>>, vector<4x256xf32>
    %c0_19 = arith.constant 0 : index
    %c0_20 = arith.constant 0 : index
    %10 = vector.load %arg9[%c0_19, %c0_20] : memref<256x512xbf16, #tpu.memory_space<vmem>>, vector<256x512xbf16>
    %c0_21 = arith.constant 0 : index
    %c0_22 = arith.constant 0 : index
    %11 = vector.load %arg10[%c0_21, %c0_22] : memref<1x512xf32, #tpu.memory_space<vmem>>, vector<1x512xf32>
    %c0_23 = arith.constant 0 : index
    %c0_24 = arith.constant 0 : index
    %12 = vector.load %arg11[%c0_23, %c0_24] : memref<512x256xbf16, #tpu.memory_space<vmem>>, vector<512x256xbf16>
    %c0_25 = arith.constant 0 : index
    %c0_26 = arith.constant 0 : index
    %13 = vector.load %arg12[%c0_25, %c0_26] : memref<1x256xf32, #tpu.memory_space<vmem>>, vector<1x256xf32>
    %14 = arith.truncf %3 : vector<32x256xf32> to vector<32x256xbf16>
    %15 = vector.extract_strided_slice %4 {offsets = [0, 0], sizes = [1, 256], strides = [1, 1]} : vector<3x256xf32> to vector<1x256xf32>
    %16 = vector.extract_strided_slice %5 {offsets = [0, 0], sizes = [1, 256], strides = [1, 1]} : vector<3x256xf32> to vector<1x256xf32>
    %cst = arith.constant dense<0.000000e+00> : vector<16xf32>
    %17 = vector.multi_reduction <add>, %1, %cst [1] : vector<16x256xf32> to vector<16xf32>
    %18 = vector.shape_cast %17 : vector<16xf32> to vector<16x1xf32>
    %cst_27 = arith.constant 2.560000e+02 : f32
    %19 = vector.broadcast %cst_27 : f32 to vector<16x1xf32>
    %20 = arith.divf %18, %19 : vector<16x1xf32>
    %21 = vector.broadcast %20 : vector<16x1xf32> to vector<16x256xf32>
    %22 = arith.subf %1, %21 : vector<16x256xf32>
    %23 = arith.mulf %22, %22 : vector<16x256xf32>
    %cst_28 = arith.constant dense<0.000000e+00> : vector<16xf32>
    %24 = vector.multi_reduction <add>, %23, %cst_28 [1] : vector<16x256xf32> to vector<16xf32>
    %25 = vector.shape_cast %24 : vector<16xf32> to vector<16x1xf32>
    %cst_29 = arith.constant 0.00392156886 : f32
    %26 = vector.broadcast %cst_29 : f32 to vector<16x1xf32>
    %27 = arith.mulf %25, %26 : vector<16x1xf32>
    %28 = math.sqrt %27 : vector<16x1xf32>
    %cst_30 = arith.constant 9.99999997E-7 : f32
    %29 = vector.broadcast %cst_30 : f32 to vector<16x1xf32>
    %30 = arith.addf %28, %29 : vector<16x1xf32>
    %31 = tpu.reciprocal %30 : vector<16x1xf32> -> vector<16x1xf32>
    %32 = vector.broadcast %20 : vector<16x1xf32> to vector<16x256xf32>
    %33 = arith.subf %1, %32 : vector<16x256xf32>
    %34 = vector.broadcast %15 : vector<1x256xf32> to vector<16x256xf32>
    %35 = arith.mulf %34, %33 : vector<16x256xf32>
    %36 = vector.broadcast %31 : vector<16x1xf32> to vector<16x256xf32>
    %37 = arith.mulf %35, %36 : vector<16x256xf32>
    %38 = vector.broadcast %16 : vector<1x256xf32> to vector<16x256xf32>
    %39 = arith.addf %37, %38 : vector<16x256xf32>
    %40 = arith.truncf %39 : vector<16x256xf32> to vector<16x256xbf16>
    %41 = vector.extract_strided_slice %6 {offsets = [0, 0, 0], sizes = [1, 256, 256], strides = [1, 1, 1]} : vector<4x256x256xbf16> to vector<1x256x256xbf16>
    %42 = vector.shape_cast %41 : vector<1x256x256xbf16> to vector<256x256xbf16>
    %cst_31 = arith.constant dense<0.000000e+00> : vector<16x256xf32>
    %43 = tpu.matmul %40, %42, %cst_31 {dimension_numbers = #tpu.dot_dimension_numbers<[1], [0], [0], [1], [0, 0, 1, 1], [], []>} : vector<16x256xbf16>, vector<256x256xbf16>, vector<16x256xf32> -> vector<16x256xf32>
    %44 = vector.extract_strided_slice %7 {offsets = [0, 0], sizes = [1, 256], strides = [1, 1]} : vector<4x256xf32> to vector<1x256xf32>
    %45 = vector.broadcast %44 : vector<1x256xf32> to vector<16x256xf32>
    %46 = arith.addf %43, %45 : vector<16x256xf32>
    %47 = vector.extract_strided_slice %6 {offsets = [1, 0, 0], sizes = [1, 256, 256], strides = [1, 1, 1]} : vector<4x256x256xbf16> to vector<1x256x256xbf16>
    %48 = vector.shape_cast %47 : vector<1x256x256xbf16> to vector<256x256xbf16>
    %cst_32 = arith.constant dense<0.000000e+00> : vector<16x256xf32>
    %49 = tpu.matmul %40, %48, %cst_32 {dimension_numbers = #tpu.dot_dimension_numbers<[1], [0], [0], [1], [0, 0, 1, 1], [], []>} : vector<16x256xbf16>, vector<256x256xbf16>, vector<16x256xf32> -> vector<16x256xf32>
    %50 = vector.extract_strided_slice %7 {offsets = [1, 0], sizes = [1, 256], strides = [1, 1]} : vector<4x256xf32> to vector<1x256xf32>
    %51 = vector.broadcast %50 : vector<1x256xf32> to vector<16x256xf32>
    %52 = arith.addf %49, %51 : vector<16x256xf32>
    %53 = vector.extract_strided_slice %6 {offsets = [2, 0, 0], sizes = [1, 256, 256], strides = [1, 1, 1]} : vector<4x256x256xbf16> to vector<1x256x256xbf16>
    %54 = vector.shape_cast %53 : vector<1x256x256xbf16> to vector<256x256xbf16>
    %cst_33 = arith.constant dense<0.000000e+00> : vector<16x256xf32>
    %55 = tpu.matmul %40, %54, %cst_33 {dimension_numbers = #tpu.dot_dimension_numbers<[1], [0], [0], [1], [0, 0, 1, 1], [], []>} : vector<16x256xbf16>, vector<256x256xbf16>, vector<16x256xf32> -> vector<16x256xf32>
    %56 = vector.extract_strided_slice %7 {offsets = [2, 0], sizes = [1, 256], strides = [1, 1]} : vector<4x256xf32> to vector<1x256xf32>
    %57 = vector.broadcast %56 : vector<1x256xf32> to vector<16x256xf32>
    %58 = arith.addf %55, %57 : vector<16x256xf32>
    %59 = vector.shape_cast %46 : vector<16x256xf32> to vector<2x8x256xf32>
    %60 = arith.truncf %59 : vector<2x8x256xf32> to vector<2x8x256xbf16>
    %61 = vector.shape_cast %52 : vector<16x256xf32> to vector<2x8x256xf32>
    %62 = arith.truncf %61 : vector<2x8x256xf32> to vector<2x8x256xbf16>
    %63 = vector.shape_cast %58 : vector<16x256xf32> to vector<2x8x256xf32>
    %64 = arith.truncf %63 : vector<2x8x256xf32> to vector<2x8x256xbf16>
    %65 = tpu.iota {dimensions = array<i32: 0>} : vector<8x8xi32>
    %66 = tpu.iota {dimensions = array<i32: 1>} : vector<8x8xi32>
    %67 = arith.cmpi sge, %65, %66 : vector<8x8xi32>
    %68 = vector.extract_strided_slice %60 {offsets = [0, 0, 0], sizes = [2, 8, 128], strides = [1, 1, 1]} : vector<2x8x256xbf16> to vector<2x8x128xbf16>
    %69 = vector.extract_strided_slice %62 {offsets = [0, 0, 0], sizes = [2, 8, 128], strides = [1, 1, 1]} : vector<2x8x256xbf16> to vector<2x8x128xbf16>
    "tpu.trace_start"() <{level = 10 : i32, message = "bqd,bkd->bqk"}> : () -> ()
    %cst_34 = arith.constant dense<0.000000e+00> : vector<2x8x8xf32>
    %70 = tpu.matmul %68, %69, %cst_34 {dimension_numbers = #tpu.dot_dimension_numbers<[2], [2], [1], [1], [0, 0, 0, 1, 1, 1], [0], [0]>} : vector<2x8x128xbf16>, vector<2x8x128xbf16>, vector<2x8x8xf32> -> vector<2x8x8xf32>
    "tpu.trace_stop"() : () -> ()
    %cst_35 = arith.constant 0.0883883461 : f32
    %71 = vector.broadcast %cst_35 : f32 to vector<2x8x8xf32>
    %72 = arith.mulf %70, %71 : vector<2x8x8xf32>
    %73 = vector.shape_cast %67 : vector<8x8xi1> to vector<1x8x8xi1>
    %cst_36 = arith.constant -1.000000e+09 : f32
    %74 = vector.shape_cast %73 : vector<1x8x8xi1> to vector<1x8x8xi1>
    %75 = vector.broadcast %74 : vector<1x8x8xi1> to vector<2x8x8xi1>
    %76 = vector.broadcast %cst_36 : f32 to vector<2x8x8xf32>
    %77 = arith.select %75, %72, %76 : vector<2x8x8xi1>, vector<2x8x8xf32>
    %cst_37 = arith.constant dense<0xFF800000> : vector<2x8xf32>
    %78 = vector.multi_reduction <maximumf>, %77, %cst_37 [2] : vector<2x8x8xf32> to vector<2x8xf32>
    %79 = vector.shape_cast %78 : vector<2x8xf32> to vector<2x8x1xf32>
    %80 = vector.broadcast %79 : vector<2x8x1xf32> to vector<2x8x8xf32>
    %81 = arith.subf %77, %80 : vector<2x8x8xf32>
    %82 = math.exp %81 : vector<2x8x8xf32>
    %cst_38 = arith.constant dense<0.000000e+00> : vector<2x8xf32>
    %83 = vector.multi_reduction <add>, %82, %cst_38 [2] : vector<2x8x8xf32> to vector<2x8xf32>
    %84 = vector.shape_cast %83 : vector<2x8xf32> to vector<2x8x1xf32>
    %85 = tpu.reciprocal %84 : vector<2x8x1xf32> -> vector<2x8x1xf32>
    %86 = vector.broadcast %85 : vector<2x8x1xf32> to vector<2x8x8xf32>
    %87 = arith.mulf %82, %86 : vector<2x8x8xf32>
    %88 = arith.truncf %87 : vector<2x8x8xf32> to vector<2x8x8xbf16>
    %89 = vector.extract_strided_slice %64 {offsets = [0, 0, 0], sizes = [2, 8, 128], strides = [1, 1, 1]} : vector<2x8x256xbf16> to vector<2x8x128xbf16>
    "tpu.trace_start"() <{level = 10 : i32, message = "bqk,bkd->bqd"}> : () -> ()
    %cst_39 = arith.constant dense<0.000000e+00> : vector<2x8x128xf32>
    %90 = tpu.matmul %88, %89, %cst_39 {dimension_numbers = #tpu.dot_dimension_numbers<[2], [1], [1], [2], [0, 0, 0, 1, 1, 2], [0], [0]>} : vector<2x8x8xbf16>, vector<2x8x128xbf16>, vector<2x8x128xf32> -> vector<2x8x128xf32>
    "tpu.trace_stop"() : () -> ()
    %91 = vector.extract_strided_slice %60 {offsets = [0, 0, 128], sizes = [2, 8, 128], strides = [1, 1, 1]} : vector<2x8x256xbf16> to vector<2x8x128xbf16>
    %92 = vector.extract_strided_slice %62 {offsets = [0, 0, 128], sizes = [2, 8, 128], strides = [1, 1, 1]} : vector<2x8x256xbf16> to vector<2x8x128xbf16>
    "tpu.trace_start"() <{level = 10 : i32, message = "bqd,bkd->bqk"}> : () -> ()
    %cst_40 = arith.constant dense<0.000000e+00> : vector<2x8x8xf32>
    %93 = tpu.matmul %91, %92, %cst_40 {dimension_numbers = #tpu.dot_dimension_numbers<[2], [2], [1], [1], [0, 0, 0, 1, 1, 1], [0], [0]>} : vector<2x8x128xbf16>, vector<2x8x128xbf16>, vector<2x8x8xf32> -> vector<2x8x8xf32>
    "tpu.trace_stop"() : () -> ()
    %cst_41 = arith.constant 0.0883883461 : f32
    %94 = vector.broadcast %cst_41 : f32 to vector<2x8x8xf32>
    %95 = arith.mulf %93, %94 : vector<2x8x8xf32>
    %96 = vector.shape_cast %67 : vector<8x8xi1> to vector<1x8x8xi1>
    %cst_42 = arith.constant -1.000000e+09 : f32
    %97 = vector.shape_cast %96 : vector<1x8x8xi1> to vector<1x8x8xi1>
    %98 = vector.broadcast %97 : vector<1x8x8xi1> to vector<2x8x8xi1>
    %99 = vector.broadcast %cst_42 : f32 to vector<2x8x8xf32>
    %100 = arith.select %98, %95, %99 : vector<2x8x8xi1>, vector<2x8x8xf32>
    %cst_43 = arith.constant dense<0xFF800000> : vector<2x8xf32>
    %101 = vector.multi_reduction <maximumf>, %100, %cst_43 [2] : vector<2x8x8xf32> to vector<2x8xf32>
    %102 = vector.shape_cast %101 : vector<2x8xf32> to vector<2x8x1xf32>
    %103 = vector.broadcast %102 : vector<2x8x1xf32> to vector<2x8x8xf32>
    %104 = arith.subf %100, %103 : vector<2x8x8xf32>
    %105 = math.exp %104 : vector<2x8x8xf32>
    %cst_44 = arith.constant dense<0.000000e+00> : vector<2x8xf32>
    %106 = vector.multi_reduction <add>, %105, %cst_44 [2] : vector<2x8x8xf32> to vector<2x8xf32>
    %107 = vector.shape_cast %106 : vector<2x8xf32> to vector<2x8x1xf32>
    %108 = tpu.reciprocal %107 : vector<2x8x1xf32> -> vector<2x8x1xf32>
    %109 = vector.broadcast %108 : vector<2x8x1xf32> to vector<2x8x8xf32>
    %110 = arith.mulf %105, %109 : vector<2x8x8xf32>
    %111 = arith.truncf %110 : vector<2x8x8xf32> to vector<2x8x8xbf16>
    %112 = vector.extract_strided_slice %64 {offsets = [0, 0, 128], sizes = [2, 8, 128], strides = [1, 1, 1]} : vector<2x8x256xbf16> to vector<2x8x128xbf16>
    "tpu.trace_start"() <{level = 10 : i32, message = "bqk,bkd->bqd"}> : () -> ()
    %cst_45 = arith.constant dense<0.000000e+00> : vector<2x8x128xf32>
    %113 = tpu.matmul %111, %112, %cst_45 {dimension_numbers = #tpu.dot_dimension_numbers<[2], [1], [1], [2], [0, 0, 0, 1, 1, 2], [0], [0]>} : vector<2x8x8xbf16>, vector<2x8x128xbf16>, vector<2x8x128xf32> -> vector<2x8x128xf32>
    "tpu.trace_stop"() : () -> ()
    %114 = tpu.concatenate %90, %113 in 2 : vector<2x8x128xf32>, vector<2x8x128xf32> -> vector<2x8x256xf32>
    %115 = vector.shape_cast %114 : vector<2x8x256xf32> to vector<16x256xf32>
    %116 = arith.truncf %115 : vector<16x256xf32> to vector<16x256xbf16>
    %117 = vector.extract_strided_slice %6 {offsets = [3, 0, 0], sizes = [1, 256, 256], strides = [1, 1, 1]} : vector<4x256x256xbf16> to vector<1x256x256xbf16>
    %118 = vector.shape_cast %117 : vector<1x256x256xbf16> to vector<256x256xbf16>
    %cst_46 = arith.constant dense<0.000000e+00> : vector<16x256xf32>
    %119 = tpu.matmul %116, %118, %cst_46 {dimension_numbers = #tpu.dot_dimension_numbers<[1], [0], [0], [1], [0, 0, 1, 1], [], []>} : vector<16x256xbf16>, vector<256x256xbf16>, vector<16x256xf32> -> vector<16x256xf32>
    %120 = vector.extract_strided_slice %7 {offsets = [3, 0], sizes = [1, 256], strides = [1, 1]} : vector<4x256xf32> to vector<1x256xf32>
    %121 = vector.broadcast %120 : vector<1x256xf32> to vector<16x256xf32>
    %122 = arith.addf %119, %121 : vector<16x256xf32>
    %123 = arith.addf %1, %122 : vector<16x256xf32>
    %124 = vector.extract_strided_slice %4 {offsets = [1, 0], sizes = [1, 256], strides = [1, 1]} : vector<3x256xf32> to vector<1x256xf32>
    %125 = vector.extract_strided_slice %5 {offsets = [1, 0], sizes = [1, 256], strides = [1, 1]} : vector<3x256xf32> to vector<1x256xf32>
    %cst_47 = arith.constant dense<0.000000e+00> : vector<16xf32>
    %126 = vector.multi_reduction <add>, %123, %cst_47 [1] : vector<16x256xf32> to vector<16xf32>
    %127 = vector.shape_cast %126 : vector<16xf32> to vector<16x1xf32>
    %cst_48 = arith.constant 2.560000e+02 : f32
    %128 = vector.broadcast %cst_48 : f32 to vector<16x1xf32>
    %129 = arith.divf %127, %128 : vector<16x1xf32>
    %130 = vector.broadcast %129 : vector<16x1xf32> to vector<16x256xf32>
    %131 = arith.subf %123, %130 : vector<16x256xf32>
    %132 = arith.mulf %131, %131 : vector<16x256xf32>
    %cst_49 = arith.constant dense<0.000000e+00> : vector<16xf32>
    %133 = vector.multi_reduction <add>, %132, %cst_49 [1] : vector<16x256xf32> to vector<16xf32>
    %134 = vector.shape_cast %133 : vector<16xf32> to vector<16x1xf32>
    %cst_50 = arith.constant 0.00392156886 : f32
    %135 = vector.broadcast %cst_50 : f32 to vector<16x1xf32>
    %136 = arith.mulf %134, %135 : vector<16x1xf32>
    %137 = math.sqrt %136 : vector<16x1xf32>
    %cst_51 = arith.constant 9.99999997E-7 : f32
    %138 = vector.broadcast %cst_51 : f32 to vector<16x1xf32>
    %139 = arith.addf %137, %138 : vector<16x1xf32>
    %140 = tpu.reciprocal %139 : vector<16x1xf32> -> vector<16x1xf32>
    %141 = vector.broadcast %129 : vector<16x1xf32> to vector<16x256xf32>
    %142 = arith.subf %123, %141 : vector<16x256xf32>
    %143 = vector.broadcast %124 : vector<1x256xf32> to vector<16x256xf32>
    %144 = arith.mulf %143, %142 : vector<16x256xf32>
    %145 = vector.broadcast %140 : vector<16x1xf32> to vector<16x256xf32>
    %146 = arith.mulf %144, %145 : vector<16x256xf32>
    %147 = vector.broadcast %125 : vector<1x256xf32> to vector<16x256xf32>
    %148 = arith.addf %146, %147 : vector<16x256xf32>
    %149 = arith.truncf %148 : vector<16x256xf32> to vector<16x256xbf16>
    %150 = vector.extract_strided_slice %8 {offsets = [0, 0, 0], sizes = [1, 256, 256], strides = [1, 1, 1]} : vector<4x256x256xbf16> to vector<1x256x256xbf16>
    %151 = vector.shape_cast %150 : vector<1x256x256xbf16> to vector<256x256xbf16>
    %cst_52 = arith.constant dense<0.000000e+00> : vector<16x256xf32>
    %152 = tpu.matmul %149, %151, %cst_52 {dimension_numbers = #tpu.dot_dimension_numbers<[1], [0], [0], [1], [0, 0, 1, 1], [], []>} : vector<16x256xbf16>, vector<256x256xbf16>, vector<16x256xf32> -> vector<16x256xf32>
    %153 = vector.extract_strided_slice %9 {offsets = [0, 0], sizes = [1, 256], strides = [1, 1]} : vector<4x256xf32> to vector<1x256xf32>
    %154 = vector.broadcast %153 : vector<1x256xf32> to vector<16x256xf32>
    %155 = arith.addf %152, %154 : vector<16x256xf32>
    %156 = vector.extract_strided_slice %8 {offsets = [1, 0, 0], sizes = [1, 256, 256], strides = [1, 1, 1]} : vector<4x256x256xbf16> to vector<1x256x256xbf16>
    %157 = vector.shape_cast %156 : vector<1x256x256xbf16> to vector<256x256xbf16>
    %cst_53 = arith.constant dense<0.000000e+00> : vector<32x256xf32>
    %158 = tpu.matmul %14, %157, %cst_53 {dimension_numbers = #tpu.dot_dimension_numbers<[1], [0], [0], [1], [0, 0, 1, 1], [], []>} : vector<32x256xbf16>, vector<256x256xbf16>, vector<32x256xf32> -> vector<32x256xf32>
    %159 = vector.extract_strided_slice %9 {offsets = [1, 0], sizes = [1, 256], strides = [1, 1]} : vector<4x256xf32> to vector<1x256xf32>
    %160 = vector.broadcast %159 : vector<1x256xf32> to vector<32x256xf32>
    %161 = arith.addf %158, %160 : vector<32x256xf32>
    %162 = vector.extract_strided_slice %8 {offsets = [2, 0, 0], sizes = [1, 256, 256], strides = [1, 1, 1]} : vector<4x256x256xbf16> to vector<1x256x256xbf16>
    %163 = vector.shape_cast %162 : vector<1x256x256xbf16> to vector<256x256xbf16>
    %cst_54 = arith.constant dense<0.000000e+00> : vector<32x256xf32>
    %164 = tpu.matmul %14, %163, %cst_54 {dimension_numbers = #tpu.dot_dimension_numbers<[1], [0], [0], [1], [0, 0, 1, 1], [], []>} : vector<32x256xbf16>, vector<256x256xbf16>, vector<32x256xf32> -> vector<32x256xf32>
    %165 = vector.extract_strided_slice %9 {offsets = [2, 0], sizes = [1, 256], strides = [1, 1]} : vector<4x256xf32> to vector<1x256xf32>
    %166 = vector.broadcast %165 : vector<1x256xf32> to vector<32x256xf32>
    %167 = arith.addf %164, %166 : vector<32x256xf32>
    %168 = vector.shape_cast %155 : vector<16x256xf32> to vector<2x8x256xf32>
    %169 = arith.truncf %168 : vector<2x8x256xf32> to vector<2x8x256xbf16>
    %170 = vector.shape_cast %161 : vector<32x256xf32> to vector<2x16x256xf32>
    %171 = arith.truncf %170 : vector<2x16x256xf32> to vector<2x16x256xbf16>
    %172 = vector.shape_cast %167 : vector<32x256xf32> to vector<2x16x256xf32>
    %173 = arith.truncf %172 : vector<2x16x256xf32> to vector<2x16x256xbf16>
    %174 = vector.extract_strided_slice %169 {offsets = [0, 0, 0], sizes = [2, 8, 128], strides = [1, 1, 1]} : vector<2x8x256xbf16> to vector<2x8x128xbf16>
    %175 = vector.extract_strided_slice %171 {offsets = [0, 0, 0], sizes = [2, 16, 128], strides = [1, 1, 1]} : vector<2x16x256xbf16> to vector<2x16x128xbf16>
    "tpu.trace_start"() <{level = 10 : i32, message = "bqd,bkd->bqk"}> : () -> ()
    %cst_55 = arith.constant dense<0.000000e+00> : vector<2x8x16xf32>
    %176 = tpu.matmul %174, %175, %cst_55 {dimension_numbers = #tpu.dot_dimension_numbers<[2], [2], [1], [1], [0, 0, 0, 1, 1, 1], [0], [0]>} : vector<2x8x128xbf16>, vector<2x16x128xbf16>, vector<2x8x16xf32> -> vector<2x8x16xf32>
    "tpu.trace_stop"() : () -> ()
    %cst_56 = arith.constant 0.0883883461 : f32
    %177 = vector.broadcast %cst_56 : f32 to vector<2x8x16xf32>
    %178 = arith.mulf %176, %177 : vector<2x8x16xf32>
    %cst_57 = arith.constant dense<0xFF800000> : vector<2x8xf32>
    %179 = vector.multi_reduction <maximumf>, %178, %cst_57 [2] : vector<2x8x16xf32> to vector<2x8xf32>
    %180 = vector.shape_cast %179 : vector<2x8xf32> to vector<2x8x1xf32>
    %181 = vector.broadcast %180 : vector<2x8x1xf32> to vector<2x8x16xf32>
    %182 = arith.subf %178, %181 : vector<2x8x16xf32>
    %183 = math.exp %182 : vector<2x8x16xf32>
    %cst_58 = arith.constant dense<0.000000e+00> : vector<2x8xf32>
    %184 = vector.multi_reduction <add>, %183, %cst_58 [2] : vector<2x8x16xf32> to vector<2x8xf32>
    %185 = vector.shape_cast %184 : vector<2x8xf32> to vector<2x8x1xf32>
    %186 = tpu.reciprocal %185 : vector<2x8x1xf32> -> vector<2x8x1xf32>
    %187 = vector.broadcast %186 : vector<2x8x1xf32> to vector<2x8x16xf32>
    %188 = arith.mulf %183, %187 : vector<2x8x16xf32>
    %189 = arith.truncf %188 : vector<2x8x16xf32> to vector<2x8x16xbf16>
    %190 = vector.extract_strided_slice %173 {offsets = [0, 0, 0], sizes = [2, 16, 128], strides = [1, 1, 1]} : vector<2x16x256xbf16> to vector<2x16x128xbf16>
    "tpu.trace_start"() <{level = 10 : i32, message = "bqk,bkd->bqd"}> : () -> ()
    %cst_59 = arith.constant dense<0.000000e+00> : vector<2x8x128xf32>
    %191 = tpu.matmul %189, %190, %cst_59 {dimension_numbers = #tpu.dot_dimension_numbers<[2], [1], [1], [2], [0, 0, 0, 1, 1, 2], [0], [0]>} : vector<2x8x16xbf16>, vector<2x16x128xbf16>, vector<2x8x128xf32> -> vector<2x8x128xf32>
    "tpu.trace_stop"() : () -> ()
    %192 = vector.extract_strided_slice %169 {offsets = [0, 0, 128], sizes = [2, 8, 128], strides = [1, 1, 1]} : vector<2x8x256xbf16> to vector<2x8x128xbf16>
    %193 = vector.extract_strided_slice %171 {offsets = [0, 0, 128], sizes = [2, 16, 128], strides = [1, 1, 1]} : vector<2x16x256xbf16> to vector<2x16x128xbf16>
    "tpu.trace_start"() <{level = 10 : i32, message = "bqd,bkd->bqk"}> : () -> ()
    %cst_60 = arith.constant dense<0.000000e+00> : vector<2x8x16xf32>
    %194 = tpu.matmul %192, %193, %cst_60 {dimension_numbers = #tpu.dot_dimension_numbers<[2], [2], [1], [1], [0, 0, 0, 1, 1, 1], [0], [0]>} : vector<2x8x128xbf16>, vector<2x16x128xbf16>, vector<2x8x16xf32> -> vector<2x8x16xf32>
    "tpu.trace_stop"() : () -> ()
    %cst_61 = arith.constant 0.0883883461 : f32
    %195 = vector.broadcast %cst_61 : f32 to vector<2x8x16xf32>
    %196 = arith.mulf %194, %195 : vector<2x8x16xf32>
    %cst_62 = arith.constant dense<0xFF800000> : vector<2x8xf32>
    %197 = vector.multi_reduction <maximumf>, %196, %cst_62 [2] : vector<2x8x16xf32> to vector<2x8xf32>
    %198 = vector.shape_cast %197 : vector<2x8xf32> to vector<2x8x1xf32>
    %199 = vector.broadcast %198 : vector<2x8x1xf32> to vector<2x8x16xf32>
    %200 = arith.subf %196, %199 : vector<2x8x16xf32>
    %201 = math.exp %200 : vector<2x8x16xf32>
    %cst_63 = arith.constant dense<0.000000e+00> : vector<2x8xf32>
    %202 = vector.multi_reduction <add>, %201, %cst_63 [2] : vector<2x8x16xf32> to vector<2x8xf32>
    %203 = vector.shape_cast %202 : vector<2x8xf32> to vector<2x8x1xf32>
    %204 = tpu.reciprocal %203 : vector<2x8x1xf32> -> vector<2x8x1xf32>
    %205 = vector.broadcast %204 : vector<2x8x1xf32> to vector<2x8x16xf32>
    %206 = arith.mulf %201, %205 : vector<2x8x16xf32>
    %207 = arith.truncf %206 : vector<2x8x16xf32> to vector<2x8x16xbf16>
    %208 = vector.extract_strided_slice %173 {offsets = [0, 0, 128], sizes = [2, 16, 128], strides = [1, 1, 1]} : vector<2x16x256xbf16> to vector<2x16x128xbf16>
    "tpu.trace_start"() <{level = 10 : i32, message = "bqk,bkd->bqd"}> : () -> ()
    %cst_64 = arith.constant dense<0.000000e+00> : vector<2x8x128xf32>
    %209 = tpu.matmul %207, %208, %cst_64 {dimension_numbers = #tpu.dot_dimension_numbers<[2], [1], [1], [2], [0, 0, 0, 1, 1, 2], [0], [0]>} : vector<2x8x16xbf16>, vector<2x16x128xbf16>, vector<2x8x128xf32> -> vector<2x8x128xf32>
    "tpu.trace_stop"() : () -> ()
    %210 = tpu.concatenate %191, %209 in 2 : vector<2x8x128xf32>, vector<2x8x128xf32> -> vector<2x8x256xf32>
    %211 = vector.shape_cast %210 : vector<2x8x256xf32> to vector<16x256xf32>
    %212 = arith.truncf %211 : vector<16x256xf32> to vector<16x256xbf16>
    %213 = vector.extract_strided_slice %8 {offsets = [3, 0, 0], sizes = [1, 256, 256], strides = [1, 1, 1]} : vector<4x256x256xbf16> to vector<1x256x256xbf16>
    %214 = vector.shape_cast %213 : vector<1x256x256xbf16> to vector<256x256xbf16>
    %cst_65 = arith.constant dense<0.000000e+00> : vector<16x256xf32>
    %215 = tpu.matmul %212, %214, %cst_65 {dimension_numbers = #tpu.dot_dimension_numbers<[1], [0], [0], [1], [0, 0, 1, 1], [], []>} : vector<16x256xbf16>, vector<256x256xbf16>, vector<16x256xf32> -> vector<16x256xf32>
    %216 = vector.extract_strided_slice %9 {offsets = [3, 0], sizes = [1, 256], strides = [1, 1]} : vector<4x256xf32> to vector<1x256xf32>
    %217 = vector.broadcast %216 : vector<1x256xf32> to vector<16x256xf32>
    %218 = arith.addf %215, %217 : vector<16x256xf32>
    %219 = arith.addf %123, %218 : vector<16x256xf32>
    %220 = vector.extract_strided_slice %4 {offsets = [2, 0], sizes = [1, 256], strides = [1, 1]} : vector<3x256xf32> to vector<1x256xf32>
    %221 = vector.extract_strided_slice %5 {offsets = [2, 0], sizes = [1, 256], strides = [1, 1]} : vector<3x256xf32> to vector<1x256xf32>
    %cst_66 = arith.constant dense<0.000000e+00> : vector<16xf32>
    %222 = vector.multi_reduction <add>, %219, %cst_66 [1] : vector<16x256xf32> to vector<16xf32>
    %223 = vector.shape_cast %222 : vector<16xf32> to vector<16x1xf32>
    %cst_67 = arith.constant 2.560000e+02 : f32
    %224 = vector.broadcast %cst_67 : f32 to vector<16x1xf32>
    %225 = arith.divf %223, %224 : vector<16x1xf32>
    %226 = vector.broadcast %225 : vector<16x1xf32> to vector<16x256xf32>
    %227 = arith.subf %219, %226 : vector<16x256xf32>
    %228 = arith.mulf %227, %227 : vector<16x256xf32>
    %cst_68 = arith.constant dense<0.000000e+00> : vector<16xf32>
    %229 = vector.multi_reduction <add>, %228, %cst_68 [1] : vector<16x256xf32> to vector<16xf32>
    %230 = vector.shape_cast %229 : vector<16xf32> to vector<16x1xf32>
    %cst_69 = arith.constant 0.00392156886 : f32
    %231 = vector.broadcast %cst_69 : f32 to vector<16x1xf32>
    %232 = arith.mulf %230, %231 : vector<16x1xf32>
    %233 = math.sqrt %232 : vector<16x1xf32>
    %cst_70 = arith.constant 9.99999997E-7 : f32
    %234 = vector.broadcast %cst_70 : f32 to vector<16x1xf32>
    %235 = arith.addf %233, %234 : vector<16x1xf32>
    %236 = tpu.reciprocal %235 : vector<16x1xf32> -> vector<16x1xf32>
    %237 = vector.broadcast %225 : vector<16x1xf32> to vector<16x256xf32>
    %238 = arith.subf %219, %237 : vector<16x256xf32>
    %239 = vector.broadcast %220 : vector<1x256xf32> to vector<16x256xf32>
    %240 = arith.mulf %239, %238 : vector<16x256xf32>
    %241 = vector.broadcast %236 : vector<16x1xf32> to vector<16x256xf32>
    %242 = arith.mulf %240, %241 : vector<16x256xf32>
    %243 = vector.broadcast %221 : vector<1x256xf32> to vector<16x256xf32>
    %244 = arith.addf %242, %243 : vector<16x256xf32>
    %245 = arith.truncf %244 : vector<16x256xf32> to vector<16x256xbf16>
    %cst_71 = arith.constant dense<0.000000e+00> : vector<16x512xf32>
    %246 = tpu.matmul %245, %10, %cst_71 {dimension_numbers = #tpu.dot_dimension_numbers<[1], [0], [0], [1], [0, 0, 1, 1], [], []>} : vector<16x256xbf16>, vector<256x512xbf16>, vector<16x512xf32> -> vector<16x512xf32>
    %247 = vector.broadcast %11 : vector<1x512xf32> to vector<16x512xf32>
    %248 = arith.addf %246, %247 : vector<16x512xf32>
    %cst_72 = arith.constant 0.000000e+00 : f32
    %249 = vector.broadcast %cst_72 : f32 to vector<16x512xf32>
    %250 = arith.maximumf %248, %249 : vector<16x512xf32>
    %251 = arith.truncf %250 : vector<16x512xf32> to vector<16x512xbf16>
    %cst_73 = arith.constant dense<0.000000e+00> : vector<16x256xf32>
    %252 = tpu.matmul %251, %12, %cst_73 {dimension_numbers = #tpu.dot_dimension_numbers<[1], [0], [0], [1], [0, 0, 1, 1], [], []>} : vector<16x512xbf16>, vector<512x256xbf16>, vector<16x256xf32> -> vector<16x256xf32>
    %253 = arith.addf %219, %252 : vector<16x256xf32>
    %254 = vector.broadcast %13 : vector<1x256xf32> to vector<16x256xf32>
    %255 = arith.addf %253, %254 : vector<16x256xf32>
    %256 = vector.shape_cast %255 : vector<16x256xf32> to vector<2x8x256xf32>
    %c0_74 = arith.constant 0 : index
    %c0_75 = arith.constant 0 : index
    %c0_76 = arith.constant 0 : index
    %257 = vector.load %arg13[%c0_74, %c0_75, %c0_76] : memref<2x8x256xf32, #tpu.memory_space<vmem>>, vector<2x8x256xf32>
    tpu.vector_store %arg13[%c0_74, %c0_75, %c0_76], %256 {strides = array<i32>} : memref<2x8x256xf32, #tpu.memory_space<vmem>>, vector<2x8x256xf32>,
    return
  }
  func.func @transform_0(%arg0: i32) -> (i32, i32, i32) {
    %c0_i32 = arith.constant 0 : i32
    %c0_i32_0 = arith.constant 0 : i32
    %c0_i32_1 = arith.constant 0 : i32
    return %arg0, %c0_i32, %c0_i32_0 : i32, i32, i32
  }
  func.func @transform_1(%arg0: i32) -> (i32, i32, i32) {
    %c0_i32 = arith.constant 0 : i32
    %c0_i32_0 = arith.constant 0 : i32
    %c0_i32_1 = arith.constant 0 : i32
    return %arg0, %c0_i32, %c0_i32_0 : i32, i32, i32
  }
  func.func @transform_2(%arg0: i32) -> (i32, i32) {
    %c0_i32 = arith.constant 0 : i32
    %c0_i32_0 = arith.constant 0 : i32
    %c0_i32_1 = arith.constant 0 : i32
    return %c0_i32, %c0_i32_0 : i32, i32
  }
  func.func @transform_3(%arg0: i32) -> (i32, i32) {
    %c0_i32 = arith.constant 0 : i32
    %c0_i32_0 = arith.constant 0 : i32
    %c0_i32_1 = arith.constant 0 : i32
    return %c0_i32, %c0_i32_0 : i32, i32
  }
  func.func @transform_4(%arg0: i32) -> (i32, i32, i32) {
    %c0_i32 = arith.constant 0 : i32
    %c0_i32_0 = arith.constant 0 : i32
    %c0_i32_1 = arith.constant 0 : i32
    %c0_i32_2 = arith.constant 0 : i32
    return %c0_i32, %c0_i32_0, %c0_i32_1 : i32, i32, i32
  }
  func.func @transform_5(%arg0: i32) -> (i32, i32) {
    %c0_i32 = arith.constant 0 : i32
    %c0_i32_0 = arith.constant 0 : i32
    %c0_i32_1 = arith.constant 0 : i32
    return %c0_i32, %c0_i32_0 : i32, i32
  }
  func.func @transform_6(%arg0: i32) -> (i32, i32, i32) {
    %c0_i32 = arith.constant 0 : i32
    %c0_i32_0 = arith.constant 0 : i32
    %c0_i32_1 = arith.constant 0 : i32
    %c0_i32_2 = arith.constant 0 : i32
    return %c0_i32, %c0_i32_0, %c0_i32_1 : i32, i32, i32
  }
  func.func @transform_7(%arg0: i32) -> (i32, i32) {
    %c0_i32 = arith.constant 0 : i32
    %c0_i32_0 = arith.constant 0 : i32
    %c0_i32_1 = arith.constant 0 : i32
    return %c0_i32, %c0_i32_0 : i32, i32
  }
  func.func @transform_8(%arg0: i32) -> (i32, i32) {
    %c0_i32 = arith.constant 0 : i32
    %c0_i32_0 = arith.constant 0 : i32
    %c0_i32_1 = arith.constant 0 : i32
    return %c0_i32, %c0_i32_0 : i32, i32
  }
  func.func @transform_9(%arg0: i32) -> (i32, i32) {
    %c0_i32 = arith.constant 0 : i32
    %c0_i32_0 = arith.constant 0 : i32
    %c0_i32_1 = arith.constant 0 : i32
    return %c0_i32, %c0_i32_0 : i32, i32
  }
  func.func @transform_10(%arg0: i32) -> (i32, i32) {
    %c0_i32 = arith.constant 0 : i32
    %c0_i32_0 = arith.constant 0 : i32
    %c0_i32_1 = arith.constant 0 : i32
    return %c0_i32, %c0_i32_0 : i32, i32
  }
  func.func @transform_11(%arg0: i32) -> (i32, i32) {
    %c0_i32 = arith.constant 0 : i32
    %c0_i32_0 = arith.constant 0 : i32
    %c0_i32_1 = arith.constant 0 : i32
    return %c0_i32, %c0_i32_0 : i32, i32
  }
  func.func @transform_12(%arg0: i32) -> (i32, i32, i32) {
    %c0_i32 = arith.constant 0 : i32
    %c0_i32_0 = arith.constant 0 : i32
    %c0_i32_1 = arith.constant 0 : i32
    return %arg0, %c0_i32, %c0_i32_0 : i32, i32, i32
  }
}

module attributes {stable_mosaic.version = 11 : i64} {
  func.func @_decoder_kernel(%arg0: i32, %arg1: memref<2x8x256xf32, #tpu.memory_space<vmem>>, %arg2: memref<2x16x256xf32, #tpu.memory_space<vmem>>, %arg3: memref<3x256xf32, #tpu.memory_space<vmem>>, %arg4: memref<3x256xf32, #tpu.memory_space<vmem>>, %arg5: memref<4x256x256xbf16, #tpu.memory_space<vmem>>, %arg6: memref<4x256xf32, #tpu.memory_space<vmem>>, %arg7: memref<4x256x256xbf16, #tpu.memory_space<vmem>>, %arg8: memref<4x256xf32, #tpu.memory_space<vmem>>, %arg9: memref<256x512xbf16, #tpu.memory_space<vmem>>, %arg10: memref<1x512xf32, #tpu.memory_space<vmem>>, %arg11: memref<512x256xbf16, #tpu.memory_space<vmem>>, %arg12: memref<1x256xf32, #tpu.memory_space<vmem>>, %arg13: memref<2x8x256xf32, #tpu.memory_space<vmem>>) attributes {dimension_semantics = [#tpu.dimension_semantics<parallel>], iteration_bounds = array<i64: 2>, scalar_prefetch = 0 : i64, scratch_operands = 0 : i64, tpu.core_type = #tpu.core_type<tc>, window_params = [{transform_indices = @transform_0, window_bounds = array<i64: 2, 8, 256>}, {transform_indices = @transform_1, window_bounds = array<i64: 2, 16, 256>}, {pipeline_mode = #tpu.pipeline_mode<synchronous>, transform_indices = @transform_2, window_bounds = array<i64: 3, 256>}, {pipeline_mode = #tpu.pipeline_mode<synchronous>, transform_indices = @transform_3, window_bounds = array<i64: 3, 256>}, {pipeline_mode = #tpu.pipeline_mode<synchronous>, transform_indices = @transform_4, window_bounds = array<i64: 4, 256, 256>}, {pipeline_mode = #tpu.pipeline_mode<synchronous>, transform_indices = @transform_5, window_bounds = array<i64: 4, 256>}, {pipeline_mode = #tpu.pipeline_mode<synchronous>, transform_indices = @transform_6, window_bounds = array<i64: 4, 256, 256>}, {pipeline_mode = #tpu.pipeline_mode<synchronous>, transform_indices = @transform_7, window_bounds = array<i64: 4, 256>}, {pipeline_mode = #tpu.pipeline_mode<synchronous>, transform_indices = @transform_8, window_bounds = array<i64: 256, 512>}, {pipeline_mode = #tpu.pipeline_mode<synchronous>, transform_indices = @transform_9, window_bounds = array<i64: 1, 512>}, {pipeline_mode = #tpu.pipeline_mode<synchronous>, transform_indices = @transform_10, window_bounds = array<i64: 512, 256>}, {pipeline_mode = #tpu.pipeline_mode<synchronous>, transform_indices = @transform_11, window_bounds = array<i64: 1, 256>}, {transform_indices = @transform_12, window_bounds = array<i64: 2, 8, 256>}]} {
    %c0 = arith.constant 0 : index
    %c0_0 = arith.constant 0 : index
    %c0_1 = arith.constant 0 : index
    %0 = vector.load %arg1[%c0, %c0_0, %c0_1] : memref<2x8x256xf32, #tpu.memory_space<vmem>>, vector<2x8x256xf32>
    %1 = vector.shape_cast %0 : vector<2x8x256xf32> to vector<16x256xf32>
    %c0_2 = arith.constant 0 : index
    %c0_3 = arith.constant 0 : index
    %c0_4 = arith.constant 0 : index
    %2 = vector.load %arg2[%c0_2, %c0_3, %c0_4] : memref<2x16x256xf32, #tpu.memory_space<vmem>>, vector<2x16x256xf32>
    %3 = vector.shape_cast %2 : vector<2x16x256xf32> to vector<32x256xf32>
    %c0_5 = arith.constant 0 : index
    %c0_6 = arith.constant 0 : index
    %4 = vector.load %arg3[%c0_5, %c0_6] : memref<3x256xf32, #tpu.memory_space<vmem>>, vector<3x256xf32>
    %c0_7 = arith.constant 0 : index
    %c0_8 = arith.constant 0 : index
    %5 = vector.load %arg4[%c0_7, %c0_8] : memref<3x256xf32, #tpu.memory_space<vmem>>, vector<3x256xf32>
    %c0_9 = arith.constant 0 : index
    %c0_10 = arith.constant 0 : index
    %c0_11 = arith.constant 0 : index
    %6 = vector.load %arg5[%c0_9, %c0_10, %c0_11] : memref<4x256x256xbf16, #tpu.memory_space<vmem>>, vector<4x256x256xbf16>
    %c0_12 = arith.constant 0 : index
    %c0_13 = arith.constant 0 : index
    %7 = vector.load %arg6[%c0_12, %c0_13] : memref<4x256xf32, #tpu.memory_space<vmem>>, vector<4x256xf32>
    %c0_14 = arith.constant 0 : index
    %c0_15 = arith.constant 0 : index
    %c0_16 = arith.constant 0 : index
    %8 = vector.load %arg7[%c0_14, %c0_15, %c0_16] : memref<4x256x256xbf16, #tpu.memory_space<vmem>>, vector<4x256x256xbf16>
    %c0_17 = arith.constant 0 : index
    %c0_18 = arith.constant 0 : index
    %9 = vector.load %arg8[%c0_17, %c0_18] : memref<4x256xf32, #tpu.memory_space<vmem>>, vector<4x256xf32>
    %c0_19 = arith.constant 0 : index
    %c0_20 = arith.constant 0 : index
    %10 = vector.load %arg9[%c0_19, %c0_20] : memref<256x512xbf16, #tpu.memory_space<vmem>>, vector<256x512xbf16>
    %c0_21 = arith.constant 0 : index
    %c0_22 = arith.constant 0 : index
    %11 = vector.load %arg10[%c0_21, %c0_22] : memref<1x512xf32, #tpu.memory_space<vmem>>, vector<1x512xf32>
    %c0_23 = arith.constant 0 : index
    %c0_24 = arith.constant 0 : index
    %12 = vector.load %arg11[%c0_23, %c0_24] : memref<512x256xbf16, #tpu.memory_space<vmem>>, vector<512x256xbf16>
    %c0_25 = arith.constant 0 : index
    %c0_26 = arith.constant 0 : index
    %13 = vector.load %arg12[%c0_25, %c0_26] : memref<1x256xf32, #tpu.memory_space<vmem>>, vector<1x256xf32>
    %14 = arith.truncf %3 : vector<32x256xf32> to vector<32x256xbf16>
    %15 = vector.extract_strided_slice %4 {offsets = [0, 0], sizes = [1, 256], strides = [1, 1]} : vector<3x256xf32> to vector<1x256xf32>
    %16 = vector.extract_strided_slice %5 {offsets = [0, 0], sizes = [1, 256], strides = [1, 1]} : vector<3x256xf32> to vector<1x256xf32>
    %cst = arith.constant dense<0.000000e+00> : vector<16xf32>
    %17 = vector.multi_reduction <add>, %1, %cst [1] : vector<16x256xf32> to vector<16xf32>
    %18 = vector.shape_cast %17 : vector<16xf32> to vector<16x1xf32>
    %cst_27 = arith.constant 2.560000e+02 : f32
    %19 = vector.broadcast %cst_27 : f32 to vector<16x1xf32>
    %20 = arith.divf %18, %19 : vector<16x1xf32>
    %21 = vector.broadcast %20 : vector<16x1xf32> to vector<16x256xf32>
    %22 = arith.subf %1, %21 : vector<16x256xf32>
    %23 = arith.mulf %22, %22 : vector<16x256xf32>
    %cst_28 = arith.constant dense<0.000000e+00> : vector<16xf32>
    %24 = vector.multi_reduction <add>, %23, %cst_28 [1] : vector<16x256xf32> to vector<16xf32>
    %25 = vector.shape_cast %24 : vector<16xf32> to vector<16x1xf32>
    %cst_29 = arith.constant 0.00392156886 : f32
    %26 = vector.broadcast %cst_29 : f32 to vector<16x1xf32>
    %27 = arith.mulf %25, %26 : vector<16x1xf32>
    %28 = math.sqrt %27 : vector<16x1xf32>
    %cst_30 = arith.constant 9.99999997E-7 : f32
    %29 = vector.broadcast %cst_30 : f32 to vector<16x1xf32>
    %30 = arith.addf %28, %29 : vector<16x1xf32>
    %31 = tpu.reciprocal %30 : vector<16x1xf32> -> vector<16x1xf32>
    %32 = vector.broadcast %20 : vector<16x1xf32> to vector<16x256xf32>
    %33 = arith.subf %1, %32 : vector<16x256xf32>
    %34 = vector.broadcast %15 : vector<1x256xf32> to vector<16x256xf32>
    %35 = arith.mulf %34, %33 : vector<16x256xf32>
    %36 = vector.broadcast %31 : vector<16x1xf32> to vector<16x256xf32>
    %37 = arith.mulf %35, %36 : vector<16x256xf32>
    %38 = vector.broadcast %16 : vector<1x256xf32> to vector<16x256xf32>
    %39 = arith.addf %37, %38 : vector<16x256xf32>
    %40 = arith.truncf %39 : vector<16x256xf32> to vector<16x256xbf16>
    %41 = vector.extract_strided_slice %6 {offsets = [0, 0, 0], sizes = [1, 256, 256], strides = [1, 1, 1]} : vector<4x256x256xbf16> to vector<1x256x256xbf16>
    %42 = vector.shape_cast %41 : vector<1x256x256xbf16> to vector<256x256xbf16>
    %cst_31 = arith.constant dense<0.000000e+00> : vector<16x256xf32>
    %43 = tpu.matmul %40, %42, %cst_31 {dimension_numbers = #tpu.dot_dimension_numbers<[1], [0], [0], [1], [0, 0, 1, 1], [], []>} : vector<16x256xbf16>, vector<256x256xbf16>, vector<16x256xf32> -> vector<16x256xf32>
    %44 = vector.extract_strided_slice %7 {offsets = [0, 0], sizes = [1, 256], strides = [1, 1]} : vector<4x256xf32> to vector<1x256xf32>
    %45 = vector.broadcast %44 : vector<1x256xf32> to vector<16x256xf32>
    %46 = arith.addf %43, %45 : vector<16x256xf32>
    %47 = vector.extract_strided_slice %6 {offsets = [1, 0, 0], sizes = [1, 256, 256], strides = [1, 1, 1]} : vector<4x256x256xbf16> to vector<1x256x256xbf16>
    %48 = vector.shape_cast %47 : vector<1x256x256xbf16> to vector<256x256xbf16>
    %cst_32 = arith.constant dense<0.000000e+00> : vector<16x256xf32>
    %49 = tpu.matmul %40, %48, %cst_32 {dimension_numbers = #tpu.dot_dimension_numbers<[1], [0], [0], [1], [0, 0, 1, 1], [], []>} : vector<16x256xbf16>, vector<256x256xbf16>, vector<16x256xf32> -> vector<16x256xf32>
    %50 = vector.extract_strided_slice %7 {offsets = [1, 0], sizes = [1, 256], strides = [1, 1]} : vector<4x256xf32> to vector<1x256xf32>
    %51 = vector.broadcast %50 : vector<1x256xf32> to vector<16x256xf32>
    %52 = arith.addf %49, %51 : vector<16x256xf32>
    %53 = vector.extract_strided_slice %6 {offsets = [2, 0, 0], sizes = [1, 256, 256], strides = [1, 1, 1]} : vector<4x256x256xbf16> to vector<1x256x256xbf16>
    %54 = vector.shape_cast %53 : vector<1x256x256xbf16> to vector<256x256xbf16>
    %cst_33 = arith.constant dense<0.000000e+00> : vector<16x256xf32>
    %55 = tpu.matmul %40, %54, %cst_33 {dimension_numbers = #tpu.dot_dimension_numbers<[1], [0], [0], [1], [0, 0, 1, 1], [], []>} : vector<16x256xbf16>, vector<256x256xbf16>, vector<16x256xf32> -> vector<16x256xf32>
    %56 = vector.extract_strided_slice %7 {offsets = [2, 0], sizes = [1, 256], strides = [1, 1]} : vector<4x256xf32> to vector<1x256xf32>
    %57 = vector.broadcast %56 : vector<1x256xf32> to vector<16x256xf32>
    %58 = arith.addf %55, %57 : vector<16x256xf32>
    %59 = vector.shape_cast %46 : vector<16x256xf32> to vector<2x8x256xf32>
    %60 = arith.truncf %59 : vector<2x8x256xf32> to vector<2x8x256xbf16>
    %61 = vector.shape_cast %52 : vector<16x256xf32> to vector<2x8x256xf32>
    %62 = arith.truncf %61 : vector<2x8x256xf32> to vector<2x8x256xbf16>
    %63 = vector.shape_cast %58 : vector<16x256xf32> to vector<2x8x256xf32>
    %64 = arith.truncf %63 : vector<2x8x256xf32> to vector<2x8x256xbf16>
    %65 = tpu.iota {dimensions = array<i32: 0>} : vector<8x8xi32>
    %66 = tpu.iota {dimensions = array<i32: 1>} : vector<8x8xi32>
    %67 = arith.cmpi sge, %65, %66 : vector<8x8xi32>
    %68 = vector.extract_strided_slice %60 {offsets = [0, 0, 0], sizes = [2, 8, 128], strides = [1, 1, 1]} : vector<2x8x256xbf16> to vector<2x8x128xbf16>
    %69 = vector.extract_strided_slice %62 {offsets = [0, 0, 0], sizes = [2, 8, 128], strides = [1, 1, 1]} : vector<2x8x256xbf16> to vector<2x8x128xbf16>
    "tpu.trace_start"() <{level = 10 : i32, message = "bqd,bkd->bqk"}> : () -> ()
    %cst_34 = arith.constant dense<0.000000e+00> : vector<2x8x8xf32>
    %70 = tpu.matmul %68, %69, %cst_34 {dimension_numbers = #tpu.dot_dimension_numbers<[2], [2], [1], [1], [0, 0, 0, 1, 1, 1], [0], [0]>} : vector<2x8x128xbf16>, vector<2x8x128xbf16>, vector<2x8x8xf32> -> vector<2x8x8xf32>
    "tpu.trace_stop"() : () -> ()
    %cst_35 = arith.constant 0.0883883461 : f32
    %71 = vector.broadcast %cst_35 : f32 to vector<2x8x8xf32>
    %72 = arith.mulf %70, %71 : vector<2x8x8xf32>
    %73 = vector.shape_cast %67 : vector<8x8xi1> to vector<1x8x8xi1>
    %cst_36 = arith.constant -1.000000e+09 : f32
    %74 = vector.shape_cast %73 : vector<1x8x8xi1> to vector<1x8x8xi1>
    %75 = vector.broadcast %74 : vector<1x8x8xi1> to vector<2x8x8xi1>
    %76 = vector.broadcast %cst_36 : f32 to vector<2x8x8xf32>
    %77 = arith.select %75, %72, %76 : vector<2x8x8xi1>, vector<2x8x8xf32>
    %cst_37 = arith.constant dense<0xFF800000> : vector<2x8xf32>
    %78 = vector.multi_reduction <maximumf>, %77, %cst_37 [2] : vector<2x8x8xf32> to vector<2x8xf32>
    %79 = vector.shape_cast %78 : vector<2x8xf32> to vector<2x8x1xf32>
    %80 = vector.broadcast %79 : vector<2x8x1xf32> to vector<2x8x8xf32>
    %81 = arith.subf %77, %80 : vector<2x8x8xf32>
    %82 = math.exp %81 : vector<2x8x8xf32>
    %cst_38 = arith.constant dense<0.000000e+00> : vector<2x8xf32>
    %83 = vector.multi_reduction <add>, %82, %cst_38 [2] : vector<2x8x8xf32> to vector<2x8xf32>
    %84 = vector.shape_cast %83 : vector<2x8xf32> to vector<2x8x1xf32>
    %85 = tpu.reciprocal %84 : vector<2x8x1xf32> -> vector<2x8x1xf32>
    %86 = vector.broadcast %85 : vector<2x8x1xf32> to vector<2x8x8xf32>
    %87 = arith.mulf %82, %86 : vector<2x8x8xf32>
    %88 = arith.truncf %87 : vector<2x8x8xf32> to vector<2x8x8xbf16>
    %89 = vector.extract_strided_slice %64 {offsets = [0, 0, 0], sizes = [2, 8, 128], strides = [1, 1, 1]} : vector<2x8x256xbf16> to vector<2x8x128xbf16>
    "tpu.trace_start"() <{level = 10 : i32, message = "bqk,bkd->bqd"}> : () -> ()
    %cst_39 = arith.constant dense<0.000000e+00> : vector<2x8x128xf32>
    %90 = tpu.matmul %88, %89, %cst_39 {dimension_numbers = #tpu.dot_dimension_numbers<[2], [1], [1], [2], [0, 0, 0, 1, 1, 2], [0], [0]>} : vector<2x8x8xbf16>, vector<2x8x128xbf16>, vector<2x8x128xf32> -> vector<2x8x128xf32>
    "tpu.trace_stop"() : () -> ()
    %91 = vector.extract_strided_slice %60 {offsets = [0, 0, 128], sizes = [2, 8, 128], strides = [1, 1, 1]} : vector<2x8x256xbf16> to vector<2x8x128xbf16>
    %92 = vector.extract_strided_slice %62 {offsets = [0, 0, 128], sizes = [2, 8, 128], strides = [1, 1, 1]} : vector<2x8x256xbf16> to vector<2x8x128xbf16>
    "tpu.trace_start"() <{level = 10 : i32, message = "bqd,bkd->bqk"}> : () -> ()
    %cst_40 = arith.constant dense<0.000000e+00> : vector<2x8x8xf32>
    %93 = tpu.matmul %91, %92, %cst_40 {dimension_numbers = #tpu.dot_dimension_numbers<[2], [2], [1], [1], [0, 0, 0, 1, 1, 1], [0], [0]>} : vector<2x8x128xbf16>, vector<2x8x128xbf16>, vector<2x8x8xf32> -> vector<2x8x8xf32>
    "tpu.trace_stop"() : () -> ()
    %cst_41 = arith.constant 0.0883883461 : f32
    %94 = vector.broadcast %cst_41 : f32 to vector<2x8x8xf32>
    %95 = arith.mulf %93, %94 : vector<2x8x8xf32>
    %96 = vector.shape_cast %67 : vector<8x8xi1> to vector<1x8x8xi1>
    %cst_42 = arith.constant -1.000000e+09 : f32
    %97 = vector.shape_cast %96 : vector<1x8x8xi1> to vector<1x8x8xi1>
    %98 = vector.broadcast %97 : vector<1x8x8xi1> to vector<2x8x8xi1>
    %99 = vector.broadcast %cst_42 : f32 to vector<2x8x8xf32>
    %100 = arith.select %98, %95, %99 : vector<2x8x8xi1>, vector<2x8x8xf32>
    %cst_43 = arith.constant dense<0xFF800000> : vector<2x8xf32>
    %101 = vector.multi_reduction <maximumf>, %100, %cst_43 [2] : vector<2x8x8xf32> to vector<2x8xf32>
    %102 = vector.shape_cast %101 : vector<2x8xf32> to vector<2x8x1xf32>
    %103 = vector.broadcast %102 : vector<2x8x1xf32> to vector<2x8x8xf32>
    %104 = arith.subf %100, %103 : vector<2x8x8xf32>
    %105 = math.exp %104 : vector<2x8x8xf32>
    %cst_44 = arith.constant dense<0.000000e+00> : vector<2x8xf32>
    %106 = vector.multi_reduction <add>, %105, %cst_44 [2] : vector<2x8x8xf32> to vector<2x8xf32>
    %107 = vector.shape_cast %106 : vector<2x8xf32> to vector<2x8x1xf32>
    %108 = tpu.reciprocal %107 : vector<2x8x1xf32> -> vector<2x8x1xf32>
    %109 = vector.broadcast %108 : vector<2x8x1xf32> to vector<2x8x8xf32>
    %110 = arith.mulf %105, %109 : vector<2x8x8xf32>
    %111 = arith.truncf %110 : vector<2x8x8xf32> to vector<2x8x8xbf16>
    %112 = vector.extract_strided_slice %64 {offsets = [0, 0, 128], sizes = [2, 8, 128], strides = [1, 1, 1]} : vector<2x8x256xbf16> to vector<2x8x128xbf16>
    "tpu.trace_start"() <{level = 10 : i32, message = "bqk,bkd->bqd"}> : () -> ()
    %cst_45 = arith.constant dense<0.000000e+00> : vector<2x8x128xf32>
    %113 = tpu.matmul %111, %112, %cst_45 {dimension_numbers = #tpu.dot_dimension_numbers<[2], [1], [1], [2], [0, 0, 0, 1, 1, 2], [0], [0]>} : vector<2x8x8xbf16>, vector<2x8x128xbf16>, vector<2x8x128xf32> -> vector<2x8x128xf32>
    "tpu.trace_stop"() : () -> ()
    %114 = tpu.concatenate %90, %113 in 2 : vector<2x8x128xf32>, vector<2x8x128xf32> -> vector<2x8x256xf32>
    %115 = vector.shape_cast %114 : vector<2x8x256xf32> to vector<16x256xf32>
    %116 = arith.truncf %115 : vector<16x256xf32> to vector<16x256xbf16>
    %117 = vector.extract_strided_slice %6 {offsets = [3, 0, 0], sizes = [1, 256, 256], strides = [1, 1, 1]} : vector<4x256x256xbf16> to vector<1x256x256xbf16>
    %118 = vector.shape_cast %117 : vector<1x256x256xbf16> to vector<256x256xbf16>
    %cst_46 = arith.constant dense<0.000000e+00> : vector<16x256xf32>
    %119 = tpu.matmul %116, %118, %cst_46 {dimension_numbers = #tpu.dot_dimension_numbers<[1], [0], [0], [1], [0, 0, 1, 1], [], []>} : vector<16x256xbf16>, vector<256x256xbf16>, vector<16x256xf32> -> vector<16x256xf32>
    %120 = vector.extract_strided_slice %7 {offsets = [3, 0], sizes = [1, 256], strides = [1, 1]} : vector<4x256xf32> to vector<1x256xf32>
    %121 = vector.broadcast %120 : vector<1x256xf32> to vector<16x256xf32>
    %122 = arith.addf %119, %121 : vector<16x256xf32>
    %123 = arith.addf %1, %122 : vector<16x256xf32>
    %124 = vector.extract_strided_slice %4 {offsets = [1, 0], sizes = [1, 256], strides = [1, 1]} : vector<3x256xf32> to vector<1x256xf32>
    %125 = vector.extract_strided_slice %5 {offsets = [1, 0], sizes = [1, 256], strides = [1, 1]} : vector<3x256xf32> to vector<1x256xf32>
    %cst_47 = arith.constant dense<0.000000e+00> : vector<16xf32>
    %126 = vector.multi_reduction <add>, %123, %cst_47 [1] : vector<16x256xf32> to vector<16xf32>
    %127 = vector.shape_cast %126 : vector<16xf32> to vector<16x1xf32>
    %cst_48 = arith.constant 2.560000e+02 : f32
    %128 = vector.broadcast %cst_48 : f32 to vector<16x1xf32>
    %129 = arith.divf %127, %128 : vector<16x1xf32>
    %130 = vector.broadcast %129 : vector<16x1xf32> to vector<16x256xf32>
    %131 = arith.subf %123, %130 : vector<16x256xf32>
    %132 = arith.mulf %131, %131 : vector<16x256xf32>
    %cst_49 = arith.constant dense<0.000000e+00> : vector<16xf32>
    %133 = vector.multi_reduction <add>, %132, %cst_49 [1] : vector<16x256xf32> to vector<16xf32>
    %134 = vector.shape_cast %133 : vector<16xf32> to vector<16x1xf32>
    %cst_50 = arith.constant 0.00392156886 : f32
    %135 = vector.broadcast %cst_50 : f32 to vector<16x1xf32>
    %136 = arith.mulf %134, %135 : vector<16x1xf32>
    %137 = math.sqrt %136 : vector<16x1xf32>
    %cst_51 = arith.constant 9.99999997E-7 : f32
    %138 = vector.broadcast %cst_51 : f32 to vector<16x1xf32>
    %139 = arith.addf %137, %138 : vector<16x1xf32>
    %140 = tpu.reciprocal %139 : vector<16x1xf32> -> vector<16x1xf32>
    %141 = vector.broadcast %129 : vector<16x1xf32> to vector<16x256xf32>
    %142 = arith.subf %123, %141 : vector<16x256xf32>
    %143 = vector.broadcast %124 : vector<1x256xf32> to vector<16x256xf32>
    %144 = arith.mulf %143, %142 : vector<16x256xf32>
    %145 = vector.broadcast %140 : vector<16x1xf32> to vector<16x256xf32>
    %146 = arith.mulf %144, %145 : vector<16x256xf32>
    %147 = vector.broadcast %125 : vector<1x256xf32> to vector<16x256xf32>
    %148 = arith.addf %146, %147 : vector<16x256xf32>
    %149 = arith.truncf %148 : vector<16x256xf32> to vector<16x256xbf16>
    %150 = vector.extract_strided_slice %8 {offsets = [0, 0, 0], sizes = [1, 256, 256], strides = [1, 1, 1]} : vector<4x256x256xbf16> to vector<1x256x256xbf16>
    %151 = vector.shape_cast %150 : vector<1x256x256xbf16> to vector<256x256xbf16>
    %cst_52 = arith.constant dense<0.000000e+00> : vector<16x256xf32>
    %152 = tpu.matmul %149, %151, %cst_52 {dimension_numbers = #tpu.dot_dimension_numbers<[1], [0], [0], [1], [0, 0, 1, 1], [], []>} : vector<16x256xbf16>, vector<256x256xbf16>, vector<16x256xf32> -> vector<16x256xf32>
    %153 = vector.extract_strided_slice %9 {offsets = [0, 0], sizes = [1, 256], strides = [1, 1]} : vector<4x256xf32> to vector<1x256xf32>
    %154 = vector.broadcast %153 : vector<1x256xf32> to vector<16x256xf32>
    %155 = arith.addf %152, %154 : vector<16x256xf32>
    %156 = vector.extract_strided_slice %8 {offsets = [1, 0, 0], sizes = [1, 256, 256], strides = [1, 1, 1]} : vector<4x256x256xbf16> to vector<1x256x256xbf16>
    %157 = vector.shape_cast %156 : vector<1x256x256xbf16> to vector<256x256xbf16>
    %cst_53 = arith.constant dense<0.000000e+00> : vector<32x256xf32>
    %158 = tpu.matmul %14, %157, %cst_53 {dimension_numbers = #tpu.dot_dimension_numbers<[1], [0], [0], [1], [0, 0, 1, 1], [], []>} : vector<32x256xbf16>, vector<256x256xbf16>, vector<32x256xf32> -> vector<32x256xf32>
    %159 = vector.extract_strided_slice %9 {offsets = [1, 0], sizes = [1, 256], strides = [1, 1]} : vector<4x256xf32> to vector<1x256xf32>
    %160 = vector.broadcast %159 : vector<1x256xf32> to vector<32x256xf32>
    %161 = arith.addf %158, %160 : vector<32x256xf32>
    %162 = vector.extract_strided_slice %8 {offsets = [2, 0, 0], sizes = [1, 256, 256], strides = [1, 1, 1]} : vector<4x256x256xbf16> to vector<1x256x256xbf16>
    %163 = vector.shape_cast %162 : vector<1x256x256xbf16> to vector<256x256xbf16>
    %cst_54 = arith.constant dense<0.000000e+00> : vector<32x256xf32>
    %164 = tpu.matmul %14, %163, %cst_54 {dimension_numbers = #tpu.dot_dimension_numbers<[1], [0], [0], [1], [0, 0, 1, 1], [], []>} : vector<32x256xbf16>, vector<256x256xbf16>, vector<32x256xf32> -> vector<32x256xf32>
    %165 = vector.extract_strided_slice %9 {offsets = [2, 0], sizes = [1, 256], strides = [1, 1]} : vector<4x256xf32> to vector<1x256xf32>
    %166 = vector.broadcast %165 : vector<1x256xf32> to vector<32x256xf32>
    %167 = arith.addf %164, %166 : vector<32x256xf32>
    %168 = vector.shape_cast %155 : vector<16x256xf32> to vector<2x8x256xf32>
    %169 = arith.truncf %168 : vector<2x8x256xf32> to vector<2x8x256xbf16>
    %170 = vector.shape_cast %161 : vector<32x256xf32> to vector<2x16x256xf32>
    %171 = arith.truncf %170 : vector<2x16x256xf32> to vector<2x16x256xbf16>
    %172 = vector.shape_cast %167 : vector<32x256xf32> to vector<2x16x256xf32>
    %173 = arith.truncf %172 : vector<2x16x256xf32> to vector<2x16x256xbf16>
    %174 = vector.extract_strided_slice %169 {offsets = [0, 0, 0], sizes = [2, 8, 128], strides = [1, 1, 1]} : vector<2x8x256xbf16> to vector<2x8x128xbf16>
    %175 = vector.extract_strided_slice %171 {offsets = [0, 0, 0], sizes = [2, 16, 128], strides = [1, 1, 1]} : vector<2x16x256xbf16> to vector<2x16x128xbf16>
    "tpu.trace_start"() <{level = 10 : i32, message = "bqd,bkd->bqk"}> : () -> ()
    %cst_55 = arith.constant dense<0.000000e+00> : vector<2x8x16xf32>
    %176 = tpu.matmul %174, %175, %cst_55 {dimension_numbers = #tpu.dot_dimension_numbers<[2], [2], [1], [1], [0, 0, 0, 1, 1, 1], [0], [0]>} : vector<2x8x128xbf16>, vector<2x16x128xbf16>, vector<2x8x16xf32> -> vector<2x8x16xf32>
    "tpu.trace_stop"() : () -> ()
    %cst_56 = arith.constant 0.0883883461 : f32
    %177 = vector.broadcast %cst_56 : f32 to vector<2x8x16xf32>
    %178 = arith.mulf %176, %177 : vector<2x8x16xf32>
    %cst_57 = arith.constant dense<0xFF800000> : vector<2x8xf32>
    %179 = vector.multi_reduction <maximumf>, %178, %cst_57 [2] : vector<2x8x16xf32> to vector<2x8xf32>
    %180 = vector.shape_cast %179 : vector<2x8xf32> to vector<2x8x1xf32>
    %181 = vector.broadcast %180 : vector<2x8x1xf32> to vector<2x8x16xf32>
    %182 = arith.subf %178, %181 : vector<2x8x16xf32>
    %183 = math.exp %182 : vector<2x8x16xf32>
    %cst_58 = arith.constant dense<0.000000e+00> : vector<2x8xf32>
    %184 = vector.multi_reduction <add>, %183, %cst_58 [2] : vector<2x8x16xf32> to vector<2x8xf32>
    %185 = vector.shape_cast %184 : vector<2x8xf32> to vector<2x8x1xf32>
    %186 = tpu.reciprocal %185 : vector<2x8x1xf32> -> vector<2x8x1xf32>
    %187 = vector.broadcast %186 : vector<2x8x1xf32> to vector<2x8x16xf32>
    %188 = arith.mulf %183, %187 : vector<2x8x16xf32>
    %189 = arith.truncf %188 : vector<2x8x16xf32> to vector<2x8x16xbf16>
    %190 = vector.extract_strided_slice %173 {offsets = [0, 0, 0], sizes = [2, 16, 128], strides = [1, 1, 1]} : vector<2x16x256xbf16> to vector<2x16x128xbf16>
    "tpu.trace_start"() <{level = 10 : i32, message = "bqk,bkd->bqd"}> : () -> ()
    %cst_59 = arith.constant dense<0.000000e+00> : vector<2x8x128xf32>
    %191 = tpu.matmul %189, %190, %cst_59 {dimension_numbers = #tpu.dot_dimension_numbers<[2], [1], [1], [2], [0, 0, 0, 1, 1, 2], [0], [0]>} : vector<2x8x16xbf16>, vector<2x16x128xbf16>, vector<2x8x128xf32> -> vector<2x8x128xf32>
    "tpu.trace_stop"() : () -> ()
    %192 = vector.extract_strided_slice %169 {offsets = [0, 0, 128], sizes = [2, 8, 128], strides = [1, 1, 1]} : vector<2x8x256xbf16> to vector<2x8x128xbf16>
    %193 = vector.extract_strided_slice %171 {offsets = [0, 0, 128], sizes = [2, 16, 128], strides = [1, 1, 1]} : vector<2x16x256xbf16> to vector<2x16x128xbf16>
    "tpu.trace_start"() <{level = 10 : i32, message = "bqd,bkd->bqk"}> : () -> ()
    %cst_60 = arith.constant dense<0.000000e+00> : vector<2x8x16xf32>
    %194 = tpu.matmul %192, %193, %cst_60 {dimension_numbers = #tpu.dot_dimension_numbers<[2], [2], [1], [1], [0, 0, 0, 1, 1, 1], [0], [0]>} : vector<2x8x128xbf16>, vector<2x16x128xbf16>, vector<2x8x16xf32> -> vector<2x8x16xf32>
    "tpu.trace_stop"() : () -> ()
    %cst_61 = arith.constant 0.0883883461 : f32
    %195 = vector.broadcast %cst_61 : f32 to vector<2x8x16xf32>
    %196 = arith.mulf %194, %195 : vector<2x8x16xf32>
    %cst_62 = arith.constant dense<0xFF800000> : vector<2x8xf32>
    %197 = vector.multi_reduction <maximumf>, %196, %cst_62 [2] : vector<2x8x16xf32> to vector<2x8xf32>
    %198 = vector.shape_cast %197 : vector<2x8xf32> to vector<2x8x1xf32>
    %199 = vector.broadcast %198 : vector<2x8x1xf32> to vector<2x8x16xf32>
    %200 = arith.subf %196, %199 : vector<2x8x16xf32>
    %201 = math.exp %200 : vector<2x8x16xf32>
    %cst_63 = arith.constant dense<0.000000e+00> : vector<2x8xf32>
    %202 = vector.multi_reduction <add>, %201, %cst_63 [2] : vector<2x8x16xf32> to vector<2x8xf32>
    %203 = vector.shape_cast %202 : vector<2x8xf32> to vector<2x8x1xf32>
    %204 = tpu.reciprocal %203 : vector<2x8x1xf32> -> vector<2x8x1xf32>
    %205 = vector.broadcast %204 : vector<2x8x1xf32> to vector<2x8x16xf32>
    %206 = arith.mulf %201, %205 : vector<2x8x16xf32>
    %207 = arith.truncf %206 : vector<2x8x16xf32> to vector<2x8x16xbf16>
    %208 = vector.extract_strided_slice %173 {offsets = [0, 0, 128], sizes = [2, 16, 128], strides = [1, 1, 1]} : vector<2x16x256xbf16> to vector<2x16x128xbf16>
    "tpu.trace_start"() <{level = 10 : i32, message = "bqk,bkd->bqd"}> : () -> ()
    %cst_64 = arith.constant dense<0.000000e+00> : vector<2x8x128xf32>
    %209 = tpu.matmul %207, %208, %cst_64 {dimension_numbers = #tpu.dot_dimension_numbers<[2], [1], [1], [2], [0, 0, 0, 1, 1, 2], [0], [0]>} : vector<2x8x16xbf16>, vector<2x16x128xbf16>, vector<2x8x128xf32> -> vector<2x8x128xf32>
    "tpu.trace_stop"() : () -> ()
    %210 = tpu.concatenate %191, %209 in 2 : vector<2x8x128xf32>, vector<2x8x128xf32> -> vector<2x8x256xf32>
    %211 = vector.shape_cast %210 : vector<2x8x256xf32> to vector<16x256xf32>
    %212 = arith.truncf %211 : vector<16x256xf32> to vector<16x256xbf16>
    %213 = vector.extract_strided_slice %8 {offsets = [3, 0, 0], sizes = [1, 256, 256], strides = [1, 1, 1]} : vector<4x256x256xbf16> to vector<1x256x256xbf16>
    %214 = vector.shape_cast %213 : vector<1x256x256xbf16> to vector<256x256xbf16>
    %cst_65 = arith.constant dense<0.000000e+00> : vector<16x256xf32>
    %215 = tpu.matmul %212, %214, %cst_65 {dimension_numbers = #tpu.dot_dimension_numbers<[1], [0], [0], [1], [0, 0, 1, 1], [], []>} : vector<16x256xbf16>, vector<256x256xbf16>, vector<16x256xf32> -> vector<16x256xf32>
    %216 = vector.extract_strided_slice %9 {offsets = [3, 0], sizes = [1, 256], strides = [1, 1]} : vector<4x256xf32> to vector<1x256xf32>
    %217 = vector.broadcast %216 : vector<1x256xf32> to vector<16x256xf32>
    %218 = arith.addf %215, %217 : vector<16x256xf32>
    %219 = arith.addf %123, %218 : vector<16x256xf32>
    %220 = vector.extract_strided_slice %4 {offsets = [2, 0], sizes = [1, 256], strides = [1, 1]} : vector<3x256xf32> to vector<1x256xf32>
    %221 = vector.extract_strided_slice %5 {offsets = [2, 0], sizes = [1, 256], strides = [1, 1]} : vector<3x256xf32> to vector<1x256xf32>
    %cst_66 = arith.constant dense<0.000000e+00> : vector<16xf32>
    %222 = vector.multi_reduction <add>, %219, %cst_66 [1] : vector<16x256xf32> to vector<16xf32>
    %223 = vector.shape_cast %222 : vector<16xf32> to vector<16x1xf32>
    %cst_67 = arith.constant 2.560000e+02 : f32
    %224 = vector.broadcast %cst_67 : f32 to vector<16x1xf32>
    %225 = arith.divf %223, %224 : vector<16x1xf32>
    %226 = vector.broadcast %225 : vector<16x1xf32> to vector<16x256xf32>
    %227 = arith.subf %219, %226 : vector<16x256xf32>
    %228 = arith.mulf %227, %227 : vector<16x256xf32>
    %cst_68 = arith.constant dense<0.000000e+00> : vector<16xf32>
    %229 = vector.multi_reduction <add>, %228, %cst_68 [1] : vector<16x256xf32> to vector<16xf32>
    %230 = vector.shape_cast %229 : vector<16xf32> to vector<16x1xf32>
    %cst_69 = arith.constant 0.00392156886 : f32
    %231 = vector.broadcast %cst_69 : f32 to vector<16x1xf32>
    %232 = arith.mulf %230, %231 : vector<16x1xf32>
    %233 = math.sqrt %232 : vector<16x1xf32>
    %cst_70 = arith.constant 9.99999997E-7 : f32
    %234 = vector.broadcast %cst_70 : f32 to vector<16x1xf32>
    %235 = arith.addf %233, %234 : vector<16x1xf32>
    %236 = tpu.reciprocal %235 : vector<16x1xf32> -> vector<16x1xf32>
    %237 = vector.broadcast %225 : vector<16x1xf32> to vector<16x256xf32>
    %238 = arith.subf %219, %237 : vector<16x256xf32>
    %239 = vector.broadcast %220 : vector<1x256xf32> to vector<16x256xf32>
    %240 = arith.mulf %239, %238 : vector<16x256xf32>
    %241 = vector.broadcast %236 : vector<16x1xf32> to vector<16x256xf32>
    %242 = arith.mulf %240, %241 : vector<16x256xf32>
    %243 = vector.broadcast %221 : vector<1x256xf32> to vector<16x256xf32>
    %244 = arith.addf %242, %243 : vector<16x256xf32>
    %245 = arith.truncf %244 : vector<16x256xf32> to vector<16x256xbf16>
    %cst_71 = arith.constant dense<0.000000e+00> : vector<16x512xf32>
    %246 = tpu.matmul %245, %10, %cst_71 {dimension_numbers = #tpu.dot_dimension_numbers<[1], [0], [0], [1], [0, 0, 1, 1], [], []>} : vector<16x256xbf16>, vector<256x512xbf16>, vector<16x512xf32> -> vector<16x512xf32>
    %247 = vector.broadcast %11 : vector<1x512xf32> to vector<16x512xf32>
    %248 = arith.addf %246, %247 : vector<16x512xf32>
    %cst_72 = arith.constant 0.000000e+00 : f32
    %249 = vector.broadcast %cst_72 : f32 to vector<16x512xf32>
    %250 = arith.maximumf %248, %249 : vector<16x512xf32>
    %251 = arith.truncf %250 : vector<16x512xf32> to vector<16x512xbf16>
    %cst_73 = arith.constant dense<0.000000e+00> : vector<16x256xf32>
    %252 = tpu.matmul %251, %12, %cst_73 {dimension_numbers = #tpu.dot_dimension_numbers<[1], [0], [0], [1], [0, 0, 1, 1], [], []>} : vector<16x512xbf16>, vector<512x256xbf16>, vector<16x256xf32> -> vector<16x256xf32>
    %253 = arith.addf %219, %252 : vector<16x256xf32>
    %254 = vector.broadcast %13 : vector<1x256xf32> to vector<16x256xf32>
    %255 = arith.addf %253, %254 : vector<16x256xf32>
    %256 = vector.shape_cast %255 : vector<16x256xf32> to vector<2x8x256xf32>
    %c0_74 = arith.constant 0 : index
    %c0_75 = arith.constant 0 : index
    %c0_76 = arith.constant 0 : index
    %257 = vector.load %arg13[%c0_74, %c0_75, %c0_76] : memref<2x8x256xf32, #tpu.memory_space<vmem>>, vector<2x8x256xf32>
    tpu.vector_store %arg13[%c0_74, %c0_75, %c0_76], %256 {strides = array<i32>} : memref<2x8x256xf32, #tpu.memory_space<vmem>>, vector<2x8x256xf32>,
    return
  }
  func.func @transform_0(%arg0: i32) -> (i32, i32, i32) {
    %c0_i32 = arith.constant 0 : i32
    %c0_i32_0 = arith.constant 0 : i32
    %c0_i32_1 = arith.constant 0 : i32
    return %arg0, %c0_i32, %c0_i32_0 : i32, i32, i32
  }
  func.func @transform_1(%arg0: i32) -> (i32, i32, i32) {
    %c0_i32 = arith.constant 0 : i32
    %c0_i32_0 = arith.constant 0 : i32
    %c0_i32_1 = arith.constant 0 : i32
    return %arg0, %c0_i32, %c0_i32_0 : i32, i32, i32
  }
  func.func @transform_2(%arg0: i32) -> (i32, i32) {
    %c0_i32 = arith.constant 0 : i32
    %c0_i32_0 = arith.constant 0 : i32
    %c0_i32_1 = arith.constant 0 : i32
    return %c0_i32, %c0_i32_0 : i32, i32
  }
  func.func @transform_3(%arg0: i32) -> (i32, i32) {
    %c0_i32 = arith.constant 0 : i32
    %c0_i32_0 = arith.constant 0 : i32
    %c0_i32_1 = arith.constant 0 : i32
    return %c0_i32, %c0_i32_0 : i32, i32
  }
  func.func @transform_4(%arg0: i32) -> (i32, i32, i32) {
    %c0_i32 = arith.constant 0 : i32
    %c0_i32_0 = arith.constant 0 : i32
    %c0_i32_1 = arith.constant 0 : i32
    %c0_i32_2 = arith.constant 0 : i32
    return %c0_i32, %c0_i32_0, %c0_i32_1 : i32, i32, i32
  }
  func.func @transform_5(%arg0: i32) -> (i32, i32) {
    %c0_i32 = arith.constant 0 : i32
    %c0_i32_0 = arith.constant 0 : i32
    %c0_i32_1 = arith.constant 0 : i32
    return %c0_i32, %c0_i32_0 : i32, i32
  }
  func.func @transform_6(%arg0: i32) -> (i32, i32, i32) {
    %c0_i32 = arith.constant 0 : i32
    %c0_i32_0 = arith.constant 0 : i32
    %c0_i32_1 = arith.constant 0 : i32
    %c0_i32_2 = arith.constant 0 : i32
    return %c0_i32, %c0_i32_0, %c0_i32_1 : i32, i32, i32
  }
  func.func @transform_7(%arg0: i32) -> (i32, i32) {
    %c0_i32 = arith.constant 0 : i32
    %c0_i32_0 = arith.constant 0 : i32
    %c0_i32_1 = arith.constant 0 : i32
    return %c0_i32, %c0_i32_0 : i32, i32
  }
  func.func @transform_8(%arg0: i32) -> (i32, i32) {
    %c0_i32 = arith.constant 0 : i32
    %c0_i32_0 = arith.constant 0 : i32
    %c0_i32_1 = arith.constant 0 : i32
    return %c0_i32, %c0_i32_0 : i32, i32
  }
  func.func @transform_9(%arg0: i32) -> (i32, i32) {
    %c0_i32 = arith.constant 0 : i32
    %c0_i32_0 = arith.constant 0 : i32
    %c0_i32_1 = arith.constant 0 : i32
    return %c0_i32, %c0_i32_0 : i32, i32
  }
  func.func @transform_10(%arg0: i32) -> (i32, i32) {
    %c0_i32 = arith.constant 0 : i32
    %c0_i32_0 = arith.constant 0 : i32
    %c0_i32_1 = arith.constant 0 : i32
    return %c0_i32, %c0_i32_0 : i32, i32
  }
  func.func @transform_11(%arg0: i32) -> (i32, i32) {
    %c0_i32 = arith.constant 0 : i32
    %c0_i32_0 = arith.constant 0 : i32
    %c0_i32_1 = arith.constant 0 : i32
    return %c0_i32, %c0_i32_0 : i32, i32
  }
  func.func @transform_12(%arg0: i32) -> (i32, i32, i32) {
    %c0_i32 = arith.constant 0 : i32
    %c0_i32_0 = arith.constant 0 : i32
    %c0_i32_1 = arith.constant 0 : i32
    return %arg0, %c0_i32, %c0_i32_0 : i32, i32, i32
  }
}

</mosaic_0001>

<bundles_post_ra>
// kernel: tpu_custom_call.1
= control target key start
LH: loop header
LB: loop body
LE: loop exit
PB: predicated region body
PF: predicated region fallthrough
CT: control target
= control target key end

     0   :  { %s7421_s0 = inlined_call_operand.hbm [shape: f32[4,8,256], index: 0, kind: input, shape index: {}]   ;;  %s7422_s1 = inlined_call_operand.hbm [shape: f32[4,16,256], index: 1, kind: input, shape index: {}]   ;;  %s7423_s2 = inlined_call_operand.hbm [shape: f32[3,256], index: 2, kind: input, shape index: {}]   ;;  %s7424_s3 = inlined_call_operand.hbm [shape: f32[3,256], index: 3, kind: input, shape index: {}]   ;;  %s7425_s4 = inlined_call_operand.hbm [shape: bf16[4,256,256], index: 4, kind: input, shape index: {}]   ;;  %s7426_s5 = inlined_call_operand.vmem [shape: f32[4,256], index: 5, kind: input, shape index: {}]   ;;  %s7427_s6 = inlined_call_operand.hbm [shape: bf16[4,256,256], index: 6, kind: input, shape index: {}]   ;;  %s7428_s7 = inlined_call_operand.hbm [shape: f32[4,256], index: 7, kind: input, shape index: {}]   ;;  %s7429_s8 = inlined_call_operand.hbm [shape: bf16[256,512], index: 8, kind: input, shape index: {}]   ;;  %s7430_s9 = inlined_call_operand.vmem [shape: f32[1,512], index: 9, kind: input, shape index: {}]   ;;  %s7431_s10 = inlined_call_operand.hbm [shape: bf16[512,256], index: 10, kind: input, shape index: {}]   ;;  %s7432_s11 = inlined_call_operand.vmem [shape: f32[1,256], index: 11, kind: input, shape index: {}]   ;;  %s7433_s12 = inlined_call_operand.hbm [shape: f32[4,8,256], index: 12, kind: output, shape index: {}]  }
   0x1   :  { %7446 = sst [smem:[#allocation27_spill]] %s7421_s0 }
   0x2   :  { %7447 = sst [smem:[#allocation28_spill]] %s7423_s2 }
   0x3   :  { %7448 = sst [smem:[#allocation29_spill]] %s7424_s3 }
   0x4   :  { %7449 = sst [smem:[#allocation30_spill]] %s7425_s4 }
   0x5   :  { %7450 = sst [smem:[#allocation31_spill]] %s7427_s6 }
   0x6   :  { %7451 = sst [smem:[#allocation32_spill]] %s7428_s7 }
   0x7   :  { %7452 = sst [smem:[#allocation33_spill]] %s7429_s8 }
   0x8   :  { %7453 = sst [smem:[#allocation34_spill]] %s7431_s10 }
   0x9   :  { %17 = vsyncpa [#allocation3], 0 }
   0xa   :  { %19 = vsyncpa [#allocation3 + $0x1], 0 }
   0xb   :  { %20 = vsyncpa [#allocation6], 0 }
   0xc   :  { %22 = vsyncpa [#allocation6 + $0x1], 0 }
   0xd   :  { %23 = vsyncpa [#allocation9], 0 }
   0xe   :  { %24 = vsyncpa [#allocation12], 0 }
   0xf   :  { %25 = vsyncpa [#allocation15], 0 }
  0x10   :  { %26 = vsyncpa [#allocation4], 0 }
  0x11   :  { %28 = vsyncpa [#allocation4 + $0x1], 0  ;;  %s6661_s21 = smov 0   ;;  %s6663_s22 = smov 0  }
  0x12   :  { %s6665_s23 = smov 0   ;;  %s6667_s24 = smov 0  }
  0x13 LB: > { %7454 = sst [smem:[#allocation25_spill]] %s6572_s23  ;;  %s6578_s25 = smov [#allocation7]   ;;  %s6576_s24 = sphi %s6667_s24, %s7494_s24   ;;  %s6572_s23 = sphi %s6665_s23, %s7491_s23   ;;  %s6568_s22 = sphi %s6663_s22, %s7493_s22   ;;  %s6564_s21 = sphi %s6661_s21, %s7492_s21  }
  0x14   : > { %s340_s26 = sshll.u32 %s6578_s25, 4  ;;  %s6682_s27 = sadd.s32 4294967295, %s6576_s24   ;;  %s341_s26 = int_to_ptr.vmem [resolvable:$true] %s340_s26 }
  0x15   : > { %p4924_p0 = scmp.ge.s32.totalorder %s6576_s24, 1  ;;  %p7434_p1 = scmp.eq.s32.totalorder %s6682_s27, 0 }
  0x16   : > { %p327_p2 = scmp.lt.s32.totalorder %s6576_s24, 3  ;;  %s6579_s29 = smov [#allocation8]  }
  0x17   : > { %s351_s30 = sshll.u32 %s6579_s29, 4  ;;  %s6580_s14 = smov [#allocation11]   ;;  %s352_s30 = int_to_ptr.vmem [resolvable:$true] %s351_s30 }
  0x18   : > { %p6687_p3 = pnand %p4924_p0, %p327_p2  ;;  %s377_s15 = sshll.u32 %s6580_s14, 4  ;;  %s6700_s15 = int_to_ptr.vmem [resolvable:$true] %s377_s15 }
  0x19   : > { %s6265_s17 = scalar_lea.vmem %s341_s26, 128  ;;  %p6273_p11 = scmp.lt.s32.totalorder %s341_s26, %s341_s26 }
  0x1a   : > { %s7455_s28 = scalar_select %p6687_p3, 1, 0 }
  0x1b   : > { %p5518_p5 = pneg %p6687_p3  ;;  %p6266_p8 = scmp.ne.s32.totalorder %s341_s26, %s6265_s17 }
  0x1c   : > { %p6274_p12 = scmp.lt.s32.totalorder %s6265_s17, %s6265_s17 }
  0x1d   : > { %p6696_p6 = pnand %p5518_p5, %p7434_p1 }
  0x1e   : > { %p6275_p13 = por %p6274_p12, %p6273_p11 }
  0x1f   : > { %p6704_p7 = pneg %p6696_p6 }
  0x21   : > { %p6268_p9 = pnand %p6266_p8, %p6704_p7 }
  0x23   : > { %p6269_p10 = pneg %p6268_p9 }
  0x25   : > { %p6276_p0 = pnand %p6275_p13, %p6269_p10 }
  0x27   : > { %6279 = shalt.err (!%p6276_p0)
}
  0x28   : > { %s7458_s2 = sld [smem:[#allocation28_spill]]  ;;  %s6291_s20 = scalar_lea.vmem %s352_s30, 128 }
  0x29   : > { %p6292_p2 = scmp.ne.s32.totalorder %s352_s30, %s6291_s20  ;;  %p6299_p1 = scmp.lt.s32.totalorder %s352_s30, %s352_s30 }
  0x2a   : > { %p6300_p8 = scmp.lt.s32.totalorder %s6291_s20, %s6291_s20 }
  0x2b   : > { %p6294_p5 = pnand %p6292_p2, %p6704_p7 }
  0x2c   : > { %p6301_p9 = por %p6300_p8, %p6299_p1 }
  0x2d   : > { %p6295_p4 = pneg %p6294_p5 }
  0x2e   : > { %5521 = dma.hbm_to_vmem [thread:$0]  (!%p6696_p6), %s7458_s2, 128, %s341_s26, [#allocation6]  }
  0x2f   : > { %p6302_p3 = pnand %p6301_p9, %p6295_p4 }
  0x31   : > { %6305 = shalt.err (!%p6302_p3)
}
  0x32   : > { %s7459_s3 = sld [smem:[#allocation29_spill]]  ;;  %s6317_s26 = scalar_lea.vmem %s6700_s15, 16384 }
  0x33   : > { %p6318_p10 = scmp.ne.s32.totalorder %s6700_s15, %s6317_s26  ;;  %p6325_p13 = scmp.lt.s32.totalorder %s6700_s15, %s6700_s15 }
  0x34   : > { %p6326_p1 = scmp.lt.s32.totalorder %s6317_s26, %s6317_s26 }
  0x35   : > { %p6320_p11 = pnand %p6318_p10, %p6704_p7 }
  0x36   : > { %p6327_p4 = por %p6326_p1, %p6325_p13 }
  0x37   : > { %p6321_p12 = pneg %p6320_p11 }
  0x38   : > { %5524 = dma.hbm_to_vmem [thread:$0]  (!%p6696_p6), %s7459_s3, 128, %s352_s30, [#allocation9]  }
  0x39   : > { %p6328_p3 = pnand %p6327_p4, %p6321_p12 }
  0x3b   : > { %6331 = shalt.err (!%p6328_p3)
}
  0x3c   : > { %s7436_s14 = smov 128   ;;  %s7438_s17 = smov 8  }
  0x3d   : > { %s7460_s6 = sld [smem:[#allocation31_spill]]  ;;  %s6583_s19 = smov [#allocation14]  }
  0x3e   : > { %s401_s20 = sshll.u32 %s6583_s19, 4  ;;  %s402_s20 = int_to_ptr.vmem [resolvable:$true] %s401_s20 }
  0x3f   : > { %s6343_s25 = scalar_lea.vmem %s402_s20, 8192  ;;  %p6351_p8 = scmp.lt.s32.totalorder %s402_s20, %s402_s20 }
  0x40   : > { %p6344_p0 = scmp.ne.s32.totalorder %s402_s20, %s6343_s25  ;;  %p6352_p9 = scmp.lt.s32.totalorder %s6343_s25, %s6343_s25 }
  0x42   : > { %p6346_p2 = pnand %p6344_p0, %p6704_p7  ;;  %p6353_p10 = por %p6352_p9, %p6351_p8 }
  0x43   : > { %5530 = dma.hbm_to_vmem [thread:$0]  (!%p6696_p6), %s7460_s6, 16384, %s6700_s15, [#allocation12], %s7436_s14, %s7436_s14, %s7438_s17  }
  0x44   : > { %p6347_p5 = pneg %p6346_p2 }
  0x46   : > { %p6354_p11 = pnand %p6353_p10, %p6347_p5 }
  0x48   : > { %6357 = shalt.err (!%p6354_p11)
}
  0x49   : > { %s7440_s29 = smov 256   ;;  %s7442_s26 = smov 16  }
  0x4a   : > { %s7461_s8 = sld [smem:[#allocation33_spill]]  ;;  %s6586_s18 = smov [#allocation10]  }
  0x4b   : > { %s361_s19 = sshll.u32 %s6586_s18, 4  ;;  %s6587_s14 = smov [#allocation13]   ;;  %s362_s19 = int_to_ptr.vmem [resolvable:$true] %s361_s19 }
  0x4c   : > { %s391_s17 = sshll.u32 %s6587_s14, 4  ;;  %s6369_s25 = scalar_lea.vmem %s362_s19, 16384  ;;  %s392_s17 = int_to_ptr.vmem [resolvable:$true] %s391_s17 }
  0x4d   : > { %p6370_p12 = scmp.ne.s32.totalorder %s362_s19, %s6369_s25  ;;  %p6377_p4 = scmp.lt.s32.totalorder %s362_s19, %s362_s19 }
  0x4e   : > { %p6378_p3 = scmp.lt.s32.totalorder %s6369_s25, %s6369_s25 }
  0x4f   : > { %p6372_p13 = pnand %p6370_p12, %p6704_p7 }
  0x50   : > { %5536 = dma.hbm_to_vmem [thread:$0]  (!%p6696_p6), %s7461_s8, 8192, %s402_s20, [#allocation15], %s7440_s29, %s7440_s29, %s7442_s26  }
  0x51   : > { %p6373_p1 = pneg %p6372_p13  ;;  %p6379_p0 = por %p6378_p3, %p6377_p4 }
  0x53   : > { %p6380_p2 = pnand %p6379_p0, %p6373_p1 }
  0x55   : > { %6383 = shalt.err (!%p6380_p2)
}
  0x56   : > { %s7462_s15 = smov 8   ;;  %s7463_s20 = smov 128  }
  0x57   : > { %s7464_s4 = sld [smem:[#allocation30_spill]]  ;;  %s6395_s14 = scalar_lea.vmem %s392_s17, 128 }
  0x58   : > { %p6396_p5 = scmp.ne.s32.totalorder %s392_s17, %s6395_s14  ;;  %p6403_p10 = scmp.lt.s32.totalorder %s392_s17, %s392_s17 }
  0x59   : > { %p6404_p11 = scmp.lt.s32.totalorder %s6395_s14, %s6395_s14 }
  0x5a   : > { %p6398_p8 = pnand %p6396_p5, %p6704_p7 }
  0x5b   : > { %p6405_p12 = por %p6404_p11, %p6403_p10 }
  0x5c   : > { %p6399_p9 = pneg %p6398_p8 }
  0x5d   : > { %5527 = dma.hbm_to_vmem [thread:$0]  (!%p6696_p6), %s7464_s4, 16384, %s362_s19, [#allocation9], %s7463_s20, %s7463_s20, %s7462_s15  }
  0x5e   : > { %p6406_p13 = pnand %p6405_p12, %p6399_p9 }
  0x60   : > { %6409 = shalt.err (!%p6406_p13)
}
  0x61   : > { %s7465_s7 = sld [smem:[#allocation32_spill]]  ;;  %s6588_s30 = smov [#allocation16]  }
  0x62   : > { %s417_s18 = sshll.u32 %s6588_s30, 4  ;;  %s418_s18 = int_to_ptr.vmem [resolvable:$true] %s417_s18 }
  0x63   : > { %s6421_s19 = scalar_lea.vmem %s418_s18, 8192  ;;  %p6429_p0 = scmp.lt.s32.totalorder %s418_s18, %s418_s18 }
  0x64   : > { %p6422_p1 = scmp.ne.s32.totalorder %s418_s18, %s6421_s19  ;;  %p6430_p2 = scmp.lt.s32.totalorder %s6421_s19, %s6421_s19 }
  0x66   : > { %p6424_p4 = pnand %p6422_p1, %p6704_p7  ;;  %p6431_p5 = por %p6430_p2, %p6429_p0 }
  0x67   : > { %5533 = dma.hbm_to_vmem [thread:$0]  (!%p6696_p6), %s7465_s7, 128, %s392_s17, [#allocation12]  }
  0x68   : > { %p6425_p3 = pneg %p6424_p4 }
  0x6a   : > { %p6432_p8 = pnand %p6431_p5, %p6425_p3 }
  0x6c   : > { %6435 = shalt.err (!%p6432_p8)
}
  0x6d   : > { %s7466_s10 = sld [smem:[#allocation34_spill]]  ;;  %s4923_s13 = sadd.s32 4294967294, %s6576_s24  }
  0x6e   : > { %s6776_s16 = sadd.s32 1, %s6576_s24   ;;  %s41_s14 = sadd.s32 1, %s6572_s23 }
  0x6f   : > { %s38_s25 = ssub.s32 %s6576_s24, %s6776_s16  ;;  %p48_p7 = scmp.ne.s32.totalorder %s6572_s23, %s6568_s22 }
  0x70   : > { %p39_p9 = scmp.eq.s32.totalorder %s38_s25, 0  ;;  %p49_p10 = scmp.eq.s32.totalorder %s6576_s24, 0 }
  0x71   : > { %p54_p11 = scmp.ne.s32.totalorder %s6568_s22, %s6564_s21  ;;  %p314_p12 = scmp.eq.s32.totalorder %s6682_s27, 1 }
  0x72   : > { %s6788_s30 = scalar_select %p39_p9, %s6572_s23, %s41_s14  }
  0x73   : > { %5539 = dma.hbm_to_vmem [thread:$0]  (!%p6696_p6), %s7466_s10, 8192, %s418_s18, [#allocation15], %s7463_s20, %s7463_s20, %s7462_s15  }
  0x74   : > { %7467 = sst [smem:[#allocation26_spill]] %s6788_s30  ;;  %p50_p13 = por %p49_p10, %p48_p7 }
  0x75   : > { %p7468_p1 = scmp.eq.s32.totalorder %s6682_s27, 0  ;;  %p6796_p6 = por %p314_p12, %p48_p7 }
  0x76   : > { %p320_p3 = scmp.eq.s32.totalorder %s4923_s13, 1  ;;  %p5558_p0 = scmp.lt.s32.totalorder %s6576_s24, 2 }
  0x77   : > { %p6792_p4 = por %p7468_p1, %p54_p11  ;;  %s6802_s18 = sand.u32 1, %s6572_s23  }
  0x78   : > { %s7470_s20 = scalar_select %p6796_p6, 1, 0 }
  0x79   : > { %p6804_p2 = por %p320_p3, %p54_p11  ;;  %s4933_s29 = sshll.u32 %s6802_s18, 5 }
  0x7a   : > { %s5351_s17 = sshll.u32 %s6576_s24, 9  ;;  %s7472_s0 = sld [smem:[#allocation27_spill]] }
  0x7b   : > { %s7471_s19 = scalar_select %p6804_p2, 1, 0 }
  0x7c   : > { %s438_s13 = scalar_lea.vmem [#allocation2], %s4933_s29  ;;  %p6815_p5 = pnand %p5558_p0, %p50_p13 }
  0x7d   : > { %s446_s2 = sshll.u32 %s438_s13, 4  ;;  %s6819_s2 = int_to_ptr.vmem [resolvable:$true] %s446_s2 }
  0x7e   : > { %p6438_p7 = pneg %p6815_p5 }
  0x80   : > { %s6813_s26 = scalar_lea.hbm %s7472_s0, %s5351_s17  ;;  %s6441_s14 = scalar_lea.hbm %s7472_s0, 1024 }
  0x81   : > { %s6436_s7 = scalar_lea.hbm %s6813_s26, 512  ;;  %p6442_p11 = scmp.lt.s32.totalorder %s6813_s26, %s7472_s0 }
  0x82   : > { %p6437_p8 = scmp.ne.s32.totalorder %s6813_s26, %s6436_s7  ;;  %p6443_p12 = scmp.lt.s32.totalorder %s6441_s14, %s6436_s7 }
  0x84   : > { %p6439_p9 = pnand %p6438_p7, %p6437_p8  ;;  %p6444_p13 = por %p6443_p12, %p6442_p11 }
  0x86   : > { %p6440_p10 = pneg %p6439_p9 }
  0x88   : > { %p6445_p1 = pnand %p6444_p13, %p6440_p10 }
  0x8a   : > { %6448 = shalt.err (!%p6445_p1)
}
  0x8b   : > { %s6449_s4 = scalar_lea.vmem %s6819_s2, 512  ;;  %s6589_s29 = smov [#allocation2]  }
  0x8c   : > { %p6450_p3 = scmp.ne.s32.totalorder %s6819_s2, %s6449_s4  ;;  %s6454_s17 = sshll.u32 %s6589_s29, 4  ;;  %s6455_s17 = int_to_ptr.vmem [resolvable:$false] %s6454_s17 }
  0x8d   : > { %s6456_s6 = scalar_lea.vmem %s6455_s17, 1024  ;;  %p6457_p9 = scmp.lt.s32.totalorder %s6819_s2, %s6455_s17 }
  0x8e   : > { %p6452_p0 = pnand %p6450_p3, %p6438_p7  ;;  %p6458_p2 = scmp.lt.s32.totalorder %s6456_s6, %s6449_s4 }
  0x90   : > { %p6453_p8 = pneg %p6452_p0  ;;  %p6459_p6 = por %p6458_p2, %p6457_p9 }
  0x92   : > { %p6460_p11 = pnand %p6459_p6, %p6453_p8 }
  0x94   : > { %6463 = shalt.err (!%p6460_p11)
}
  0x95   : > { %s7474_s7 = smov 16   ;;  %s7475_s14 = smov 256  }
  0x96   : > { %s7476_s25 = scalar_lea.sflag [#allocation3], %s6802_s18  ;;  %s4937_s13 = sshll.u32 %s6802_s18, 6 }
  0x97   : > { %5543 = dma.hbm_to_vmem [thread:$0]  (!%p6815_p5), %s6813_s26, 512, %s6819_s2, %s7476_s25, %s7475_s14, %s7475_s14, %s7474_s7  }
  0x98   : > { %s5353_s29 = sshll.u32 %s6576_s24, 10  ;;  %s460_s0 = scalar_lea.vmem [#allocation5], %s4937_s13 }
  0x99   : > { %s6857_s17 = scalar_lea.hbm %s7422_s1, %s5353_s29  ;;  %s468_s8 = sshll.u32 %s460_s0, 4  ;;  %s6859_s8 = int_to_ptr.vmem [resolvable:$true] %s468_s8 }
  0x9a   : > { %s7477_s10 = sand.u32 1, %s6576_s24   ;;  %s6464_s23 = scalar_lea.hbm %s6857_s17, 1024 }
  0x9b   : > { %s457_s30 = scalar_lea.sflag [#allocation6], %s7477_s10  ;;  %p6465_p6 = scmp.ne.s32.totalorder %s6857_s17, %s6464_s23 }
  0x9c   : > { %s6469_s18 = scalar_lea.hbm %s7422_s1, 2048  ;;  %p6470_p12 = scmp.lt.s32.totalorder %s6857_s17, %s7422_s1 }
  0x9d   : > { %p6467_p2 = pnand %p6465_p6, %p6438_p7  ;;  %p6471_p13 = scmp.lt.s32.totalorder %s6469_s18, %s6464_s23 }
  0x9f   : > { %p6468_p10 = pneg %p6467_p2  ;;  %p6472_p1 = por %p6471_p13, %p6470_p12 }
  0xa1   : > { %p6473_p3 = pnand %p6472_p1, %p6468_p10 }
  0xa3   : > { %6476 = shalt.err (!%p6473_p3)
}
  0xa4   : > { %s6477_s0 = scalar_lea.vmem %s6859_s8, 1024  ;;  %s6590_s10 = smov [#allocation5]  }
  0xa5   : > { %p6478_p0 = scmp.ne.s32.totalorder %s6859_s8, %s6477_s0  ;;  %s6482_s13 = sshll.u32 %s6590_s10, 4  ;;  %s6483_s13 = int_to_ptr.vmem [resolvable:$false] %s6482_s13 }
  0xa6   : > { %s6484_s4 = scalar_lea.vmem %s6483_s13, 2048  ;;  %p6485_p11 = scmp.lt.s32.totalorder %s6859_s8, %s6483_s13 }
  0xa7   : > { %p6480_p8 = pnand %p6478_p0, %p6438_p7  ;;  %p6486_p6 = scmp.lt.s32.totalorder %s6484_s4, %s6477_s0 }
  0xa9   : > { %p6481_p9 = pneg %p6480_p8  ;;  %p6487_p2 = por %p6486_p6, %p6485_p11 }
  0xab   : > { %p6488_p12 = pnand %p6487_p2, %p6481_p9 }
  0xad   : > { %6491 = shalt.err (!%p6488_p12)
}
  0xae   : > { %5546 = dma.hbm_to_vmem [thread:$0]  (!%p6815_p5), %s6857_s17, 1024, %s6859_s8, %s457_s30, %s7475_s14, %s7475_s14, %s7474_s7  }
  0xaf   : > { %p7478_p7 = scmp.ne.s32.totalorder %s7455_s28, 0 }
  0xb0   : > { %s6891_s23 = sand.u32 (!%p7478_p7), 1, %s6568_s22  }
  0xb1   : > { %480 = sbr.rel (%p7478_p7) target bundleno = 4901 (0x1325), region = 68  ;;  %s4942_s6 = sshll.u32 (!%p7478_p7), %s6891_s23, 5 }
  0xb2   : > { %s483_s2 = scalar_lea.sflag (!%p7478_p7), [#allocation3], %s6891_s23  ;;  %s6897_s3 = scalar_lea.vmem (!%p7478_p7), [#allocation2], %s4942_s6 }
  0xb6   : > { %6535 = dma.done.wait (%p6792_p4), %s483_s2, 512  }
  0xb7   : > { %6537 = vsyncadd (%p6792_p4), %s483_s2, 4294966784  ;;  %s491_s8 = sand.u32 1, %s6682_s27   ;;  %s4943_s28 = sshll.u32 %s6891_s23, 6 }
  0xb8   : > { %s492_s30 = scalar_lea.sflag [#allocation6], %s491_s8  ;;  %s6905_s7 = scalar_lea.vmem [#allocation5], %s4943_s28 }
  0xb9   : > { %6539 = dma.done.wait (%p6792_p4), %s492_s30, 1024  }
  0xba   : > { %6541 = vsyncadd (%p6792_p4), %s492_s30, 4294966272  ;;  %p7479_p5 = scmp.eq.s32.totalorder %s6682_s27, 0 }
  0xbc   : > { %6543 = dma.done.wait (%p7479_p5), [#allocation6], 128   ;;  %p7480_p10 = pmov %p7479_p5 }
  0xbd   : > { %p7481_p13 = pmov %p7479_p5 }
  0xbe   : > { %6545 = vsyncadd (%p7480_p10), [#allocation6], 4294967168 }
  0xbf   : > { %6547 = dma.done.wait (%p7481_p13), [#allocation9], 16512   ;;  %p7482_p1 = pmov %p7479_p5 }
  0xc1   : > { %6549 = vsyncadd (%p7482_p1), [#allocation9], 4294950784  ;;  %p7483_p3 = pmov %p7482_p1 }
  0xc2   : > { %p7484_p0 = pmov %p7482_p1 }
  0xc3   : > { %6551 = dma.done.wait (%p7483_p3), [#allocation12], 16512  }
  0xc4   : > { %6553 = vsyncadd (%p7484_p0), [#allocation12], 4294950784  ;;  %p7485_p4 = pmov %p7484_p0 }
  0xc5   : > { %p7486_p8 = pmov %p7484_p0 }
  0xc6   : > { %6555 = dma.done.wait (%p7485_p4), [#allocation15], 16384  }
  0xc7   : > { %6557 = vsyncadd (%p7486_p8), [#allocation15], 4294950912  ;;  %v573_v0 = vld [vmem:[%s6897_s3] sm:$0xff]  ;;  %v574_v1 = vld [vmem:[%s6897_s3 + $0x8] sm:$0xff]  ;;  %vm6592_vm4 = vmmov 0   ;;  %vm1869_vm5 = vcmask 1043456  }
  0xc8   : > { %v575_v2 = vld [vmem:[%s6897_s3 + $0x10] sm:$0xff]  ;;  %v979_v3 = vadd.f32 %v574_v1, %v573_v0  ;;  %v576_v4 = vld [vmem:[%s6897_s3 + $0x18] sm:$0xff]  ;;  %v5614_v6 = vld [vmem:[#allocation10 + $0x74] ss:$8 sps:$4 sm:$0xff]   ;;  %vm1841_vm7 = vcmask 64512   ;;  %vm3256_vm12 = vcmask 130048  }
  0xc9   : > { %v982_v5 = vadd.f32 %v576_v4, %v575_v2  ;;  %v5616_v7 = vld [vmem:[#allocation10 + $0x70] ss:$8 sps:$4 sm:$0xff]   ;;  %v5617_v8 = vld [vmem:[#allocation10 + $0x174] ss:$8 sps:$4 sm:$0xff]   ;;  %v5620_v10 = vld [vmem:[#allocation10 + $0x64] ss:$8 sps:$4 sm:$0xff]   ;;  %1253 = vmatprep.subr.bf16.mxu0 %v5614_v6 }
  0xca   : > { %980 = vadd.xlane.f32.xlu0 %v979_v3  ;;  %v5619_v9 = vld [vmem:[#allocation10 + $0x170] ss:$8 sps:$4 sm:$0xff]   ;;  %1474 = vmatprep.subr.bf16.mxu1 %v5617_v8  ;;  %v5623_v11 = vld [vmem:[#allocation10 + $0x164] ss:$8 sps:$4 sm:$0xff]   ;;  %v5622_v12 = vld [vmem:[#allocation10 + $0x60] ss:$8 sps:$4 sm:$0xff]  }
  0xcb   : > { %1254 = vmatpush1.bf16.msra.mxu0 %v5616_v7  ;;  %1475 = vmatpush1.bf16.msra.mxu1 %v5619_v9  ;;  %v5625_v13 = vld [vmem:[#allocation10 + $0x160] ss:$8 sps:$4 sm:$0xff]   ;;  %v5626_v14 = vld [vmem:[#allocation10 + $0x54] ss:$8 sps:$4 sm:$0xff]   ;;  %v5628_v16 = vld [vmem:[#allocation10 + $0x50] ss:$8 sps:$4 sm:$0xff]  }
  0xcc   : > { %1255 = vmatprep.subr.bf16.mxu0 %v5620_v10  ;;  %1476 = vmatprep.subr.bf16.mxu1 %v5623_v11  ;;  %v5629_v15 = vld [vmem:[#allocation10 + $0x154] ss:$8 sps:$4 sm:$0xff]   ;;  %v5631_v17 = vld [vmem:[#allocation10 + $0x150] ss:$8 sps:$4 sm:$0xff]   ;;  %v5632_v18 = vld [vmem:[#allocation10 + $0x44] ss:$8 sps:$4 sm:$0xff]  }
  0xcd   : > { %v5635_v19 = vld [vmem:[#allocation10 + $0x144] ss:$8 sps:$4 sm:$0xff]   ;;  %v5634_v20 = vld [vmem:[#allocation10 + $0x40] ss:$8 sps:$4 sm:$0xff]   ;;  %v5638_v22 = vld [vmem:[#allocation10 + $0x34] ss:$8 sps:$4 sm:$0xff]  }
  0xce   : > { %983 = vadd.xlane.f32.xlu0 %v982_v5  ;;  %v5637_v21 = vld [vmem:[#allocation10 + $0x140] ss:$8 sps:$4 sm:$0xff]   ;;  %v5641_v23 = vld [vmem:[#allocation10 + $0x134] ss:$8 sps:$4 sm:$0xff]   ;;  %v5640_v24 = vld [vmem:[#allocation10 + $0x30] ss:$8 sps:$4 sm:$0xff]  }
  0xcf   : > { %1256 = vmatpush1.bf16.msra.mxu0 %v5622_v12  ;;  %1477 = vmatpush1.bf16.msra.mxu1 %v5625_v13  ;;  %v5643_v39 = vld [vmem:[#allocation10 + $0x130] ss:$8 sps:$4 sm:$0xff]   ;;  %v5644_v40 = vld [vmem:[#allocation10 + $0x24] ss:$8 sps:$4 sm:$0xff]   ;;  %v5646_v41 = vld [vmem:[#allocation10 + $0x20] ss:$8 sps:$4 sm:$0xff]  }
  0xd0   : > { %1257 = vmatprep.subr.bf16.mxu0 %v5626_v14  ;;  %1478 = vmatprep.subr.bf16.mxu1 %v5629_v15  ;;  %v5647_v42 = vld [vmem:[#allocation10 + $0x124] ss:$8 sps:$4 sm:$0xff]   ;;  %v5649_v43 = vld [vmem:[#allocation10 + $0x120] ss:$8 sps:$4 sm:$0xff]   ;;  %v5650_v44 = vld [vmem:[#allocation10 + $0x14] ss:$8 sps:$4 sm:$0xff]  }
  0xd1   : > { %v5652_v45 = vld [vmem:[#allocation10 + $0x10] ss:$8 sps:$4 sm:$0xff]   ;;  %v5653_v46 = vld [vmem:[#allocation10 + $0x114] ss:$8 sps:$4 sm:$0xff]   ;;  %v5656_v48 = vld [vmem:[#allocation10 + $0x4] ss:$8 sps:$4 sm:$0xff]  }
  0xd2   : > { %v5655_v47 = vld [vmem:[#allocation10 + $0x110] ss:$8 sps:$4 sm:$0xff]   ;;  %v5658_v49 = vld [vmem:[#allocation10] ss:$8 sps:$4 sm:$0xff]   ;;  %v5659_v50 = vld [vmem:[#allocation10 + $0x104] ss:$8 sps:$4 sm:$0xff]  }
  0xd3   : > { %1258 = vmatpush1.bf16.msra.mxu0 %v5628_v16  ;;  %1479 = vmatpush1.bf16.msra.mxu1 %v5631_v17  ;;  %v5661_v51 = vld [vmem:[#allocation10 + $0x100] ss:$8 sps:$4 sm:$0xff]   ;;  %v5662_v52 = vld [vmem:[#allocation10 + $0xf4] ss:$8 sps:$4 sm:$0xff]   ;;  %v5664_v53 = vld [vmem:[#allocation10 + $0xf0] ss:$8 sps:$4 sm:$0xff]  }
  0xd4   : > { %1259 = vmatprep.subr.bf16.mxu0 %v5632_v18  ;;  %1480 = vmatprep.subr.bf16.mxu1 %v5635_v19  ;;  %v5665_v54 = vld [vmem:[#allocation10 + $0x1f4] ss:$8 sps:$4 sm:$0xff]   ;;  %v5667_v55 = vld [vmem:[#allocation10 + $0x1f0] ss:$8 sps:$4 sm:$0xff]   ;;  %v5668_v56 = vld [vmem:[#allocation10 + $0xe4] ss:$8 sps:$4 sm:$0xff]  }
  0xd5   : > { %v5670_v57 = vld [vmem:[#allocation10 + $0xe0] ss:$8 sps:$4 sm:$0xff]   ;;  %v5671_v58 = vld [vmem:[#allocation10 + $0x1e4] ss:$8 sps:$4 sm:$0xff]   ;;  %v5674_v60 = vld [vmem:[#allocation10 + $0xd4] ss:$8 sps:$4 sm:$0xff]  }
  0xd6   : > { %v5673_v59 = vld [vmem:[#allocation10 + $0x1e0] ss:$8 sps:$4 sm:$0xff]   ;;  %v5676_v61 = vld [vmem:[#allocation10 + $0xd0] ss:$8 sps:$4 sm:$0xff]   ;;  %v5677_v62 = vld [vmem:[#allocation10 + $0x1d4] ss:$8 sps:$4 sm:$0xff]  }
  0xd7   : > { %1260 = vmatpush1.bf16.msra.mxu0 %v5634_v20  ;;  %1481 = vmatpush1.bf16.msra.mxu1 %v5637_v21  ;;  %v5679_v63 = vld [vmem:[#allocation10 + $0x1d0] ss:$8 sps:$4 sm:$0xff]   ;;  %v5685_v3 = vld [vmem:[#allocation10 + $0x1c0] ss:$8 sps:$4 sm:$0xff]   ;;  %v5689_v6 = vld [vmem:[#allocation10 + $0x1b4] ss:$8 sps:$4 sm:$0xff]  }
  0xd8   : > { %1261 = vmatprep.subr.bf16.mxu0 %v5638_v22  ;;  %1482 = vmatprep.subr.bf16.mxu1 %v5641_v23  ;;  %v5688_v5 = vld [vmem:[#allocation10 + $0xb0] ss:$8 sps:$4 sm:$0xff]   ;;  %v5692_v8 = vld [vmem:[#allocation10 + $0xa4] ss:$8 sps:$4 sm:$0xff]   ;;  %v5694_v10 = vld [vmem:[#allocation10 + $0xa0] ss:$8 sps:$4 sm:$0xff]  }
  0xd9   : > { %v5691_v7 = vld [vmem:[#allocation10 + $0x1b0] ss:$8 sps:$4 sm:$0xff]   ;;  %v5695_v9 = vld [vmem:[#allocation10 + $0x1a4] ss:$8 sps:$4 sm:$0xff]   ;;  %v5697_v11 = vld [vmem:[#allocation10 + $0x1a0] ss:$8 sps:$4 sm:$0xff]  }
  0xda   : > { %v5698_v12 = vld [vmem:[#allocation10 + $0x94] ss:$8 sps:$4 sm:$0xff]   ;;  %v5700_v14 = vld [vmem:[#allocation10 + $0x90] ss:$8 sps:$4 sm:$0xff]   ;;  %v5704_v16 = vld [vmem:[#allocation10 + $0x84] ss:$8 sps:$4 sm:$0xff]  }
  0xdb   : > { %1262 = vmatpush1.bf16.msra.mxu0 %v5640_v24  ;;  %1483 = vmatpush1.bf16.msra.mxu1 %v5643_v39  ;;  %v5701_v13 = vld [vmem:[#allocation10 + $0x194] ss:$8 sps:$4 sm:$0xff]   ;;  %v5703_v15 = vld [vmem:[#allocation10 + $0x190] ss:$8 sps:$4 sm:$0xff]   ;;  %v5707_v17 = vld [vmem:[#allocation10 + $0x184] ss:$8 sps:$4 sm:$0xff]  }
  0xdc   : > { %1263 = vmatprep.subr.bf16.mxu0 %v5644_v40  ;;  %1484 = vmatprep.subr.bf16.mxu1 %v5647_v42  ;;  %v5706_v18 = vld [vmem:[#allocation10 + $0x80] ss:$8 sps:$4 sm:$0xff]   ;;  %v5712_v20 = vld [vmem:[#allocation10 + $0x274] ss:$8 sps:$4 sm:$0xff]   ;;  %s568_s29 = scalar_lea.vmem [#allocation17], %s4942_s6  ;;  %s5355_s10 = sshll.u32 %s6682_s27, 9 }
  0xdd   : > { %v5709_v19 = vld [vmem:[#allocation10 + $0x180] ss:$8 sps:$4 sm:$0xff]   ;;  %s4761_s0 = sshll.u32 %s568_s29, 4  ;;  %s7378_s6 = scalar_lea.hbm %s7433_s12, %s5355_s10  ;;  %s7372_s0 = int_to_ptr.vmem [resolvable:$true] %s4761_s0 }
  0xde   : > { %s4747_s2 = scalar_lea.sflag [#allocation4], %s6891_s23  ;;  %p7487_p11 = scmp.ne.s32.totalorder %s7470_s20, 0 }
  0xdf   : > { %1264 = vmatpush1.bf16.msra.mxu0 %v5646_v41  ;;  %1485 = vmatpush1.bf16.msra.mxu1 %v5649_v43  ;;  %s6593_s27 = smov [#allocation17]  }
  0xe0   : > { %1265 = vmatprep.subr.bf16.mxu0 %v5650_v44  ;;  %1486 = vmatprep.subr.bf16.mxu1 %v5653_v46  ;;  %s6496_s8 = sshll.u32 %s6593_s27, 4  ;;  %s6497_s8 = int_to_ptr.vmem [resolvable:$false] %s6496_s8 }
  0xe1   : > { %s6498_s28 = scalar_lea.vmem %s6497_s8, 1024  ;;  %p6499_p12 = scmp.lt.s32.totalorder %s7372_s0, %s6497_s8 }
  0xe3   : > { %1266 = vmatpush1.bf16.msra.mxu0 %v5652_v45  ;;  %1487 = vmatpush1.bf16.msra.mxu1 %v5655_v47  ;;  %v585_v45 = vld [vmem:[#allocation7] sm:$0x77] }
  0xe4   : > { %1267 = vmatprep.subr.bf16.mxu0 %v5656_v48  ;;  %1488 = vmatprep.subr.bf16.mxu1 %v5659_v50  ;;  %v586_v48 = vld [vmem:[#allocation8] sm:$0x77] }
  0xe7   : > { %1268 = vmatpush1.bf16.msra.mxu0 %v5658_v49  ;;  %1489 = vmatpush1.bf16.msra.mxu1 %v5661_v51 }
  0xe8   : > { %1269 = vmatprep.subr.bf16.mxu0 %v5662_v52  ;;  %1490 = vmatprep.subr.bf16.mxu1 %v5665_v54 }
  0xeb   : > { %1270 = vmatpush2.bf16.msra.mxu0 %v5664_v53  ;;  %1491 = vmatpush2.bf16.msra.mxu1 %v5667_v55 }
  0xec   : > { %1271 = vmatprep.subr.bf16.mxu0 %v5668_v56  ;;  %1492 = vmatprep.subr.bf16.mxu1 %v5671_v58 }
  0xef   : > { %1272 = vmatpush2.bf16.msra.mxu0 %v5670_v57  ;;  %1493 = vmatpush2.bf16.msra.mxu1 %v5673_v59 }
  0xf0   : > { %1273 = vmatprep.subr.bf16.mxu0 %v5674_v60  ;;  %1494 = vmatprep.subr.bf16.mxu1 %v5677_v62 }
  0xf3   : > { %1274 = vmatpush2.bf16.msra.mxu0 %v5676_v61  ;;  %1495 = vmatpush2.bf16.msra.mxu1 %v5679_v63 }
 0x153   : > { %v981_v25 = vpop.xlane.xlu0 %980 }
 0x154   : > { %v986_v26 = vmul.f32 0.00390625, %v981_v25 }
 0x156   : > { %v6931_v27 = vsub.f32 %v573_v0, %v986_v26  ;;  %v6933_v28 = vsub.f32 %v574_v1, %v986_v26  ;;  %v5680_v0 = vld [vmem:[#allocation10 + $0xc4] ss:$8 sps:$4 sm:$0xff]   ;;  %v5682_v1 = vld [vmem:[#allocation10 + $0xc0] ss:$8 sps:$4 sm:$0xff]   ;;  %v1023_v26 = vlaneseq }
 0x157   : > { %v984_v29 = vpop.xlane.xlu0 %983  ;;  %1275 = vmatprep.subr.bf16.mxu0 %v5680_v0 }
 0x158   : > { %v987_v30 = vmul.f32 0.00390625, %v984_v29  ;;  %v992_v31 = vmul.f32 %v6931_v27, %v6931_v27  ;;  %v993_v32 = vmul.f32 %v6933_v28, %v6933_v28  ;;  %1276 = vmatpush2.bf16.msra.mxu0 %v5682_v1 }
 0x15a   : > { %v6939_v33 = vsub.f32 %v575_v2, %v987_v30  ;;  %v6941_v34 = vsub.f32 %v576_v4, %v987_v30  ;;  %v996_v35 = vadd.f32 %v993_v32, %v992_v31  ;;  %v5683_v2 = vld [vmem:[#allocation10 + $0x1c4] ss:$8 sps:$4 sm:$0xff]   ;;  %v5686_v4 = vld [vmem:[#allocation10 + $0xb4] ss:$8 sps:$4 sm:$0xff]  }
 0x15b   : > { %1496 = vmatprep.subr.bf16.mxu1 %v5683_v2  ;;  %1277 = vmatprep.subr.bf16.mxu0 %v5686_v4 }
 0x15c   : > { %v994_v36 = vmul.f32 %v6939_v33, %v6939_v33  ;;  %v995_v37 = vmul.f32 %v6941_v34, %v6941_v34  ;;  %997 = vadd.xlane.f32.xlu1 %v996_v35  ;;  %1497 = vmatpush2.bf16.msra.mxu1 %v5685_v3 }
 0x15d   : > { %1498 = vmatprep.subr.bf16.mxu1 %v5689_v6  ;;  %1278 = vmatpush2.bf16.msra.mxu0 %v5688_v5  ;;  %v5710_v5 = vld [vmem:[#allocation10 + $0x270] ss:$8 sps:$4 sm:$0xff]   ;;  %v5718_v6 = vld [vmem:[#allocation10 + $0x254] ss:$8 sps:$4 sm:$0xff]  }
 0x15e   : > { %v999_v38 = vadd.f32 %v995_v37, %v994_v36  ;;  %1279 = vmatprep.subr.bf16.mxu0 %v5692_v8  ;;  %v6948_v36 = vshrl.u32 %v1023_v26, 7  ;;  %v5721_v8 = vld [vmem:[#allocation10 + $0x244] ss:$8 sps:$4 sm:$0xff]  }
 0x160   : > { %1000 = vadd.xlane.f32.xlu1 %v999_v38  ;;  %1499 = vmatpush2.bf16.msra.mxu1 %v5691_v7  ;;  %v6951_v42 = vsub.s32 0, %v6948_v36  ;;  %v6954_v43 = vsub.s32 4, %v6948_v36  ;;  %v5716_v7 = vld [vmem:[#allocation10 + $0x250] ss:$8 sps:$4 sm:$0xff]  }
 0x161   : > { %1500 = vmatprep.subr.bf16.mxu1 %v5695_v9  ;;  %1280 = vmatpush2.bf16.msra.mxu0 %v5694_v10  ;;  %v5719_v9 = vld [vmem:[#allocation10 + $0x240] ss:$8 sps:$4 sm:$0xff]   ;;  %v5724_v10 = vld [vmem:[#allocation10 + $0x234] ss:$8 sps:$4 sm:$0xff]  }
 0x162   : > { %1281 = vmatprep.subr.bf16.mxu0 %v5698_v12  ;;  %v1026_v46 = vrot.slane %v585_v45, %v6951_v42  ;;  %v1030_v47 = vrot.slane %v585_v45, %v6954_v43  ;;  %v1057_v51 = vrot.slane %v586_v48, %v6954_v43  ;;  %v1053_v52 = vrot.slane %v586_v48, %v6951_v42  ;;  %v5727_v12 = vld [vmem:[#allocation10 + $0x224] ss:$8 sps:$4 sm:$0xff]  }
 0x164   : > { %1501 = vmatpush2.bf16.msra.mxu1 %v5697_v11  ;;  %v1036_v49 = vrot.slane %v1026_v46, %v6951_v42  ;;  %v1040_v50 = vrot.slane %v1030_v47, %v6951_v42  ;;  %v1067_v59 = vrot.slane %v1057_v51, %v6951_v42  ;;  %v1063_v61 = vrot.slane %v1053_v52, %v6951_v42  ;;  %v5722_v11 = vld [vmem:[#allocation10 + $0x230] ss:$8 sps:$4 sm:$0xff]  }
 0x165   : > { %1502 = vmatprep.subr.bf16.mxu1 %v5701_v13  ;;  %1282 = vmatpush2.bf16.msra.mxu0 %v5700_v14  ;;  %v5725_v13 = vld [vmem:[#allocation10 + $0x220] ss:$8 sps:$4 sm:$0xff]   ;;  %v5730_v14 = vld [vmem:[#allocation10 + $0x214] ss:$8 sps:$4 sm:$0xff]  }
 0x166   : > { %1283 = vmatprep.subr.bf16.mxu0 %v5704_v16  ;;  %v1041_v54 = vmul.f32 %v1036_v49, %v6931_v27  ;;  %v1042_v55 = vmul.f32 %v1040_v50, %v6933_v28  ;;  %v1043_v56 = vmul.f32 %v1036_v49, %v6939_v33  ;;  %v1044_v57 = vmul.f32 %v1040_v50, %v6941_v34  ;;  %v5715_v33 = vld [vmem:[#allocation10 + $0x264] ss:$8 sps:$4 sm:$0xff]   ;;  %v5713_v34 = vld [vmem:[#allocation10 + $0x260] ss:$8 sps:$4 sm:$0xff]  }
 0x167   : > { %v5733_v16 = vld [vmem:[#allocation10 + $0x204] ss:$8 sps:$4 sm:$0xff]  }
 0x168   : > { %1503 = vmatpush2.bf16.msra.mxu1 %v5703_v15  ;;  %v5728_v15 = vld [vmem:[#allocation10 + $0x210] ss:$8 sps:$4 sm:$0xff]  }
 0x169   : > { %1504 = vmatprep.subr.bf16.mxu1 %v5707_v17  ;;  %1284 = vmatpush2.bf16.msra.mxu0 %v5706_v18  ;;  %v5731_v17 = vld [vmem:[#allocation10 + $0x200] ss:$8 sps:$4 sm:$0xff]   ;;  %v5736_v18 = vld [vmem:[#allocation10 + $0x2f4] ss:$8 sps:$4 sm:$0xff]  }
 0x16a   : > { %1695 = vmatprep.subr.bf16.mxu0 %v5712_v20  ;;  %v5739_v20 = vld [vmem:[#allocation10 + $0x2e4] ss:$8 sps:$4 sm:$0xff]  }
 0x16c   : > { %1505 = vmatpush2.bf16.msra.mxu1 %v5709_v19  ;;  %v5734_v19 = vld [vmem:[#allocation10 + $0x2f0] ss:$8 sps:$4 sm:$0xff]  }
 0x1e5   : > { %v998_v21 = vpop.xlane.xlu1 %997 }
 0x1e6   : > { %v1002_v22 = vmul.f32 0.003921569, %v998_v21  ;;  %v5737_v21 = vld [vmem:[#allocation10 + $0x2e0] ss:$8 sps:$4 sm:$0xff]  }
 0x1e8   : > { %6190 = vrsqrt.f32 %v1002_v22  ;;  %vm1006_vm0 = vcmp.eq.f32.partialorder %v1002_v22, inf  ;;  %v1009_v30 = vand.u32 2147483648, %v1002_v22  ;;  %vm1008_vm1 = vcmp.eq.f32.partialorder %v1002_v22, 0.0 }
 0x1e9   : > { %v1001_v23 = vpop.xlane.xlu1 %1000 }
 0x1ea   : > { %v1003_v24 = vmul.f32 0.003921569, %v1001_v23  ;;  %v5740_v23 = vld [vmem:[#allocation10 + $0x2d0] ss:$8 sps:$4 sm:$0xff]  }
 0x1ec   : > { %6192 = vrsqrt.f32 %v1003_v24  ;;  %vm1013_vm2 = vcmp.eq.f32.partialorder %v1003_v24, inf  ;;  %v1016_v39 = vand.u32 2147483648, %v1003_v24  ;;  %vm1015_vm3 = vcmp.eq.f32.partialorder %v1003_v24, 0.0 }
 0x1f5   : > { %v6191_v25 = vpop.eup %6190 }
 0x1f6   : > { %v1005_v29 = vmul.f32 %v6191_v25, %v1002_v22  ;;  %v5743_v25 = vld [vmem:[#allocation10 + $0x2c0] ss:$8 sps:$4 sm:$0xff]  }
 0x1f8   : > { %v1007_v31 = vsel %vm1006_vm0, %v1002_v22, %v1005_v29  ;;  %v5742_v22 = vld [vmem:[#allocation10 + $0x2d4] ss:$8 sps:$4 sm:$0xff]  }
 0x1f9   : > { %v6193_v32 = vpop.eup %6192  ;;  %v1010_v35 = vsel %vm1008_vm1, %v1009_v30, %v1007_v31  ;;  %v5748_v29 = vld [vmem:[#allocation10 + $0x2b4] ss:$8 sps:$4 sm:$0xff]   ;;  %v5746_v30 = vld [vmem:[#allocation10 + $0x2b0] ss:$8 sps:$4 sm:$0xff]   ;;  %v5751_v31 = vld [vmem:[#allocation10 + $0x2a4] ss:$8 sps:$4 sm:$0xff]  }
 0x1fa   : > { %v1018_v37 = vadd.f32 1e-06, %v1010_v35  ;;  %v1012_v38 = vmul.f32 %v6193_v32, %v1003_v24  ;;  %v5749_v32 = vld [vmem:[#allocation10 + $0x2a0] ss:$8 sps:$4 sm:$0xff]   ;;  %v5754_v35 = vld [vmem:[#allocation10 + $0x294] ss:$8 sps:$4 sm:$0xff]  }
 0x1fc   : > { %6194 = vrcp.f32 %v1018_v37  ;;  %v1014_v40 = vsel %vm1013_vm2, %v1003_v24, %v1012_v38  ;;  %v5745_v24 = vld [vmem:[#allocation10 + $0x2c4] ss:$8 sps:$4 sm:$0xff]   ;;  %v5752_v37 = vld [vmem:[#allocation10 + $0x290] ss:$8 sps:$4 sm:$0xff]  }
 0x1fd   : > { %v1017_v41 = vsel %vm1015_vm3, %v1016_v39, %v1014_v40  ;;  %v5757_v38 = vld [vmem:[#allocation10 + $0x284] ss:$8 sps:$4 sm:$0xff]   ;;  %v5755_v39 = vld [vmem:[#allocation10 + $0x280] ss:$8 sps:$4 sm:$0xff]   ;;  %v6591_v40 = vmov 0.0  }
 0x1fe   : > { %v1019_v44 = vadd.f32 1e-06, %v1017_v41  ;;  %5388 = vmatprep.subr.bf16.mxu1 %v6591_v40  ;;  %v6977_v41 = vsub.s32 1, %v6948_v36 }
 0x200   : > { %6196 = vrcp.f32 %v1019_v44  ;;  %v6982_v44 = vld [vmem:[%s7426_s5] sm:$0xff] }
 0x201   : > { %v1299_v45 = vrot.slane %v6982_v44, %v6977_v41  ;;  %v1078_v47 = vrot.slane %v6982_v44, %v6951_v42 }
 0x203   : > { %v1309_v46 = vrot.slane %v1299_v45, %v6977_v41  ;;  %v1088_v50 = vrot.slane %v1078_v47, %v6951_v42 }
 0x209   : > { %v6195_v53 = vpop.eup %6194 }
 0x20a   : > { %v1046_v58 = vmul.f32 %v6195_v53, %v1042_v55  ;;  %v1045_v60 = vmul.f32 %v6195_v53, %v1041_v54 }
 0x20c   : > { %v1069_v1 = vadd.f32 %v1067_v59, %v1046_v58  ;;  %v1068_v3 = vadd.f32 %v1063_v61, %v1045_v60 }
 0x20d   : > { %v6197_v62 = vpop.eup %6196 }
 0x20e   : > { %v1048_v63 = vmul.f32 %v6197_v62, %v1044_v57  ;;  %v1047_v0 = vmul.f32 %v6197_v62, %v1043_v56 }
 0x210   : > { %v1071_v2 = vadd.f32 %v1067_v59, %v1048_v63  ;;  %v1070_v4 = vadd.f32 %v1063_v61, %v1047_v0  ;;  %v7001_v63 = vsub.s32 2, %v6948_v36 }
 0x212   : > { %v1073_v27 = vpack.c.bf16 %v1071_v2, %v1069_v1  ;;  %v6968_v28 = vpack.c.bf16 %v1070_v4, %v1068_v3  ;;  %v1520_v0 = vrot.slane %v6982_v44, %v7001_v63  ;;  %v7007_v2 = vsub.s32 6, %v6948_v36 }
 0x214   : > { %1285 = vmatprep.mubr.bf16.mxu0 %v1073_v27  ;;  %1506 = vmatprep.mubr.bf16.mxu1 %v1073_v27  ;;  %v1530_v1 = vrot.slane %v1520_v0, %v7001_v63 }
 0x215   : > { %1286 = vmatmul.mubr.bf16.vlgmr.msra.gmra.mxu0 %v6968_v28  ;;  %1507 = vmatmul.mubr.bf16.vlgmr.msra.gmra.mxu1 %v6968_v28 }
 0x216   : > { %1696 = vmatpush1.bf16.msra.mxu0 %v5710_v5  ;;  %1727 = vmatprep.mubr.bf16.mxu0 %v1073_v27  ;;  %v1524_v5 = vrot.slane %v6982_v44, %v7007_v2 }
 0x217   : > { %1697 = vmatprep.subr.bf16.mxu0 %v5715_v33  ;;  %5390 = vmatprep.mubr.msk.bf16.mxu1 %vm6592_vm4, %v6591_v40 }
 0x21a   : > { %1698 = vmatpush1.bf16.msra.mxu0 %v5713_v34 }
 0x21b   : > { %1699 = vmatprep.subr.bf16.mxu0 %v5718_v6 }
 0x21e   : > { %1700 = vmatpush1.bf16.msra.mxu0 %v5716_v7  ;;  %v7017_v7 = vrot.slane %v1524_v5, %v7001_v63 }
 0x21f   : > { %1701 = vmatprep.subr.bf16.mxu0 %v5721_v8 }
 0x222   : > { %1702 = vmatpush1.bf16.msra.mxu0 %v5719_v9 }
 0x223   : > { %1703 = vmatprep.subr.bf16.mxu0 %v5724_v10 }
 0x226   : > { %1704 = vmatpush1.bf16.msra.mxu0 %v5722_v11 }
 0x227   : > { %1705 = vmatprep.subr.bf16.mxu0 %v5727_v12 }
 0x22a   : > { %1706 = vmatpush1.bf16.msra.mxu0 %v5725_v13 }
 0x22b   : > { %1707 = vmatprep.subr.bf16.mxu0 %v5730_v14 }
 0x22e   : > { %1708 = vmatpush1.bf16.msra.mxu0 %v5728_v15  ;;  %v7026_v15 = vand.u32 127, %v1023_v26 }
 0x22f   : > { %1709 = vmatprep.subr.bf16.mxu0 %v5733_v16 }
 0x230   : > { %vm1754_vm6 = vcmp.ge.s32.totalorder %v6948_v36, %v7026_v15 }
 0x232   : > { %1710 = vmatpush1.bf16.msra.mxu0 %v5731_v17 }
 0x233   : > { %1711 = vmatprep.subr.bf16.mxu0 %v5736_v18 }
 0x236   : > { %1712 = vmatpush2.bf16.msra.mxu0 %v5734_v19 }
 0x237   : > { %1713 = vmatprep.subr.bf16.mxu0 %v5739_v20 }
 0x23a   : > { %1714 = vmatpush2.bf16.msra.mxu0 %v5737_v21 }
 0x23b   : > { %1715 = vmatprep.subr.bf16.mxu0 %v5742_v22 }
 0x23e   : > { %1716 = vmatpush2.bf16.msra.mxu0 %v5740_v23 }
 0x23f   : > { %1717 = vmatprep.subr.bf16.mxu0 %v5745_v24 }
 0x242   : > { %1718 = vmatpush2.bf16.msra.mxu0 %v5743_v25 }
 0x243   : > { %1719 = vmatprep.subr.bf16.mxu0 %v5748_v29 }
 0x246   : > { %1720 = vmatpush2.bf16.msra.mxu0 %v5746_v30 }
 0x247   : > { %1721 = vmatprep.subr.bf16.mxu0 %v5751_v31 }
 0x24a   : > { %1722 = vmatpush2.bf16.msra.mxu0 %v5749_v32 }
 0x24b   : > { %1723 = vmatprep.subr.bf16.mxu0 %v5754_v35 }
 0x24e   : > { %1724 = vmatpush2.bf16.msra.mxu0 %v5752_v37 }
 0x24f   : > { %1725 = vmatprep.subr.bf16.mxu0 %v5757_v38 }
 0x252   : > { %1726 = vmatpush2.bf16.msra.mxu0 %v5755_v39 }
 0x255   : > { %1728 = vmatmul.mubr.bf16.vlgmr.msra.gmra.mxu0 %v6968_v28 }
 0x2d5   : > { %v1508_v48 = vpop.f32.mrf.mxu1  ;;  %v1287_v52 = vpop.f32.mrf.mxu0 }
 0x2d6   : > { %v1509_v49 = vadd.f32 %v1508_v48, %v1309_v46  ;;  %v1288_v55 = vadd.f32 %v1287_v52, %v1088_v50 }
 0x2d7   : > { %v6990_v51 = vpop.f32.mrf.mxu1  ;;  %v6993_v56 = vpop.f32.mrf.mxu0 }
 0x2d8   : > { %v1742_v53 = vpack.c.bf16 %v1509_v49, %v1509_v49  ;;  %v1738_v58 = vpack.c.bf16 %v1288_v55, %v1288_v55 }
 0x2d9   : > { %v1512_v54 = vpop.f32.mrf.mxu1  ;;  %v1291_v59 = vpop.f32.mrf.mxu0 }
 0x2da   : > { %5389 = vmatpush3.bf16.xpose.msra.mxu1 %v1742_v53  ;;  %v1513_v57 = vadd.f32 %v1512_v54, %v1309_v46  ;;  %v1292_v61 = vadd.f32 %v1291_v59, %v1088_v50  ;;  %v7041_v54 = vsub.s32 5, %v6948_v36 }
 0x2db   : > { %5394 = vmatprep.subr.bf16.mxu1 %v6591_v40  ;;  %v7009_v3 = vpop.f32.mrf.mxu0  ;;  %v1514_v16 = vpop.f32.mrf.mxu1 }
 0x2dc   : > { %v1744_v60 = vpack.c.bf16 %v1513_v57, %v1513_v57  ;;  %v1740_v62 = vpack.c.bf16 %v1292_v61, %v1292_v61  ;;  %v1303_v57 = vrot.slane %v6982_v44, %v7041_v54  ;;  %v1082_v61 = vrot.slane %v6982_v44, %v6954_v43 }
 0x2e1   : > { %5391 = vmatmul.mubr.bf16.vlgmr.msra.gmra.mxu1 %v1738_v58 }
 0x2e2   : > { %5395 = vmatpush3.bf16.xpose.msra.mxu1 %v1744_v60  ;;  %5396 = vmatprep.mubr.msk.bf16.mxu1 %vm6592_vm4, %v6591_v40  ;;  %v1313_v60 = vrot.slane %v1303_v57, %v6977_v41  ;;  %v5760_v57 = vld [vmem:[#allocation10 + $0x374] ss:$8 sps:$4 sm:$0xff]  }
 0x2e3   : > { %5400 = vmatprep.subr.bf16.mxu1 %v6591_v40  ;;  %2339 = vmatprep.subr.bf16.mxu0 %v5760_v57 }
 0x2e4   : > { %v1511_v0 = vadd.f32 %v6990_v51, %v1313_v60 }
 0x2e6   : > { %v1743_v5 = vpack.c.bf16 %v1511_v0, %v1511_v0  ;;  %v5767_v0 = vld [vmem:[#allocation10 + $0x340] ss:$8 sps:$4 sm:$0xff]  }
 0x2e9   : > { %5397 = vmatmul.mubr.bf16.vlgmr.msra.gmra.mxu1 %v1740_v62 }
 0x2ea   : > { %5402 = vmatprep.mubr.msk.bf16.mxu1 %vm6592_vm4, %v6591_v40 }
 0x315   : > { %v1729_v4 = vpop.f32.mrf.mxu0 }
 0x316   : > { %v1730_v27 = vadd.f32 %v1729_v4, %v1530_v1  ;;  %v1092_v4 = vrot.slane %v1082_v61, %v6951_v42  ;;  %v5764_v61 = vld [vmem:[#allocation10 + $0x350] ss:$8 sps:$4 sm:$0xff]  }
 0x317   : > { %v7013_v28 = vpop.f32.mrf.mxu0 }
 0x318   : > { %v1746_v33 = vpack.c.bf16 %v1730_v27, %v1730_v27  ;;  %v1732_v51 = vadd.f32 %v7013_v28, %v7017_v7 }
 0x319   : > { %v1733_v34 = vpop.f32.mrf.mxu0 }
 0x31a   : > { %v1871_v6 = vsel %vm1869_vm5, %v1746_v33, 0  ;;  %v1734_v8 = vadd.f32 %v1733_v34, %v1530_v1  ;;  %v1290_v33 = vadd.f32 %v6993_v56, %v1092_v4  ;;  %v1515_v34 = vadd.f32 %v1514_v16, %v1313_v60  ;;  %v5766_v60 = vld [vmem:[#allocation10 + $0x354] ss:$8 sps:$4 sm:$0xff]  }
 0x31b   : > { %v1735_v9 = vpop.f32.mrf.mxu0  ;;  %5401 = vmatpush3.bf16.msra.mxu1 %v1871_v6 }
 0x31c   : > { %v1748_v10 = vpack.c.bf16 %v1734_v8, %v1734_v8  ;;  %v1736_v11 = vadd.f32 %v1735_v9, %v7017_v7  ;;  %5406 = vmatprep.subr.bf16.mxu1 %v6591_v40  ;;  %v1739_v6 = vpack.c.bf16 %v1290_v33, %v1290_v33  ;;  %v1745_v8 = vpack.c.bf16 %v1515_v34, %v1515_v34  ;;  %v5778_v33 = vld [vmem:[#allocation10 + $0x314] ss:$8 sps:$4 sm:$0xff]   ;;  %v5776_v34 = vld [vmem:[#allocation10 + $0x310] ss:$8 sps:$4 sm:$0xff]  }
 0x31d   : > { %v1294_v9 = vadd.f32 %v7009_v3, %v1092_v4  ;;  %v5770_v4 = vld [vmem:[#allocation10 + $0x330] ss:$8 sps:$4 sm:$0xff]  }
 0x31e   : > { %v1917_v12 = vsel %vm1869_vm5, %v1748_v10, 0  ;;  %v1749_v13 = vpack.c.bf16 %v1736_v11, %v1736_v11  ;;  %v1747_v10 = vpack.c.bf16 %v1732_v51, %v1732_v51  ;;  %v5784_v51 = vld [vmem:[#allocation10 + $0x3f4] ss:$8 sps:$4 sm:$0xff]  }
 0x31f   : > { %v1741_v11 = vpack.c.bf16 %v1294_v9, %v1294_v9  ;;  %v5782_v9 = vld [vmem:[#allocation10 + $0x3f0] ss:$8 sps:$4 sm:$0xff]  }
 0x320   : > { %v7023_v14 = vsel %vm1869_vm5, %v1749_v13, 0  ;;  %v2071_v56 = vsel %vm1869_vm5, %v1747_v10, 0  ;;  %v5787_v10 = vld [vmem:[#allocation10 + $0x3e4] ss:$8 sps:$4 sm:$0xff]  }
 0x3a1   : > { %v1789_v17 = vpop.f32.mrf.mxu1 }
 0x3a2   : > { %v1835_v18 = vmul.f32 0.088388346, %v1789_v17 }
 0x3a3   : > { %v5392_v19 = vpop.f32.mrf.mxu1 }
 0x3a4   : > { %v1839_v20 = vsel %vm1754_vm6, %v1835_v18, -1e+09 }
 0x3a5   : > { %v1792_v21 = vpop.f32.mrf.mxu1  ;;  %v1842_v22 = vsel %vm1841_vm7, %v1839_v20, -inf }
 0x3a6   : > { %1843 = vmax.xlane.f32.xlu0 %v1842_v22 }
 0x3a7   : > { %v5393_v23 = vpop.f32.mrf.mxu1 }
 0x3a9   : > { %v1829_v24 = vpop.f32.mrf.mxu1 }
 0x3aa   : > { %v1836_v26 = vmul.f32 0.088388346, %v1829_v24 }
 0x3ab   : > { %v5398_v25 = vpop.f32.mrf.mxu1 }
 0x3ac   : > { %v1840_v29 = vsel %vm1754_vm6, %v1836_v26, -1e+09 }
 0x3ad   : > { %v1832_v30 = vpop.f32.mrf.mxu1  ;;  %v1845_v31 = vsel %vm1841_vm7, %v1840_v29, -inf }
 0x3ae   : > { %1846 = vmax.xlane.f32.xlu1 %v1845_v31 }
 0x3af   : > { %v5399_v32 = vpop.f32.mrf.mxu1 }
 0x42f   : > { %v1844_v35 = vpop.xlane.xlu0 %1843 }
 0x430   : > { %v1848_v37 = vsub.f32 %v1839_v20, %v1844_v35 }
 0x432   : > { %v1850_v38 = vmul.f32 1.442695, %v1848_v37 }
 0x434   : > { %6198 = vpow2.f32 %v1850_v38 }
 0x437   : > { %v1847_v39 = vpop.xlane.xlu1 %1846 }
 0x438   : > { %v1849_v45 = vsub.f32 %v1840_v29, %v1847_v39 }
 0x43a   : > { %v1852_v46 = vmul.f32 1.442695, %v1849_v45 }
 0x43c   : > { %6200 = vpow2.f32 %v1852_v46 }
 0x441   : > { %v6199_v47 = vpop.eup %6198 }
 0x442   : > { %v1854_v48 = vsel %vm1841_vm7, %v6199_v47, 0.0 }
 0x443   : > { %1855 = vadd.xlane.f32.xlu0 %v1854_v48 }
 0x449   : > { %v6201_v49 = vpop.eup %6200 }
 0x44a   : > { %v1857_v50 = vsel %vm1841_vm7, %v6201_v49, 0.0 }
 0x44b   : > { %1858 = vadd.xlane.f32.xlu1 %v1857_v50 }
 0x4cc   : > { %v1856_v52 = vpop.xlane.xlu0 %1855 }
 0x4cd   : > { %6202 = vrcp.f32 %v1856_v52 }
 0x4d4   : > { %v1859_v53 = vpop.xlane.xlu1 %1858 }
 0x4d5   : > { %6204 = vrcp.f32 %v1859_v53 }
 0x4da   : > { %v6203_v55 = vpop.eup %6202 }
 0x4db   : > { %v1862_v58 = vmul.f32 %v6203_v55, %v6199_v47  ;;  %v5758_v55 = vld [vmem:[#allocation10 + $0x370] ss:$8 sps:$4 sm:$0xff]  }
 0x4dc   : > { %2340 = vmatpush1.bf16.msra.mxu0 %v5758_v55 }
 0x4dd   : > { %v1864_v59 = vpack.c.bf16 %v1862_v58, %v1862_v58  ;;  %v5763_v58 = vld [vmem:[#allocation10 + $0x364] ss:$8 sps:$4 sm:$0xff]  }
 0x4de   : > { %2341 = vmatprep.subr.bf16.mxu0 %v5763_v58 }
 0x4df   : > { %5403 = vmatmul.mubr.msk.bf16.vlgmr.msra.gmra.mxu1 %vm1841_vm7, %v1864_v59  ;;  %v5761_v59 = vld [vmem:[#allocation10 + $0x360] ss:$8 sps:$4 sm:$0xff]  }
 0x4e0   : > { %5407 = vmatpush3.bf16.msra.mxu1 %v1917_v12  ;;  %5408 = vmatprep.mubr.msk.bf16.mxu1 %vm6592_vm4, %v6591_v40 }
 0x4e1   : > { %5412 = vmatprep.subr.bf16.mxu1 %v6591_v40  ;;  %2342 = vmatpush1.bf16.msra.mxu0 %v5761_v59 }
 0x4e2   : > { %v6205_v62 = vpop.eup %6204  ;;  %2343 = vmatprep.subr.bf16.mxu0 %v5766_v60 }
 0x4e3   : > { %v1863_v1 = vmul.f32 %v6205_v62, %v6201_v49  ;;  %v5769_v62 = vld [vmem:[#allocation10 + $0x344] ss:$8 sps:$4 sm:$0xff]  }
 0x4e5   : > { %v1865_v27 = vpack.c.bf16 %v1863_v1, %v1863_v1  ;;  %2344 = vmatpush1.bf16.msra.mxu0 %v5764_v61  ;;  %v5772_v1 = vld [vmem:[#allocation10 + $0x334] ss:$8 sps:$4 sm:$0xff]  }
 0x4e6   : > { %2345 = vmatprep.subr.bf16.mxu0 %v5769_v62  ;;  %v6246_v61 = vld [vmem:[%s6897_s3] sm:$0xff] }
 0x4e7   : > { %5409 = vmatmul.mubr.msk.bf16.vlgmr.msra.gmra.mxu1 %vm1841_vm7, %v1865_v27  ;;  %v5775_v27 = vld [vmem:[#allocation10 + $0x324] ss:$8 sps:$4 sm:$0xff]  }
 0x4e8   : > { %5413 = vmatpush3.bf16.xpose.msra.mxu1 %v1743_v5  ;;  %5414 = vmatprep.mubr.msk.bf16.mxu1 %vm6592_vm4, %v6591_v40  ;;  %v5773_v5 = vld [vmem:[#allocation10 + $0x320] ss:$8 sps:$4 sm:$0xff]  }
 0x4e9   : > { %5418 = vmatprep.subr.bf16.mxu1 %v6591_v40  ;;  %2346 = vmatpush1.bf16.msra.mxu0 %v5767_v0  ;;  %v6247_v0 = vld [vmem:[%s6897_s3 + $0x8] sm:$0xff] }
 0x4ea   : > { %2347 = vmatprep.subr.bf16.mxu0 %v5772_v1 }
 0x4ed   : > { %2348 = vmatpush1.bf16.msra.mxu0 %v5770_v4 }
 0x4ee   : > { %2349 = vmatprep.subr.bf16.mxu0 %v5775_v27 }
 0x4ef   : > { %5415 = vmatmul.mubr.bf16.vlgmr.msra.gmra.mxu1 %v1739_v6  ;;  %v5781_v6 = vld [vmem:[#allocation10 + $0x304] ss:$8 sps:$4 sm:$0xff]  }
 0x4f0   : > { %5419 = vmatpush3.bf16.xpose.msra.mxu1 %v1745_v8  ;;  %5420 = vmatprep.mubr.msk.bf16.mxu1 %vm6592_vm4, %v6591_v40  ;;  %v5779_v8 = vld [vmem:[#allocation10 + $0x300] ss:$8 sps:$4 sm:$0xff]  }
 0x4f1   : > { %5424 = vmatprep.subr.bf16.mxu1 %v6591_v40  ;;  %2350 = vmatpush1.bf16.msra.mxu0 %v5773_v5 }
 0x4f2   : > { %2351 = vmatprep.subr.bf16.mxu0 %v5778_v33  ;;  %v6248_v33 = vld [vmem:[%s6897_s3 + $0x10] sm:$0xff] }
 0x4f5   : > { %2352 = vmatpush1.bf16.msra.mxu0 %v5776_v34 }
 0x4f6   : > { %2353 = vmatprep.subr.bf16.mxu0 %v5781_v6  ;;  %v6249_v6 = vld [vmem:[%s6897_s3 + $0x18] sm:$0xff]  ;;  %s6492_s3 = scalar_lea.vmem %s7372_s0, 512 }
 0x4f7   : > { %5421 = vmatmul.mubr.bf16.vlgmr.msra.gmra.mxu1 %v1741_v11  ;;  %v5785_v11 = vld [vmem:[#allocation10 + $0x3e0] ss:$8 sps:$4 sm:$0xff]   ;;  %p6493_p9 = scmp.ne.s32.totalorder %s7372_s0, %s6492_s3  ;;  %p6500_p7 = scmp.lt.s32.totalorder %s6498_s28, %s6492_s3 }
 0x4f8   : > { %5425 = vmatpush3.bf16.msra.mxu1 %v2071_v56  ;;  %5426 = vmatprep.mubr.msk.bf16.mxu1 %vm6592_vm4, %v6591_v40  ;;  %v5790_v56 = vld [vmem:[#allocation10 + $0x3d4] ss:$8 sps:$4 sm:$0xff]  }
 0x4f9   : > { %5430 = vmatprep.subr.bf16.mxu1 %v6591_v40  ;;  %2354 = vmatpush1.bf16.msra.mxu0 %v5779_v8  ;;  %p6494_p6 = pnand %p6493_p9, %p7487_p11  ;;  %p6501_p5 = por %p6500_p7, %p6499_p12 }
 0x4fa   : > { %2355 = vmatprep.subr.bf16.mxu0 %v5784_v51 }
 0x4fb   : > { %p6495_p2 = pneg %p6494_p6 }
 0x4fd   : > { %2356 = vmatpush2.bf16.msra.mxu0 %v5782_v9  ;;  %v5806_v9 = vld [vmem:[#allocation11 + $0x170] ss:$8 sps:$4 sm:$0xff]   ;;  %p6502_p10 = pnand %p6501_p5, %p6495_p2 }
 0x4fe   : > { %2357 = vmatprep.subr.bf16.mxu0 %v5787_v10  ;;  %v5808_v10 = vld [vmem:[#allocation11 + $0x174] ss:$8 sps:$4 sm:$0xff]  }
 0x501   : > { %2358 = vmatpush2.bf16.msra.mxu0 %v5785_v11  ;;  %v5811_v11 = vld [vmem:[#allocation11 + $0x164] ss:$8 sps:$4 sm:$0xff]  }
 0x502   : > { %2359 = vmatprep.subr.bf16.mxu0 %v5790_v56  ;;  %v5809_v56 = vld [vmem:[#allocation11 + $0x160] ss:$8 sps:$4 sm:$0xff]  }
 0x59f   : > { %v7069_v28 = vpop.f32.mrf.mxu1 }
 0x5a1   : > { %v5404_v7 = vpop.f32.mrf.mxu1 }
 0x5a2   : > { %v5788_v7 = vld [vmem:[#allocation10 + $0x3d0] ss:$8 sps:$4 sm:$0xff]  }
 0x5a3   : > { %v1910_v12 = vpop.f32.mrf.mxu1  ;;  %2360 = vmatpush2.bf16.msra.mxu0 %v5788_v7  ;;  %v5814_v7 = vld [vmem:[#allocation11 + $0x154] ss:$8 sps:$4 sm:$0xff]  }
 0x5a4   : > { %v5793_v12 = vld [vmem:[#allocation10 + $0x3c4] ss:$8 sps:$4 sm:$0xff]  }
 0x5a5   : > { %v5405_v13 = vpop.f32.mrf.mxu1  ;;  %2361 = vmatprep.subr.bf16.mxu0 %v5793_v12  ;;  %v5827_v12 = vld [vmem:[#allocation11 + $0x70] ss:$8 sps:$4 sm:$0xff]  }
 0x5a6   : > { %v5791_v13 = vld [vmem:[#allocation10 + $0x3c0] ss:$8 sps:$4 sm:$0xff]  }
 0x5a7   : > { %v7071_v16 = vpop.f32.mrf.mxu1  ;;  %2362 = vmatpush2.bf16.msra.mxu0 %v5791_v13  ;;  %v5829_v13 = vld [vmem:[#allocation11 + $0x74] ss:$8 sps:$4 sm:$0xff]  }
 0x5a8   : > { %v2159_v3 = vpack.c.bf16 %v7071_v16, %v7069_v28 }
 0x5a9   : > { %v5410_v17 = vpop.f32.mrf.mxu1 }
 0x5aa   : > { %v5796_v17 = vld [vmem:[#allocation10 + $0x3b4] ss:$8 sps:$4 sm:$0xff]  }
 0x5ab   : > { %v1956_v18 = vpop.f32.mrf.mxu1  ;;  %2363 = vmatprep.subr.bf16.mxu0 %v5796_v17  ;;  %v5835_v17 = vld [vmem:[#allocation11 + $0x64] ss:$8 sps:$4 sm:$0xff]  }
 0x5ac   : > { %v5794_v18 = vld [vmem:[#allocation10 + $0x3b0] ss:$8 sps:$4 sm:$0xff]  }
 0x5ad   : > { %v5411_v19 = vpop.f32.mrf.mxu1  ;;  %2364 = vmatpush2.bf16.msra.mxu0 %v5794_v18  ;;  %v5812_v18 = vld [vmem:[#allocation11 + $0x150] ss:$8 sps:$4 sm:$0xff]  }
 0x5af   : > { %v1993_v20 = vpop.f32.mrf.mxu1 }
 0x5b0   : > { %v2039_v21 = vmul.f32 0.088388346, %v1993_v20 }
 0x5b1   : > { %v5416_v22 = vpop.f32.mrf.mxu1 }
 0x5b2   : > { %v2041_v23 = vsel %vm1754_vm6, %v2039_v21, -1e+09 }
 0x5b3   : > { %v1996_v24 = vpop.f32.mrf.mxu1  ;;  %v2043_v26 = vsel %vm1841_vm7, %v2041_v23, -inf }
 0x5b4   : > { %2044 = vmax.xlane.f32.xlu0 %v2043_v26 }
 0x5b5   : > { %v5417_v25 = vpop.f32.mrf.mxu1 }
 0x5b7   : > { %v2033_v29 = vpop.f32.mrf.mxu1 }
 0x5b8   : > { %v2040_v30 = vmul.f32 0.088388346, %v2033_v29  ;;  %v5799_v29 = vld [vmem:[#allocation10 + $0x3a4] ss:$8 sps:$4 sm:$0xff]  }
 0x5b9   : > { %v5422_v31 = vpop.f32.mrf.mxu1  ;;  %2365 = vmatprep.subr.bf16.mxu0 %v5799_v29  ;;  %v5823_v29 = vld [vmem:[#allocation11 + $0x124] ss:$8 sps:$4 sm:$0xff]  }
 0x5ba   : > { %v2042_v32 = vsel %vm1754_vm6, %v2040_v30, -1e+09  ;;  %v5797_v30 = vld [vmem:[#allocation10 + $0x3a0] ss:$8 sps:$4 sm:$0xff]   ;;  %v5802_v31 = vld [vmem:[#allocation10 + $0x394] ss:$8 sps:$4 sm:$0xff]  }
 0x5bb   : > { %v2036_v35 = vpop.f32.mrf.mxu1  ;;  %v2046_v37 = vsel %vm1841_vm7, %v2042_v32, -inf  ;;  %2366 = vmatpush2.bf16.msra.mxu0 %v5797_v30  ;;  %v5845_v30 = vld [vmem:[#allocation11 + $0x40] ss:$8 sps:$4 sm:$0xff]  }
 0x5bc   : > { %2047 = vmax.xlane.f32.xlu1 %v2046_v37  ;;  %2367 = vmatprep.subr.bf16.mxu0 %v5802_v31  ;;  %v5805_v35 = vld [vmem:[#allocation10 + $0x384] ss:$8 sps:$4 sm:$0xff]   ;;  %v5803_v37 = vld [vmem:[#allocation10 + $0x380] ss:$8 sps:$4 sm:$0xff]   ;;  %v5853_v31 = vld [vmem:[#allocation11 + $0x34] ss:$8 sps:$4 sm:$0xff]  }
 0x5bd   : > { %v5423_v38 = vpop.f32.mrf.mxu1 }
 0x63d   : > { %v2045_v39 = vpop.xlane.xlu0 %2044 }
 0x63e   : > { %v2049_v45 = vsub.f32 %v2041_v23, %v2045_v39 }
 0x640   : > { %v2051_v46 = vmul.f32 1.442695, %v2049_v45 }
 0x642   : > { %6206 = vpow2.f32 %v2051_v46 }
 0x645   : > { %v2048_v47 = vpop.xlane.xlu1 %2047 }
 0x646   : > { %v2050_v48 = vsub.f32 %v2042_v32, %v2048_v47  ;;  %v5800_v32 = vld [vmem:[#allocation10 + $0x390] ss:$8 sps:$4 sm:$0xff]  }
 0x647   : > { %2368 = vmatpush2.bf16.msra.mxu0 %v5800_v32  ;;  %v5821_v32 = vld [vmem:[#allocation11 + $0x120] ss:$8 sps:$4 sm:$0xff]  }
 0x648   : > { %v2053_v49 = vmul.f32 1.442695, %v2050_v48  ;;  %2369 = vmatprep.subr.bf16.mxu0 %v5805_v35  ;;  %v5826_v35 = vld [vmem:[#allocation11 + $0x114] ss:$8 sps:$4 sm:$0xff]  }
 0x64a   : > { %6208 = vpow2.f32 %v2053_v49 }
 0x64b   : > { %2370 = vmatpush2.bf16.msra.mxu0 %v5803_v37  ;;  %v5851_v37 = vld [vmem:[#allocation11 + $0x30] ss:$8 sps:$4 sm:$0xff]  }
 0x64c   : > { %2878 = vmatprep.subr.bf16.mxu0 %v5808_v10  ;;  %v5854_v10 = vld [vmem:[#allocation11 + $0x1c0] ss:$8 sps:$4 sm:$0xff]  }
 0x64f   : > { %v7083_v50 = vpop.eup %6206 }
 0x650   : > { %v2055_v52 = vsel %vm1841_vm7, %v7083_v50, 0.0 }
 0x651   : > { %2056 = vadd.xlane.f32.xlu0 %v2055_v52  ;;  %v7102_v52 = vsub.s32 3, %v6948_v36 }
 0x657   : > { %v7087_v15 = vpop.eup %6208 }
 0x658   : > { %v2058_v53 = vsel %vm1841_vm7, %v7087_v15, 0.0 }
 0x659   : > { %2059 = vadd.xlane.f32.xlu1 %v2058_v53  ;;  %v2164_v53 = vrot.slane %v6982_v44, %v7102_v52 }
 0x65b   : > { %v2174_v57 = vrot.slane %v2164_v53, %v7102_v52 }
 0x6da   : > { %v2057_v19 = vpop.xlane.xlu0 %2056 }
 0x6db   : > { %6210 = vrcp.f32 %v2057_v19  ;;  %v5817_v19 = vld [vmem:[#allocation11 + $0x144] ss:$8 sps:$4 sm:$0xff]  }
 0x6e2   : > { %v2060_v20 = vpop.xlane.xlu1 %2059 }
 0x6e3   : > { %6212 = vrcp.f32 %v2060_v20  ;;  %v5833_v20 = vld [vmem:[#allocation11 + $0x60] ss:$8 sps:$4 sm:$0xff]  }
 0x6e8   : > { %v6211_v21 = vpop.eup %6210 }
 0x6e9   : > { %v2063_v22 = vmul.f32 %v6211_v21, %v7083_v50  ;;  %v5841_v21 = vld [vmem:[#allocation11 + $0x54] ss:$8 sps:$4 sm:$0xff]  }
 0x6eb   : > { %v2065_v23 = vpack.c.bf16 %v2063_v22, %v2063_v22  ;;  %v5815_v22 = vld [vmem:[#allocation11 + $0x140] ss:$8 sps:$4 sm:$0xff]  }
 0x6ed   : > { %5427 = vmatmul.mubr.msk.bf16.vlgmr.msra.gmra.mxu1 %vm1841_vm7, %v2065_v23  ;;  %v5820_v23 = vld [vmem:[#allocation11 + $0x134] ss:$8 sps:$4 sm:$0xff]  }
 0x6ee   : > { %5431 = vmatpush3.bf16.msra.mxu1 %v7023_v14  ;;  %5432 = vmatprep.mubr.msk.bf16.mxu1 %vm6592_vm4, %v6591_v40 }
 0x6ef   : > { %2657 = vmatprep.subr.bf16.mxu1 %v5829_v13  ;;  %v5877_v13 = vld [vmem:[#allocation11 + $0xf4] ss:$8 sps:$4 sm:$0xff]  }
 0x6f0   : > { %v6213_v24 = vpop.eup %6212 }
 0x6f1   : > { %v2064_v26 = vmul.f32 %v6213_v24, %v7087_v15  ;;  %v2167_v15 = vsub.s32 7, %v6948_v36  ;;  %v5839_v24 = vld [vmem:[#allocation11 + $0x50] ss:$8 sps:$4 sm:$0xff]  }
 0x6f3   : > { %v2066_v25 = vpack.c.bf16 %v2064_v26, %v2064_v26  ;;  %v2168_v55 = vrot.slane %v6982_v44, %v2167_v15  ;;  %v5847_v26 = vld [vmem:[#allocation11 + $0x44] ss:$8 sps:$4 sm:$0xff]  }
 0x6f5   : > { %5433 = vmatmul.mubr.msk.bf16.vlgmr.msra.gmra.mxu1 %vm1841_vm7, %v2066_v25  ;;  %v2178_v28 = vrot.slane %v2168_v55, %v7102_v52  ;;  %v5818_v25 = vld [vmem:[#allocation11 + $0x130] ss:$8 sps:$4 sm:$0xff]  }
 0x6f6   : > { %2658 = vmatpush1.bf16.msra.mxu1 %v5827_v12  ;;  %v5860_v12 = vld [vmem:[#allocation11 + $0x1b0] ss:$8 sps:$4 sm:$0xff]  }
 0x6f7   : > { %2659 = vmatprep.subr.bf16.mxu1 %v5835_v17  ;;  %v5875_v17 = vld [vmem:[#allocation11 + $0xf0] ss:$8 sps:$4 sm:$0xff]  }
 0x6fa   : > { %2660 = vmatpush1.bf16.msra.mxu1 %v5833_v20  ;;  %v5883_v20 = vld [vmem:[#allocation11 + $0xe4] ss:$8 sps:$4 sm:$0xff]  }
 0x6fb   : > { %2661 = vmatprep.subr.bf16.mxu1 %v5841_v21  ;;  %v5881_v21 = vld [vmem:[#allocation11 + $0xe0] ss:$8 sps:$4 sm:$0xff]  }
 0x6fe   : > { %2662 = vmatpush1.bf16.msra.mxu1 %v5839_v24  ;;  %v5886_v24 = vld [vmem:[#allocation11 + $0xd4] ss:$8 sps:$4 sm:$0xff]  }
 0x6ff   : > { %2663 = vmatprep.subr.bf16.mxu1 %v5847_v26  ;;  %v5884_v26 = vld [vmem:[#allocation11 + $0xd0] ss:$8 sps:$4 sm:$0xff]  }
 0x702   : > { %2664 = vmatpush1.bf16.msra.mxu1 %v5845_v30  ;;  %v578_v30 = vld [vmem:[%s6905_s7 + $0x8] sm:$0xff] }
 0x703   : > { %2665 = vmatprep.subr.bf16.mxu1 %v5853_v31  ;;  %v580_v31 = vld [vmem:[%s6905_s7 + $0x18] sm:$0xff] }
 0x706   : > { %2666 = vmatpush1.bf16.msra.mxu1 %v5851_v37  ;;  %v579_v37 = vld [vmem:[%s6905_s7 + $0x10] sm:$0xff] }
 0x7ad   : > { %v2107_v14 = vpop.f32.mrf.mxu1 }
 0x7af   : > { %v5428_v38 = vpop.f32.mrf.mxu1 }
 0x7b0   : > { %v5832_v38 = vld [vmem:[#allocation11 + $0x104] ss:$8 sps:$4 sm:$0xff]  }
 0x7b1   : > { %v2110_v39 = vpop.f32.mrf.mxu1 }
 0x7b2   : > { %v5830_v39 = vld [vmem:[#allocation11 + $0x100] ss:$8 sps:$4 sm:$0xff]  }
 0x7b3   : > { %v5429_v45 = vpop.f32.mrf.mxu1 }
 0x7b4   : > { %v5838_v45 = vld [vmem:[#allocation11 + $0x1f4] ss:$8 sps:$4 sm:$0xff]  }
 0x7b5   : > { %v2153_v46 = vpop.f32.mrf.mxu1 }
 0x7b6   : > { %v2160_v47 = vpack.c.bf16 %v2153_v46, %v2107_v14  ;;  %v5824_v14 = vld [vmem:[#allocation11 + $0x110] ss:$8 sps:$4 sm:$0xff]  }
 0x7b7   : > { %v5434_v48 = vpop.f32.mrf.mxu1  ;;  %v5836_v46 = vld [vmem:[#allocation11 + $0x1f0] ss:$8 sps:$4 sm:$0xff]  }
 0x7b8   : > { %2371 = vmatprep.mubr.bf16.mxu0 %v2160_v47  ;;  %v5844_v47 = vld [vmem:[#allocation11 + $0x1e4] ss:$8 sps:$4 sm:$0xff]   ;;  %v5842_v48 = vld [vmem:[#allocation11 + $0x1e0] ss:$8 sps:$4 sm:$0xff]  }
 0x7b9   : > { %v2156_v49 = vpop.f32.mrf.mxu1  ;;  %2372 = vmatmul.mubr.bf16.vlgmr.msra.gmra.mxu0 %v2159_v3 }
 0x7ba   : > { %2879 = vmatpush1.bf16.msra.mxu0 %v5806_v9  ;;  %v5850_v49 = vld [vmem:[#allocation11 + $0x1d4] ss:$8 sps:$4 sm:$0xff]   ;;  %v5856_v9 = vld [vmem:[#allocation11 + $0x1c4] ss:$8 sps:$4 sm:$0xff]  }
 0x7bb   : > { %v5435_v50 = vpop.f32.mrf.mxu1  ;;  %2880 = vmatprep.subr.bf16.mxu0 %v5811_v11  ;;  %v5871_v11 = vld [vmem:[#allocation11 + $0x4] ss:$8 sps:$4 sm:$0xff]  }
 0x7bc   : > { %v5848_v50 = vld [vmem:[#allocation11 + $0x1d0] ss:$8 sps:$4 sm:$0xff]  }
 0x7be   : > { %2881 = vmatpush1.bf16.msra.mxu0 %v5809_v56  ;;  %v5869_v56 = vld [vmem:[#allocation11] ss:$8 sps:$4 sm:$0xff]  }
 0x7bf   : > { %2882 = vmatprep.subr.bf16.mxu0 %v5814_v7  ;;  %v5862_v7 = vld [vmem:[#allocation11 + $0x1b4] ss:$8 sps:$4 sm:$0xff]  }
 0x7c2   : > { %2883 = vmatpush1.bf16.msra.mxu0 %v5812_v18  ;;  %v5868_v18 = vld [vmem:[#allocation11 + $0x1a4] ss:$8 sps:$4 sm:$0xff]  }
 0x7c3   : > { %2884 = vmatprep.subr.bf16.mxu0 %v5817_v19  ;;  %v5866_v19 = vld [vmem:[#allocation11 + $0x1a0] ss:$8 sps:$4 sm:$0xff]  }
 0x7c6   : > { %2885 = vmatpush1.bf16.msra.mxu0 %v5815_v22  ;;  %v5874_v22 = vld [vmem:[#allocation11 + $0x194] ss:$8 sps:$4 sm:$0xff]  }
 0x7c7   : > { %2886 = vmatprep.subr.bf16.mxu0 %v5820_v23  ;;  %v5872_v23 = vld [vmem:[#allocation11 + $0x190] ss:$8 sps:$4 sm:$0xff]  }
 0x7ca   : > { %2887 = vmatpush1.bf16.msra.mxu0 %v5818_v25  ;;  %v5880_v25 = vld [vmem:[#allocation11 + $0x184] ss:$8 sps:$4 sm:$0xff]  }
 0x7cb   : > { %2888 = vmatprep.subr.bf16.mxu0 %v5823_v29  ;;  %v5878_v29 = vld [vmem:[#allocation11 + $0x180] ss:$8 sps:$4 sm:$0xff]  }
 0x7ce   : > { %2889 = vmatpush1.bf16.msra.mxu0 %v5821_v32  ;;  %v7150_v32 = vpack.c.bf16 %v580_v31, %v578_v30 }
 0x7cf   : > { %2890 = vmatprep.subr.bf16.mxu0 %v5826_v35  ;;  %v577_v35 = vld [vmem:[%s6905_s7] sm:$0xff] }
 0x7d0   : > { %2910 = vmatprep.mubr.bf16.mxu0 %v7150_v32 }
 0x7d2   : > { %2891 = vmatpush1.bf16.msra.mxu0 %v5824_v14  ;;  %v5887_v14 = vld [vmem:[#allocation11 + $0xc0] ss:$8 sps:$4 sm:$0xff]  }
 0x7d3   : > { %2892 = vmatprep.subr.bf16.mxu0 %v5832_v38  ;;  %v7154_v38 = vpack.c.bf16 %v579_v37, %v577_v35 }
 0x7d6   : > { %2893 = vmatpush1.bf16.msra.mxu0 %v5830_v39  ;;  %v5889_v39 = vld [vmem:[#allocation11 + $0xc4] ss:$8 sps:$4 sm:$0xff]  }
 0x7d7   : > { %2894 = vmatprep.subr.bf16.mxu0 %v5838_v45  ;;  %v5892_v45 = vld [vmem:[#allocation11 + $0xb4] ss:$8 sps:$4 sm:$0xff]  }
 0x7da   : > { %2895 = vmatpush2.bf16.msra.mxu0 %v5836_v46  ;;  %v582_v46 = vld [vmem:[%s6905_s7 + $0x28] sm:$0xff] }
 0x7db   : > { %2896 = vmatprep.subr.bf16.mxu0 %v5844_v47  ;;  %v584_v47 = vld [vmem:[%s6905_s7 + $0x38] sm:$0xff] }
 0x7de   : > { %2897 = vmatpush2.bf16.msra.mxu0 %v5842_v48  ;;  %v5890_v48 = vld [vmem:[#allocation11 + $0xb0] ss:$8 sps:$4 sm:$0xff]  }
 0x7df   : > { %2898 = vmatprep.subr.bf16.mxu0 %v5850_v49  ;;  %v7160_v49 = vpack.c.bf16 %v584_v47, %v582_v46 }
 0x7e2   : > { %2899 = vmatpush2.bf16.msra.mxu0 %v5848_v50  ;;  %v5895_v50 = vld [vmem:[#allocation11 + $0xa4] ss:$8 sps:$4 sm:$0xff]  }
 0x7e3   : > { %2900 = vmatprep.subr.bf16.mxu0 %v5856_v9 }
 0x7e6   : > { %2901 = vmatpush2.bf16.msra.mxu0 %v5854_v10 }
 0x7e7   : > { %2902 = vmatprep.subr.bf16.mxu0 %v5862_v7 }
 0x7ea   : > { %2903 = vmatpush2.bf16.msra.mxu0 %v5860_v12 }
 0x7eb   : > { %2904 = vmatprep.subr.bf16.mxu0 %v5868_v18 }
 0x7ee   : > { %2905 = vmatpush2.bf16.msra.mxu0 %v5866_v19 }
 0x7ef   : > { %2906 = vmatprep.subr.bf16.mxu0 %v5874_v22 }
 0x7f2   : > { %2907 = vmatpush2.bf16.msra.mxu0 %v5872_v23 }
 0x7f3   : > { %2908 = vmatprep.subr.bf16.mxu0 %v5880_v25  ;;  %v6251_v25 = vld [vmem:[#allocation8] sm:$0x77] }
 0x7f4   : > { %v2457_v30 = vrot.slane %v6251_v25, %v6977_v41 }
 0x7f6   : > { %2909 = vmatpush2.bf16.msra.mxu0 %v5878_v29  ;;  %v2461_v29 = vrot.slane %v6251_v25, %v7041_v54 }
 0x7f8   : > { %v2471_v46 = vrot.slane %v2461_v29, %v6977_v41  ;;  %v5943_v29 = vld [vmem:[#allocation11 + $0x2a4] ss:$8 sps:$4 sm:$0xff]  }
 0x7f9   : > { %2911 = vmatmul.mubr.bf16.vlgmr.msra.gmra.mxu0 %v7154_v38 }
 0x7fa   : > { %2920 = vmatprep.mubr.bf16.mxu0 %v7160_v49 }
 0x879   : > { %v2373_v16 = vpop.f32.mrf.mxu0 }
 0x87a   : > { %v2374_v3 = vadd.f32 %v2373_v16, %v2174_v57 }
 0x87b   : > { %v2375_v58 = vpop.f32.mrf.mxu0 }
 0x87c   : > { %v2376_v59 = vadd.f32 %v2375_v58, %v2178_v28  ;;  %v7113_v62 = vadd.f32 %v6246_v61, %v2374_v3 }
 0x87d   : > { %v2377_v60 = vpop.f32.mrf.mxu0 }
 0x87e   : > { %v7116_v1 = vadd.f32 %v6247_v0, %v2376_v59  ;;  %v2378_v4 = vadd.f32 %v2377_v60, %v2174_v57 }
 0x87f   : > { %v2379_v27 = vpop.f32.mrf.mxu0 }
 0x880   : > { %v2380_v44 = vadd.f32 %v2379_v27, %v2178_v28  ;;  %v2386_v5 = vadd.f32 %v7116_v1, %v7113_v62  ;;  %v7121_v34 = vadd.f32 %v6248_v33, %v2378_v4  ;;  %v5857_v33 = vld [vmem:[#allocation11 + $0x20] ss:$8 sps:$4 sm:$0xff]  }
 0x882   : > { %v7124_v8 = vadd.f32 %v6249_v6, %v2380_v44  ;;  %2387 = vadd.xlane.f32.xlu0 %v2386_v5  ;;  %v5859_v5 = vld [vmem:[#allocation11 + $0x24] ss:$8 sps:$4 sm:$0xff]   ;;  %v5865_v6 = vld [vmem:[#allocation11 + $0x14] ss:$8 sps:$4 sm:$0xff]  }
 0x883   : > { %2667 = vmatprep.subr.bf16.mxu1 %v5859_v5 }
 0x884   : > { %v2389_v51 = vadd.f32 %v7124_v8, %v7121_v34  ;;  %2668 = vmatpush1.bf16.msra.mxu1 %v5857_v33 }
 0x885   : > { %2669 = vmatprep.subr.bf16.mxu1 %v5865_v6 }
 0x886   : > { %2390 = vadd.xlane.f32.xlu1 %v2389_v51  ;;  %v5863_v51 = vld [vmem:[#allocation11 + $0x10] ss:$8 sps:$4 sm:$0xff]  }
 0x888   : > { %2670 = vmatpush1.bf16.msra.mxu1 %v5863_v51 }
 0x889   : > { %2671 = vmatprep.subr.bf16.mxu1 %v5871_v11 }
 0x88c   : > { %2672 = vmatpush1.bf16.msra.mxu1 %v5869_v56 }
 0x88d   : > { %2673 = vmatprep.subr.bf16.mxu1 %v5877_v13 }
 0x890   : > { %2674 = vmatpush2.bf16.msra.mxu1 %v5875_v17 }
 0x891   : > { %2675 = vmatprep.subr.bf16.mxu1 %v5883_v20 }
 0x894   : > { %2676 = vmatpush2.bf16.msra.mxu1 %v5881_v21  ;;  %v6250_v21 = vld [vmem:[#allocation7] sm:$0x77] }
 0x895   : > { %2677 = vmatprep.subr.bf16.mxu1 %v5886_v24  ;;  %v2431_v22 = vrot.slane %v6250_v21, %v6977_v41  ;;  %v2435_v23 = vrot.slane %v6250_v21, %v7041_v54  ;;  %v5937_v21 = vld [vmem:[#allocation11 + $0x2c4] ss:$8 sps:$4 sm:$0xff]  }
 0x897   : > { %v2441_v24 = vrot.slane %v2431_v22, %v6977_v41  ;;  %v5935_v22 = vld [vmem:[#allocation11 + $0x2c0] ss:$8 sps:$4 sm:$0xff]  }
 0x898   : > { %2678 = vmatpush2.bf16.msra.mxu1 %v5884_v26  ;;  %v2445_v26 = vrot.slane %v2435_v23, %v6977_v41  ;;  %v5940_v23 = vld [vmem:[#allocation11 + $0x2b4] ss:$8 sps:$4 sm:$0xff]  }
 0x899   : > { %2679 = vmatprep.subr.bf16.mxu1 %v5889_v39 }
 0x89c   : > { %2680 = vmatpush2.bf16.msra.mxu1 %v5887_v14 }
 0x89d   : > { %2681 = vmatprep.subr.bf16.mxu1 %v5892_v45 }
 0x8a0   : > { %2682 = vmatpush2.bf16.msra.mxu1 %v5890_v48  ;;  %v2467_v48 = vrot.slane %v2457_v30, %v6977_v41 }
 0x8a1   : > { %2683 = vmatprep.subr.bf16.mxu1 %v5895_v50 }
 0x8b9   : > { %v2912_v30 = vpop.f32.mrf.mxu0 }
 0x90b   : > { %v2388_v53 = vpop.xlane.xlu0 %2387 }
 0x90c   : > { %v2392_v55 = vmul.f32 0.00390625, %v2388_v53  ;;  %v581_v53 = vld [vmem:[%s6905_s7 + $0x20] sm:$0xff] }
 0x90e   : > { %v7129_v57 = vsub.f32 %v7113_v62, %v2392_v55  ;;  %v7132_v28 = vsub.f32 %v7116_v1, %v2392_v55  ;;  %v583_v55 = vld [vmem:[%s6905_s7 + $0x30] sm:$0xff] }
 0x90f   : > { %v2391_v16 = vpop.xlane.xlu1 %2390 }
 0x910   : > { %v2393_v3 = vmul.f32 0.00390625, %v2391_v16  ;;  %v2398_v58 = vmul.f32 %v7129_v57, %v7129_v57  ;;  %v2399_v59 = vmul.f32 %v7132_v28, %v7132_v28  ;;  %v5893_v16 = vld [vmem:[#allocation11 + $0xa0] ss:$8 sps:$4 sm:$0xff]   ;;  %v2446_v35 = vmul.f32 %v2441_v24, %v7129_v57 }
 0x911   : > { %2684 = vmatpush2.bf16.msra.mxu1 %v5893_v16  ;;  %v2447_v37 = vmul.f32 %v2445_v26, %v7132_v28  ;;  %v5902_v28 = vld [vmem:[#allocation11 + $0x270] ss:$8 sps:$4 sm:$0xff]  }
 0x912   : > { %v7139_v60 = vsub.f32 %v7121_v34, %v2393_v3  ;;  %v7142_v61 = vsub.f32 %v7124_v8, %v2393_v3  ;;  %v2402_v0 = vadd.f32 %v2399_v59, %v2398_v58  ;;  %v7165_v3 = vpack.c.bf16 %v583_v55, %v581_v53  ;;  %v5898_v58 = vld [vmem:[#allocation11 + $0x94] ss:$8 sps:$4 sm:$0xff]   ;;  %v5896_v59 = vld [vmem:[#allocation11 + $0x90] ss:$8 sps:$4 sm:$0xff]  }
 0x913   : > { %2685 = vmatprep.subr.bf16.mxu1 %v5898_v58 }
 0x914   : > { %v2400_v4 = vmul.f32 %v7139_v60, %v7139_v60  ;;  %v2401_v27 = vmul.f32 %v7142_v61, %v7142_v61  ;;  %2403 = vadd.xlane.f32.xlu0 %v2402_v0  ;;  %2921 = vmatmul.mubr.bf16.gmra.mxu0 %v7165_v3  ;;  %v5901_v0 = vld [vmem:[#allocation11 + $0x84] ss:$8 sps:$4 sm:$0xff]   ;;  %v2448_v14 = vmul.f32 %v2441_v24, %v7139_v60  ;;  %v5905_v60 = vld [vmem:[#allocation11 + $0x260] ss:$8 sps:$4 sm:$0xff]  }
 0x915   : > { %2686 = vmatpush2.bf16.msra.mxu1 %v5896_v59  ;;  %v2449_v39 = vmul.f32 %v2445_v26, %v7142_v61  ;;  %v5910_v61 = vld [vmem:[#allocation11 + $0x254] ss:$8 sps:$4 sm:$0xff]   ;;  %v7181_v24 = vld [vmem:[#allocation13] sm:$0xff]  ;;  %v5938_v26 = vld [vmem:[#allocation11 + $0x2b0] ss:$8 sps:$4 sm:$0xff]  }
 0x916   : > { %v2405_v44 = vadd.f32 %v2401_v27, %v2400_v4  ;;  %v5899_v4 = vld [vmem:[#allocation11 + $0x80] ss:$8 sps:$4 sm:$0xff]   ;;  %2687 = vmatprep.subr.bf16.mxu1 %v5901_v0  ;;  %v5904_v27 = vld [vmem:[#allocation11 + $0x274] ss:$8 sps:$4 sm:$0xff]   ;;  %v2707_v25 = vrot.slane %v7181_v24, %v7041_v54 }
 0x918   : > { %2406 = vadd.xlane.f32.xlu1 %v2405_v44 }
 0x919   : > { %2688 = vmatpush2.bf16.msra.mxu1 %v5899_v4 }
 0x91a   : > { %3109 = vmatprep.subr.bf16.mxu1 %v5904_v27  ;;  %v5907_v27 = vld [vmem:[#allocation11 + $0x264] ss:$8 sps:$4 sm:$0xff]  }
 0x99d   : > { %v2404_v44 = vpop.xlane.xlu0 %2403 }
 0x99e   : > { %v2408_v5 = vmul.f32 0.003921569, %v2404_v44  ;;  %v5908_v44 = vld [vmem:[#allocation11 + $0x250] ss:$8 sps:$4 sm:$0xff]  }
 0x9a0   : > { %6214 = vrsqrt.f32 %v2408_v5  ;;  %vm2412_vm8 = vcmp.eq.f32.partialorder %v2408_v5, inf  ;;  %v2415_v10 = vand.u32 2147483648, %v2408_v5  ;;  %vm2414_vm9 = vcmp.eq.f32.partialorder %v2408_v5, 0.0 }
 0x9a1   : > { %v2407_v33 = vpop.xlane.xlu1 %2406 }
 0x9a2   : > { %v2409_v6 = vmul.f32 0.003921569, %v2407_v33  ;;  %v5911_v33 = vld [vmem:[#allocation11 + $0x240] ss:$8 sps:$4 sm:$0xff]  }
 0x9a4   : > { %6216 = vrsqrt.f32 %v2409_v6  ;;  %vm2419_vm10 = vcmp.eq.f32.partialorder %v2409_v6, inf  ;;  %v2422_v17 = vand.u32 2147483648, %v2409_v6  ;;  %vm2421_vm11 = vcmp.eq.f32.partialorder %v2409_v6, 0.0 }
 0x9ad   : > { %v6215_v51 = vpop.eup %6214 }
 0x9ae   : > { %v2411_v9 = vmul.f32 %v6215_v51, %v2408_v5  ;;  %v5914_v51 = vld [vmem:[#allocation11 + $0x230] ss:$8 sps:$4 sm:$0xff]  }
 0x9b0   : > { %v2413_v56 = vsel %vm2412_vm8, %v2408_v5, %v2411_v9  ;;  %v5913_v5 = vld [vmem:[#allocation11 + $0x244] ss:$8 sps:$4 sm:$0xff]  }
 0x9b1   : > { %v6217_v11 = vpop.eup %6216  ;;  %v2416_v7 = vsel %vm2414_vm9, %v2415_v10, %v2413_v56  ;;  %v5919_v9 = vld [vmem:[#allocation11 + $0x224] ss:$8 sps:$4 sm:$0xff]   ;;  %v5917_v10 = vld [vmem:[#allocation11 + $0x220] ss:$8 sps:$4 sm:$0xff]  }
 0x9b2   : > { %v2418_v12 = vmul.f32 %v6217_v11, %v2409_v6  ;;  %v2424_v13 = vadd.f32 1e-06, %v2416_v7  ;;  %v5922_v11 = vld [vmem:[#allocation11 + $0x214] ss:$8 sps:$4 sm:$0xff]   ;;  %v5925_v56 = vld [vmem:[#allocation11 + $0x204] ss:$8 sps:$4 sm:$0xff]  }
 0x9b3   : > { %v5923_v7 = vld [vmem:[#allocation11 + $0x200] ss:$8 sps:$4 sm:$0xff]  }
 0x9b4   : > { %v2420_v18 = vsel %vm2419_vm10, %v2409_v6, %v2418_v12  ;;  %6218 = vrcp.f32 %v2424_v13  ;;  %v5916_v6 = vld [vmem:[#allocation11 + $0x234] ss:$8 sps:$4 sm:$0xff]   ;;  %v5926_v13 = vld [vmem:[#allocation11 + $0x2f0] ss:$8 sps:$4 sm:$0xff]  }
 0x9b5   : > { %v2423_v19 = vsel %vm2421_vm11, %v2422_v17, %v2420_v18  ;;  %v5928_v12 = vld [vmem:[#allocation11 + $0x2f4] ss:$8 sps:$4 sm:$0xff]   ;;  %v5931_v17 = vld [vmem:[#allocation11 + $0x2e4] ss:$8 sps:$4 sm:$0xff]   ;;  %v5929_v18 = vld [vmem:[#allocation11 + $0x2e0] ss:$8 sps:$4 sm:$0xff]  }
 0x9b6   : > { %v2425_v20 = vadd.f32 1e-06, %v2423_v19  ;;  %v5934_v19 = vld [vmem:[#allocation11 + $0x2d4] ss:$8 sps:$4 sm:$0xff]  }
 0x9b8   : > { %6220 = vrcp.f32 %v2425_v20  ;;  %v5932_v20 = vld [vmem:[#allocation11 + $0x2d0] ss:$8 sps:$4 sm:$0xff]  }
 0x9c1   : > { %v6219_v31 = vpop.eup %6218 }
 0x9c2   : > { %v2451_v45 = vmul.f32 %v6219_v31, %v2447_v37  ;;  %v2450_v47 = vmul.f32 %v6219_v31, %v2446_v35  ;;  %v5941_v31 = vld [vmem:[#allocation11 + $0x2a0] ss:$8 sps:$4 sm:$0xff]   ;;  %v2703_v35 = vrot.slane %v7181_v24, %v6977_v41  ;;  %v7188_v37 = vrot.slane %v2707_v25, %v6977_v41 }
 0x9c4   : > { %v2473_v16 = vadd.f32 %v2471_v46, %v2451_v45  ;;  %v2472_v59 = vadd.f32 %v2467_v48, %v2450_v47  ;;  %v5944_v47 = vld [vmem:[#allocation11 + $0x290] ss:$8 sps:$4 sm:$0xff]  }
 0x9c5   : > { %v6221_v50 = vpop.eup %6220 }
 0x9c6   : > { %v2453_v53 = vmul.f32 %v6221_v50, %v2449_v39  ;;  %v2452_v55 = vmul.f32 %v6221_v50, %v2448_v14  ;;  %v5946_v14 = vld [vmem:[#allocation11 + $0x294] ss:$8 sps:$4 sm:$0xff]   ;;  %v2914_v39 = vpop.f32.mrf.mxu0 }
 0x9c7   : > { %v7192_v54 = vadd.f32 %v2914_v39, %v7188_v37 }
 0x9c8   : > { %v2475_v58 = vadd.f32 %v2471_v46, %v2453_v53  ;;  %v2474_v0 = vadd.f32 %v2467_v48, %v2452_v55  ;;  %v2916_v45 = vpop.f32.mrf.mxu0  ;;  %v2713_v46 = vrot.slane %v2703_v35, %v6977_v41  ;;  %v5949_v48 = vld [vmem:[#allocation11 + $0x284] ss:$8 sps:$4 sm:$0xff]  }
 0x9ca   : > { %v2477_v57 = vpack.c.bf16 %v2475_v58, %v2473_v16  ;;  %v2476_v4 = vpack.c.bf16 %v2474_v0, %v2472_v59  ;;  %v2918_v50 = vpop.f32.mrf.mxu0  ;;  %v2913_v55 = vadd.f32 %v2912_v30, %v2713_v46  ;;  %v2917_v16 = vadd.f32 %v2916_v45, %v2713_v46  ;;  %v5947_v58 = vld [vmem:[#allocation11 + $0x280] ss:$8 sps:$4 sm:$0xff]  }
 0x9cb   : > { %v7195_v53 = vadd.f32 %v2918_v50, %v7188_v37 }
 0x9cc   : > { %2689 = vmatprep.mubr.bf16.mxu1 %v2477_v57  ;;  %v3166_v0 = vpack.c.bf16 %v2917_v16, %v2913_v55 }
 0x9cd   : > { %2690 = vmatmul.mubr.bf16.vlgmr.msra.gmra.mxu1 %v2476_v4  ;;  %v3167_v59 = vpack.c.bf16 %v7195_v53, %v7192_v54  ;;  %v2482_v4 = vrot.slane %v7181_v24, %v6951_v42 }
 0x9ce   : > { %3110 = vmatpush1.bf16.msra.mxu1 %v5902_v28  ;;  %3141 = vmatprep.mubr.bf16.mxu1 %v7150_v32  ;;  %v5920_v32 = vld [vmem:[#allocation11 + $0x210] ss:$8 sps:$4 sm:$0xff]  }
 0x9cf   : > { %3111 = vmatprep.subr.bf16.mxu1 %v5907_v27  ;;  %v2492_v27 = vrot.slane %v2482_v4, %v6951_v42 }
 0x9d2   : > { %3112 = vmatpush1.bf16.msra.mxu1 %v5905_v60 }
 0x9d3   : > { %3113 = vmatprep.subr.bf16.mxu1 %v5910_v61 }
 0x9d4   : > { %v2922_v57 = vpop.f32.mrf.mxu0 }
 0x9d6   : > { %3114 = vmatpush1.bf16.msra.mxu1 %v5908_v44  ;;  %v7208_v28 = vpop.f32.mrf.mxu0 }
 0x9d7   : > { %3115 = vmatprep.subr.bf16.mxu1 %v5913_v5 }
 0x9d8   : > { %v2926_v60 = vpop.f32.mrf.mxu0 }
 0x9d9   : > { %v2927_v61 = vadd.f32 %v2926_v60, %v2713_v46 }
 0x9da   : > { %3116 = vmatpush1.bf16.msra.mxu1 %v5911_v33 }
 0x9db   : > { %3117 = vmatprep.subr.bf16.mxu1 %v5916_v6 }
 0x9de   : > { %3118 = vmatpush1.bf16.msra.mxu1 %v5914_v51 }
 0x9df   : > { %3119 = vmatprep.subr.bf16.mxu1 %v5919_v9 }
 0x9e2   : > { %3120 = vmatpush1.bf16.msra.mxu1 %v5917_v10  ;;  %v2934_v10 = vrot.slane %v7181_v24, %v7001_v63 }
 0x9e3   : > { %3121 = vmatprep.subr.bf16.mxu1 %v5922_v11  ;;  %v2938_v11 = vrot.slane %v7181_v24, %v7007_v2 }
 0x9e6   : > { %3122 = vmatpush1.bf16.msra.mxu1 %v5920_v32 }
 0x9e7   : > { %3123 = vmatprep.subr.bf16.mxu1 %v5925_v56  ;;  %v2944_v56 = vrot.slane %v2934_v10, %v7001_v63 }
 0x9ea   : > { %3124 = vmatpush1.bf16.msra.mxu1 %v5923_v7 }
 0x9eb   : > { %3125 = vmatprep.subr.bf16.mxu1 %v5928_v12  ;;  %v2948_v12 = vrot.slane %v2938_v11, %v7001_v63 }
 0x9ee   : > { %3126 = vmatpush2.bf16.msra.mxu1 %v5926_v13 }
 0x9ef   : > { %3127 = vmatprep.subr.bf16.mxu1 %v5931_v17 }
 0x9f2   : > { %3128 = vmatpush2.bf16.msra.mxu1 %v5929_v18 }
 0x9f3   : > { %3129 = vmatprep.subr.bf16.mxu1 %v5934_v19 }
 0x9f6   : > { %3130 = vmatpush2.bf16.msra.mxu1 %v5932_v20 }
 0x9f7   : > { %3131 = vmatprep.subr.bf16.mxu1 %v5937_v21 }
 0x9fa   : > { %3132 = vmatpush2.bf16.msra.mxu1 %v5935_v22 }
 0x9fb   : > { %3133 = vmatprep.subr.bf16.mxu1 %v5940_v23 }
 0x9fe   : > { %3134 = vmatpush2.bf16.msra.mxu1 %v5938_v26 }
 0x9ff   : > { %3135 = vmatprep.subr.bf16.mxu1 %v5943_v29 }
 0xa02   : > { %3136 = vmatpush2.bf16.msra.mxu1 %v5941_v31 }
 0xa03   : > { %3137 = vmatprep.subr.bf16.mxu1 %v5946_v14 }
 0xa06   : > { %3138 = vmatpush2.bf16.msra.mxu1 %v5944_v47 }
 0xa07   : > { %3139 = vmatprep.subr.bf16.mxu1 %v5949_v48 }
 0xa0a   : > { %3140 = vmatpush2.bf16.msra.mxu1 %v5947_v58 }
 0xa0b   : > { %5436 = vmatprep.subr.bf16.mxu1 %v6591_v40 }
 0xa0d   : > { %3142 = vmatmul.mubr.bf16.vlgmr.msra.gmra.mxu1 %v7154_v38  ;;  %v2923_v38 = vadd.f32 %v2922_v57, %v2713_v46 }
 0xa0e   : > { %5437 = vmatpush3.bf16.xpose.msra.mxu1 %v3166_v0  ;;  %3151 = vmatprep.mubr.bf16.mxu1 %v7160_v49 }
 0xa0f   : > { %5442 = vmatprep.subr.bf16.mxu1 %v6591_v40 }
 0xa15   : > { %3152 = vmatmul.mubr.bf16.gmra.mxu1 %v7165_v3  ;;  %v3168_v3 = vpack.c.bf16 %v2927_v61, %v2923_v38 }
 0xa16   : > { %5438 = vmatprep.mubr.msk.bf16.mxu1 %vm6592_vm4, %v6591_v40 }
 0xa8d   : > { %v2691_v44 = vpop.f32.mrf.mxu1 }
 0xa8e   : > { %v2692_v49 = vadd.f32 %v2691_v44, %v2492_v27 }
 0xa8f   : > { %v7211_v5 = vpop.f32.mrf.mxu1 }
 0xa90   : > { %v3162_v33 = vpack.c.bf16 %v2692_v49, %v2692_v49 }
 0xa91   : > { %v2695_v6 = vpop.f32.mrf.mxu1 }
 0xa92   : > { %5439 = vmatmul.mubr.bf16.vlgmr.msra.gmra.mxu1 %v3162_v33  ;;  %v2696_v51 = vadd.f32 %v2695_v6, %v2492_v27 }
 0xa93   : > { %5443 = vmatpush3.bf16.xpose.msra.mxu1 %v3168_v3  ;;  %5444 = vmatprep.mubr.msk.bf16.mxu1 %vm6592_vm4, %v6591_v40  ;;  %v7222_v32 = vpop.f32.mrf.mxu1 }
 0xa94   : > { %5448 = vmatprep.subr.bf16.mxu1 %v6591_v40  ;;  %v3164_v9 = vpack.c.bf16 %v2696_v51, %v2696_v51 }
 0xa9a   : > { %5445 = vmatmul.mubr.bf16.vlgmr.msra.gmra.mxu1 %v3164_v9 }
 0xa9b   : > { %5450 = vmatprep.mubr.msk.bf16.mxu1 %vm6592_vm4, %v6591_v40 }
 0xacd   : > { %v3143_v7 = vpop.f32.mrf.mxu1 }
 0xace   : > { %v3144_v17 = vadd.f32 %v3143_v7, %v2944_v56 }
 0xacf   : > { %v3145_v13 = vpop.f32.mrf.mxu1 }
 0xad0   : > { %v7226_v19 = vadd.f32 %v3145_v13, %v2948_v12 }
 0xad1   : > { %v3147_v18 = vpop.f32.mrf.mxu1 }
 0xad2   : > { %v3148_v20 = vadd.f32 %v3147_v18, %v2944_v56 }
 0xad3   : > { %v3149_v21 = vpop.f32.mrf.mxu1 }
 0xad4   : > { %v3170_v22 = vpack.c.bf16 %v3148_v20, %v3144_v17  ;;  %v7228_v23 = vadd.f32 %v3149_v21, %v2948_v12  ;;  %v2486_v20 = vrot.slane %v7181_v24, %v6954_v43  ;;  %v2925_v43 = vadd.f32 %v7208_v28, %v7188_v37 }
 0xad5   : > { %v3153_v26 = vpop.f32.mrf.mxu1 }
 0xad6   : > { %v3171_v25 = vpack.c.bf16 %v7228_v23, %v7226_v19  ;;  %v3154_v29 = vadd.f32 %v3153_v26, %v2944_v56  ;;  %5449 = vmatpush3.bf16.msra.mxu1 %v3170_v22  ;;  %v2496_v26 = vrot.slane %v2486_v20, %v6951_v42  ;;  %v5958_v20 = vld [vmem:[#allocation11 + $0x354] ss:$8 sps:$4 sm:$0xff]  }
 0xad7   : > { %v3155_v30 = vpop.f32.mrf.mxu1  ;;  %5454 = vmatprep.subr.bf16.mxu1 %v6591_v40 }
 0xad8   : > { %v7233_v31 = vadd.f32 %v3155_v30, %v2948_v12  ;;  %v2928_v30 = vpop.f32.mrf.mxu0  ;;  %v2698_v54 = vadd.f32 %v7222_v32, %v2496_v26 }
 0xad9   : > { %v3157_v35 = vpop.f32.mrf.mxu1 }
 0xada   : > { %v3158_v14 = vadd.f32 %v3157_v35, %v2944_v56  ;;  %v2694_v35 = vadd.f32 %v7211_v5, %v2496_v26  ;;  %v3165_v53 = vpack.c.bf16 %v2698_v54, %v2698_v54  ;;  %v5959_v26 = vld [vmem:[#allocation11 + $0x340] ss:$8 sps:$4 sm:$0xff]  }
 0xadb   : > { %v3159_v39 = vpop.f32.mrf.mxu1  ;;  %v5971_v54 = vld [vmem:[#allocation11 + $0x300] ss:$8 sps:$4 sm:$0xff]  }
 0xadc   : > { %v3172_v45 = vpack.c.bf16 %v3158_v14, %v3154_v29  ;;  %v7235_v46 = vadd.f32 %v3159_v39, %v2948_v12  ;;  %v2929_v14 = vadd.f32 %v2928_v30, %v7188_v37  ;;  %v3163_v39 = vpack.c.bf16 %v2694_v35, %v2694_v35  ;;  %v5962_v30 = vld [vmem:[#allocation11 + $0x330] ss:$8 sps:$4 sm:$0xff]   ;;  %v5967_v35 = vld [vmem:[#allocation11 + $0x324] ss:$8 sps:$4 sm:$0xff]  }
 0xade   : > { %v3173_v47 = vpack.c.bf16 %v7235_v46, %v7233_v31  ;;  %v5995_v31 = vld [vmem:[#allocation11 + $0x380] ss:$8 sps:$4 sm:$0xff]  }
 0xb52   : > { %v3208_v48 = vpop.f32.mrf.mxu1 }
 0xb53   : > { %v3254_v50 = vmul.f32 0.088388346, %v3208_v48 }
 0xb54   : > { %v5440_v55 = vpop.f32.mrf.mxu1 }
 0xb55   : > { %v3257_v16 = vsel %vm3256_vm12, %v3254_v50, -inf }
 0xb56   : > { %3258 = vmax.xlane.f32.xlu0 %v3257_v16  ;;  %v3211_v58 = vpop.f32.mrf.mxu1 }
 0xb58   : > { %v5441_v0 = vpop.f32.mrf.mxu1 }
 0xb5a   : > { %v3248_v57 = vpop.f32.mrf.mxu1 }
 0xb5b   : > { %v3255_v4 = vmul.f32 0.088388346, %v3248_v57 }
 0xb5c   : > { %v5446_v27 = vpop.f32.mrf.mxu1 }
 0xb5d   : > { %v3260_v60 = vsel %vm3256_vm12, %v3255_v4, -inf }
 0xb5e   : > { %3261 = vmax.xlane.f32.xlu1 %v3260_v60  ;;  %v3251_v38 = vpop.f32.mrf.mxu1 }
 0xb60   : > { %v5447_v61 = vpop.f32.mrf.mxu1 }
 0xbdf   : > { %v3259_v44 = vpop.xlane.xlu0 %3258 }
 0xbe0   : > { %v3263_v49 = vsub.f32 %v3254_v50, %v3259_v44 }
 0xbe2   : > { %v3265_v33 = vmul.f32 1.442695, %v3263_v49 }
 0xbe4   : > { %6222 = vpow2.f32 %v3265_v33 }
 0xbe7   : > { %v3262_v3 = vpop.xlane.xlu1 %3261 }
 0xbe8   : > { %v3264_v6 = vsub.f32 %v3255_v4, %v3262_v3 }
 0xbea   : > { %v3267_v51 = vmul.f32 1.442695, %v3264_v6 }
 0xbec   : > { %6224 = vpow2.f32 %v3267_v51 }
 0xbf1   : > { %v6223_v9 = vpop.eup %6222 }
 0xbf2   : > { %v3269_v10 = vsel %vm3256_vm12, %v6223_v9, 0.0 }
 0xbf3   : > { %3270 = vadd.xlane.f32.xlu0 %v3269_v10 }
 0xbf9   : > { %v6225_v11 = vpop.eup %6224 }
 0xbfa   : > { %v3272_v56 = vsel %vm3256_vm12, %v6225_v11, 0.0 }
 0xbfb   : > { %3273 = vadd.xlane.f32.xlu1 %v3272_v56 }
 0xc7c   : > { %v3271_v7 = vpop.xlane.xlu0 %3270 }
 0xc7d   : > { %6226 = vrcp.f32 %v3271_v7 }
 0xc84   : > { %v3274_v12 = vpop.xlane.xlu1 %3273 }
 0xc85   : > { %6228 = vrcp.f32 %v3274_v12  ;;  %v5950_v12 = vld [vmem:[#allocation11 + $0x370] ss:$8 sps:$4 sm:$0xff]  }
 0xc8a   : > { %v6227_v13 = vpop.eup %6226 }
 0xc8b   : > { %v3277_v17 = vmul.f32 %v6227_v13, %v6223_v9  ;;  %v5952_v13 = vld [vmem:[#allocation11 + $0x374] ss:$8 sps:$4 sm:$0xff]  }
 0xc8c   : > { %3739 = vmatprep.subr.bf16.mxu0 %v5952_v13  ;;  %v3568_v13 = vrot.slane %v7181_v24, %v2167_v15 }
 0xc8d   : > { %v3279_v18 = vpack.c.bf16 %v3277_v17, %v3277_v17  ;;  %v5955_v17 = vld [vmem:[#allocation11 + $0x364] ss:$8 sps:$4 sm:$0xff]   ;;  %3740 = vmatpush1.bf16.msra.mxu0 %v5950_v12  ;;  %v3564_v12 = vrot.slane %v7181_v24, %v7102_v52 }
 0xc8e   : > { %3741 = vmatprep.subr.bf16.mxu0 %v5955_v17 }
 0xc8f   : > { %5451 = vmatmul.mubr.msk.bf16.vlgmr.msra.gmra.mxu1 %vm3256_vm12, %v3279_v18  ;;  %v5953_v18 = vld [vmem:[#allocation11 + $0x360] ss:$8 sps:$4 sm:$0xff]   ;;  %v3574_v17 = vrot.slane %v3564_v12, %v7102_v52 }
 0xc90   : > { %5455 = vmatpush3.bf16.msra.mxu1 %v3172_v45  ;;  %5456 = vmatprep.mubr.msk.bf16.mxu1 %vm6592_vm4, %v6591_v40  ;;  %v3169_v45 = vpack.c.bf16 %v2929_v14, %v2925_v43  ;;  %v5965_v43 = vld [vmem:[#allocation11 + $0x320] ss:$8 sps:$4 sm:$0xff]   ;;  %v5970_v14 = vld [vmem:[#allocation11 + $0x314] ss:$8 sps:$4 sm:$0xff]  }
 0xc91   : > { %5460 = vmatprep.subr.bf16.mxu1 %v6591_v40  ;;  %3742 = vmatpush1.bf16.msra.mxu0 %v5953_v18  ;;  %v3578_v18 = vrot.slane %v3568_v13, %v7102_v52  ;;  %v6037_v12 = vld [vmem:[#allocation14 + $0x28] ss:$16 sps:$4 sm:$0xff]   ;;  %v6042_v13 = vld [vmem:[#allocation14 + $0x4] ss:$16 sps:$4 sm:$0xff]  }
 0xc92   : > { %v6229_v21 = vpop.eup %6228  ;;  %3743 = vmatprep.subr.bf16.mxu0 %v5958_v20 }
 0xc93   : > { %v3278_v22 = vmul.f32 %v6229_v21, %v6225_v11  ;;  %v5956_v21 = vld [vmem:[#allocation11 + $0x350] ss:$8 sps:$4 sm:$0xff]  }
 0xc95   : > { %v3280_v29 = vpack.c.bf16 %v3278_v22, %v3278_v22  ;;  %v5961_v22 = vld [vmem:[#allocation11 + $0x344] ss:$8 sps:$4 sm:$0xff]   ;;  %3744 = vmatpush1.bf16.msra.mxu0 %v5956_v21 }
 0xc96   : > { %3745 = vmatprep.subr.bf16.mxu0 %v5961_v22 }
 0xc97   : > { %5457 = vmatmul.mubr.msk.bf16.vlgmr.msra.gmra.mxu1 %vm3256_vm12, %v3280_v29  ;;  %v5964_v29 = vld [vmem:[#allocation11 + $0x334] ss:$8 sps:$4 sm:$0xff]  }
 0xc98   : > { %5461 = vmatpush3.bf16.xpose.msra.mxu1 %v3167_v59  ;;  %5462 = vmatprep.mubr.msk.bf16.mxu1 %vm6592_vm4, %v6591_v40 }
 0xc99   : > { %5466 = vmatprep.subr.bf16.mxu1 %v6591_v40  ;;  %3746 = vmatpush1.bf16.msra.mxu0 %v5959_v26 }
 0xc9a   : > { %3747 = vmatprep.subr.bf16.mxu0 %v5964_v29 }
 0xc9d   : > { %3748 = vmatpush1.bf16.msra.mxu0 %v5962_v30 }
 0xc9e   : > { %3749 = vmatprep.subr.bf16.mxu0 %v5967_v35 }
 0xc9f   : > { %5463 = vmatmul.mubr.bf16.vlgmr.msra.gmra.mxu1 %v3163_v39  ;;  %v5968_v39 = vld [vmem:[#allocation11 + $0x310] ss:$8 sps:$4 sm:$0xff]  }
 0xca0   : > { %5467 = vmatpush3.bf16.xpose.msra.mxu1 %v3169_v45  ;;  %5468 = vmatprep.mubr.msk.bf16.mxu1 %vm6592_vm4, %v6591_v40  ;;  %v5973_v45 = vld [vmem:[#allocation11 + $0x304] ss:$8 sps:$4 sm:$0xff]  }
 0xca1   : > { %5472 = vmatprep.subr.bf16.mxu1 %v6591_v40  ;;  %3750 = vmatpush1.bf16.msra.mxu0 %v5965_v43  ;;  %v5998_v43 = vld [vmem:[#allocation14 + $0xe0] ss:$16 sps:$4 sm:$0xff]  }
 0xca2   : > { %3751 = vmatprep.subr.bf16.mxu0 %v5970_v14  ;;  %v6001_v14 = vld [vmem:[#allocation14 + $0xe8] ss:$16 sps:$4 sm:$0xff]  }
 0xca5   : > { %3752 = vmatpush1.bf16.msra.mxu0 %v5968_v39  ;;  %v6003_v39 = vld [vmem:[#allocation14 + $0xec] ss:$16 sps:$4 sm:$0xff]  }
 0xca6   : > { %3753 = vmatprep.subr.bf16.mxu0 %v5973_v45  ;;  %v6006_v45 = vld [vmem:[#allocation14 + $0xc4] ss:$16 sps:$4 sm:$0xff]  }
 0xca7   : > { %5469 = vmatmul.mubr.bf16.vlgmr.msra.gmra.mxu1 %v3165_v53  ;;  %v5976_v53 = vld [vmem:[#allocation11 + $0x3f4] ss:$8 sps:$4 sm:$0xff]  }
 0xca8   : > { %5473 = vmatpush3.bf16.msra.mxu1 %v3171_v25  ;;  %5474 = vmatprep.mubr.msk.bf16.mxu1 %vm6592_vm4, %v6591_v40 }
 0xca9   : > { %5478 = vmatprep.subr.bf16.mxu1 %v6591_v40  ;;  %3754 = vmatpush1.bf16.msra.mxu0 %v5971_v54  ;;  %v6009_v54 = vld [vmem:[#allocation14 + $0xcc] ss:$16 sps:$4 sm:$0xff]  }
 0xcaa   : > { %3755 = vmatprep.subr.bf16.mxu0 %v5976_v53  ;;  %v6004_v53 = vld [vmem:[#allocation14 + $0xc0] ss:$16 sps:$4 sm:$0xff]  }
 0xd4f   : > { %v7271_v37 = vpop.f32.mrf.mxu1 }
 0xd51   : > { %v5452_v59 = vpop.f32.mrf.mxu1 }
 0xd52   : > { %v5974_v59 = vld [vmem:[#allocation11 + $0x3f0] ss:$8 sps:$4 sm:$0xff]  }
 0xd53   : > { %v3321_v28 = vpop.f32.mrf.mxu1  ;;  %3756 = vmatpush2.bf16.msra.mxu0 %v5974_v59  ;;  %v6015_v59 = vld [vmem:[#allocation14 + $0xac] ss:$16 sps:$4 sm:$0xff]  }
 0xd54   : > { %v5979_v28 = vld [vmem:[#allocation11 + $0x3e4] ss:$8 sps:$4 sm:$0xff]  }
 0xd55   : > { %v5453_v5 = vpop.f32.mrf.mxu1  ;;  %3757 = vmatprep.subr.bf16.mxu0 %v5979_v28  ;;  %v6010_v28 = vld [vmem:[#allocation14 + $0xa0] ss:$16 sps:$4 sm:$0xff]  }
 0xd56   : > { %v5977_v5 = vld [vmem:[#allocation11 + $0x3e0] ss:$8 sps:$4 sm:$0xff]  }
 0xd57   : > { %v7273_v48 = vpop.f32.mrf.mxu1  ;;  %3758 = vmatpush2.bf16.msra.mxu0 %v5977_v5  ;;  %v6013_v5 = vld [vmem:[#allocation14 + $0xa8] ss:$16 sps:$4 sm:$0xff]  }
 0xd58   : > { %v3559_v32 = vpack.c.bf16 %v7273_v48, %v7271_v37 }
 0xd59   : > { %v5458_v50 = vpop.f32.mrf.mxu1 }
 0xd5a   : > { %v5982_v50 = vld [vmem:[#allocation11 + $0x3d4] ss:$8 sps:$4 sm:$0xff]  }
 0xd5b   : > { %v3364_v55 = vpop.f32.mrf.mxu1  ;;  %3759 = vmatprep.subr.bf16.mxu0 %v5982_v50  ;;  %v6018_v50 = vld [vmem:[#allocation14 + $0x84] ss:$16 sps:$4 sm:$0xff]  }
 0xd5c   : > { %v5980_v55 = vld [vmem:[#allocation11 + $0x3d0] ss:$8 sps:$4 sm:$0xff]  }
 0xd5d   : > { %v5459_v16 = vpop.f32.mrf.mxu1  ;;  %3760 = vmatpush2.bf16.msra.mxu0 %v5980_v55  ;;  %v6021_v55 = vld [vmem:[#allocation14 + $0x8c] ss:$16 sps:$4 sm:$0xff]  }
 0xd5e   : > { %v5985_v16 = vld [vmem:[#allocation11 + $0x3c4] ss:$8 sps:$4 sm:$0xff]  }
 0xd5f   : > { %v3401_v19 = vpop.f32.mrf.mxu1  ;;  %3761 = vmatprep.subr.bf16.mxu0 %v5985_v16  ;;  %v6016_v16 = vld [vmem:[#allocation14 + $0x80] ss:$16 sps:$4 sm:$0xff]  }
 0xd60   : > { %v3447_v23 = vmul.f32 0.088388346, %v3401_v19  ;;  %v5983_v19 = vld [vmem:[#allocation11 + $0x3c0] ss:$8 sps:$4 sm:$0xff]  }
 0xd61   : > { %v5464_v25 = vpop.f32.mrf.mxu1  ;;  %3762 = vmatpush2.bf16.msra.mxu0 %v5983_v19  ;;  %v6019_v19 = vld [vmem:[#allocation14 + $0x88] ss:$16 sps:$4 sm:$0xff]  }
 0xd62   : > { %v3449_v58 = vsel %vm3256_vm12, %v3447_v23, -inf  ;;  %v5986_v25 = vld [vmem:[#allocation11 + $0x3b0] ss:$8 sps:$4 sm:$0xff]  }
 0xd63   : > { %3450 = vmax.xlane.f32.xlu0 %v3449_v58  ;;  %v3404_v0 = vpop.f32.mrf.mxu1 }
 0xd65   : > { %v5465_v57 = vpop.f32.mrf.mxu1 }
 0xd67   : > { %v3441_v4 = vpop.f32.mrf.mxu1 }
 0xd68   : > { %v3448_v27 = vmul.f32 0.088388346, %v3441_v4 }
 0xd69   : > { %v5470_v60 = vpop.f32.mrf.mxu1 }
 0xd6a   : > { %v3452_v38 = vsel %vm3256_vm12, %v3448_v27, -inf }
 0xd6b   : > { %3453 = vmax.xlane.f32.xlu1 %v3452_v38  ;;  %v3444_v61 = vpop.f32.mrf.mxu1 }
 0xd6d   : > { %v5471_v44 = vpop.f32.mrf.mxu1 }
 0xd6e   : > { %v5991_v44 = vld [vmem:[#allocation11 + $0x3a4] ss:$8 sps:$4 sm:$0xff]  }
 0xdec   : > { %v3451_v49 = vpop.xlane.xlu0 %3450 }
 0xded   : > { %v3455_v33 = vsub.f32 %v3447_v23, %v3451_v49  ;;  %v5988_v23 = vld [vmem:[#allocation11 + $0x3b4] ss:$8 sps:$4 sm:$0xff]   ;;  %v5989_v49 = vld [vmem:[#allocation11 + $0x3a0] ss:$8 sps:$4 sm:$0xff]  }
 0xdee   : > { %3763 = vmatprep.subr.bf16.mxu0 %v5988_v23  ;;  %v6024_v23 = vld [vmem:[#allocation14 + $0x64] ss:$16 sps:$4 sm:$0xff]  }
 0xdef   : > { %v3457_v3 = vmul.f32 1.442695, %v3455_v33  ;;  %3764 = vmatpush2.bf16.msra.mxu0 %v5986_v25  ;;  %v5994_v33 = vld [vmem:[#allocation11 + $0x394] ss:$8 sps:$4 sm:$0xff]  }
 0xdf0   : > { %3765 = vmatprep.subr.bf16.mxu0 %v5991_v44  ;;  %v6027_v25 = vld [vmem:[#allocation14 + $0x6c] ss:$16 sps:$4 sm:$0xff]  }
 0xdf1   : > { %6230 = vpow2.f32 %v3457_v3  ;;  %v5992_v3 = vld [vmem:[#allocation11 + $0x390] ss:$8 sps:$4 sm:$0xff]  }
 0xdf3   : > { %3766 = vmatpush2.bf16.msra.mxu0 %v5989_v49 }
 0xdf4   : > { %v3454_v6 = vpop.xlane.xlu1 %3453  ;;  %3767 = vmatprep.subr.bf16.mxu0 %v5994_v33 }
 0xdf5   : > { %v3456_v51 = vsub.f32 %v3448_v27, %v3454_v6  ;;  %v5997_v6 = vld [vmem:[#allocation11 + $0x384] ss:$8 sps:$4 sm:$0xff]  }
 0xdf7   : > { %v3459_v9 = vmul.f32 1.442695, %v3456_v51  ;;  %3768 = vmatpush2.bf16.msra.mxu0 %v5992_v3 }
 0xdf8   : > { %3769 = vmatprep.subr.bf16.mxu0 %v5997_v6 }
 0xdf9   : > { %6232 = vpow2.f32 %v3459_v9 }
 0xdfb   : > { %3770 = vmatpush2.bf16.msra.mxu0 %v5995_v31 }
 0xdfc   : > { %4262 = vmatprep.subr.bf16.mxu0 %v6003_v39  ;;  %v6064_v39 = vld [vmem:[#allocation14 + $0x180] ss:$16 sps:$4 sm:$0xff]  }
 0xdfe   : > { %v7279_v10 = vpop.eup %6230 }
 0xdff   : > { %v3461_v11 = vsel %vm3256_vm12, %v7279_v10, 0.0 }
 0xe00   : > { %3462 = vadd.xlane.f32.xlu0 %v3461_v11 }
 0xe06   : > { %v7283_v56 = vpop.eup %6232 }
 0xe07   : > { %v3464_v7 = vsel %vm3256_vm12, %v7283_v56, 0.0 }
 0xe08   : > { %3465 = vadd.xlane.f32.xlu1 %v3464_v7 }
 0xe89   : > { %v3463_v58 = vpop.xlane.xlu0 %3462 }
 0xe8a   : > { %6234 = vrcp.f32 %v3463_v58  ;;  %v6022_v58 = vld [vmem:[#allocation14 + $0x60] ss:$16 sps:$4 sm:$0xff]  }
 0xe91   : > { %v3466_v0 = vpop.xlane.xlu1 %3465 }
 0xe92   : > { %6236 = vrcp.f32 %v3466_v0  ;;  %v6025_v0 = vld [vmem:[#allocation14 + $0x68] ss:$16 sps:$4 sm:$0xff]  }
 0xe97   : > { %v6235_v57 = vpop.eup %6234 }
 0xe98   : > { %v3469_v4 = vmul.f32 %v6235_v57, %v7279_v10 }
 0xe9a   : > { %v3471_v27 = vpack.c.bf16 %v3469_v4, %v3469_v4 }
 0xe9c   : > { %5475 = vmatmul.mubr.msk.bf16.vlgmr.msra.gmra.mxu1 %vm3256_vm12, %v3471_v27 }
 0xe9d   : > { %5479 = vmatpush3.bf16.msra.mxu1 %v3173_v47  ;;  %5480 = vmatprep.mubr.msk.bf16.mxu1 %vm6592_vm4, %v6591_v40 }
 0xe9f   : > { %v6237_v60 = vpop.eup %6236 }
 0xea0   : > { %v3470_v38 = vmul.f32 %v6237_v60, %v7283_v56 }
 0xea2   : > { %v3472_v61 = vpack.c.bf16 %v3470_v38, %v3470_v38 }
 0xea4   : > { %5481 = vmatmul.mubr.msk.bf16.vlgmr.msra.gmra.mxu1 %vm3256_vm12, %v3472_v61 }
 0xf5c   : > { %v3510_v46 = vpop.f32.mrf.mxu1 }
 0xf5e   : > { %v5476_v40 = vpop.f32.mrf.mxu1 }
 0xf60   : > { %v3513_v47 = vpop.f32.mrf.mxu1 }
 0xf61   : > { %v6030_v47 = vld [vmem:[#allocation14 + $0x44] ss:$16 sps:$4 sm:$0xff]  }
 0xf62   : > { %v5477_v51 = vpop.f32.mrf.mxu1 }
 0xf63   : > { %v6033_v51 = vld [vmem:[#allocation14 + $0x4c] ss:$16 sps:$4 sm:$0xff]  }
 0xf64   : > { %v3553_v9 = vpop.f32.mrf.mxu1 }
 0xf65   : > { %v3560_v10 = vpack.c.bf16 %v3553_v9, %v3510_v46  ;;  %v6028_v9 = vld [vmem:[#allocation14 + $0x40] ss:$16 sps:$4 sm:$0xff]  }
 0xf66   : > { %v5482_v11 = vpop.f32.mrf.mxu1 }
 0xf67   : > { %3771 = vmatprep.mubr.bf16.mxu0 %v3560_v10  ;;  %v6031_v10 = vld [vmem:[#allocation14 + $0x48] ss:$16 sps:$4 sm:$0xff]   ;;  %v6036_v11 = vld [vmem:[#allocation14 + $0x24] ss:$16 sps:$4 sm:$0xff]  }
 0xf68   : > { %v3556_v56 = vpop.f32.mrf.mxu1  ;;  %3772 = vmatmul.mubr.bf16.vlgmr.msra.gmra.mxu0 %v3559_v32 }
 0xf69   : > { %4263 = vmatpush1.bf16.msra.mxu0 %v6001_v14  ;;  %v6039_v56 = vld [vmem:[#allocation14 + $0x2c] ss:$16 sps:$4 sm:$0xff]   ;;  %v6061_v14 = vld [vmem:[#allocation14 + $0x1a8] ss:$16 sps:$4 sm:$0xff]  }
 0xf6a   : > { %v5483_v7 = vpop.f32.mrf.mxu1  ;;  %4264 = vmatprep.subr.bf16.mxu0 %v6009_v54  ;;  %v6067_v54 = vld [vmem:[#allocation14 + $0x188] ss:$16 sps:$4 sm:$0xff]  }
 0xf6b   : > { %v6034_v7 = vld [vmem:[#allocation14 + $0x20] ss:$16 sps:$4 sm:$0xff]  }
0x1028   : > { %v3773_v20 = vpop.f32.mrf.mxu0 }
0x1029   : > { %v3774_v21 = vadd.f32 %v3773_v20, %v3574_v17  ;;  %v6043_v20 = vld [vmem:[#allocation14 + $0x8] ss:$16 sps:$4 sm:$0xff]  }
0x102a   : > { %v3775_v22 = vpop.f32.mrf.mxu0 }
0x102b   : > { %v3776_v26 = vadd.f32 %v3775_v22, %v3578_v18  ;;  %v7307_v37 = vadd.f32 %v3774_v21, %v7113_v62  ;;  %v6048_v21 = vld [vmem:[#allocation14 + $0x1e4] ss:$16 sps:$4 sm:$0xff]   ;;  %v6051_v22 = vld [vmem:[#allocation14 + $0x1ec] ss:$16 sps:$4 sm:$0xff]  }
0x102c   : > { %v3777_v29 = vpop.f32.mrf.mxu0 }
0x102d   : > { %v7310_v48 = vadd.f32 %v3776_v26, %v7116_v1  ;;  %v3778_v32 = vadd.f32 %v3777_v29, %v3574_v17  ;;  %v6000_v1 = vld [vmem:[#allocation14 + $0xe4] ss:$16 sps:$4 sm:$0xff]   ;;  %v6045_v17 = vld [vmem:[#allocation14 + $0xc] ss:$16 sps:$4 sm:$0xff]   ;;  %v6046_v26 = vld [vmem:[#allocation14 + $0x1e0] ss:$16 sps:$4 sm:$0xff]  }
0x102e   : > { %v3779_v30 = vpop.f32.mrf.mxu0  ;;  %4219 = vmatprep.subr.bf16.mxu1 %v6000_v1  ;;  %v6049_v29 = vld [vmem:[#allocation14 + $0x1e8] ss:$16 sps:$4 sm:$0xff]   ;;  %v6058_v1 = vld [vmem:[#allocation14 + $0x1a0] ss:$16 sps:$4 sm:$0xff]  }
0x102f   : > { %v3780_v36 = vadd.f32 %v3779_v30, %v3578_v18  ;;  %v3786_v15 = vadd.f32 %v7310_v48, %v7307_v37  ;;  %v7315_v24 = vadd.f32 %v3778_v32, %v7121_v34  ;;  %4220 = vmatpush1.bf16.msra.mxu1 %v5998_v43  ;;  %v6007_v34 = vld [vmem:[#allocation14 + $0xc8] ss:$16 sps:$4 sm:$0xff]   ;;  %v6040_v18 = vld [vmem:[#allocation14] ss:$16 sps:$4 sm:$0xff]   ;;  %v6054_v32 = vld [vmem:[#allocation14 + $0x1c4] ss:$16 sps:$4 sm:$0xff]  }
0x1030   : > { %4221 = vmatprep.subr.bf16.mxu1 %v6006_v45  ;;  %4265 = vmatpush1.bf16.msra.mxu0 %v6007_v34  ;;  %v6057_v30 = vld [vmem:[#allocation14 + $0x1cc] ss:$16 sps:$4 sm:$0xff]   ;;  %v6066_v45 = vld [vmem:[#allocation14 + $0x184] ss:$16 sps:$4 sm:$0xff]  }
0x1031   : > { %v7318_v35 = vadd.f32 %v3780_v36, %v7124_v8  ;;  %3787 = vadd.xlane.f32.xlu0 %v3786_v15  ;;  %v6012_v8 = vld [vmem:[#allocation14 + $0xa4] ss:$16 sps:$4 sm:$0xff]   ;;  %4266 = vmatprep.subr.bf16.mxu0 %v6015_v59  ;;  %v6052_v36 = vld [vmem:[#allocation14 + $0x1c0] ss:$16 sps:$4 sm:$0xff]   ;;  %v6055_v15 = vld [vmem:[#allocation14 + $0x1c8] ss:$16 sps:$4 sm:$0xff]  }
0x1032   : > { %v6063_v43 = vld [vmem:[#allocation14 + $0x1ac] ss:$16 sps:$4 sm:$0xff]   ;;  %v6072_v34 = vld [vmem:[#allocation14 + $0x164] ss:$16 sps:$4 sm:$0xff]   ;;  %v6070_v59 = vld [vmem:[#allocation14 + $0x160] ss:$16 sps:$4 sm:$0xff]  }
0x1033   : > { %v3789_v62 = vadd.f32 %v7318_v35, %v7315_v24  ;;  %4222 = vmatpush1.bf16.msra.mxu1 %v6004_v53  ;;  %v6069_v53 = vld [vmem:[#allocation14 + $0x18c] ss:$16 sps:$4 sm:$0xff]  }
0x1034   : > { %4223 = vmatprep.subr.bf16.mxu1 %v6012_v8  ;;  %4267 = vmatpush1.bf16.msra.mxu0 %v6013_v5  ;;  %v6075_v8 = vld [vmem:[#allocation14 + $0x16c] ss:$16 sps:$4 sm:$0xff]   ;;  %v6078_v5 = vld [vmem:[#allocation14 + $0x144] ss:$16 sps:$4 sm:$0xff]  }
0x1035   : > { %3790 = vadd.xlane.f32.xlu1 %v3789_v62  ;;  %4268 = vmatprep.subr.bf16.mxu0 %v6021_v55  ;;  %v6060_v62 = vld [vmem:[#allocation14 + $0x1a4] ss:$16 sps:$4 sm:$0xff]   ;;  %v6076_v55 = vld [vmem:[#allocation14 + $0x140] ss:$16 sps:$4 sm:$0xff]  }
0x1037   : > { %4224 = vmatpush1.bf16.msra.mxu1 %v6010_v28  ;;  %v6073_v28 = vld [vmem:[#allocation14 + $0x168] ss:$16 sps:$4 sm:$0xff]  }
0x1038   : > { %4225 = vmatprep.subr.bf16.mxu1 %v6018_v50  ;;  %4269 = vmatpush1.bf16.msra.mxu0 %v6019_v19  ;;  %v6081_v50 = vld [vmem:[#allocation14 + $0x14c] ss:$16 sps:$4 sm:$0xff]   ;;  %v6084_v19 = vld [vmem:[#allocation14 + $0x124] ss:$16 sps:$4 sm:$0xff]  }
0x1039   : > { %4270 = vmatprep.subr.bf16.mxu0 %v6027_v25  ;;  %v6082_v25 = vld [vmem:[#allocation14 + $0x120] ss:$16 sps:$4 sm:$0xff]  }
0x103b   : > { %4226 = vmatpush1.bf16.msra.mxu1 %v6016_v16  ;;  %v6079_v16 = vld [vmem:[#allocation14 + $0x148] ss:$16 sps:$4 sm:$0xff]  }
0x103c   : > { %4227 = vmatprep.subr.bf16.mxu1 %v6024_v23  ;;  %4271 = vmatpush1.bf16.msra.mxu0 %v6025_v0  ;;  %v6087_v23 = vld [vmem:[#allocation14 + $0x12c] ss:$16 sps:$4 sm:$0xff]   ;;  %v6090_v0 = vld [vmem:[#allocation14 + $0x104] ss:$16 sps:$4 sm:$0xff]  }
0x103d   : > { %4272 = vmatprep.subr.bf16.mxu0 %v6033_v51 }
0x103f   : > { %4228 = vmatpush1.bf16.msra.mxu1 %v6022_v58  ;;  %v6085_v58 = vld [vmem:[#allocation14 + $0x128] ss:$16 sps:$4 sm:$0xff]  }
0x1040   : > { %4229 = vmatprep.subr.bf16.mxu1 %v6030_v47  ;;  %4273 = vmatpush1.bf16.msra.mxu0 %v6031_v10 }
0x1041   : > { %4274 = vmatprep.subr.bf16.mxu0 %v6039_v56 }
0x1043   : > { %4230 = vmatpush1.bf16.msra.mxu1 %v6028_v9 }
0x1044   : > { %4231 = vmatprep.subr.bf16.mxu1 %v6036_v11  ;;  %4275 = vmatpush1.bf16.msra.mxu0 %v6037_v12 }
0x1045   : > { %4276 = vmatprep.subr.bf16.mxu0 %v6045_v17 }
0x1047   : > { %4232 = vmatpush1.bf16.msra.mxu1 %v6034_v7 }
0x1048   : > { %4233 = vmatprep.subr.bf16.mxu1 %v6042_v13  ;;  %4277 = vmatpush1.bf16.msra.mxu0 %v6043_v20  ;;  %v6252_v20 = vld [vmem:[#allocation7] sm:$0x77] }
0x1049   : > { %4278 = vmatprep.subr.bf16.mxu0 %v6051_v22  ;;  %v3835_v22 = vrot.slane %v6252_v20, %v7007_v2 }
0x104b   : > { %4234 = vmatpush1.bf16.msra.mxu1 %v6040_v18 }
0x104c   : > { %4235 = vmatprep.subr.bf16.mxu1 %v6048_v21  ;;  %4279 = vmatpush2.bf16.msra.mxu0 %v6049_v29  ;;  %v3831_v21 = vrot.slane %v6252_v20, %v7001_v63  ;;  %v3845_v29 = vrot.slane %v3835_v22, %v7001_v63  ;;  %v6144_v20 = vld [vmem:[#allocation16 + $0xf4] ss:$8 sps:$4 sm:$0xff]   ;;  %v6142_v22 = vld [vmem:[#allocation16 + $0xf0] ss:$8 sps:$4 sm:$0xff]  }
0x104d   : > { %4280 = vmatprep.subr.bf16.mxu0 %v6057_v30 }
0x104f   : > { %4236 = vmatpush2.bf16.msra.mxu1 %v6046_v26  ;;  %v3841_v26 = vrot.slane %v3831_v21, %v7001_v63  ;;  %v6147_v21 = vld [vmem:[#allocation16 + $0x1f4] ss:$8 sps:$4 sm:$0xff]  }
0x1050   : > { %4237 = vmatprep.subr.bf16.mxu1 %v6054_v32  ;;  %4281 = vmatpush2.bf16.msra.mxu0 %v6055_v15  ;;  %v6253_v32 = vld [vmem:[#allocation8] sm:$0x77] }
0x1051   : > { %4282 = vmatprep.subr.bf16.mxu0 %v6063_v43  ;;  %v3861_v30 = vrot.slane %v6253_v32, %v7007_v2 }
0x1053   : > { %4238 = vmatpush2.bf16.msra.mxu1 %v6052_v36  ;;  %v3857_v36 = vrot.slane %v6253_v32, %v7001_v63  ;;  %v6153_v32 = vld [vmem:[#allocation16 + $0x1e4] ss:$8 sps:$4 sm:$0xff]  }
0x1054   : > { %4239 = vmatprep.subr.bf16.mxu1 %v6060_v62  ;;  %4283 = vmatpush2.bf16.msra.mxu0 %v6061_v14 }
0x1055   : > { %4284 = vmatprep.subr.bf16.mxu0 %v6069_v53  ;;  %v3867_v53 = vrot.slane %v3857_v36, %v7001_v63  ;;  %v6151_v36 = vld [vmem:[#allocation16 + $0x1e0] ss:$8 sps:$4 sm:$0xff]  }
0x1057   : > { %4240 = vmatpush2.bf16.msra.mxu1 %v6058_v1 }
0x1058   : > { %4241 = vmatprep.subr.bf16.mxu1 %v6066_v45  ;;  %4285 = vmatpush2.bf16.msra.mxu0 %v6067_v54  ;;  %v3871_v45 = vrot.slane %v3861_v30, %v7001_v63  ;;  %v6148_v30 = vld [vmem:[#allocation16 + $0xe0] ss:$8 sps:$4 sm:$0xff]  }
0x1059   : > { %4286 = vmatprep.subr.bf16.mxu0 %v6075_v8 }
0x105b   : > { %4242 = vmatpush2.bf16.msra.mxu1 %v6064_v39 }
0x105c   : > { %4243 = vmatprep.subr.bf16.mxu1 %v6072_v34  ;;  %4287 = vmatpush2.bf16.msra.mxu0 %v6073_v28 }
0x105d   : > { %4288 = vmatprep.subr.bf16.mxu0 %v6081_v50 }
0x105f   : > { %4244 = vmatpush2.bf16.msra.mxu1 %v6070_v59 }
0x1060   : > { %4245 = vmatprep.subr.bf16.mxu1 %v6078_v5  ;;  %4289 = vmatpush2.bf16.msra.mxu0 %v6079_v16  ;;  %v6097_v16 = vld [vmem:[#allocation16 + $0x170] ss:$8 sps:$4 sm:$0xff]  }
0x1061   : > { %4290 = vmatprep.subr.bf16.mxu0 %v6087_v23  ;;  %v6103_v23 = vld [vmem:[#allocation16 + $0x160] ss:$8 sps:$4 sm:$0xff]  }
0x1063   : > { %4246 = vmatpush2.bf16.msra.mxu1 %v6076_v55 }
0x1064   : > { %4247 = vmatprep.subr.bf16.mxu1 %v6084_v19  ;;  %4291 = vmatpush2.bf16.msra.mxu0 %v6085_v58  ;;  %v6105_v19 = vld [vmem:[#allocation16 + $0x164] ss:$8 sps:$4 sm:$0xff]   ;;  %v6111_v58 = vld [vmem:[#allocation16 + $0x154] ss:$8 sps:$4 sm:$0xff]  }
0x1067   : > { %4248 = vmatpush2.bf16.msra.mxu1 %v6082_v25  ;;  %v6108_v25 = vld [vmem:[#allocation16 + $0x54] ss:$8 sps:$4 sm:$0xff]  }
0x1068   : > { %4249 = vmatprep.subr.bf16.mxu1 %v6090_v0  ;;  %v6106_v0 = vld [vmem:[#allocation16 + $0x50] ss:$8 sps:$4 sm:$0xff]  }
0x10ba   : > { %v3788_v57 = vpop.xlane.xlu0 %3787 }
0x10bb   : > { %v3792_v4 = vmul.f32 0.00390625, %v3788_v57  ;;  %v6093_v57 = vld [vmem:[#allocation14 + $0x10c] ss:$16 sps:$4 sm:$0xff]  }
0x10bc   : > { %4292 = vmatprep.subr.bf16.mxu0 %v6093_v57  ;;  %v6109_v57 = vld [vmem:[#allocation16 + $0x150] ss:$8 sps:$4 sm:$0xff]  }
0x10bd   : > { %v7323_v27 = vsub.f32 %v7307_v37, %v3792_v4  ;;  %v7326_v60 = vsub.f32 %v7310_v48, %v3792_v4  ;;  %v6088_v4 = vld [vmem:[#allocation14 + $0x100] ss:$16 sps:$4 sm:$0xff]  }
0x10be   : > { %v3791_v38 = vpop.xlane.xlu1 %3790  ;;  %4250 = vmatpush2.bf16.msra.mxu1 %v6088_v4  ;;  %v6114_v4 = vld [vmem:[#allocation16 + $0x44] ss:$8 sps:$4 sm:$0xff]  }
0x10bf   : > { %v3793_v61 = vmul.f32 0.00390625, %v3791_v38  ;;  %v3798_v44 = vmul.f32 %v7323_v27, %v7323_v27  ;;  %v3799_v49 = vmul.f32 %v7326_v60, %v7326_v60  ;;  %v6091_v38 = vld [vmem:[#allocation14 + $0x108] ss:$16 sps:$4 sm:$0xff]   ;;  %v3846_v62 = vmul.f32 %v3841_v26, %v7323_v27 }
0x10c0   : > { %4293 = vmatpush2.bf16.msra.mxu0 %v6091_v38  ;;  %v3847_v43 = vmul.f32 %v3845_v29, %v7326_v60  ;;  %v6094_v60 = vld [vmem:[#allocation16 + $0x70] ss:$8 sps:$4 sm:$0xff]   ;;  %v6117_v38 = vld [vmem:[#allocation16 + $0x144] ss:$8 sps:$4 sm:$0xff]  }
0x10c1   : > { %v7333_v33 = vsub.f32 %v7315_v24, %v3793_v61  ;;  %v7336_v3 = vsub.f32 %v7318_v35, %v3793_v61  ;;  %v3802_v6 = vadd.f32 %v3799_v49, %v3798_v44  ;;  %v6096_v61 = vld [vmem:[#allocation16 + $0x74] ss:$8 sps:$4 sm:$0xff]  }
0x10c2   : > { %v6099_v44 = vld [vmem:[#allocation16 + $0x174] ss:$8 sps:$4 sm:$0xff]   ;;  %4637 = vmatprep.subr.bf16.mxu1 %v6096_v61  ;;  %v6112_v61 = vld [vmem:[#allocation16 + $0x40] ss:$8 sps:$4 sm:$0xff]  }
0x10c3   : > { %v3800_v31 = vmul.f32 %v7333_v33, %v7333_v33  ;;  %v3801_v46 = vmul.f32 %v7336_v3, %v7336_v3  ;;  %3803 = vadd.xlane.f32.xlu0 %v3802_v6  ;;  %4680 = vmatprep.subr.bf16.mxu0 %v6099_v44  ;;  %v3848_v1 = vmul.f32 %v3841_v26, %v7333_v33  ;;  %v6102_v33 = vld [vmem:[#allocation16 + $0x64] ss:$8 sps:$4 sm:$0xff]   ;;  %v6115_v44 = vld [vmem:[#allocation16 + $0x140] ss:$8 sps:$4 sm:$0xff]   ;;  %v6145_v26 = vld [vmem:[#allocation16 + $0x1f0] ss:$8 sps:$4 sm:$0xff]  }
0x10c4   : > { %v3849_v14 = vmul.f32 %v3845_v29, %v7336_v3  ;;  %v6100_v3 = vld [vmem:[#allocation16 + $0x60] ss:$8 sps:$4 sm:$0xff]   ;;  %v6150_v29 = vld [vmem:[#allocation16 + $0xe4] ss:$8 sps:$4 sm:$0xff]  }
0x10c5   : > { %v3805_v40 = vadd.f32 %v3801_v46, %v3800_v31 }
0x10c7   : > { %3806 = vadd.xlane.f32.xlu1 %v3805_v40 }
0x114c   : > { %v3804_v49 = vpop.xlane.xlu0 %3803 }
0x114d   : > { %v3808_v6 = vmul.f32 0.003921569, %v3804_v49  ;;  %v6120_v49 = vld [vmem:[#allocation16 + $0x34] ss:$8 sps:$4 sm:$0xff]  }
0x114f   : > { %6238 = vrsqrt.f32 %v3808_v6  ;;  %vm3812_vm13 = vcmp.eq.f32.partialorder %v3808_v6, inf  ;;  %v3815_v51 = vand.u32 2147483648, %v3808_v6  ;;  %vm3814_vm14 = vcmp.eq.f32.partialorder %v3808_v6, 0.0 }
0x1150   : > { %v3807_v31 = vpop.xlane.xlu1 %3806 }
0x1151   : > { %v3809_v46 = vmul.f32 0.003921569, %v3807_v31  ;;  %v6118_v31 = vld [vmem:[#allocation16 + $0x30] ss:$8 sps:$4 sm:$0xff]  }
0x1153   : > { %6240 = vrsqrt.f32 %v3809_v46  ;;  %vm3819_vm15 = vcmp.eq.f32.partialorder %v3809_v46, inf  ;;  %v3822_v12 = vand.u32 2147483648, %v3809_v46  ;;  %vm3821_vm0 = vcmp.eq.f32.partialorder %v3809_v46, 0.0 }
0x115c   : > { %v6239_v40 = vpop.eup %6238 }
0x115d   : > { %v3811_v47 = vmul.f32 %v6239_v40, %v3808_v6  ;;  %v6126_v40 = vld [vmem:[#allocation16 + $0x24] ss:$8 sps:$4 sm:$0xff]  }
0x115f   : > { %v3813_v10 = vsel %vm3812_vm13, %v3808_v6, %v3811_v47  ;;  %v6123_v6 = vld [vmem:[#allocation16 + $0x134] ss:$8 sps:$4 sm:$0xff]   ;;  %v6129_v47 = vld [vmem:[#allocation16 + $0x124] ss:$8 sps:$4 sm:$0xff]  }
0x1160   : > { %v6241_v9 = vpop.eup %6240  ;;  %v3816_v11 = vsel %vm3814_vm14, %v3815_v51, %v3813_v10  ;;  %v6124_v51 = vld [vmem:[#allocation16 + $0x20] ss:$8 sps:$4 sm:$0xff]   ;;  %v6132_v10 = vld [vmem:[#allocation16 + $0x14] ss:$8 sps:$4 sm:$0xff]  }
0x1161   : > { %v3818_v56 = vmul.f32 %v6241_v9, %v3809_v46  ;;  %v3824_v7 = vadd.f32 1e-06, %v3816_v11  ;;  %v6127_v9 = vld [vmem:[#allocation16 + $0x120] ss:$8 sps:$4 sm:$0xff]   ;;  %v6135_v11 = vld [vmem:[#allocation16 + $0x114] ss:$8 sps:$4 sm:$0xff]  }
0x1163   : > { %v3820_v13 = vsel %vm3819_vm15, %v3809_v46, %v3818_v56  ;;  %6242 = vrcp.f32 %v3824_v7  ;;  %v6121_v46 = vld [vmem:[#allocation16 + $0x130] ss:$8 sps:$4 sm:$0xff]  }
0x1164   : > { %v3823_v17 = vsel %vm3821_vm0, %v3822_v12, %v3820_v13  ;;  %v6130_v56 = vld [vmem:[#allocation16 + $0x10] ss:$8 sps:$4 sm:$0xff]   ;;  %v6138_v12 = vld [vmem:[#allocation16 + $0x4] ss:$8 sps:$4 sm:$0xff]  }
0x1165   : > { %v3825_v18 = vadd.f32 1e-06, %v3823_v17  ;;  %v6133_v7 = vld [vmem:[#allocation16 + $0x110] ss:$8 sps:$4 sm:$0xff]   ;;  %v6141_v13 = vld [vmem:[#allocation16 + $0x104] ss:$8 sps:$4 sm:$0xff]  }
0x1166   : > { %v6136_v17 = vld [vmem:[#allocation16] ss:$8 sps:$4 sm:$0xff]  }
0x1167   : > { %6244 = vrcp.f32 %v3825_v18  ;;  %v6139_v18 = vld [vmem:[#allocation16 + $0x100] ss:$8 sps:$4 sm:$0xff]  }
0x1170   : > { %v6243_v15 = vpop.eup %6242 }
0x1171   : > { %v3851_v39 = vmul.f32 %v6243_v15, %v3847_v43  ;;  %v3850_v54 = vmul.f32 %v6243_v15, %v3846_v62  ;;  %v6156_v15 = vld [vmem:[#allocation16 + $0xd4] ss:$8 sps:$4 sm:$0xff]   ;;  %v6154_v43 = vld [vmem:[#allocation16 + $0xd0] ss:$8 sps:$4 sm:$0xff]  }
0x1172   : > { %v6159_v62 = vld [vmem:[#allocation16 + $0x1d4] ss:$8 sps:$4 sm:$0xff]  }
0x1173   : > { %v3873_v59 = vadd.f32 %v3871_v45, %v3851_v39  ;;  %v3872_v5 = vadd.f32 %v3867_v53, %v3850_v54  ;;  %v6165_v39 = vld [vmem:[#allocation16 + $0x1c4] ss:$8 sps:$4 sm:$0xff]   ;;  %v6163_v54 = vld [vmem:[#allocation16 + $0x1c0] ss:$8 sps:$4 sm:$0xff]  }
0x1174   : > { %v6245_v34 = vpop.eup %6244 }
0x1175   : > { %v3853_v8 = vmul.f32 %v6245_v34, %v3849_v14  ;;  %v3852_v2 = vmul.f32 %v6245_v34, %v3848_v1  ;;  %v6157_v1 = vld [vmem:[#allocation16 + $0x1d0] ss:$8 sps:$4 sm:$0xff]   ;;  %v6162_v14 = vld [vmem:[#allocation16 + $0xc4] ss:$8 sps:$4 sm:$0xff]   ;;  %v6171_v34 = vld [vmem:[#allocation16 + $0x1b4] ss:$8 sps:$4 sm:$0xff]  }
0x1177   : > { %v3875_v28 = vadd.f32 %v3871_v45, %v3853_v8  ;;  %v3874_v50 = vadd.f32 %v3867_v53, %v3852_v2  ;;  %v6160_v45 = vld [vmem:[#allocation16 + $0xc0] ss:$8 sps:$4 sm:$0xff]   ;;  %v6168_v53 = vld [vmem:[#allocation16 + $0xb4] ss:$8 sps:$4 sm:$0xff]   ;;  %v6166_v8 = vld [vmem:[#allocation16 + $0xb0] ss:$8 sps:$4 sm:$0xff]  }
0x1178   : > { %v6169_v2 = vld [vmem:[#allocation16 + $0x1b0] ss:$8 sps:$4 sm:$0xff]  }
0x1179   : > { %v3877_v27 = vpack.c.bf16 %v3875_v28, %v3873_v59  ;;  %v3876_v55 = vpack.c.bf16 %v3874_v50, %v3872_v5  ;;  %v6174_v59 = vld [vmem:[#allocation16 + $0xa4] ss:$8 sps:$4 sm:$0xff]   ;;  %v6172_v5 = vld [vmem:[#allocation16 + $0xa0] ss:$8 sps:$4 sm:$0xff]  }
0x117a   : > { %v6177_v28 = vld [vmem:[#allocation16 + $0x1a4] ss:$8 sps:$4 sm:$0xff]   ;;  %v6175_v50 = vld [vmem:[#allocation16 + $0x1a0] ss:$8 sps:$4 sm:$0xff]  }
0x117b   : > { %4251 = vmatprep.mubr.bf16.mxu1 %v3877_v27  ;;  %4294 = vmatprep.mubr.bf16.mxu0 %v3877_v27  ;;  %v6180_v27 = vld [vmem:[#allocation16 + $0x94] ss:$8 sps:$4 sm:$0xff]  }
0x117c   : > { %4252 = vmatmul.mubr.bf16.vlgmr.msra.gmra.mxu1 %v3876_v55  ;;  %4295 = vmatmul.mubr.bf16.vlgmr.msra.gmra.mxu0 %v3876_v55  ;;  %v6183_v55 = vld [vmem:[#allocation16 + $0x194] ss:$8 sps:$4 sm:$0xff]  }
0x117d   : > { %4638 = vmatpush1.bf16.msra.mxu1 %v6094_v60  ;;  %4681 = vmatpush1.bf16.msra.mxu0 %v6097_v16  ;;  %v6178_v60 = vld [vmem:[#allocation16 + $0x90] ss:$8 sps:$4 sm:$0xff]  }
0x117e   : > { %4639 = vmatprep.subr.bf16.mxu1 %v6102_v33  ;;  %4682 = vmatprep.subr.bf16.mxu0 %v6105_v19  ;;  %v6181_v16 = vld [vmem:[#allocation16 + $0x190] ss:$8 sps:$4 sm:$0xff]   ;;  %v6186_v33 = vld [vmem:[#allocation16 + $0x84] ss:$8 sps:$4 sm:$0xff]  }
0x117f   : > { %v6189_v19 = vld [vmem:[#allocation16 + $0x184] ss:$8 sps:$4 sm:$0xff]  }
0x1181   : > { %4640 = vmatpush1.bf16.msra.mxu1 %v6100_v3  ;;  %4683 = vmatpush1.bf16.msra.mxu0 %v6103_v23  ;;  %v6184_v3 = vld [vmem:[#allocation16 + $0x80] ss:$8 sps:$4 sm:$0xff]  }
0x1182   : > { %4641 = vmatprep.subr.bf16.mxu1 %v6108_v25  ;;  %4684 = vmatprep.subr.bf16.mxu0 %v6111_v58  ;;  %v6187_v23 = vld [vmem:[#allocation16 + $0x180] ss:$8 sps:$4 sm:$0xff]  }
0x1183   : > { %v909_v25 = vld [vmem:[%s7430_s9] sm:$0xf] }
0x1185   : > { %4642 = vmatpush1.bf16.msra.mxu1 %v6106_v0  ;;  %4685 = vmatpush1.bf16.msra.mxu0 %v6109_v57  ;;  %v3886_v57 = vrot.slane %v909_v25, %v6977_v41 }
0x1186   : > { %4643 = vmatprep.subr.bf16.mxu1 %v6114_v4  ;;  %4686 = vmatprep.subr.bf16.mxu0 %v6117_v38  ;;  %v3894_v4 = vrot.slane %v909_v25, %v7102_v52  ;;  %v3882_v38 = vrot.slane %v909_v25, %v6951_v42 }
0x1189   : > { %4644 = vmatpush1.bf16.msra.mxu1 %v6112_v61  ;;  %4687 = vmatpush1.bf16.msra.mxu0 %v6115_v44  ;;  %v3890_v61 = vrot.slane %v909_v25, %v7001_v63 }
0x118a   : > { %4645 = vmatprep.subr.bf16.mxu1 %v6120_v49  ;;  %4688 = vmatprep.subr.bf16.mxu0 %v6123_v6 }
0x118d   : > { %4646 = vmatpush1.bf16.msra.mxu1 %v6118_v31  ;;  %4689 = vmatpush1.bf16.msra.mxu0 %v6121_v46 }
0x118e   : > { %4647 = vmatprep.subr.bf16.mxu1 %v6126_v40  ;;  %4690 = vmatprep.subr.bf16.mxu0 %v6129_v47 }
0x1191   : > { %4648 = vmatpush1.bf16.msra.mxu1 %v6124_v51  ;;  %4691 = vmatpush1.bf16.msra.mxu0 %v6127_v9 }
0x1192   : > { %4649 = vmatprep.subr.bf16.mxu1 %v6132_v10  ;;  %4692 = vmatprep.subr.bf16.mxu0 %v6135_v11 }
0x1195   : > { %4650 = vmatpush1.bf16.msra.mxu1 %v6130_v56  ;;  %4693 = vmatpush1.bf16.msra.mxu0 %v6133_v7 }
0x1196   : > { %4651 = vmatprep.subr.bf16.mxu1 %v6138_v12  ;;  %4694 = vmatprep.subr.bf16.mxu0 %v6141_v13 }
0x1199   : > { %4652 = vmatpush1.bf16.msra.mxu1 %v6136_v17  ;;  %4695 = vmatpush1.bf16.msra.mxu0 %v6139_v18 }
0x119a   : > { %4653 = vmatprep.subr.bf16.mxu1 %v6144_v20  ;;  %4696 = vmatprep.subr.bf16.mxu0 %v6147_v21 }
0x119d   : > { %4654 = vmatpush2.bf16.msra.mxu1 %v6142_v22  ;;  %4697 = vmatpush2.bf16.msra.mxu0 %v6145_v26 }
0x119e   : > { %4655 = vmatprep.subr.bf16.mxu1 %v6150_v29  ;;  %4698 = vmatprep.subr.bf16.mxu0 %v6153_v32 }
0x11a1   : > { %4656 = vmatpush2.bf16.msra.mxu1 %v6148_v30  ;;  %4699 = vmatpush2.bf16.msra.mxu0 %v6151_v36  ;;  %v974_v36 = vld [vmem:[%s7432_s11] sm:$0x3] }
0x11a2   : > { %4657 = vmatprep.subr.bf16.mxu1 %v6156_v15  ;;  %4700 = vmatprep.subr.bf16.mxu0 %v6159_v62 }
0x11a5   : > { %4658 = vmatpush2.bf16.msra.mxu1 %v6154_v43  ;;  %4701 = vmatpush2.bf16.msra.mxu0 %v6157_v1  ;;  %v4731_v1 = vrot.slane %v974_v36, %v6951_v42 }
0x11a6   : > { %4659 = vmatprep.subr.bf16.mxu1 %v6162_v14  ;;  %4702 = vmatprep.subr.bf16.mxu0 %v6165_v39 }
0x11a9   : > { %4660 = vmatpush2.bf16.msra.mxu1 %v6160_v45  ;;  %4703 = vmatpush2.bf16.msra.mxu0 %v6163_v54 }
0x11aa   : > { %4661 = vmatprep.subr.bf16.mxu1 %v6168_v53  ;;  %4704 = vmatprep.subr.bf16.mxu0 %v6171_v34  ;;  %v4735_v53 = vrot.slane %v974_v36, %v6977_v41 }
0x11ad   : > { %4662 = vmatpush2.bf16.msra.mxu1 %v6166_v8  ;;  %4705 = vmatpush2.bf16.msra.mxu0 %v6169_v2 }
0x11ae   : > { %4663 = vmatprep.subr.bf16.mxu1 %v6174_v59  ;;  %4706 = vmatprep.subr.bf16.mxu0 %v6177_v28 }
0x11b1   : > { %4664 = vmatpush2.bf16.msra.mxu1 %v6172_v5  ;;  %4707 = vmatpush2.bf16.msra.mxu0 %v6175_v50 }
0x11b2   : > { %4665 = vmatprep.subr.bf16.mxu1 %v6180_v27  ;;  %4708 = vmatprep.subr.bf16.mxu0 %v6183_v55 }
0x11b5   : > { %4666 = vmatpush2.bf16.msra.mxu1 %v6178_v60  ;;  %4709 = vmatpush2.bf16.msra.mxu0 %v6181_v16 }
0x11b6   : > { %4667 = vmatprep.subr.bf16.mxu1 %v6186_v33  ;;  %4710 = vmatprep.subr.bf16.mxu0 %v6189_v19 }
0x11b9   : > { %4668 = vmatpush2.bf16.msra.mxu1 %v6184_v3  ;;  %4711 = vmatpush2.bf16.msra.mxu0 %v6187_v23 }
0x123c   : > { %v4253_v58 = vpop.f32.mrf.mxu1  ;;  %v4296_v0 = vpop.f32.mrf.mxu0 }
0x123d   : > { %v4254_v9 = vadd.f32 %v4253_v58, %v3882_v38  ;;  %v4297_v10 = vadd.f32 %v4296_v0, %v3890_v61 }
0x123e   : > { %v4255_v44 = vpop.f32.mrf.mxu1  ;;  %v4298_v49 = vpop.f32.mrf.mxu0 }
0x123f   : > { %v4256_v46 = vadd.f32 %v4255_v44, %v3886_v57  ;;  %v4299_v40 = vadd.f32 %v4298_v49, %v3894_v4  ;;  %v4305_v21 = vmax.f32 %v4254_v9, 0.0  ;;  %v4307_v22 = vmax.f32 %v4297_v10, 0.0 }
0x1240   : > { %v4257_v6 = vpop.f32.mrf.mxu1  ;;  %v4300_v31 = vpop.f32.mrf.mxu0 }
0x1241   : > { %v4258_v47 = vadd.f32 %v4257_v6, %v3882_v38  ;;  %v4301_v51 = vadd.f32 %v4300_v31, %v3890_v61  ;;  %v4306_v17 = vmax.f32 %v4256_v46, 0.0  ;;  %v4308_v18 = vmax.f32 %v4299_v40, 0.0 }
0x1242   : > { %v4259_v11 = vpop.f32.mrf.mxu1  ;;  %v4302_v56 = vpop.f32.mrf.mxu0 }
0x1243   : > { %v4260_v7 = vadd.f32 %v4259_v11, %v3886_v57  ;;  %v4303_v12 = vadd.f32 %v4302_v56, %v3894_v4  ;;  %v4309_v13 = vmax.f32 %v4258_v47, 0.0  ;;  %v4311_v52 = vmax.f32 %v4301_v51, 0.0 }
0x1245   : > { %v4310_v20 = vmax.f32 %v4260_v7, 0.0  ;;  %v4312_v63 = vmax.f32 %v4303_v12, 0.0  ;;  %v4313_v32 = vpack.c.bf16 %v4309_v13, %v4305_v21  ;;  %v4315_v30 = vpack.c.bf16 %v4311_v52, %v4307_v22 }
0x1247   : > { %v4314_v26 = vpack.c.bf16 %v4310_v20, %v4306_v17  ;;  %v4316_v29 = vpack.c.bf16 %v4312_v63, %v4308_v18 }
0x1249   : > { %4669 = vmatprep.mubr.bf16.mxu1 %v4314_v26  ;;  %4712 = vmatprep.mubr.bf16.mxu0 %v4316_v29 }
0x124a   : > { %4670 = vmatmul.mubr.bf16.vlgmr.msra.gmra.mxu1 %v4313_v32  ;;  %4713 = vmatmul.mubr.bf16.vlgmr.msra.gmra.mxu0 %v4315_v30 }
0x130a   : > { %v4671_v15 = vpop.f32.mrf.mxu1  ;;  %v4714_v62 = vpop.f32.mrf.mxu0 }
0x130b   : > { %v4715_v43 = vadd.f32 %v4714_v62, %v4671_v15 }
0x130c   : > { %v4673_v14 = vpop.f32.mrf.mxu1  ;;  %v4716_v39 = vpop.f32.mrf.mxu0 }
0x130d   : > { %v4723_v45 = vadd.f32 %v4715_v43, %v7307_v37  ;;  %v4717_v54 = vadd.f32 %v4716_v39, %v4673_v14 }
0x130e   : > { %v4675_v34 = vpop.f32.mrf.mxu1  ;;  %v4718_v8 = vpop.f32.mrf.mxu0 }
0x130f   : > { %v4738_v2 = vadd.f32 %v4731_v1, %v4723_v45  ;;  %v4724_v59 = vadd.f32 %v4717_v54, %v7310_v48  ;;  %v4719_v28 = vadd.f32 %v4718_v8, %v4675_v34 }
0x1310   : > { %v4677_v5 = vpop.f32.mrf.mxu1  ;;  %v4720_v42 = vpop.f32.mrf.mxu0 }
0x1311   : > { %4742 = vst [vmem:[%s568_s29] sm:$0xff] %v4738_v2  ;;  %v4739_v50 = vadd.f32 %v4735_v53, %v4724_v59  ;;  %v4725_v37 = vadd.f32 %v4719_v28, %v7315_v24  ;;  %v4721_v27 = vadd.f32 %v4720_v42, %v4677_v5 }
0x1313   : > { %4743 = vst [vmem:[%s568_s29 + $0x8] sm:$0xff] %v4739_v50  ;;  %v4740_v41 = vadd.f32 %v4731_v1, %v4725_v37  ;;  %v4726_v48 = vadd.f32 %v4721_v27, %v7318_v35 }
0x1315   : > { %4744 = vst [vmem:[%s568_s29 + $0x10] sm:$0xff] %v4740_v41  ;;  %v4741_v55 = vadd.f32 %v4735_v53, %v4726_v48 }
0x1317   : > { %4745 = vst [vmem:[%s568_s29 + $0x18] sm:$0xff] %v4741_v55 }
0x1318   : > { %6505 = shalt.err (!%p6502_p10)
}
0x1319   : > { %s6506_s30 = scalar_lea.hbm %s7378_s6, 512  ;;  %s6510_s14 = scalar_lea.hbm %s7433_s12, 1024 }
0x131a   : > { %p6507_p13 = scmp.ne.s32.totalorder %s7378_s6, %s6506_s30  ;;  %p6511_p0 = scmp.lt.s32.totalorder %s7378_s6, %s7433_s12 }
0x131b   : > { %p6512_p4 = scmp.lt.s32.totalorder %s6510_s14, %s6506_s30 }
0x131c   : > { %p6508_p1 = pnand %p6507_p13, %p7487_p11 }
0x131d   : > { %p6513_p8 = por %p6512_p4, %p6511_p0 }
0x131e   : > { %p6509_p3 = pneg %p6508_p1 }
0x1320   : > { %p6514_p9 = pnand %p6513_p8, %p6509_p3 }
0x1322   : > { %6517 = shalt.err (!%p6514_p9)
}
0x1323   : > { %s6594_s18 = smov 256   ;;  %s6595_s25 = smov 16  }
0x1324   : > { %5516 = dma.vmem_to_hbm [thread:$0]  (%p7487_p11), %s7372_s0, 512, %s7378_s6, %s4747_s2, %s6594_s18, %s6594_s18, %s6595_s25  }
0x1325 PF: > { %s4776_s29 = sand.u32 1, %s6564_s21   ;;  %p7488_p6 = scmp.ne.s32.totalorder %s7471_s19, 0 }
0x1326   : > { %p7489_p2 = scmp.ge.s32.totalorder %s6576_s24, 2  ;;  %s4777_s10 = scalar_lea.sflag [#allocation4], %s4776_s29 }
0x1328   : > { %p5548_p12 = pnand %p7489_p2, %p7488_p6 }
0x132a   : > { %p5549_p7 = pneg %p5548_p12 }
0x132c   : > { %6559 = dma.done.wait (%p5549_p7), %s4777_s10, 512  }
0x132d   : > { %6561 = vsyncadd (%p5549_p7), %s4777_s10, 4294966784  ;;  %s7490_s13 = sld [smem:[#allocation25_spill]]  ;;  %p31_p5 = scmp.ge.s32.totalorder %s6776_s16, 4  }
0x132e   : > { %s7491_s23 = sld [smem:[#allocation26_spill]]  ;;  %s7492_s21 = smov %s6568_s22 }
0x132f   : > { %s7494_s24 = smov %s6776_s16  ;;  %33 = sbr.rel (!%p31_p5) target bundleno = 19 (0x13), region = 154 }
0x1333   : > { %s7493_s22 = smov %s7490_s13 }
0x1334   :  { %4782 = vsyncpa [#allocation3], 1 }
0x1335   :  { %4784 = vsyncpa [#allocation3 + $0x1], 1 }
0x1336   :  { %4785 = vsyncpa [#allocation6], 1 }
0x1337   :  { %4787 = vsyncpa [#allocation6 + $0x1], 1 }
0x1338   :  { %4788 = vsyncpa [#allocation9], 1 }
0x1339   :  { %4789 = vsyncpa [#allocation12], 1 }
0x133a   :  { %4790 = vsyncpa [#allocation15], 1 }
0x133b   :  { %4791 = vsyncpa [#allocation4], 1 }
0x133c   :  { %4793 = vsyncpa [#allocation4 + $0x1], 1 }

// kernel: tpu_custom_call.1
= control target key start
LH: loop header
LB: loop body
LE: loop exit
PB: predicated region body
PF: predicated region fallthrough
CT: control target
= control target key end

     0   :  { %s7421_s0 = inlined_call_operand.hbm [shape: f32[4,8,256], index: 0, kind: input, shape index: {}]   ;;  %s7422_s1 = inlined_call_operand.hbm [shape: f32[4,16,256], index: 1, kind: input, shape index: {}]   ;;  %s7423_s2 = inlined_call_operand.hbm [shape: f32[3,256], index: 2, kind: input, shape index: {}]   ;;  %s7424_s3 = inlined_call_operand.hbm [shape: f32[3,256], index: 3, kind: input, shape index: {}]   ;;  %s7425_s4 = inlined_call_operand.hbm [shape: bf16[4,256,256], index: 4, kind: input, shape index: {}]   ;;  %s7426_s5 = inlined_call_operand.vmem [shape: f32[4,256], index: 5, kind: input, shape index: {}]   ;;  %s7427_s6 = inlined_call_operand.hbm [shape: bf16[4,256,256], index: 6, kind: input, shape index: {}]   ;;  %s7428_s7 = inlined_call_operand.hbm [shape: f32[4,256], index: 7, kind: input, shape index: {}]   ;;  %s7429_s8 = inlined_call_operand.hbm [shape: bf16[256,512], index: 8, kind: input, shape index: {}]   ;;  %s7430_s9 = inlined_call_operand.vmem [shape: f32[1,512], index: 9, kind: input, shape index: {}]   ;;  %s7431_s10 = inlined_call_operand.hbm [shape: bf16[512,256], index: 10, kind: input, shape index: {}]   ;;  %s7432_s11 = inlined_call_operand.vmem [shape: f32[1,256], index: 11, kind: input, shape index: {}]   ;;  %s7433_s12 = inlined_call_operand.hbm [shape: f32[4,8,256], index: 12, kind: output, shape index: {}]  }
   0x1   :  { %7446 = sst [smem:[#allocation27_spill]] %s7421_s0 }
   0x2   :  { %7447 = sst [smem:[#allocation28_spill]] %s7423_s2 }
   0x3   :  { %7448 = sst [smem:[#allocation29_spill]] %s7424_s3 }
   0x4   :  { %7449 = sst [smem:[#allocation30_spill]] %s7425_s4 }
   0x5   :  { %7450 = sst [smem:[#allocation31_spill]] %s7427_s6 }
   0x6   :  { %7451 = sst [smem:[#allocation32_spill]] %s7428_s7 }
   0x7   :  { %7452 = sst [smem:[#allocation33_spill]] %s7429_s8 }
   0x8   :  { %7453 = sst [smem:[#allocation34_spill]] %s7431_s10 }
   0x9   :  { %17 = vsyncpa [#allocation3], 0 }
   0xa   :  { %19 = vsyncpa [#allocation3 + $0x1], 0 }
   0xb   :  { %20 = vsyncpa [#allocation6], 0 }
   0xc   :  { %22 = vsyncpa [#allocation6 + $0x1], 0 }
   0xd   :  { %23 = vsyncpa [#allocation9], 0 }
   0xe   :  { %24 = vsyncpa [#allocation12], 0 }
   0xf   :  { %25 = vsyncpa [#allocation15], 0 }
  0x10   :  { %26 = vsyncpa [#allocation4], 0 }
  0x11   :  { %28 = vsyncpa [#allocation4 + $0x1], 0  ;;  %s6661_s21 = smov 0   ;;  %s6663_s22 = smov 0  }
  0x12   :  { %s6665_s23 = smov 0   ;;  %s6667_s24 = smov 0  }
  0x13 LB: > { %7454 = sst [smem:[#allocation25_spill]] %s6572_s23  ;;  %s6578_s25 = smov [#allocation7]   ;;  %s6576_s24 = sphi %s6667_s24, %s7494_s24   ;;  %s6572_s23 = sphi %s6665_s23, %s7491_s23   ;;  %s6568_s22 = sphi %s6663_s22, %s7493_s22   ;;  %s6564_s21 = sphi %s6661_s21, %s7492_s21  }
  0x14   : > { %s340_s26 = sshll.u32 %s6578_s25, 4  ;;  %s6682_s27 = sadd.s32 4294967295, %s6576_s24   ;;  %s341_s26 = int_to_ptr.vmem [resolvable:$true] %s340_s26 }
  0x15   : > { %p4924_p0 = scmp.ge.s32.totalorder %s6576_s24, 1  ;;  %p7434_p1 = scmp.eq.s32.totalorder %s6682_s27, 0 }
  0x16   : > { %p327_p2 = scmp.lt.s32.totalorder %s6576_s24, 3  ;;  %s6579_s29 = smov [#allocation8]  }
  0x17   : > { %s351_s30 = sshll.u32 %s6579_s29, 4  ;;  %s6580_s14 = smov [#allocation11]   ;;  %s352_s30 = int_to_ptr.vmem [resolvable:$true] %s351_s30 }
  0x18   : > { %p6687_p3 = pnand %p4924_p0, %p327_p2  ;;  %s377_s15 = sshll.u32 %s6580_s14, 4  ;;  %s6700_s15 = int_to_ptr.vmem [resolvable:$true] %s377_s15 }
  0x19   : > { %s6265_s17 = scalar_lea.vmem %s341_s26, 128  ;;  %p6273_p11 = scmp.lt.s32.totalorder %s341_s26, %s341_s26 }
  0x1a   : > { %s7455_s28 = scalar_select %p6687_p3, 1, 0 }
  0x1b   : > { %p5518_p5 = pneg %p6687_p3  ;;  %p6266_p8 = scmp.ne.s32.totalorder %s341_s26, %s6265_s17 }
  0x1c   : > { %p6274_p12 = scmp.lt.s32.totalorder %s6265_s17, %s6265_s17 }
  0x1d   : > { %p6696_p6 = pnand %p5518_p5, %p7434_p1 }
  0x1e   : > { %p6275_p13 = por %p6274_p12, %p6273_p11 }
  0x1f   : > { %p6704_p7 = pneg %p6696_p6 }
  0x21   : > { %p6268_p9 = pnand %p6266_p8, %p6704_p7 }
  0x23   : > { %p6269_p10 = pneg %p6268_p9 }
  0x25   : > { %p6276_p0 = pnand %p6275_p13, %p6269_p10 }
  0x27   : > { %6279 = shalt.err (!%p6276_p0)
}
  0x28   : > { %s7458_s2 = sld [smem:[#allocation28_spill]]  ;;  %s6291_s20 = scalar_lea.vmem %s352_s30, 128 }
  0x29   : > { %p6292_p2 = scmp.ne.s32.totalorder %s352_s30, %s6291_s20  ;;  %p6299_p1 = scmp.lt.s32.totalorder %s352_s30, %s352_s30 }
  0x2a   : > { %p6300_p8 = scmp.lt.s32.totalorder %s6291_s20, %s6291_s20 }
  0x2b   : > { %p6294_p5 = pnand %p6292_p2, %p6704_p7 }
  0x2c   : > { %p6301_p9 = por %p6300_p8, %p6299_p1 }
  0x2d   : > { %p6295_p4 = pneg %p6294_p5 }
  0x2e   : > { %5521 = dma.hbm_to_vmem [thread:$0]  (!%p6696_p6), %s7458_s2, 128, %s341_s26, [#allocation6]  }
  0x2f   : > { %p6302_p3 = pnand %p6301_p9, %p6295_p4 }
  0x31   : > { %6305 = shalt.err (!%p6302_p3)
}
  0x32   : > { %s7459_s3 = sld [smem:[#allocation29_spill]]  ;;  %s6317_s26 = scalar_lea.vmem %s6700_s15, 16384 }
  0x33   : > { %p6318_p10 = scmp.ne.s32.totalorder %s6700_s15, %s6317_s26  ;;  %p6325_p13 = scmp.lt.s32.totalorder %s6700_s15, %s6700_s15 }
  0x34   : > { %p6326_p1 = scmp.lt.s32.totalorder %s6317_s26, %s6317_s26 }
  0x35   : > { %p6320_p11 = pnand %p6318_p10, %p6704_p7 }
  0x36   : > { %p6327_p4 = por %p6326_p1, %p6325_p13 }
  0x37   : > { %p6321_p12 = pneg %p6320_p11 }
  0x38   : > { %5524 = dma.hbm_to_vmem [thread:$0]  (!%p6696_p6), %s7459_s3, 128, %s352_s30, [#allocation9]  }
  0x39   : > { %p6328_p3 = pnand %p6327_p4, %p6321_p12 }
  0x3b   : > { %6331 = shalt.err (!%p6328_p3)
}
  0x3c   : > { %s7436_s14 = smov 128   ;;  %s7438_s17 = smov 8  }
  0x3d   : > { %s7460_s6 = sld [smem:[#allocation31_spill]]  ;;  %s6583_s19 = smov [#allocation14]  }
  0x3e   : > { %s401_s20 = sshll.u32 %s6583_s19, 4  ;;  %s402_s20 = int_to_ptr.vmem [resolvable:$true] %s401_s20 }
  0x3f   : > { %s6343_s25 = scalar_lea.vmem %s402_s20, 8192  ;;  %p6351_p8 = scmp.lt.s32.totalorder %s402_s20, %s402_s20 }
  0x40   : > { %p6344_p0 = scmp.ne.s32.totalorder %s402_s20, %s6343_s25  ;;  %p6352_p9 = scmp.lt.s32.totalorder %s6343_s25, %s6343_s25 }
  0x42   : > { %p6346_p2 = pnand %p6344_p0, %p6704_p7  ;;  %p6353_p10 = por %p6352_p9, %p6351_p8 }
  0x43   : > { %5530 = dma.hbm_to_vmem [thread:$0]  (!%p6696_p6), %s7460_s6, 16384, %s6700_s15, [#allocation12], %s7436_s14, %s7436_s14, %s7438_s17  }
  0x44   : > { %p6347_p5 = pneg %p6346_p2 }
  0x46   : > { %p6354_p11 = pnand %p6353_p10, %p6347_p5 }
  0x48   : > { %6357 = shalt.err (!%p6354_p11)
}
  0x49   : > { %s7440_s29 = smov 256   ;;  %s7442_s26 = smov 16  }
  0x4a   : > { %s7461_s8 = sld [smem:[#allocation33_spill]]  ;;  %s6586_s18 = smov [#allocation10]  }
  0x4b   : > { %s361_s19 = sshll.u32 %s6586_s18, 4  ;;  %s6587_s14 = smov [#allocation13]   ;;  %s362_s19 = int_to_ptr.vmem [resolvable:$true] %s361_s19 }
  0x4c   : > { %s391_s17 = sshll.u32 %s6587_s14, 4  ;;  %s6369_s25 = scalar_lea.vmem %s362_s19, 16384  ;;  %s392_s17 = int_to_ptr.vmem [resolvable:$true] %s391_s17 }
  0x4d   : > { %p6370_p12 = scmp.ne.s32.totalorder %s362_s19, %s6369_s25  ;;  %p6377_p4 = scmp.lt.s32.totalorder %s362_s19, %s362_s19 }
  0x4e   : > { %p6378_p3 = scmp.lt.s32.totalorder %s6369_s25, %s6369_s25 }
  0x4f   : > { %p6372_p13 = pnand %p6370_p12, %p6704_p7 }
  0x50   : > { %5536 = dma.hbm_to_vmem [thread:$0]  (!%p6696_p6), %s7461_s8, 8192, %s402_s20, [#allocation15], %s7440_s29, %s7440_s29, %s7442_s26  }
  0x51   : > { %p6373_p1 = pneg %p6372_p13  ;;  %p6379_p0 = por %p6378_p3, %p6377_p4 }
  0x53   : > { %p6380_p2 = pnand %p6379_p0, %p6373_p1 }
  0x55   : > { %6383 = shalt.err (!%p6380_p2)
}
  0x56   : > { %s7462_s15 = smov 8   ;;  %s7463_s20 = smov 128  }
  0x57   : > { %s7464_s4 = sld [smem:[#allocation30_spill]]  ;;  %s6395_s14 = scalar_lea.vmem %s392_s17, 128 }
  0x58   : > { %p6396_p5 = scmp.ne.s32.totalorder %s392_s17, %s6395_s14  ;;  %p6403_p10 = scmp.lt.s32.totalorder %s392_s17, %s392_s17 }
  0x59   : > { %p6404_p11 = scmp.lt.s32.totalorder %s6395_s14, %s6395_s14 }
  0x5a   : > { %p6398_p8 = pnand %p6396_p5, %p6704_p7 }
  0x5b   : > { %p6405_p12 = por %p6404_p11, %p6403_p10 }
  0x5c   : > { %p6399_p9 = pneg %p6398_p8 }
  0x5d   : > { %5527 = dma.hbm_to_vmem [thread:$0]  (!%p6696_p6), %s7464_s4, 16384, %s362_s19, [#allocation9], %s7463_s20, %s7463_s20, %s7462_s15  }
  0x5e   : > { %p6406_p13 = pnand %p6405_p12, %p6399_p9 }
  0x60   : > { %6409 = shalt.err (!%p6406_p13)
}
  0x61   : > { %s7465_s7 = sld [smem:[#allocation32_spill]]  ;;  %s6588_s30 = smov [#allocation16]  }
  0x62   : > { %s417_s18 = sshll.u32 %s6588_s30, 4  ;;  %s418_s18 = int_to_ptr.vmem [resolvable:$true] %s417_s18 }
  0x63   : > { %s6421_s19 = scalar_lea.vmem %s418_s18, 8192  ;;  %p6429_p0 = scmp.lt.s32.totalorder %s418_s18, %s418_s18 }
  0x64   : > { %p6422_p1 = scmp.ne.s32.totalorder %s418_s18, %s6421_s19  ;;  %p6430_p2 = scmp.lt.s32.totalorder %s6421_s19, %s6421_s19 }
  0x66   : > { %p6424_p4 = pnand %p6422_p1, %p6704_p7  ;;  %p6431_p5 = por %p6430_p2, %p6429_p0 }
  0x67   : > { %5533 = dma.hbm_to_vmem [thread:$0]  (!%p6696_p6), %s7465_s7, 128, %s392_s17, [#allocation12]  }
  0x68   : > { %p6425_p3 = pneg %p6424_p4 }
  0x6a   : > { %p6432_p8 = pnand %p6431_p5, %p6425_p3 }
  0x6c   : > { %6435 = shalt.err (!%p6432_p8)
}
  0x6d   : > { %s7466_s10 = sld [smem:[#allocation34_spill]]  ;;  %s4923_s13 = sadd.s32 4294967294, %s6576_s24  }
  0x6e   : > { %s6776_s16 = sadd.s32 1, %s6576_s24   ;;  %s41_s14 = sadd.s32 1, %s6572_s23 }
  0x6f   : > { %s38_s25 = ssub.s32 %s6576_s24, %s6776_s16  ;;  %p48_p7 = scmp.ne.s32.totalorder %s6572_s23, %s6568_s22 }
  0x70   : > { %p39_p9 = scmp.eq.s32.totalorder %s38_s25, 0  ;;  %p49_p10 = scmp.eq.s32.totalorder %s6576_s24, 0 }
  0x71   : > { %p54_p11 = scmp.ne.s32.totalorder %s6568_s22, %s6564_s21  ;;  %p314_p12 = scmp.eq.s32.totalorder %s6682_s27, 1 }
  0x72   : > { %s6788_s30 = scalar_select %p39_p9, %s6572_s23, %s41_s14  }
  0x73   : > { %5539 = dma.hbm_to_vmem [thread:$0]  (!%p6696_p6), %s7466_s10, 8192, %s418_s18, [#allocation15], %s7463_s20, %s7463_s20, %s7462_s15  }
  0x74   : > { %7467 = sst [smem:[#allocation26_spill]] %s6788_s30  ;;  %p50_p13 = por %p49_p10, %p48_p7 }
  0x75   : > { %p7468_p1 = scmp.eq.s32.totalorder %s6682_s27, 0  ;;  %p6796_p6 = por %p314_p12, %p48_p7 }
  0x76   : > { %p320_p3 = scmp.eq.s32.totalorder %s4923_s13, 1  ;;  %p5558_p0 = scmp.lt.s32.totalorder %s6576_s24, 2 }
  0x77   : > { %p6792_p4 = por %p7468_p1, %p54_p11  ;;  %s6802_s18 = sand.u32 1, %s6572_s23  }
  0x78   : > { %s7470_s20 = scalar_select %p6796_p6, 1, 0 }
  0x79   : > { %p6804_p2 = por %p320_p3, %p54_p11  ;;  %s4933_s29 = sshll.u32 %s6802_s18, 5 }
  0x7a   : > { %s5351_s17 = sshll.u32 %s6576_s24, 9  ;;  %s7472_s0 = sld [smem:[#allocation27_spill]] }
  0x7b   : > { %s7471_s19 = scalar_select %p6804_p2, 1, 0 }
  0x7c   : > { %s438_s13 = scalar_lea.vmem [#allocation2], %s4933_s29  ;;  %p6815_p5 = pnand %p5558_p0, %p50_p13 }
  0x7d   : > { %s446_s2 = sshll.u32 %s438_s13, 4  ;;  %s6819_s2 = int_to_ptr.vmem [resolvable:$true] %s446_s2 }
  0x7e   : > { %p6438_p7 = pneg %p6815_p5 }
  0x80   : > { %s6813_s26 = scalar_lea.hbm %s7472_s0, %s5351_s17  ;;  %s6441_s14 = scalar_lea.hbm %s7472_s0, 1024 }
  0x81   : > { %s6436_s7 = scalar_lea.hbm %s6813_s26, 512  ;;  %p6442_p11 = scmp.lt.s32.totalorder %s6813_s26, %s7472_s0 }
  0x82   : > { %p6437_p8 = scmp.ne.s32.totalorder %s6813_s26, %s6436_s7  ;;  %p6443_p12 = scmp.lt.s32.totalorder %s6441_s14, %s6436_s7 }
  0x84   : > { %p6439_p9 = pnand %p6438_p7, %p6437_p8  ;;  %p6444_p13 = por %p6443_p12, %p6442_p11 }
  0x86   : > { %p6440_p10 = pneg %p6439_p9 }
  0x88   : > { %p6445_p1 = pnand %p6444_p13, %p6440_p10 }
  0x8a   : > { %6448 = shalt.err (!%p6445_p1)
}
  0x8b   : > { %s6449_s4 = scalar_lea.vmem %s6819_s2, 512  ;;  %s6589_s29 = smov [#allocation2]  }
  0x8c   : > { %p6450_p3 = scmp.ne.s32.totalorder %s6819_s2, %s6449_s4  ;;  %s6454_s17 = sshll.u32 %s6589_s29, 4  ;;  %s6455_s17 = int_to_ptr.vmem [resolvable:$false] %s6454_s17 }
  0x8d   : > { %s6456_s6 = scalar_lea.vmem %s6455_s17, 1024  ;;  %p6457_p9 = scmp.lt.s32.totalorder %s6819_s2, %s6455_s17 }
  0x8e   : > { %p6452_p0 = pnand %p6450_p3, %p6438_p7  ;;  %p6458_p2 = scmp.lt.s32.totalorder %s6456_s6, %s6449_s4 }
  0x90   : > { %p6453_p8 = pneg %p6452_p0  ;;  %p6459_p6 = por %p6458_p2, %p6457_p9 }
  0x92   : > { %p6460_p11 = pnand %p6459_p6, %p6453_p8 }
  0x94   : > { %6463 = shalt.err (!%p6460_p11)
}
  0x95   : > { %s7474_s7 = smov 16   ;;  %s7475_s14 = smov 256  }
  0x96   : > { %s7476_s25 = scalar_lea.sflag [#allocation3], %s6802_s18  ;;  %s4937_s13 = sshll.u32 %s6802_s18, 6 }
  0x97   : > { %5543 = dma.hbm_to_vmem [thread:$0]  (!%p6815_p5), %s6813_s26, 512, %s6819_s2, %s7476_s25, %s7475_s14, %s7475_s14, %s7474_s7  }
  0x98   : > { %s5353_s29 = sshll.u32 %s6576_s24, 10  ;;  %s460_s0 = scalar_lea.vmem [#allocation5], %s4937_s13 }
  0x99   : > { %s6857_s17 = scalar_lea.hbm %s7422_s1, %s5353_s29  ;;  %s468_s8 = sshll.u32 %s460_s0, 4  ;;  %s6859_s8 = int_to_ptr.vmem [resolvable:$true] %s468_s8 }
  0x9a   : > { %s7477_s10 = sand.u32 1, %s6576_s24   ;;  %s6464_s23 = scalar_lea.hbm %s6857_s17, 1024 }
  0x9b   : > { %s457_s30 = scalar_lea.sflag [#allocation6], %s7477_s10  ;;  %p6465_p6 = scmp.ne.s32.totalorder %s6857_s17, %s6464_s23 }
  0x9c   : > { %s6469_s18 = scalar_lea.hbm %s7422_s1, 2048  ;;  %p6470_p12 = scmp.lt.s32.totalorder %s6857_s17, %s7422_s1 }
  0x9d   : > { %p6467_p2 = pnand %p6465_p6, %p6438_p7  ;;  %p6471_p13 = scmp.lt.s32.totalorder %s6469_s18, %s6464_s23 }
  0x9f   : > { %p6468_p10 = pneg %p6467_p2  ;;  %p6472_p1 = por %p6471_p13, %p6470_p12 }
  0xa1   : > { %p6473_p3 = pnand %p6472_p1, %p6468_p10 }
  0xa3   : > { %6476 = shalt.err (!%p6473_p3)
}
  0xa4   : > { %s6477_s0 = scalar_lea.vmem %s6859_s8, 1024  ;;  %s6590_s10 = smov [#allocation5]  }
  0xa5   : > { %p6478_p0 = scmp.ne.s32.totalorder %s6859_s8, %s6477_s0  ;;  %s6482_s13 = sshll.u32 %s6590_s10, 4  ;;  %s6483_s13 = int_to_ptr.vmem [resolvable:$false] %s6482_s13 }
  0xa6   : > { %s6484_s4 = scalar_lea.vmem %s6483_s13, 2048  ;;  %p6485_p11 = scmp.lt.s32.totalorder %s6859_s8, %s6483_s13 }
  0xa7   : > { %p6480_p8 = pnand %p6478_p0, %p6438_p7  ;;  %p6486_p6 = scmp.lt.s32.totalorder %s6484_s4, %s6477_s0 }
  0xa9   : > { %p6481_p9 = pneg %p6480_p8  ;;  %p6487_p2 = por %p6486_p6, %p6485_p11 }
  0xab   : > { %p6488_p12 = pnand %p6487_p2, %p6481_p9 }
  0xad   : > { %6491 = shalt.err (!%p6488_p12)
}
  0xae   : > { %5546 = dma.hbm_to_vmem [thread:$0]  (!%p6815_p5), %s6857_s17, 1024, %s6859_s8, %s457_s30, %s7475_s14, %s7475_s14, %s7474_s7  }
  0xaf   : > { %p7478_p7 = scmp.ne.s32.totalorder %s7455_s28, 0 }
  0xb0   : > { %s6891_s23 = sand.u32 (!%p7478_p7), 1, %s6568_s22  }
  0xb1   : > { %480 = sbr.rel (%p7478_p7) target bundleno = 4901 (0x1325), region = 68  ;;  %s4942_s6 = sshll.u32 (!%p7478_p7), %s6891_s23, 5 }
  0xb2   : > { %s483_s2 = scalar_lea.sflag (!%p7478_p7), [#allocation3], %s6891_s23  ;;  %s6897_s3 = scalar_lea.vmem (!%p7478_p7), [#allocation2], %s4942_s6 }
  0xb6   : > { %6535 = dma.done.wait (%p6792_p4), %s483_s2, 512  }
  0xb7   : > { %6537 = vsyncadd (%p6792_p4), %s483_s2, 4294966784  ;;  %s491_s8 = sand.u32 1, %s6682_s27   ;;  %s4943_s28 = sshll.u32 %s6891_s23, 6 }
  0xb8   : > { %s492_s30 = scalar_lea.sflag [#allocation6], %s491_s8  ;;  %s6905_s7 = scalar_lea.vmem [#allocation5], %s4943_s28 }
  0xb9   : > { %6539 = dma.done.wait (%p6792_p4), %s492_s30, 1024  }
  0xba   : > { %6541 = vsyncadd (%p6792_p4), %s492_s30, 4294966272  ;;  %p7479_p5 = scmp.eq.s32.totalorder %s6682_s27, 0 }
  0xbc   : > { %6543 = dma.done.wait (%p7479_p5), [#allocation6], 128   ;;  %p7480_p10 = pmov %p7479_p5 }
  0xbd   : > { %p7481_p13 = pmov %p7479_p5 }
  0xbe   : > { %6545 = vsyncadd (%p7480_p10), [#allocation6], 4294967168 }
  0xbf   : > { %6547 = dma.done.wait (%p7481_p13), [#allocation9], 16512   ;;  %p7482_p1 = pmov %p7479_p5 }
  0xc1   : > { %6549 = vsyncadd (%p7482_p1), [#allocation9], 4294950784  ;;  %p7483_p3 = pmov %p7482_p1 }
  0xc2   : > { %p7484_p0 = pmov %p7482_p1 }
  0xc3   : > { %6551 = dma.done.wait (%p7483_p3), [#allocation12], 16512  }
  0xc4   : > { %6553 = vsyncadd (%p7484_p0), [#allocation12], 4294950784  ;;  %p7485_p4 = pmov %p7484_p0 }
  0xc5   : > { %p7486_p8 = pmov %p7484_p0 }
  0xc6   : > { %6555 = dma.done.wait (%p7485_p4), [#allocation15], 16384  }
  0xc7   : > { %6557 = vsyncadd (%p7486_p8), [#allocation15], 4294950912  ;;  %v573_v0 = vld [vmem:[%s6897_s3] sm:$0xff]  ;;  %v574_v1 = vld [vmem:[%s6897_s3 + $0x8] sm:$0xff]  ;;  %vm6592_vm4 = vmmov 0   ;;  %vm1869_vm5 = vcmask 1043456  }
  0xc8   : > { %v575_v2 = vld [vmem:[%s6897_s3 + $0x10] sm:$0xff]  ;;  %v979_v3 = vadd.f32 %v574_v1, %v573_v0  ;;  %v576_v4 = vld [vmem:[%s6897_s3 + $0x18] sm:$0xff]  ;;  %v5614_v6 = vld [vmem:[#allocation10 + $0x74] ss:$8 sps:$4 sm:$0xff]   ;;  %vm1841_vm7 = vcmask 64512   ;;  %vm3256_vm12 = vcmask 130048  }
  0xc9   : > { %v982_v5 = vadd.f32 %v576_v4, %v575_v2  ;;  %v5616_v7 = vld [vmem:[#allocation10 + $0x70] ss:$8 sps:$4 sm:$0xff]   ;;  %v5617_v8 = vld [vmem:[#allocation10 + $0x174] ss:$8 sps:$4 sm:$0xff]   ;;  %v5620_v10 = vld [vmem:[#allocation10 + $0x64] ss:$8 sps:$4 sm:$0xff]   ;;  %1253 = vmatprep.subr.bf16.mxu0 %v5614_v6 }
  0xca   : > { %980 = vadd.xlane.f32.xlu0 %v979_v3  ;;  %v5619_v9 = vld [vmem:[#allocation10 + $0x170] ss:$8 sps:$4 sm:$0xff]   ;;  %1474 = vmatprep.subr.bf16.mxu1 %v5617_v8  ;;  %v5623_v11 = vld [vmem:[#allocation10 + $0x164] ss:$8 sps:$4 sm:$0xff]   ;;  %v5622_v12 = vld [vmem:[#allocation10 + $0x60] ss:$8 sps:$4 sm:$0xff]  }
  0xcb   : > { %1254 = vmatpush1.bf16.msra.mxu0 %v5616_v7  ;;  %1475 = vmatpush1.bf16.msra.mxu1 %v5619_v9  ;;  %v5625_v13 = vld [vmem:[#allocation10 + $0x160] ss:$8 sps:$4 sm:$0xff]   ;;  %v5626_v14 = vld [vmem:[#allocation10 + $0x54] ss:$8 sps:$4 sm:$0xff]   ;;  %v5628_v16 = vld [vmem:[#allocation10 + $0x50] ss:$8 sps:$4 sm:$0xff]  }
  0xcc   : > { %1255 = vmatprep.subr.bf16.mxu0 %v5620_v10  ;;  %1476 = vmatprep.subr.bf16.mxu1 %v5623_v11  ;;  %v5629_v15 = vld [vmem:[#allocation10 + $0x154] ss:$8 sps:$4 sm:$0xff]   ;;  %v5631_v17 = vld [vmem:[#allocation10 + $0x150] ss:$8 sps:$4 sm:$0xff]   ;;  %v5632_v18 = vld [vmem:[#allocation10 + $0x44] ss:$8 sps:$4 sm:$0xff]  }
  0xcd   : > { %v5635_v19 = vld [vmem:[#allocation10 + $0x144] ss:$8 sps:$4 sm:$0xff]   ;;  %v5634_v20 = vld [vmem:[#allocation10 + $0x40] ss:$8 sps:$4 sm:$0xff]   ;;  %v5638_v22 = vld [vmem:[#allocation10 + $0x34] ss:$8 sps:$4 sm:$0xff]  }
  0xce   : > { %983 = vadd.xlane.f32.xlu0 %v982_v5  ;;  %v5637_v21 = vld [vmem:[#allocation10 + $0x140] ss:$8 sps:$4 sm:$0xff]   ;;  %v5641_v23 = vld [vmem:[#allocation10 + $0x134] ss:$8 sps:$4 sm:$0xff]   ;;  %v5640_v24 = vld [vmem:[#allocation10 + $0x30] ss:$8 sps:$4 sm:$0xff]  }
  0xcf   : > { %1256 = vmatpush1.bf16.msra.mxu0 %v5622_v12  ;;  %1477 = vmatpush1.bf16.msra.mxu1 %v5625_v13  ;;  %v5643_v39 = vld [vmem:[#allocation10 + $0x130] ss:$8 sps:$4 sm:$0xff]   ;;  %v5644_v40 = vld [vmem:[#allocation10 + $0x24] ss:$8 sps:$4 sm:$0xff]   ;;  %v5646_v41 = vld [vmem:[#allocation10 + $0x20] ss:$8 sps:$4 sm:$0xff]  }
  0xd0   : > { %1257 = vmatprep.subr.bf16.mxu0 %v5626_v14  ;;  %1478 = vmatprep.subr.bf16.mxu1 %v5629_v15  ;;  %v5647_v42 = vld [vmem:[#allocation10 + $0x124] ss:$8 sps:$4 sm:$0xff]   ;;  %v5649_v43 = vld [vmem:[#allocation10 + $0x120] ss:$8 sps:$4 sm:$0xff]   ;;  %v5650_v44 = vld [vmem:[#allocation10 + $0x14] ss:$8 sps:$4 sm:$0xff]  }
  0xd1   : > { %v5652_v45 = vld [vmem:[#allocation10 + $0x10] ss:$8 sps:$4 sm:$0xff]   ;;  %v5653_v46 = vld [vmem:[#allocation10 + $0x114] ss:$8 sps:$4 sm:$0xff]   ;;  %v5656_v48 = vld [vmem:[#allocation10 + $0x4] ss:$8 sps:$4 sm:$0xff]  }
  0xd2   : > { %v5655_v47 = vld [vmem:[#allocation10 + $0x110] ss:$8 sps:$4 sm:$0xff]   ;;  %v5658_v49 = vld [vmem:[#allocation10] ss:$8 sps:$4 sm:$0xff]   ;;  %v5659_v50 = vld [vmem:[#allocation10 + $0x104] ss:$8 sps:$4 sm:$0xff]  }
  0xd3   : > { %1258 = vmatpush1.bf16.msra.mxu0 %v5628_v16  ;;  %1479 = vmatpush1.bf16.msra.mxu1 %v5631_v17  ;;  %v5661_v51 = vld [vmem:[#allocation10 + $0x100] ss:$8 sps:$4 sm:$0xff]   ;;  %v5662_v52 = vld [vmem:[#allocation10 + $0xf4] ss:$8 sps:$4 sm:$0xff]   ;;  %v5664_v53 = vld [vmem:[#allocation10 + $0xf0] ss:$8 sps:$4 sm:$0xff]  }
  0xd4   : > { %1259 = vmatprep.subr.bf16.mxu0 %v5632_v18  ;;  %1480 = vmatprep.subr.bf16.mxu1 %v5635_v19  ;;  %v5665_v54 = vld [vmem:[#allocation10 + $0x1f4] ss:$8 sps:$4 sm:$0xff]   ;;  %v5667_v55 = vld [vmem:[#allocation10 + $0x1f0] ss:$8 sps:$4 sm:$0xff]   ;;  %v5668_v56 = vld [vmem:[#allocation10 + $0xe4] ss:$8 sps:$4 sm:$0xff]  }
  0xd5   : > { %v5670_v57 = vld [vmem:[#allocation10 + $0xe0] ss:$8 sps:$4 sm:$0xff]   ;;  %v5671_v58 = vld [vmem:[#allocation10 + $0x1e4] ss:$8 sps:$4 sm:$0xff]   ;;  %v5674_v60 = vld [vmem:[#allocation10 + $0xd4] ss:$8 sps:$4 sm:$0xff]  }
  0xd6   : > { %v5673_v59 = vld [vmem:[#allocation10 + $0x1e0] ss:$8 sps:$4 sm:$0xff]   ;;  %v5676_v61 = vld [vmem:[#allocation10 + $0xd0] ss:$8 sps:$4 sm:$0xff]   ;;  %v5677_v62 = vld [vmem:[#allocation10 + $0x1d4] ss:$8 sps:$4 sm:$0xff]  }
  0xd7   : > { %1260 = vmatpush1.bf16.msra.mxu0 %v5634_v20  ;;  %1481 = vmatpush1.bf16.msra.mxu1 %v5637_v21  ;;  %v5679_v63 = vld [vmem:[#allocation10 + $0x1d0] ss:$8 sps:$4 sm:$0xff]   ;;  %v5685_v3 = vld [vmem:[#allocation10 + $0x1c0] ss:$8 sps:$4 sm:$0xff]   ;;  %v5689_v6 = vld [vmem:[#allocation10 + $0x1b4] ss:$8 sps:$4 sm:$0xff]  }
  0xd8   : > { %1261 = vmatprep.subr.bf16.mxu0 %v5638_v22  ;;  %1482 = vmatprep.subr.bf16.mxu1 %v5641_v23  ;;  %v5688_v5 = vld [vmem:[#allocation10 + $0xb0] ss:$8 sps:$4 sm:$0xff]   ;;  %v5692_v8 = vld [vmem:[#allocation10 + $0xa4] ss:$8 sps:$4 sm:$0xff]   ;;  %v5694_v10 = vld [vmem:[#allocation10 + $0xa0] ss:$8 sps:$4 sm:$0xff]  }
  0xd9   : > { %v5691_v7 = vld [vmem:[#allocation10 + $0x1b0] ss:$8 sps:$4 sm:$0xff]   ;;  %v5695_v9 = vld [vmem:[#allocation10 + $0x1a4] ss:$8 sps:$4 sm:$0xff]   ;;  %v5697_v11 = vld [vmem:[#allocation10 + $0x1a0] ss:$8 sps:$4 sm:$0xff]  }
  0xda   : > { %v5698_v12 = vld [vmem:[#allocation10 + $0x94] ss:$8 sps:$4 sm:$0xff]   ;;  %v5700_v14 = vld [vmem:[#allocation10 + $0x90] ss:$8 sps:$4 sm:$0xff]   ;;  %v5704_v16 = vld [vmem:[#allocation10 + $0x84] ss:$8 sps:$4 sm:$0xff]  }
  0xdb   : > { %1262 = vmatpush1.bf16.msra.mxu0 %v5640_v24  ;;  %1483 = vmatpush1.bf16.msra.mxu1 %v5643_v39  ;;  %v5701_v13 = vld [vmem:[#allocation10 + $0x194] ss:$8 sps:$4 sm:$0xff]   ;;  %v5703_v15 = vld [vmem:[#allocation10 + $0x190] ss:$8 sps:$4 sm:$0xff]   ;;  %v5707_v17 = vld [vmem:[#allocation10 + $0x184] ss:$8 sps:$4 sm:$0xff]  }
  0xdc   : > { %1263 = vmatprep.subr.bf16.mxu0 %v5644_v40  ;;  %1484 = vmatprep.subr.bf16.mxu1 %v5647_v42  ;;  %v5706_v18 = vld [vmem:[#allocation10 + $0x80] ss:$8 sps:$4 sm:$0xff]   ;;  %v5712_v20 = vld [vmem:[#allocation10 + $0x274] ss:$8 sps:$4 sm:$0xff]   ;;  %s568_s29 = scalar_lea.vmem [#allocation17], %s4942_s6  ;;  %s5355_s10 = sshll.u32 %s6682_s27, 9 }
  0xdd   : > { %v5709_v19 = vld [vmem:[#allocation10 + $0x180] ss:$8 sps:$4 sm:$0xff]   ;;  %s4761_s0 = sshll.u32 %s568_s29, 4  ;;  %s7378_s6 = scalar_lea.hbm %s7433_s12, %s5355_s10  ;;  %s7372_s0 = int_to_ptr.vmem [resolvable:$true] %s4761_s0 }
  0xde   : > { %s4747_s2 = scalar_lea.sflag [#allocation4], %s6891_s23  ;;  %p7487_p11 = scmp.ne.s32.totalorder %s7470_s20, 0 }
  0xdf   : > { %1264 = vmatpush1.bf16.msra.mxu0 %v5646_v41  ;;  %1485 = vmatpush1.bf16.msra.mxu1 %v5649_v43  ;;  %s6593_s27 = smov [#allocation17]  }
  0xe0   : > { %1265 = vmatprep.subr.bf16.mxu0 %v5650_v44  ;;  %1486 = vmatprep.subr.bf16.mxu1 %v5653_v46  ;;  %s6496_s8 = sshll.u32 %s6593_s27, 4  ;;  %s6497_s8 = int_to_ptr.vmem [resolvable:$false] %s6496_s8 }
  0xe1   : > { %s6498_s28 = scalar_lea.vmem %s6497_s8, 1024  ;;  %p6499_p12 = scmp.lt.s32.totalorder %s7372_s0, %s6497_s8 }
  0xe3   : > { %1266 = vmatpush1.bf16.msra.mxu0 %v5652_v45  ;;  %1487 = vmatpush1.bf16.msra.mxu1 %v5655_v47  ;;  %v585_v45 = vld [vmem:[#allocation7] sm:$0x77] }
  0xe4   : > { %1267 = vmatprep.subr.bf16.mxu0 %v5656_v48  ;;  %1488 = vmatprep.subr.bf16.mxu1 %v5659_v50  ;;  %v586_v48 = vld [vmem:[#allocation8] sm:$0x77] }
  0xe7   : > { %1268 = vmatpush1.bf16.msra.mxu0 %v5658_v49  ;;  %1489 = vmatpush1.bf16.msra.mxu1 %v5661_v51 }
  0xe8   : > { %1269 = vmatprep.subr.bf16.mxu0 %v5662_v52  ;;  %1490 = vmatprep.subr.bf16.mxu1 %v5665_v54 }
  0xeb   : > { %1270 = vmatpush2.bf16.msra.mxu0 %v5664_v53  ;;  %1491 = vmatpush2.bf16.msra.mxu1 %v5667_v55 }
  0xec   : > { %1271 = vmatprep.subr.bf16.mxu0 %v5668_v56  ;;  %1492 = vmatprep.subr.bf16.mxu1 %v5671_v58 }
  0xef   : > { %1272 = vmatpush2.bf16.msra.mxu0 %v5670_v57  ;;  %1493 = vmatpush2.bf16.msra.mxu1 %v5673_v59 }
  0xf0   : > { %1273 = vmatprep.subr.bf16.mxu0 %v5674_v60  ;;  %1494 = vmatprep.subr.bf16.mxu1 %v5677_v62 }
  0xf3   : > { %1274 = vmatpush2.bf16.msra.mxu0 %v5676_v61  ;;  %1495 = vmatpush2.bf16.msra.mxu1 %v5679_v63 }
 0x153   : > { %v981_v25 = vpop.xlane.xlu0 %980 }
 0x154   : > { %v986_v26 = vmul.f32 0.00390625, %v981_v25 }
 0x156   : > { %v6931_v27 = vsub.f32 %v573_v0, %v986_v26  ;;  %v6933_v28 = vsub.f32 %v574_v1, %v986_v26  ;;  %v5680_v0 = vld [vmem:[#allocation10 + $0xc4] ss:$8 sps:$4 sm:$0xff]   ;;  %v5682_v1 = vld [vmem:[#allocation10 + $0xc0] ss:$8 sps:$4 sm:$0xff]   ;;  %v1023_v26 = vlaneseq }
 0x157   : > { %v984_v29 = vpop.xlane.xlu0 %983  ;;  %1275 = vmatprep.subr.bf16.mxu0 %v5680_v0 }
 0x158   : > { %v987_v30 = vmul.f32 0.00390625, %v984_v29  ;;  %v992_v31 = vmul.f32 %v6931_v27, %v6931_v27  ;;  %v993_v32 = vmul.f32 %v6933_v28, %v6933_v28  ;;  %1276 = vmatpush2.bf16.msra.mxu0 %v5682_v1 }
 0x15a   : > { %v6939_v33 = vsub.f32 %v575_v2, %v987_v30  ;;  %v6941_v34 = vsub.f32 %v576_v4, %v987_v30  ;;  %v996_v35 = vadd.f32 %v993_v32, %v992_v31  ;;  %v5683_v2 = vld [vmem:[#allocation10 + $0x1c4] ss:$8 sps:$4 sm:$0xff]   ;;  %v5686_v4 = vld [vmem:[#allocation10 + $0xb4] ss:$8 sps:$4 sm:$0xff]  }
 0x15b   : > { %1496 = vmatprep.subr.bf16.mxu1 %v5683_v2  ;;  %1277 = vmatprep.subr.bf16.mxu0 %v5686_v4 }
 0x15c   : > { %v994_v36 = vmul.f32 %v6939_v33, %v6939_v33  ;;  %v995_v37 = vmul.f32 %v6941_v34, %v6941_v34  ;;  %997 = vadd.xlane.f32.xlu1 %v996_v35  ;;  %1497 = vmatpush2.bf16.msra.mxu1 %v5685_v3 }
 0x15d   : > { %1498 = vmatprep.subr.bf16.mxu1 %v5689_v6  ;;  %1278 = vmatpush2.bf16.msra.mxu0 %v5688_v5  ;;  %v5710_v5 = vld [vmem:[#allocation10 + $0x270] ss:$8 sps:$4 sm:$0xff]   ;;  %v5718_v6 = vld [vmem:[#allocation10 + $0x254] ss:$8 sps:$4 sm:$0xff]  }
 0x15e   : > { %v999_v38 = vadd.f32 %v995_v37, %v994_v36  ;;  %1279 = vmatprep.subr.bf16.mxu0 %v5692_v8  ;;  %v6948_v36 = vshrl.u32 %v1023_v26, 7  ;;  %v5721_v8 = vld [vmem:[#allocation10 + $0x244] ss:$8 sps:$4 sm:$0xff]  }
 0x160   : > { %1000 = vadd.xlane.f32.xlu1 %v999_v38  ;;  %1499 = vmatpush2.bf16.msra.mxu1 %v5691_v7  ;;  %v6951_v42 = vsub.s32 0, %v6948_v36  ;;  %v6954_v43 = vsub.s32 4, %v6948_v36  ;;  %v5716_v7 = vld [vmem:[#allocation10 + $0x250] ss:$8 sps:$4 sm:$0xff]  }
 0x161   : > { %1500 = vmatprep.subr.bf16.mxu1 %v5695_v9  ;;  %1280 = vmatpush2.bf16.msra.mxu0 %v5694_v10  ;;  %v5719_v9 = vld [vmem:[#allocation10 + $0x240] ss:$8 sps:$4 sm:$0xff]   ;;  %v5724_v10 = vld [vmem:[#allocation10 + $0x234] ss:$8 sps:$4 sm:$0xff]  }
 0x162   : > { %1281 = vmatprep.subr.bf16.mxu0 %v5698_v12  ;;  %v1026_v46 = vrot.slane %v585_v45, %v6951_v42  ;;  %v1030_v47 = vrot.slane %v585_v45, %v6954_v43  ;;  %v1057_v51 = vrot.slane %v586_v48, %v6954_v43  ;;  %v1053_v52 = vrot.slane %v586_v48, %v6951_v42  ;;  %v5727_v12 = vld [vmem:[#allocation10 + $0x224] ss:$8 sps:$4 sm:$0xff]  }
 0x164   : > { %1501 = vmatpush2.bf16.msra.mxu1 %v5697_v11  ;;  %v1036_v49 = vrot.slane %v1026_v46, %v6951_v42  ;;  %v1040_v50 = vrot.slane %v1030_v47, %v6951_v42  ;;  %v1067_v59 = vrot.slane %v1057_v51, %v6951_v42  ;;  %v1063_v61 = vrot.slane %v1053_v52, %v6951_v42  ;;  %v5722_v11 = vld [vmem:[#allocation10 + $0x230] ss:$8 sps:$4 sm:$0xff]  }
 0x165   : > { %1502 = vmatprep.subr.bf16.mxu1 %v5701_v13  ;;  %1282 = vmatpush2.bf16.msra.mxu0 %v5700_v14  ;;  %v5725_v13 = vld [vmem:[#allocation10 + $0x220] ss:$8 sps:$4 sm:$0xff]   ;;  %v5730_v14 = vld [vmem:[#allocation10 + $0x214] ss:$8 sps:$4 sm:$0xff]  }
 0x166   : > { %1283 = vmatprep.subr.bf16.mxu0 %v5704_v16  ;;  %v1041_v54 = vmul.f32 %v1036_v49, %v6931_v27  ;;  %v1042_v55 = vmul.f32 %v1040_v50, %v6933_v28  ;;  %v1043_v56 = vmul.f32 %v1036_v49, %v6939_v33  ;;  %v1044_v57 = vmul.f32 %v1040_v50, %v6941_v34  ;;  %v5715_v33 = vld [vmem:[#allocation10 + $0x264] ss:$8 sps:$4 sm:$0xff]   ;;  %v5713_v34 = vld [vmem:[#allocation10 + $0x260] ss:$8 sps:$4 sm:$0xff]  }
 0x167   : > { %v5733_v16 = vld [vmem:[#allocation10 + $0x204] ss:$8 sps:$4 sm:$0xff]  }
 0x168   : > { %1503 = vmatpush2.bf16.msra.mxu1 %v5703_v15  ;;  %v5728_v15 = vld [vmem:[#allocation10 + $0x210] ss:$8 sps:$4 sm:$0xff]  }
 0x169   : > { %1504 = vmatprep.subr.bf16.mxu1 %v5707_v17  ;;  %1284 = vmatpush2.bf16.msra.mxu0 %v5706_v18  ;;  %v5731_v17 = vld [vmem:[#allocation10 + $0x200] ss:$8 sps:$4 sm:$0xff]   ;;  %v5736_v18 = vld [vmem:[#allocation10 + $0x2f4] ss:$8 sps:$4 sm:$0xff]  }
 0x16a   : > { %1695 = vmatprep.subr.bf16.mxu0 %v5712_v20  ;;  %v5739_v20 = vld [vmem:[#allocation10 + $0x2e4] ss:$8 sps:$4 sm:$0xff]  }
 0x16c   : > { %1505 = vmatpush2.bf16.msra.mxu1 %v5709_v19  ;;  %v5734_v19 = vld [vmem:[#allocation10 + $0x2f0] ss:$8 sps:$4 sm:$0xff]  }
 0x1e5   : > { %v998_v21 = vpop.xlane.xlu1 %997 }
 0x1e6   : > { %v1002_v22 = vmul.f32 0.003921569, %v998_v21  ;;  %v5737_v21 = vld [vmem:[#allocation10 + $0x2e0] ss:$8 sps:$4 sm:$0xff]  }
 0x1e8   : > { %6190 = vrsqrt.f32 %v1002_v22  ;;  %vm1006_vm0 = vcmp.eq.f32.partialorder %v1002_v22, inf  ;;  %v1009_v30 = vand.u32 2147483648, %v1002_v22  ;;  %vm1008_vm1 = vcmp.eq.f32.partialorder %v1002_v22, 0.0 }
 0x1e9   : > { %v1001_v23 = vpop.xlane.xlu1 %1000 }
 0x1ea   : > { %v1003_v24 = vmul.f32 0.003921569, %v1001_v23  ;;  %v5740_v23 = vld [vmem:[#allocation10 + $0x2d0] ss:$8 sps:$4 sm:$0xff]  }
 0x1ec   : > { %6192 = vrsqrt.f32 %v1003_v24  ;;  %vm1013_vm2 = vcmp.eq.f32.partialorder %v1003_v24, inf  ;;  %v1016_v39 = vand.u32 2147483648, %v1003_v24  ;;  %vm1015_vm3 = vcmp.eq.f32.partialorder %v1003_v24, 0.0 }
 0x1f5   : > { %v6191_v25 = vpop.eup %6190 }
 0x1f6   : > { %v1005_v29 = vmul.f32 %v6191_v25, %v1002_v22  ;;  %v5743_v25 = vld [vmem:[#allocation10 + $0x2c0] ss:$8 sps:$4 sm:$0xff]  }
 0x1f8   : > { %v1007_v31 = vsel %vm1006_vm0, %v1002_v22, %v1005_v29  ;;  %v5742_v22 = vld [vmem:[#allocation10 + $0x2d4] ss:$8 sps:$4 sm:$0xff]  }
 0x1f9   : > { %v6193_v32 = vpop.eup %6192  ;;  %v1010_v35 = vsel %vm1008_vm1, %v1009_v30, %v1007_v31  ;;  %v5748_v29 = vld [vmem:[#allocation10 + $0x2b4] ss:$8 sps:$4 sm:$0xff]   ;;  %v5746_v30 = vld [vmem:[#allocation10 + $0x2b0] ss:$8 sps:$4 sm:$0xff]   ;;  %v5751_v31 = vld [vmem:[#allocation10 + $0x2a4] ss:$8 sps:$4 sm:$0xff]  }
 0x1fa   : > { %v1018_v37 = vadd.f32 1e-06, %v1010_v35  ;;  %v1012_v38 = vmul.f32 %v6193_v32, %v1003_v24  ;;  %v5749_v32 = vld [vmem:[#allocation10 + $0x2a0] ss:$8 sps:$4 sm:$0xff]   ;;  %v5754_v35 = vld [vmem:[#allocation10 + $0x294] ss:$8 sps:$4 sm:$0xff]  }
 0x1fc   : > { %6194 = vrcp.f32 %v1018_v37  ;;  %v1014_v40 = vsel %vm1013_vm2, %v1003_v24, %v1012_v38  ;;  %v5745_v24 = vld [vmem:[#allocation10 + $0x2c4] ss:$8 sps:$4 sm:$0xff]   ;;  %v5752_v37 = vld [vmem:[#allocation10 + $0x290] ss:$8 sps:$4 sm:$0xff]  }
 0x1fd   : > { %v1017_v41 = vsel %vm1015_vm3, %v1016_v39, %v1014_v40  ;;  %v5757_v38 = vld [vmem:[#allocation10 + $0x284] ss:$8 sps:$4 sm:$0xff]   ;;  %v5755_v39 = vld [vmem:[#allocation10 + $0x280] ss:$8 sps:$4 sm:$0xff]   ;;  %v6591_v40 = vmov 0.0  }
 0x1fe   : > { %v1019_v44 = vadd.f32 1e-06, %v1017_v41  ;;  %5388 = vmatprep.subr.bf16.mxu1 %v6591_v40  ;;  %v6977_v41 = vsub.s32 1, %v6948_v36 }
 0x200   : > { %6196 = vrcp.f32 %v1019_v44  ;;  %v6982_v44 = vld [vmem:[%s7426_s5] sm:$0xff] }
 0x201   : > { %v1299_v45 = vrot.slane %v6982_v44, %v6977_v41  ;;  %v1078_v47 = vrot.slane %v6982_v44, %v6951_v42 }
 0x203   : > { %v1309_v46 = vrot.slane %v1299_v45, %v6977_v41  ;;  %v1088_v50 = vrot.slane %v1078_v47, %v6951_v42 }
 0x209   : > { %v6195_v53 = vpop.eup %6194 }
 0x20a   : > { %v1046_v58 = vmul.f32 %v6195_v53, %v1042_v55  ;;  %v1045_v60 = vmul.f32 %v6195_v53, %v1041_v54 }
 0x20c   : > { %v1069_v1 = vadd.f32 %v1067_v59, %v1046_v58  ;;  %v1068_v3 = vadd.f32 %v1063_v61, %v1045_v60 }
 0x20d   : > { %v6197_v62 = vpop.eup %6196 }
 0x20e   : > { %v1048_v63 = vmul.f32 %v6197_v62, %v1044_v57  ;;  %v1047_v0 = vmul.f32 %v6197_v62, %v1043_v56 }
 0x210   : > { %v1071_v2 = vadd.f32 %v1067_v59, %v1048_v63  ;;  %v1070_v4 = vadd.f32 %v1063_v61, %v1047_v0  ;;  %v7001_v63 = vsub.s32 2, %v6948_v36 }
 0x212   : > { %v1073_v27 = vpack.c.bf16 %v1071_v2, %v1069_v1  ;;  %v6968_v28 = vpack.c.bf16 %v1070_v4, %v1068_v3  ;;  %v1520_v0 = vrot.slane %v6982_v44, %v7001_v63  ;;  %v7007_v2 = vsub.s32 6, %v6948_v36 }
 0x214   : > { %1285 = vmatprep.mubr.bf16.mxu0 %v1073_v27  ;;  %1506 = vmatprep.mubr.bf16.mxu1 %v1073_v27  ;;  %v1530_v1 = vrot.slane %v1520_v0, %v7001_v63 }
 0x215   : > { %1286 = vmatmul.mubr.bf16.vlgmr.msra.gmra.mxu0 %v6968_v28  ;;  %1507 = vmatmul.mubr.bf16.vlgmr.msra.gmra.mxu1 %v6968_v28 }
 0x216   : > { %1696 = vmatpush1.bf16.msra.mxu0 %v5710_v5  ;;  %1727 = vmatprep.mubr.bf16.mxu0 %v1073_v27  ;;  %v1524_v5 = vrot.slane %v6982_v44, %v7007_v2 }
 0x217   : > { %1697 = vmatprep.subr.bf16.mxu0 %v5715_v33  ;;  %5390 = vmatprep.mubr.msk.bf16.mxu1 %vm6592_vm4, %v6591_v40 }
 0x21a   : > { %1698 = vmatpush1.bf16.msra.mxu0 %v5713_v34 }
 0x21b   : > { %1699 = vmatprep.subr.bf16.mxu0 %v5718_v6 }
 0x21e   : > { %1700 = vmatpush1.bf16.msra.mxu0 %v5716_v7  ;;  %v7017_v7 = vrot.slane %v1524_v5, %v7001_v63 }
 0x21f   : > { %1701 = vmatprep.subr.bf16.mxu0 %v5721_v8 }
 0x222   : > { %1702 = vmatpush1.bf16.msra.mxu0 %v5719_v9 }
 0x223   : > { %1703 = vmatprep.subr.bf16.mxu0 %v5724_v10 }
 0x226   : > { %1704 = vmatpush1.bf16.msra.mxu0 %v5722_v11 }
 0x227   : > { %1705 = vmatprep.subr.bf16.mxu0 %v5727_v12 }
 0x22a   : > { %1706 = vmatpush1.bf16.msra.mxu0 %v5725_v13 }
 0x22b   : > { %1707 = vmatprep.subr.bf16.mxu0 %v5730_v14 }
 0x22e   : > { %1708 = vmatpush1.bf16.msra.mxu0 %v5728_v15  ;;  %v7026_v15 = vand.u32 127, %v1023_v26 }
 0x22f   : > { %1709 = vmatprep.subr.bf16.mxu0 %v5733_v16 }
 0x230   : > { %vm1754_vm6 = vcmp.ge.s32.totalorder %v6948_v36, %v7026_v15 }
 0x232   : > { %1710 = vmatpush1.bf16.msra.mxu0 %v5731_v17 }
 0x233   : > { %1711 = vmatprep.subr.bf16.mxu0 %v5736_v18 }
 0x236   : > { %1712 = vmatpush2.bf16.msra.mxu0 %v5734_v19 }
 0x237   : > { %1713 = vmatprep.subr.bf16.mxu0 %v5739_v20 }
 0x23a   : > { %1714 = vmatpush2.bf16.msra.mxu0 %v5737_v21 }
 0x23b   : > { %1715 = vmatprep.subr.bf16.mxu0 %v5742_v22 }
 0x23e   : > { %1716 = vmatpush2.bf16.msra.mxu0 %v5740_v23 }
 0x23f   : > { %1717 = vmatprep.subr.bf16.mxu0 %v5745_v24 }
 0x242   : > { %1718 = vmatpush2.bf16.msra.mxu0 %v5743_v25 }
 0x243   : > { %1719 = vmatprep.subr.bf16.mxu0 %v5748_v29 }
 0x246   : > { %1720 = vmatpush2.bf16.msra.mxu0 %v5746_v30 }
 0x247   : > { %1721 = vmatprep.subr.bf16.mxu0 %v5751_v31 }
 0x24a   : > { %1722 = vmatpush2.bf16.msra.mxu0 %v5749_v32 }
 0x24b   : > { %1723 = vmatprep.subr.bf16.mxu0 %v5754_v35 }
 0x24e   : > { %1724 = vmatpush2.bf16.msra.mxu0 %v5752_v37 }
 0x24f   : > { %1725 = vmatprep.subr.bf16.mxu0 %v5757_v38 }
 0x252   : > { %1726 = vmatpush2.bf16.msra.mxu0 %v5755_v39 }
 0x255   : > { %1728 = vmatmul.mubr.bf16.vlgmr.msra.gmra.mxu0 %v6968_v28 }
 0x2d5   : > { %v1508_v48 = vpop.f32.mrf.mxu1  ;;  %v1287_v52 = vpop.f32.mrf.mxu0 }
 0x2d6   : > { %v1509_v49 = vadd.f32 %v1508_v48, %v1309_v46  ;;  %v1288_v55 = vadd.f32 %v1287_v52, %v1088_v50 }
 0x2d7   : > { %v6990_v51 = vpop.f32.mrf.mxu1  ;;  %v6993_v56 = vpop.f32.mrf.mxu0 }
 0x2d8   : > { %v1742_v53 = vpack.c.bf16 %v1509_v49, %v1509_v49  ;;  %v1738_v58 = vpack.c.bf16 %v1288_v55, %v1288_v55 }
 0x2d9   : > { %v1512_v54 = vpop.f32.mrf.mxu1  ;;  %v1291_v59 = vpop.f32.mrf.mxu0 }
 0x2da   : > { %5389 = vmatpush3.bf16.xpose.msra.mxu1 %v1742_v53  ;;  %v1513_v57 = vadd.f32 %v1512_v54, %v1309_v46  ;;  %v1292_v61 = vadd.f32 %v1291_v59, %v1088_v50  ;;  %v7041_v54 = vsub.s32 5, %v6948_v36 }
 0x2db   : > { %5394 = vmatprep.subr.bf16.mxu1 %v6591_v40  ;;  %v7009_v3 = vpop.f32.mrf.mxu0  ;;  %v1514_v16 = vpop.f32.mrf.mxu1 }
 0x2dc   : > { %v1744_v60 = vpack.c.bf16 %v1513_v57, %v1513_v57  ;;  %v1740_v62 = vpack.c.bf16 %v1292_v61, %v1292_v61  ;;  %v1303_v57 = vrot.slane %v6982_v44, %v7041_v54  ;;  %v1082_v61 = vrot.slane %v6982_v44, %v6954_v43 }
 0x2e1   : > { %5391 = vmatmul.mubr.bf16.vlgmr.msra.gmra.mxu1 %v1738_v58 }
 0x2e2   : > { %5395 = vmatpush3.bf16.xpose.msra.mxu1 %v1744_v60  ;;  %5396 = vmatprep.mubr.msk.bf16.mxu1 %vm6592_vm4, %v6591_v40  ;;  %v1313_v60 = vrot.slane %v1303_v57, %v6977_v41  ;;  %v5760_v57 = vld [vmem:[#allocation10 + $0x374] ss:$8 sps:$4 sm:$0xff]  }
 0x2e3   : > { %5400 = vmatprep.subr.bf16.mxu1 %v6591_v40  ;;  %2339 = vmatprep.subr.bf16.mxu0 %v5760_v57 }
 0x2e4   : > { %v1511_v0 = vadd.f32 %v6990_v51, %v1313_v60 }
 0x2e6   : > { %v1743_v5 = vpack.c.bf16 %v1511_v0, %v1511_v0  ;;  %v5767_v0 = vld [vmem:[#allocation10 + $0x340] ss:$8 sps:$4 sm:$0xff]  }
 0x2e9   : > { %5397 = vmatmul.mubr.bf16.vlgmr.msra.gmra.mxu1 %v1740_v62 }
 0x2ea   : > { %5402 = vmatprep.mubr.msk.bf16.mxu1 %vm6592_vm4, %v6591_v40 }
 0x315   : > { %v1729_v4 = vpop.f32.mrf.mxu0 }
 0x316   : > { %v1730_v27 = vadd.f32 %v1729_v4, %v1530_v1  ;;  %v1092_v4 = vrot.slane %v1082_v61, %v6951_v42  ;;  %v5764_v61 = vld [vmem:[#allocation10 + $0x350] ss:$8 sps:$4 sm:$0xff]  }
 0x317   : > { %v7013_v28 = vpop.f32.mrf.mxu0 }
 0x318   : > { %v1746_v33 = vpack.c.bf16 %v1730_v27, %v1730_v27  ;;  %v1732_v51 = vadd.f32 %v7013_v28, %v7017_v7 }
 0x319   : > { %v1733_v34 = vpop.f32.mrf.mxu0 }
 0x31a   : > { %v1871_v6 = vsel %vm1869_vm5, %v1746_v33, 0  ;;  %v1734_v8 = vadd.f32 %v1733_v34, %v1530_v1  ;;  %v1290_v33 = vadd.f32 %v6993_v56, %v1092_v4  ;;  %v1515_v34 = vadd.f32 %v1514_v16, %v1313_v60  ;;  %v5766_v60 = vld [vmem:[#allocation10 + $0x354] ss:$8 sps:$4 sm:$0xff]  }
 0x31b   : > { %v1735_v9 = vpop.f32.mrf.mxu0  ;;  %5401 = vmatpush3.bf16.msra.mxu1 %v1871_v6 }
 0x31c   : > { %v1748_v10 = vpack.c.bf16 %v1734_v8, %v1734_v8  ;;  %v1736_v11 = vadd.f32 %v1735_v9, %v7017_v7  ;;  %5406 = vmatprep.subr.bf16.mxu1 %v6591_v40  ;;  %v1739_v6 = vpack.c.bf16 %v1290_v33, %v1290_v33  ;;  %v1745_v8 = vpack.c.bf16 %v1515_v34, %v1515_v34  ;;  %v5778_v33 = vld [vmem:[#allocation10 + $0x314] ss:$8 sps:$4 sm:$0xff]   ;;  %v5776_v34 = vld [vmem:[#allocation10 + $0x310] ss:$8 sps:$4 sm:$0xff]  }
 0x31d   : > { %v1294_v9 = vadd.f32 %v7009_v3, %v1092_v4  ;;  %v5770_v4 = vld [vmem:[#allocation10 + $0x330] ss:$8 sps:$4 sm:$0xff]  }
 0x31e   : > { %v1917_v12 = vsel %vm1869_vm5, %v1748_v10, 0  ;;  %v1749_v13 = vpack.c.bf16 %v1736_v11, %v1736_v11  ;;  %v1747_v10 = vpack.c.bf16 %v1732_v51, %v1732_v51  ;;  %v5784_v51 = vld [vmem:[#allocation10 + $0x3f4] ss:$8 sps:$4 sm:$0xff]  }
 0x31f   : > { %v1741_v11 = vpack.c.bf16 %v1294_v9, %v1294_v9  ;;  %v5782_v9 = vld [vmem:[#allocation10 + $0x3f0] ss:$8 sps:$4 sm:$0xff]  }
 0x320   : > { %v7023_v14 = vsel %vm1869_vm5, %v1749_v13, 0  ;;  %v2071_v56 = vsel %vm1869_vm5, %v1747_v10, 0  ;;  %v5787_v10 = vld [vmem:[#allocation10 + $0x3e4] ss:$8 sps:$4 sm:$0xff]  }
 0x3a1   : > { %v1789_v17 = vpop.f32.mrf.mxu1 }
 0x3a2   : > { %v1835_v18 = vmul.f32 0.088388346, %v1789_v17 }
 0x3a3   : > { %v5392_v19 = vpop.f32.mrf.mxu1 }
 0x3a4   : > { %v1839_v20 = vsel %vm1754_vm6, %v1835_v18, -1e+09 }
 0x3a5   : > { %v1792_v21 = vpop.f32.mrf.mxu1  ;;  %v1842_v22 = vsel %vm1841_vm7, %v1839_v20, -inf }
 0x3a6   : > { %1843 = vmax.xlane.f32.xlu0 %v1842_v22 }
 0x3a7   : > { %v5393_v23 = vpop.f32.mrf.mxu1 }
 0x3a9   : > { %v1829_v24 = vpop.f32.mrf.mxu1 }
 0x3aa   : > { %v1836_v26 = vmul.f32 0.088388346, %v1829_v24 }
 0x3ab   : > { %v5398_v25 = vpop.f32.mrf.mxu1 }
 0x3ac   : > { %v1840_v29 = vsel %vm1754_vm6, %v1836_v26, -1e+09 }
 0x3ad   : > { %v1832_v30 = vpop.f32.mrf.mxu1  ;;  %v1845_v31 = vsel %vm1841_vm7, %v1840_v29, -inf }
 0x3ae   : > { %1846 = vmax.xlane.f32.xlu1 %v1845_v31 }
 0x3af   : > { %v5399_v32 = vpop.f32.mrf.mxu1 }
 0x42f   : > { %v1844_v35 = vpop.xlane.xlu0 %1843 }
 0x430   : > { %v1848_v37 = vsub.f32 %v1839_v20, %v1844_v35 }
 0x432   : > { %v1850_v38 = vmul.f32 1.442695, %v1848_v37 }
 0x434   : > { %6198 = vpow2.f32 %v1850_v38 }
 0x437   : > { %v1847_v39 = vpop.xlane.xlu1 %1846 }
 0x438   : > { %v1849_v45 = vsub.f32 %v1840_v29, %v1847_v39 }
 0x43a   : > { %v1852_v46 = vmul.f32 1.442695, %v1849_v45 }
 0x43c   : > { %6200 = vpow2.f32 %v1852_v46 }
 0x441   : > { %v6199_v47 = vpop.eup %6198 }
 0x442   : > { %v1854_v48 = vsel %vm1841_vm7, %v6199_v47, 0.0 }
 0x443   : > { %1855 = vadd.xlane.f32.xlu0 %v1854_v48 }
 0x449   : > { %v6201_v49 = vpop.eup %6200 }
 0x44a   : > { %v1857_v50 = vsel %vm1841_vm7, %v6201_v49, 0.0 }
 0x44b   : > { %1858 = vadd.xlane.f32.xlu1 %v1857_v50 }
 0x4cc   : > { %v1856_v52 = vpop.xlane.xlu0 %1855 }
 0x4cd   : > { %6202 = vrcp.f32 %v1856_v52 }
 0x4d4   : > { %v1859_v53 = vpop.xlane.xlu1 %1858 }
 0x4d5   : > { %6204 = vrcp.f32 %v1859_v53 }
 0x4da   : > { %v6203_v55 = vpop.eup %6202 }
 0x4db   : > { %v1862_v58 = vmul.f32 %v6203_v55, %v6199_v47  ;;  %v5758_v55 = vld [vmem:[#allocation10 + $0x370] ss:$8 sps:$4 sm:$0xff]  }
 0x4dc   : > { %2340 = vmatpush1.bf16.msra.mxu0 %v5758_v55 }
 0x4dd   : > { %v1864_v59 = vpack.c.bf16 %v1862_v58, %v1862_v58  ;;  %v5763_v58 = vld [vmem:[#allocation10 + $0x364] ss:$8 sps:$4 sm:$0xff]  }
 0x4de   : > { %2341 = vmatprep.subr.bf16.mxu0 %v5763_v58 }
 0x4df   : > { %5403 = vmatmul.mubr.msk.bf16.vlgmr.msra.gmra.mxu1 %vm1841_vm7, %v1864_v59  ;;  %v5761_v59 = vld [vmem:[#allocation10 + $0x360] ss:$8 sps:$4 sm:$0xff]  }
 0x4e0   : > { %5407 = vmatpush3.bf16.msra.mxu1 %v1917_v12  ;;  %5408 = vmatprep.mubr.msk.bf16.mxu1 %vm6592_vm4, %v6591_v40 }
 0x4e1   : > { %5412 = vmatprep.subr.bf16.mxu1 %v6591_v40  ;;  %2342 = vmatpush1.bf16.msra.mxu0 %v5761_v59 }
 0x4e2   : > { %v6205_v62 = vpop.eup %6204  ;;  %2343 = vmatprep.subr.bf16.mxu0 %v5766_v60 }
 0x4e3   : > { %v1863_v1 = vmul.f32 %v6205_v62, %v6201_v49  ;;  %v5769_v62 = vld [vmem:[#allocation10 + $0x344] ss:$8 sps:$4 sm:$0xff]  }
 0x4e5   : > { %v1865_v27 = vpack.c.bf16 %v1863_v1, %v1863_v1  ;;  %2344 = vmatpush1.bf16.msra.mxu0 %v5764_v61  ;;  %v5772_v1 = vld [vmem:[#allocation10 + $0x334] ss:$8 sps:$4 sm:$0xff]  }
 0x4e6   : > { %2345 = vmatprep.subr.bf16.mxu0 %v5769_v62  ;;  %v6246_v61 = vld [vmem:[%s6897_s3] sm:$0xff] }
 0x4e7   : > { %5409 = vmatmul.mubr.msk.bf16.vlgmr.msra.gmra.mxu1 %vm1841_vm7, %v1865_v27  ;;  %v5775_v27 = vld [vmem:[#allocation10 + $0x324] ss:$8 sps:$4 sm:$0xff]  }
 0x4e8   : > { %5413 = vmatpush3.bf16.xpose.msra.mxu1 %v1743_v5  ;;  %5414 = vmatprep.mubr.msk.bf16.mxu1 %vm6592_vm4, %v6591_v40  ;;  %v5773_v5 = vld [vmem:[#allocation10 + $0x320] ss:$8 sps:$4 sm:$0xff]  }
 0x4e9   : > { %5418 = vmatprep.subr.bf16.mxu1 %v6591_v40  ;;  %2346 = vmatpush1.bf16.msra.mxu0 %v5767_v0  ;;  %v6247_v0 = vld [vmem:[%s6897_s3 + $0x8] sm:$0xff] }
 0x4ea   : > { %2347 = vmatprep.subr.bf16.mxu0 %v5772_v1 }
 0x4ed   : > { %2348 = vmatpush1.bf16.msra.mxu0 %v5770_v4 }
 0x4ee   : > { %2349 = vmatprep.subr.bf16.mxu0 %v5775_v27 }
 0x4ef   : > { %5415 = vmatmul.mubr.bf16.vlgmr.msra.gmra.mxu1 %v1739_v6  ;;  %v5781_v6 = vld [vmem:[#allocation10 + $0x304] ss:$8 sps:$4 sm:$0xff]  }
 0x4f0   : > { %5419 = vmatpush3.bf16.xpose.msra.mxu1 %v1745_v8  ;;  %5420 = vmatprep.mubr.msk.bf16.mxu1 %vm6592_vm4, %v6591_v40  ;;  %v5779_v8 = vld [vmem:[#allocation10 + $0x300] ss:$8 sps:$4 sm:$0xff]  }
 0x4f1   : > { %5424 = vmatprep.subr.bf16.mxu1 %v6591_v40  ;;  %2350 = vmatpush1.bf16.msra.mxu0 %v5773_v5 }
 0x4f2   : > { %2351 = vmatprep.subr.bf16.mxu0 %v5778_v33  ;;  %v6248_v33 = vld [vmem:[%s6897_s3 + $0x10] sm:$0xff] }
 0x4f5   : > { %2352 = vmatpush1.bf16.msra.mxu0 %v5776_v34 }
 0x4f6   : > { %2353 = vmatprep.subr.bf16.mxu0 %v5781_v6  ;;  %v6249_v6 = vld [vmem:[%s6897_s3 + $0x18] sm:$0xff]  ;;  %s6492_s3 = scalar_lea.vmem %s7372_s0, 512 }
 0x4f7   : > { %5421 = vmatmul.mubr.bf16.vlgmr.msra.gmra.mxu1 %v1741_v11  ;;  %v5785_v11 = vld [vmem:[#allocation10 + $0x3e0] ss:$8 sps:$4 sm:$0xff]   ;;  %p6493_p9 = scmp.ne.s32.totalorder %s7372_s0, %s6492_s3  ;;  %p6500_p7 = scmp.lt.s32.totalorder %s6498_s28, %s6492_s3 }
 0x4f8   : > { %5425 = vmatpush3.bf16.msra.mxu1 %v2071_v56  ;;  %5426 = vmatprep.mubr.msk.bf16.mxu1 %vm6592_vm4, %v6591_v40  ;;  %v5790_v56 = vld [vmem:[#allocation10 + $0x3d4] ss:$8 sps:$4 sm:$0xff]  }
 0x4f9   : > { %5430 = vmatprep.subr.bf16.mxu1 %v6591_v40  ;;  %2354 = vmatpush1.bf16.msra.mxu0 %v5779_v8  ;;  %p6494_p6 = pnand %p6493_p9, %p7487_p11  ;;  %p6501_p5 = por %p6500_p7, %p6499_p12 }
 0x4fa   : > { %2355 = vmatprep.subr.bf16.mxu0 %v5784_v51 }
 0x4fb   : > { %p6495_p2 = pneg %p6494_p6 }
 0x4fd   : > { %2356 = vmatpush2.bf16.msra.mxu0 %v5782_v9  ;;  %v5806_v9 = vld [vmem:[#allocation11 + $0x170] ss:$8 sps:$4 sm:$0xff]   ;;  %p6502_p10 = pnand %p6501_p5, %p6495_p2 }
 0x4fe   : > { %2357 = vmatprep.subr.bf16.mxu0 %v5787_v10  ;;  %v5808_v10 = vld [vmem:[#allocation11 + $0x174] ss:$8 sps:$4 sm:$0xff]  }
 0x501   : > { %2358 = vmatpush2.bf16.msra.mxu0 %v5785_v11  ;;  %v5811_v11 = vld [vmem:[#allocation11 + $0x164] ss:$8 sps:$4 sm:$0xff]  }
 0x502   : > { %2359 = vmatprep.subr.bf16.mxu0 %v5790_v56  ;;  %v5809_v56 = vld [vmem:[#allocation11 + $0x160] ss:$8 sps:$4 sm:$0xff]  }
 0x59f   : > { %v7069_v28 = vpop.f32.mrf.mxu1 }
 0x5a1   : > { %v5404_v7 = vpop.f32.mrf.mxu1 }
 0x5a2   : > { %v5788_v7 = vld [vmem:[#allocation10 + $0x3d0] ss:$8 sps:$4 sm:$0xff]  }
 0x5a3   : > { %v1910_v12 = vpop.f32.mrf.mxu1  ;;  %2360 = vmatpush2.bf16.msra.mxu0 %v5788_v7  ;;  %v5814_v7 = vld [vmem:[#allocation11 + $0x154] ss:$8 sps:$4 sm:$0xff]  }
 0x5a4   : > { %v5793_v12 = vld [vmem:[#allocation10 + $0x3c4] ss:$8 sps:$4 sm:$0xff]  }
 0x5a5   : > { %v5405_v13 = vpop.f32.mrf.mxu1  ;;  %2361 = vmatprep.subr.bf16.mxu0 %v5793_v12  ;;  %v5827_v12 = vld [vmem:[#allocation11 + $0x70] ss:$8 sps:$4 sm:$0xff]  }
 0x5a6   : > { %v5791_v13 = vld [vmem:[#allocation10 + $0x3c0] ss:$8 sps:$4 sm:$0xff]  }
 0x5a7   : > { %v7071_v16 = vpop.f32.mrf.mxu1  ;;  %2362 = vmatpush2.bf16.msra.mxu0 %v5791_v13  ;;  %v5829_v13 = vld [vmem:[#allocation11 + $0x74] ss:$8 sps:$4 sm:$0xff]  }
 0x5a8   : > { %v2159_v3 = vpack.c.bf16 %v7071_v16, %v7069_v28 }
 0x5a9   : > { %v5410_v17 = vpop.f32.mrf.mxu1 }
 0x5aa   : > { %v5796_v17 = vld [vmem:[#allocation10 + $0x3b4] ss:$8 sps:$4 sm:$0xff]  }
 0x5ab   : > { %v1956_v18 = vpop.f32.mrf.mxu1  ;;  %2363 = vmatprep.subr.bf16.mxu0 %v5796_v17  ;;  %v5835_v17 = vld [vmem:[#allocation11 + $0x64] ss:$8 sps:$4 sm:$0xff]  }
 0x5ac   : > { %v5794_v18 = vld [vmem:[#allocation10 + $0x3b0] ss:$8 sps:$4 sm:$0xff]  }
 0x5ad   : > { %v5411_v19 = vpop.f32.mrf.mxu1  ;;  %2364 = vmatpush2.bf16.msra.mxu0 %v5794_v18  ;;  %v5812_v18 = vld [vmem:[#allocation11 + $0x150] ss:$8 sps:$4 sm:$0xff]  }
 0x5af   : > { %v1993_v20 = vpop.f32.mrf.mxu1 }
 0x5b0   : > { %v2039_v21 = vmul.f32 0.088388346, %v1993_v20 }
 0x5b1   : > { %v5416_v22 = vpop.f32.mrf.mxu1 }
 0x5b2   : > { %v2041_v23 = vsel %vm1754_vm6, %v2039_v21, -1e+09 }
 0x5b3   : > { %v1996_v24 = vpop.f32.mrf.mxu1  ;;  %v2043_v26 = vsel %vm1841_vm7, %v2041_v23, -inf }
 0x5b4   : > { %2044 = vmax.xlane.f32.xlu0 %v2043_v26 }
 0x5b5   : > { %v5417_v25 = vpop.f32.mrf.mxu1 }
 0x5b7   : > { %v2033_v29 = vpop.f32.mrf.mxu1 }
 0x5b8   : > { %v2040_v30 = vmul.f32 0.088388346, %v2033_v29  ;;  %v5799_v29 = vld [vmem:[#allocation10 + $0x3a4] ss:$8 sps:$4 sm:$0xff]  }
 0x5b9   : > { %v5422_v31 = vpop.f32.mrf.mxu1  ;;  %2365 = vmatprep.subr.bf16.mxu0 %v5799_v29  ;;  %v5823_v29 = vld [vmem:[#allocation11 + $0x124] ss:$8 sps:$4 sm:$0xff]  }
 0x5ba   : > { %v2042_v32 = vsel %vm1754_vm6, %v2040_v30, -1e+09  ;;  %v5797_v30 = vld [vmem:[#allocation10 + $0x3a0] ss:$8 sps:$4 sm:$0xff]   ;;  %v5802_v31 = vld [vmem:[#allocation10 + $0x394] ss:$8 sps:$4 sm:$0xff]  }
 0x5bb   : > { %v2036_v35 = vpop.f32.mrf.mxu1  ;;  %v2046_v37 = vsel %vm1841_vm7, %v2042_v32, -inf  ;;  %2366 = vmatpush2.bf16.msra.mxu0 %v5797_v30  ;;  %v5845_v30 = vld [vmem:[#allocation11 + $0x40] ss:$8 sps:$4 sm:$0xff]  }
 0x5bc   : > { %2047 = vmax.xlane.f32.xlu1 %v2046_v37  ;;  %2367 = vmatprep.subr.bf16.mxu0 %v5802_v31  ;;  %v5805_v35 = vld [vmem:[#allocation10 + $0x384] ss:$8 sps:$4 sm:$0xff]   ;;  %v5803_v37 = vld [vmem:[#allocation10 + $0x380] ss:$8 sps:$4 sm:$0xff]   ;;  %v5853_v31 = vld [vmem:[#allocation11 + $0x34] ss:$8 sps:$4 sm:$0xff]  }
 0x5bd   : > { %v5423_v38 = vpop.f32.mrf.mxu1 }
 0x63d   : > { %v2045_v39 = vpop.xlane.xlu0 %2044 }
 0x63e   : > { %v2049_v45 = vsub.f32 %v2041_v23, %v2045_v39 }
 0x640   : > { %v2051_v46 = vmul.f32 1.442695, %v2049_v45 }
 0x642   : > { %6206 = vpow2.f32 %v2051_v46 }
 0x645   : > { %v2048_v47 = vpop.xlane.xlu1 %2047 }
 0x646   : > { %v2050_v48 = vsub.f32 %v2042_v32, %v2048_v47  ;;  %v5800_v32 = vld [vmem:[#allocation10 + $0x390] ss:$8 sps:$4 sm:$0xff]  }
 0x647   : > { %2368 = vmatpush2.bf16.msra.mxu0 %v5800_v32  ;;  %v5821_v32 = vld [vmem:[#allocation11 + $0x120] ss:$8 sps:$4 sm:$0xff]  }
 0x648   : > { %v2053_v49 = vmul.f32 1.442695, %v2050_v48  ;;  %2369 = vmatprep.subr.bf16.mxu0 %v5805_v35  ;;  %v5826_v35 = vld [vmem:[#allocation11 + $0x114] ss:$8 sps:$4 sm:$0xff]  }
 0x64a   : > { %6208 = vpow2.f32 %v2053_v49 }
 0x64b   : > { %2370 = vmatpush2.bf16.msra.mxu0 %v5803_v37  ;;  %v5851_v37 = vld [vmem:[#allocation11 + $0x30] ss:$8 sps:$4 sm:$0xff]  }
 0x64c   : > { %2878 = vmatprep.subr.bf16.mxu0 %v5808_v10  ;;  %v5854_v10 = vld [vmem:[#allocation11 + $0x1c0] ss:$8 sps:$4 sm:$0xff]  }
 0x64f   : > { %v7083_v50 = vpop.eup %6206 }
 0x650   : > { %v2055_v52 = vsel %vm1841_vm7, %v7083_v50, 0.0 }
 0x651   : > { %2056 = vadd.xlane.f32.xlu0 %v2055_v52  ;;  %v7102_v52 = vsub.s32 3, %v6948_v36 }
 0x657   : > { %v7087_v15 = vpop.eup %6208 }
 0x658   : > { %v2058_v53 = vsel %vm1841_vm7, %v7087_v15, 0.0 }
 0x659   : > { %2059 = vadd.xlane.f32.xlu1 %v2058_v53  ;;  %v2164_v53 = vrot.slane %v6982_v44, %v7102_v52 }
 0x65b   : > { %v2174_v57 = vrot.slane %v2164_v53, %v7102_v52 }
 0x6da   : > { %v2057_v19 = vpop.xlane.xlu0 %2056 }
 0x6db   : > { %6210 = vrcp.f32 %v2057_v19  ;;  %v5817_v19 = vld [vmem:[#allocation11 + $0x144] ss:$8 sps:$4 sm:$0xff]  }
 0x6e2   : > { %v2060_v20 = vpop.xlane.xlu1 %2059 }
 0x6e3   : > { %6212 = vrcp.f32 %v2060_v20  ;;  %v5833_v20 = vld [vmem:[#allocation11 + $0x60] ss:$8 sps:$4 sm:$0xff]  }
 0x6e8   : > { %v6211_v21 = vpop.eup %6210 }
 0x6e9   : > { %v2063_v22 = vmul.f32 %v6211_v21, %v7083_v50  ;;  %v5841_v21 = vld [vmem:[#allocation11 + $0x54] ss:$8 sps:$4 sm:$0xff]  }
 0x6eb   : > { %v2065_v23 = vpack.c.bf16 %v2063_v22, %v2063_v22  ;;  %v5815_v22 = vld [vmem:[#allocation11 + $0x140] ss:$8 sps:$4 sm:$0xff]  }
 0x6ed   : > { %5427 = vmatmul.mubr.msk.bf16.vlgmr.msra.gmra.mxu1 %vm1841_vm7, %v2065_v23  ;;  %v5820_v23 = vld [vmem:[#allocation11 + $0x134] ss:$8 sps:$4 sm:$0xff]  }
 0x6ee   : > { %5431 = vmatpush3.bf16.msra.mxu1 %v7023_v14  ;;  %5432 = vmatprep.mubr.msk.bf16.mxu1 %vm6592_vm4, %v6591_v40 }
 0x6ef   : > { %2657 = vmatprep.subr.bf16.mxu1 %v5829_v13  ;;  %v5877_v13 = vld [vmem:[#allocation11 + $0xf4] ss:$8 sps:$4 sm:$0xff]  }
 0x6f0   : > { %v6213_v24 = vpop.eup %6212 }
 0x6f1   : > { %v2064_v26 = vmul.f32 %v6213_v24, %v7087_v15  ;;  %v2167_v15 = vsub.s32 7, %v6948_v36  ;;  %v5839_v24 = vld [vmem:[#allocation11 + $0x50] ss:$8 sps:$4 sm:$0xff]  }
 0x6f3   : > { %v2066_v25 = vpack.c.bf16 %v2064_v26, %v2064_v26  ;;  %v2168_v55 = vrot.slane %v6982_v44, %v2167_v15  ;;  %v5847_v26 = vld [vmem:[#allocation11 + $0x44] ss:$8 sps:$4 sm:$0xff]  }
 0x6f5   : > { %5433 = vmatmul.mubr.msk.bf16.vlgmr.msra.gmra.mxu1 %vm1841_vm7, %v2066_v25  ;;  %v2178_v28 = vrot.slane %v2168_v55, %v7102_v52  ;;  %v5818_v25 = vld [vmem:[#allocation11 + $0x130] ss:$8 sps:$4 sm:$0xff]  }
 0x6f6   : > { %2658 = vmatpush1.bf16.msra.mxu1 %v5827_v12  ;;  %v5860_v12 = vld [vmem:[#allocation11 + $0x1b0] ss:$8 sps:$4 sm:$0xff]  }
 0x6f7   : > { %2659 = vmatprep.subr.bf16.mxu1 %v5835_v17  ;;  %v5875_v17 = vld [vmem:[#allocation11 + $0xf0] ss:$8 sps:$4 sm:$0xff]  }
 0x6fa   : > { %2660 = vmatpush1.bf16.msra.mxu1 %v5833_v20  ;;  %v5883_v20 = vld [vmem:[#allocation11 + $0xe4] ss:$8 sps:$4 sm:$0xff]  }
 0x6fb   : > { %2661 = vmatprep.subr.bf16.mxu1 %v5841_v21  ;;  %v5881_v21 = vld [vmem:[#allocation11 + $0xe0] ss:$8 sps:$4 sm:$0xff]  }
 0x6fe   : > { %2662 = vmatpush1.bf16.msra.mxu1 %v5839_v24  ;;  %v5886_v24 = vld [vmem:[#allocation11 + $0xd4] ss:$8 sps:$4 sm:$0xff]  }
 0x6ff   : > { %2663 = vmatprep.subr.bf16.mxu1 %v5847_v26  ;;  %v5884_v26 = vld [vmem:[#allocation11 + $0xd0] ss:$8 sps:$4 sm:$0xff]  }
 0x702   : > { %2664 = vmatpush1.bf16.msra.mxu1 %v5845_v30  ;;  %v578_v30 = vld [vmem:[%s6905_s7 + $0x8] sm:$0xff] }
 0x703   : > { %2665 = vmatprep.subr.bf16.mxu1 %v5853_v31  ;;  %v580_v31 = vld [vmem:[%s6905_s7 + $0x18] sm:$0xff] }
 0x706   : > { %2666 = vmatpush1.bf16.msra.mxu1 %v5851_v37  ;;  %v579_v37 = vld [vmem:[%s6905_s7 + $0x10] sm:$0xff] }
 0x7ad   : > { %v2107_v14 = vpop.f32.mrf.mxu1 }
 0x7af   : > { %v5428_v38 = vpop.f32.mrf.mxu1 }
 0x7b0   : > { %v5832_v38 = vld [vmem:[#allocation11 + $0x104] ss:$8 sps:$4 sm:$0xff]  }
 0x7b1   : > { %v2110_v39 = vpop.f32.mrf.mxu1 }
 0x7b2   : > { %v5830_v39 = vld [vmem:[#allocation11 + $0x100] ss:$8 sps:$4 sm:$0xff]  }
 0x7b3   : > { %v5429_v45 = vpop.f32.mrf.mxu1 }
 0x7b4   : > { %v5838_v45 = vld [vmem:[#allocation11 + $0x1f4] ss:$8 sps:$4 sm:$0xff]  }
 0x7b5   : > { %v2153_v46 = vpop.f32.mrf.mxu1 }
 0x7b6   : > { %v2160_v47 = vpack.c.bf16 %v2153_v46, %v2107_v14  ;;  %v5824_v14 = vld [vmem:[#allocation11 + $0x110] ss:$8 sps:$4 sm:$0xff]  }
 0x7b7   : > { %v5434_v48 = vpop.f32.mrf.mxu1  ;;  %v5836_v46 = vld [vmem:[#allocation11 + $0x1f0] ss:$8 sps:$4 sm:$0xff]  }
 0x7b8   : > { %2371 = vmatprep.mubr.bf16.mxu0 %v2160_v47  ;;  %v5844_v47 = vld [vmem:[#allocation11 + $0x1e4] ss:$8 sps:$4 sm:$0xff]   ;;  %v5842_v48 = vld [vmem:[#allocation11 + $0x1e0] ss:$8 sps:$4 sm:$0xff]  }
 0x7b9   : > { %v2156_v49 = vpop.f32.mrf.mxu1  ;;  %2372 = vmatmul.mubr.bf16.vlgmr.msra.gmra.mxu0 %v2159_v3 }
 0x7ba   : > { %2879 = vmatpush1.bf16.msra.mxu0 %v5806_v9  ;;  %v5850_v49 = vld [vmem:[#allocation11 + $0x1d4] ss:$8 sps:$4 sm:$0xff]   ;;  %v5856_v9 = vld [vmem:[#allocation11 + $0x1c4] ss:$8 sps:$4 sm:$0xff]  }
 0x7bb   : > { %v5435_v50 = vpop.f32.mrf.mxu1  ;;  %2880 = vmatprep.subr.bf16.mxu0 %v5811_v11  ;;  %v5871_v11 = vld [vmem:[#allocation11 + $0x4] ss:$8 sps:$4 sm:$0xff]  }
 0x7bc   : > { %v5848_v50 = vld [vmem:[#allocation11 + $0x1d0] ss:$8 sps:$4 sm:$0xff]  }
 0x7be   : > { %2881 = vmatpush1.bf16.msra.mxu0 %v5809_v56  ;;  %v5869_v56 = vld [vmem:[#allocation11] ss:$8 sps:$4 sm:$0xff]  }
 0x7bf   : > { %2882 = vmatprep.subr.bf16.mxu0 %v5814_v7  ;;  %v5862_v7 = vld [vmem:[#allocation11 + $0x1b4] ss:$8 sps:$4 sm:$0xff]  }
 0x7c2   : > { %2883 = vmatpush1.bf16.msra.mxu0 %v5812_v18  ;;  %v5868_v18 = vld [vmem:[#allocation11 + $0x1a4] ss:$8 sps:$4 sm:$0xff]  }
 0x7c3   : > { %2884 = vmatprep.subr.bf16.mxu0 %v5817_v19  ;;  %v5866_v19 = vld [vmem:[#allocation11 + $0x1a0] ss:$8 sps:$4 sm:$0xff]  }
 0x7c6   : > { %2885 = vmatpush1.bf16.msra.mxu0 %v5815_v22  ;;  %v5874_v22 = vld [vmem:[#allocation11 + $0x194] ss:$8 sps:$4 sm:$0xff]  }
 0x7c7   : > { %2886 = vmatprep.subr.bf16.mxu0 %v5820_v23  ;;  %v5872_v23 = vld [vmem:[#allocation11 + $0x190] ss:$8 sps:$4 sm:$0xff]  }
 0x7ca   : > { %2887 = vmatpush1.bf16.msra.mxu0 %v5818_v25  ;;  %v5880_v25 = vld [vmem:[#allocation11 + $0x184] ss:$8 sps:$4 sm:$0xff]  }
 0x7cb   : > { %2888 = vmatprep.subr.bf16.mxu0 %v5823_v29  ;;  %v5878_v29 = vld [vmem:[#allocation11 + $0x180] ss:$8 sps:$4 sm:$0xff]  }
 0x7ce   : > { %2889 = vmatpush1.bf16.msra.mxu0 %v5821_v32  ;;  %v7150_v32 = vpack.c.bf16 %v580_v31, %v578_v30 }
 0x7cf   : > { %2890 = vmatprep.subr.bf16.mxu0 %v5826_v35  ;;  %v577_v35 = vld [vmem:[%s6905_s7] sm:$0xff] }
 0x7d0   : > { %2910 = vmatprep.mubr.bf16.mxu0 %v7150_v32 }
 0x7d2   : > { %2891 = vmatpush1.bf16.msra.mxu0 %v5824_v14  ;;  %v5887_v14 = vld [vmem:[#allocation11 + $0xc0] ss:$8 sps:$4 sm:$0xff]  }
 0x7d3   : > { %2892 = vmatprep.subr.bf16.mxu0 %v5832_v38  ;;  %v7154_v38 = vpack.c.bf16 %v579_v37, %v577_v35 }
 0x7d6   : > { %2893 = vmatpush1.bf16.msra.mxu0 %v5830_v39  ;;  %v5889_v39 = vld [vmem:[#allocation11 + $0xc4] ss:$8 sps:$4 sm:$0xff]  }
 0x7d7   : > { %2894 = vmatprep.subr.bf16.mxu0 %v5838_v45  ;;  %v5892_v45 = vld [vmem:[#allocation11 + $0xb4] ss:$8 sps:$4 sm:$0xff]  }
 0x7da   : > { %2895 = vmatpush2.bf16.msra.mxu0 %v5836_v46  ;;  %v582_v46 = vld [vmem:[%s6905_s7 + $0x28] sm:$0xff] }
 0x7db   : > { %2896 = vmatprep.subr.bf16.mxu0 %v5844_v47  ;;  %v584_v47 = vld [vmem:[%s6905_s7 + $0x38] sm:$0xff] }
 0x7de   : > { %2897 = vmatpush2.bf16.msra.mxu0 %v5842_v48  ;;  %v5890_v48 = vld [vmem:[#allocation11 + $0xb0] ss:$8 sps:$4 sm:$0xff]  }
 0x7df   : > { %2898 = vmatprep.subr.bf16.mxu0 %v5850_v49  ;;  %v7160_v49 = vpack.c.bf16 %v584_v47, %v582_v46 }
 0x7e2   : > { %2899 = vmatpush2.bf16.msra.mxu0 %v5848_v50  ;;  %v5895_v50 = vld [vmem:[#allocation11 + $0xa4] ss:$8 sps:$4 sm:$0xff]  }
 0x7e3   : > { %2900 = vmatprep.subr.bf16.mxu0 %v5856_v9 }
 0x7e6   : > { %2901 = vmatpush2.bf16.msra.mxu0 %v5854_v10 }
 0x7e7   : > { %2902 = vmatprep.subr.bf16.mxu0 %v5862_v7 }
 0x7ea   : > { %2903 = vmatpush2.bf16.msra.mxu0 %v5860_v12 }
 0x7eb   : > { %2904 = vmatprep.subr.bf16.mxu0 %v5868_v18 }
 0x7ee   : > { %2905 = vmatpush2.bf16.msra.mxu0 %v5866_v19 }
 0x7ef   : > { %2906 = vmatprep.subr.bf16.mxu0 %v5874_v22 }
 0x7f2   : > { %2907 = vmatpush2.bf16.msra.mxu0 %v5872_v23 }
 0x7f3   : > { %2908 = vmatprep.subr.bf16.mxu0 %v5880_v25  ;;  %v6251_v25 = vld [vmem:[#allocation8] sm:$0x77] }
 0x7f4   : > { %v2457_v30 = vrot.slane %v6251_v25, %v6977_v41 }
 0x7f6   : > { %2909 = vmatpush2.bf16.msra.mxu0 %v5878_v29  ;;  %v2461_v29 = vrot.slane %v6251_v25, %v7041_v54 }
 0x7f8   : > { %v2471_v46 = vrot.slane %v2461_v29, %v6977_v41  ;;  %v5943_v29 = vld [vmem:[#allocation11 + $0x2a4] ss:$8 sps:$4 sm:$0xff]  }
 0x7f9   : > { %2911 = vmatmul.mubr.bf16.vlgmr.msra.gmra.mxu0 %v7154_v38 }
 0x7fa   : > { %2920 = vmatprep.mubr.bf16.mxu0 %v7160_v49 }
 0x879   : > { %v2373_v16 = vpop.f32.mrf.mxu0 }
 0x87a   : > { %v2374_v3 = vadd.f32 %v2373_v16, %v2174_v57 }
 0x87b   : > { %v2375_v58 = vpop.f32.mrf.mxu0 }
 0x87c   : > { %v2376_v59 = vadd.f32 %v2375_v58, %v2178_v28  ;;  %v7113_v62 = vadd.f32 %v6246_v61, %v2374_v3 }
 0x87d   : > { %v2377_v60 = vpop.f32.mrf.mxu0 }
 0x87e   : > { %v7116_v1 = vadd.f32 %v6247_v0, %v2376_v59  ;;  %v2378_v4 = vadd.f32 %v2377_v60, %v2174_v57 }
 0x87f   : > { %v2379_v27 = vpop.f32.mrf.mxu0 }
 0x880   : > { %v2380_v44 = vadd.f32 %v2379_v27, %v2178_v28  ;;  %v2386_v5 = vadd.f32 %v7116_v1, %v7113_v62  ;;  %v7121_v34 = vadd.f32 %v6248_v33, %v2378_v4  ;;  %v5857_v33 = vld [vmem:[#allocation11 + $0x20] ss:$8 sps:$4 sm:$0xff]  }
 0x882   : > { %v7124_v8 = vadd.f32 %v6249_v6, %v2380_v44  ;;  %2387 = vadd.xlane.f32.xlu0 %v2386_v5  ;;  %v5859_v5 = vld [vmem:[#allocation11 + $0x24] ss:$8 sps:$4 sm:$0xff]   ;;  %v5865_v6 = vld [vmem:[#allocation11 + $0x14] ss:$8 sps:$4 sm:$0xff]  }
 0x883   : > { %2667 = vmatprep.subr.bf16.mxu1 %v5859_v5 }
 0x884   : > { %v2389_v51 = vadd.f32 %v7124_v8, %v7121_v34  ;;  %2668 = vmatpush1.bf16.msra.mxu1 %v5857_v33 }
 0x885   : > { %2669 = vmatprep.subr.bf16.mxu1 %v5865_v6 }
 0x886   : > { %2390 = vadd.xlane.f32.xlu1 %v2389_v51  ;;  %v5863_v51 = vld [vmem:[#allocation11 + $0x10] ss:$8 sps:$4 sm:$0xff]  }
 0x888   : > { %2670 = vmatpush1.bf16.msra.mxu1 %v5863_v51 }
 0x889   : > { %2671 = vmatprep.subr.bf16.mxu1 %v5871_v11 }
 0x88c   : > { %2672 = vmatpush1.bf16.msra.mxu1 %v5869_v56 }
 0x88d   : > { %2673 = vmatprep.subr.bf16.mxu1 %v5877_v13 }
 0x890   : > { %2674 = vmatpush2.bf16.msra.mxu1 %v5875_v17 }
 0x891   : > { %2675 = vmatprep.subr.bf16.mxu1 %v5883_v20 }
 0x894   : > { %2676 = vmatpush2.bf16.msra.mxu1 %v5881_v21  ;;  %v6250_v21 = vld [vmem:[#allocation7] sm:$0x77] }
 0x895   : > { %2677 = vmatprep.subr.bf16.mxu1 %v5886_v24  ;;  %v2431_v22 = vrot.slane %v6250_v21, %v6977_v41  ;;  %v2435_v23 = vrot.slane %v6250_v21, %v7041_v54  ;;  %v5937_v21 = vld [vmem:[#allocation11 + $0x2c4] ss:$8 sps:$4 sm:$0xff]  }
 0x897   : > { %v2441_v24 = vrot.slane %v2431_v22, %v6977_v41  ;;  %v5935_v22 = vld [vmem:[#allocation11 + $0x2c0] ss:$8 sps:$4 sm:$0xff]  }
 0x898   : > { %2678 = vmatpush2.bf16.msra.mxu1 %v5884_v26  ;;  %v2445_v26 = vrot.slane %v2435_v23, %v6977_v41  ;;  %v5940_v23 = vld [vmem:[#allocation11 + $0x2b4] ss:$8 sps:$4 sm:$0xff]  }
 0x899   : > { %2679 = vmatprep.subr.bf16.mxu1 %v5889_v39 }
 0x89c   : > { %2680 = vmatpush2.bf16.msra.mxu1 %v5887_v14 }
 0x89d   : > { %2681 = vmatprep.subr.bf16.mxu1 %v5892_v45 }
 0x8a0   : > { %2682 = vmatpush2.bf16.msra.mxu1 %v5890_v48  ;;  %v2467_v48 = vrot.slane %v2457_v30, %v6977_v41 }
 0x8a1   : > { %2683 = vmatprep.subr.bf16.mxu1 %v5895_v50 }
 0x8b9   : > { %v2912_v30 = vpop.f32.mrf.mxu0 }
 0x90b   : > { %v2388_v53 = vpop.xlane.xlu0 %2387 }
 0x90c   : > { %v2392_v55 = vmul.f32 0.00390625, %v2388_v53  ;;  %v581_v53 = vld [vmem:[%s6905_s7 + $0x20] sm:$0xff] }
 0x90e   : > { %v7129_v57 = vsub.f32 %v7113_v62, %v2392_v55  ;;  %v7132_v28 = vsub.f32 %v7116_v1, %v2392_v55  ;;  %v583_v55 = vld [vmem:[%s6905_s7 + $0x30] sm:$0xff] }
 0x90f   : > { %v2391_v16 = vpop.xlane.xlu1 %2390 }
 0x910   : > { %v2393_v3 = vmul.f32 0.00390625, %v2391_v16  ;;  %v2398_v58 = vmul.f32 %v7129_v57, %v7129_v57  ;;  %v2399_v59 = vmul.f32 %v7132_v28, %v7132_v28  ;;  %v5893_v16 = vld [vmem:[#allocation11 + $0xa0] ss:$8 sps:$4 sm:$0xff]   ;;  %v2446_v35 = vmul.f32 %v2441_v24, %v7129_v57 }
 0x911   : > { %2684 = vmatpush2.bf16.msra.mxu1 %v5893_v16  ;;  %v2447_v37 = vmul.f32 %v2445_v26, %v7132_v28  ;;  %v5902_v28 = vld [vmem:[#allocation11 + $0x270] ss:$8 sps:$4 sm:$0xff]  }
 0x912   : > { %v7139_v60 = vsub.f32 %v7121_v34, %v2393_v3  ;;  %v7142_v61 = vsub.f32 %v7124_v8, %v2393_v3  ;;  %v2402_v0 = vadd.f32 %v2399_v59, %v2398_v58  ;;  %v7165_v3 = vpack.c.bf16 %v583_v55, %v581_v53  ;;  %v5898_v58 = vld [vmem:[#allocation11 + $0x94] ss:$8 sps:$4 sm:$0xff]   ;;  %v5896_v59 = vld [vmem:[#allocation11 + $0x90] ss:$8 sps:$4 sm:$0xff]  }
 0x913   : > { %2685 = vmatprep.subr.bf16.mxu1 %v5898_v58 }
 0x914   : > { %v2400_v4 = vmul.f32 %v7139_v60, %v7139_v60  ;;  %v2401_v27 = vmul.f32 %v7142_v61, %v7142_v61  ;;  %2403 = vadd.xlane.f32.xlu0 %v2402_v0  ;;  %2921 = vmatmul.mubr.bf16.gmra.mxu0 %v7165_v3  ;;  %v5901_v0 = vld [vmem:[#allocation11 + $0x84] ss:$8 sps:$4 sm:$0xff]   ;;  %v2448_v14 = vmul.f32 %v2441_v24, %v7139_v60  ;;  %v5905_v60 = vld [vmem:[#allocation11 + $0x260] ss:$8 sps:$4 sm:$0xff]  }
 0x915   : > { %2686 = vmatpush2.bf16.msra.mxu1 %v5896_v59  ;;  %v2449_v39 = vmul.f32 %v2445_v26, %v7142_v61  ;;  %v5910_v61 = vld [vmem:[#allocation11 + $0x254] ss:$8 sps:$4 sm:$0xff]   ;;  %v7181_v24 = vld [vmem:[#allocation13] sm:$0xff]  ;;  %v5938_v26 = vld [vmem:[#allocation11 + $0x2b0] ss:$8 sps:$4 sm:$0xff]  }
 0x916   : > { %v2405_v44 = vadd.f32 %v2401_v27, %v2400_v4  ;;  %v5899_v4 = vld [vmem:[#allocation11 + $0x80] ss:$8 sps:$4 sm:$0xff]   ;;  %2687 = vmatprep.subr.bf16.mxu1 %v5901_v0  ;;  %v5904_v27 = vld [vmem:[#allocation11 + $0x274] ss:$8 sps:$4 sm:$0xff]   ;;  %v2707_v25 = vrot.slane %v7181_v24, %v7041_v54 }
 0x918   : > { %2406 = vadd.xlane.f32.xlu1 %v2405_v44 }
 0x919   : > { %2688 = vmatpush2.bf16.msra.mxu1 %v5899_v4 }
 0x91a   : > { %3109 = vmatprep.subr.bf16.mxu1 %v5904_v27  ;;  %v5907_v27 = vld [vmem:[#allocation11 + $0x264] ss:$8 sps:$4 sm:$0xff]  }
 0x99d   : > { %v2404_v44 = vpop.xlane.xlu0 %2403 }
 0x99e   : > { %v2408_v5 = vmul.f32 0.003921569, %v2404_v44  ;;  %v5908_v44 = vld [vmem:[#allocation11 + $0x250] ss:$8 sps:$4 sm:$0xff]  }
 0x9a0   : > { %6214 = vrsqrt.f32 %v2408_v5  ;;  %vm2412_vm8 = vcmp.eq.f32.partialorder %v2408_v5, inf  ;;  %v2415_v10 = vand.u32 2147483648, %v2408_v5  ;;  %vm2414_vm9 = vcmp.eq.f32.partialorder %v2408_v5, 0.0 }
 0x9a1   : > { %v2407_v33 = vpop.xlane.xlu1 %2406 }
 0x9a2   : > { %v2409_v6 = vmul.f32 0.003921569, %v2407_v33  ;;  %v5911_v33 = vld [vmem:[#allocation11 + $0x240] ss:$8 sps:$4 sm:$0xff]  }
 0x9a4   : > { %6216 = vrsqrt.f32 %v2409_v6  ;;  %vm2419_vm10 = vcmp.eq.f32.partialorder %v2409_v6, inf  ;;  %v2422_v17 = vand.u32 2147483648, %v2409_v6  ;;  %vm2421_vm11 = vcmp.eq.f32.partialorder %v2409_v6, 0.0 }
 0x9ad   : > { %v6215_v51 = vpop.eup %6214 }
 0x9ae   : > { %v2411_v9 = vmul.f32 %v6215_v51, %v2408_v5  ;;  %v5914_v51 = vld [vmem:[#allocation11 + $0x230] ss:$8 sps:$4 sm:$0xff]  }
 0x9b0   : > { %v2413_v56 = vsel %vm2412_vm8, %v2408_v5, %v2411_v9  ;;  %v5913_v5 = vld [vmem:[#allocation11 + $0x244] ss:$8 sps:$4 sm:$0xff]  }
 0x9b1   : > { %v6217_v11 = vpop.eup %6216  ;;  %v2416_v7 = vsel %vm2414_vm9, %v2415_v10, %v2413_v56  ;;  %v5919_v9 = vld [vmem:[#allocation11 + $0x224] ss:$8 sps:$4 sm:$0xff]   ;;  %v5917_v10 = vld [vmem:[#allocation11 + $0x220] ss:$8 sps:$4 sm:$0xff]  }
 0x9b2   : > { %v2418_v12 = vmul.f32 %v6217_v11, %v2409_v6  ;;  %v2424_v13 = vadd.f32 1e-06, %v2416_v7  ;;  %v5922_v11 = vld [vmem:[#allocation11 + $0x214] ss:$8 sps:$4 sm:$0xff]   ;;  %v5925_v56 = vld [vmem:[#allocation11 + $0x204] ss:$8 sps:$4 sm:$0xff]  }
 0x9b3   : > { %v5923_v7 = vld [vmem:[#allocation11 + $0x200] ss:$8 sps:$4 sm:$0xff]  }
 0x9b4   : > { %v2420_v18 = vsel %vm2419_vm10, %v2409_v6, %v2418_v12  ;;  %6218 = vrcp.f32 %v2424_v13  ;;  %v5916_v6 = vld [vmem:[#allocation11 + $0x234] ss:$8 sps:$4 sm:$0xff]   ;;  %v5926_v13 = vld [vmem:[#allocation11 + $0x2f0] ss:$8 sps:$4 sm:$0xff]  }
 0x9b5   : > { %v2423_v19 = vsel %vm2421_vm11, %v2422_v17, %v2420_v18  ;;  %v5928_v12 = vld [vmem:[#allocation11 + $0x2f4] ss:$8 sps:$4 sm:$0xff]   ;;  %v5931_v17 = vld [vmem:[#allocation11 + $0x2e4] ss:$8 sps:$4 sm:$0xff]   ;;  %v5929_v18 = vld [vmem:[#allocation11 + $0x2e0] ss:$8 sps:$4 sm:$0xff]  }
 0x9b6   : > { %v2425_v20 = vadd.f32 1e-06, %v2423_v19  ;;  %v5934_v19 = vld [vmem:[#allocation11 + $0x2d4] ss:$8 sps:$4 sm:$0xff]  }
 0x9b8   : > { %6220 = vrcp.f32 %v2425_v20  ;;  %v5932_v20 = vld [vmem:[#allocation11 + $0x2d0] ss:$8 sps:$4 sm:$0xff]  }
 0x9c1   : > { %v6219_v31 = vpop.eup %6218 }
 0x9c2   : > { %v2451_v45 = vmul.f32 %v6219_v31, %v2447_v37  ;;  %v2450_v47 = vmul.f32 %v6219_v31, %v2446_v35  ;;  %v5941_v31 = vld [vmem:[#allocation11 + $0x2a0] ss:$8 sps:$4 sm:$0xff]   ;;  %v2703_v35 = vrot.slane %v7181_v24, %v6977_v41  ;;  %v7188_v37 = vrot.slane %v2707_v25, %v6977_v41 }
 0x9c4   : > { %v2473_v16 = vadd.f32 %v2471_v46, %v2451_v45  ;;  %v2472_v59 = vadd.f32 %v2467_v48, %v2450_v47  ;;  %v5944_v47 = vld [vmem:[#allocation11 + $0x290] ss:$8 sps:$4 sm:$0xff]  }
 0x9c5   : > { %v6221_v50 = vpop.eup %6220 }
 0x9c6   : > { %v2453_v53 = vmul.f32 %v6221_v50, %v2449_v39  ;;  %v2452_v55 = vmul.f32 %v6221_v50, %v2448_v14  ;;  %v5946_v14 = vld [vmem:[#allocation11 + $0x294] ss:$8 sps:$4 sm:$0xff]   ;;  %v2914_v39 = vpop.f32.mrf.mxu0 }
 0x9c7   : > { %v7192_v54 = vadd.f32 %v2914_v39, %v7188_v37 }
 0x9c8   : > { %v2475_v58 = vadd.f32 %v2471_v46, %v2453_v53  ;;  %v2474_v0 = vadd.f32 %v2467_v48, %v2452_v55  ;;  %v2916_v45 = vpop.f32.mrf.mxu0  ;;  %v2713_v46 = vrot.slane %v2703_v35, %v6977_v41  ;;  %v5949_v48 = vld [vmem:[#allocation11 + $0x284] ss:$8 sps:$4 sm:$0xff]  }
 0x9ca   : > { %v2477_v57 = vpack.c.bf16 %v2475_v58, %v2473_v16  ;;  %v2476_v4 = vpack.c.bf16 %v2474_v0, %v2472_v59  ;;  %v2918_v50 = vpop.f32.mrf.mxu0  ;;  %v2913_v55 = vadd.f32 %v2912_v30, %v2713_v46  ;;  %v2917_v16 = vadd.f32 %v2916_v45, %v2713_v46  ;;  %v5947_v58 = vld [vmem:[#allocation11 + $0x280] ss:$8 sps:$4 sm:$0xff]  }
 0x9cb   : > { %v7195_v53 = vadd.f32 %v2918_v50, %v7188_v37 }
 0x9cc   : > { %2689 = vmatprep.mubr.bf16.mxu1 %v2477_v57  ;;  %v3166_v0 = vpack.c.bf16 %v2917_v16, %v2913_v55 }
 0x9cd   : > { %2690 = vmatmul.mubr.bf16.vlgmr.msra.gmra.mxu1 %v2476_v4  ;;  %v3167_v59 = vpack.c.bf16 %v7195_v53, %v7192_v54  ;;  %v2482_v4 = vrot.slane %v7181_v24, %v6951_v42 }
 0x9ce   : > { %3110 = vmatpush1.bf16.msra.mxu1 %v5902_v28  ;;  %3141 = vmatprep.mubr.bf16.mxu1 %v7150_v32  ;;  %v5920_v32 = vld [vmem:[#allocation11 + $0x210] ss:$8 sps:$4 sm:$0xff]  }
 0x9cf   : > { %3111 = vmatprep.subr.bf16.mxu1 %v5907_v27  ;;  %v2492_v27 = vrot.slane %v2482_v4, %v6951_v42 }
 0x9d2   : > { %3112 = vmatpush1.bf16.msra.mxu1 %v5905_v60 }
 0x9d3   : > { %3113 = vmatprep.subr.bf16.mxu1 %v5910_v61 }
 0x9d4   : > { %v2922_v57 = vpop.f32.mrf.mxu0 }
 0x9d6   : > { %3114 = vmatpush1.bf16.msra.mxu1 %v5908_v44  ;;  %v7208_v28 = vpop.f32.mrf.mxu0 }
 0x9d7   : > { %3115 = vmatprep.subr.bf16.mxu1 %v5913_v5 }
 0x9d8   : > { %v2926_v60 = vpop.f32.mrf.mxu0 }
 0x9d9   : > { %v2927_v61 = vadd.f32 %v2926_v60, %v2713_v46 }
 0x9da   : > { %3116 = vmatpush1.bf16.msra.mxu1 %v5911_v33 }
 0x9db   : > { %3117 = vmatprep.subr.bf16.mxu1 %v5916_v6 }
 0x9de   : > { %3118 = vmatpush1.bf16.msra.mxu1 %v5914_v51 }
 0x9df   : > { %3119 = vmatprep.subr.bf16.mxu1 %v5919_v9 }
 0x9e2   : > { %3120 = vmatpush1.bf16.msra.mxu1 %v5917_v10  ;;  %v2934_v10 = vrot.slane %v7181_v24, %v7001_v63 }
 0x9e3   : > { %3121 = vmatprep.subr.bf16.mxu1 %v5922_v11  ;;  %v2938_v11 = vrot.slane %v7181_v24, %v7007_v2 }
 0x9e6   : > { %3122 = vmatpush1.bf16.msra.mxu1 %v5920_v32 }
 0x9e7   : > { %3123 = vmatprep.subr.bf16.mxu1 %v5925_v56  ;;  %v2944_v56 = vrot.slane %v2934_v10, %v7001_v63 }
 0x9ea   : > { %3124 = vmatpush1.bf16.msra.mxu1 %v5923_v7 }
 0x9eb   : > { %3125 = vmatprep.subr.bf16.mxu1 %v5928_v12  ;;  %v2948_v12 = vrot.slane %v2938_v11, %v7001_v63 }
 0x9ee   : > { %3126 = vmatpush2.bf16.msra.mxu1 %v5926_v13 }
 0x9ef   : > { %3127 = vmatprep.subr.bf16.mxu1 %v5931_v17 }
 0x9f2   : > { %3128 = vmatpush2.bf16.msra.mxu1 %v5929_v18 }
 0x9f3   : > { %3129 = vmatprep.subr.bf16.mxu1 %v5934_v19 }
 0x9f6   : > { %3130 = vmatpush2.bf16.msra.mxu1 %v5932_v20 }
 0x9f7   : > { %3131 = vmatprep.subr.bf16.mxu1 %v5937_v21 }
 0x9fa   : > { %3132 = vmatpush2.bf16.msra.mxu1 %v5935_v22 }
 0x9fb   : > { %3133 = vmatprep.subr.bf16.mxu1 %v5940_v23 }
 0x9fe   : > { %3134 = vmatpush2.bf16.msra.mxu1 %v5938_v26 }
 0x9ff   : > { %3135 = vmatprep.subr.bf16.mxu1 %v5943_v29 }
 0xa02   : > { %3136 = vmatpush2.bf16.msra.mxu1 %v5941_v31 }
 0xa03   : > { %3137 = vmatprep.subr.bf16.mxu1 %v5946_v14 }
 0xa06   : > { %3138 = vmatpush2.bf16.msra.mxu1 %v5944_v47 }
 0xa07   : > { %3139 = vmatprep.subr.bf16.mxu1 %v5949_v48 }
 0xa0a   : > { %3140 = vmatpush2.bf16.msra.mxu1 %v5947_v58 }
 0xa0b   : > { %5436 = vmatprep.subr.bf16.mxu1 %v6591_v40 }
 0xa0d   : > { %3142 = vmatmul.mubr.bf16.vlgmr.msra.gmra.mxu1 %v7154_v38  ;;  %v2923_v38 = vadd.f32 %v2922_v57, %v2713_v46 }
 0xa0e   : > { %5437 = vmatpush3.bf16.xpose.msra.mxu1 %v3166_v0  ;;  %3151 = vmatprep.mubr.bf16.mxu1 %v7160_v49 }
 0xa0f   : > { %5442 = vmatprep.subr.bf16.mxu1 %v6591_v40 }
 0xa15   : > { %3152 = vmatmul.mubr.bf16.gmra.mxu1 %v7165_v3  ;;  %v3168_v3 = vpack.c.bf16 %v2927_v61, %v2923_v38 }
 0xa16   : > { %5438 = vmatprep.mubr.msk.bf16.mxu1 %vm6592_vm4, %v6591_v40 }
 0xa8d   : > { %v2691_v44 = vpop.f32.mrf.mxu1 }
 0xa8e   : > { %v2692_v49 = vadd.f32 %v2691_v44, %v2492_v27 }
 0xa8f   : > { %v7211_v5 = vpop.f32.mrf.mxu1 }
 0xa90   : > { %v3162_v33 = vpack.c.bf16 %v2692_v49, %v2692_v49 }
 0xa91   : > { %v2695_v6 = vpop.f32.mrf.mxu1 }
 0xa92   : > { %5439 = vmatmul.mubr.bf16.vlgmr.msra.gmra.mxu1 %v3162_v33  ;;  %v2696_v51 = vadd.f32 %v2695_v6, %v2492_v27 }
 0xa93   : > { %5443 = vmatpush3.bf16.xpose.msra.mxu1 %v3168_v3  ;;  %5444 = vmatprep.mubr.msk.bf16.mxu1 %vm6592_vm4, %v6591_v40  ;;  %v7222_v32 = vpop.f32.mrf.mxu1 }
 0xa94   : > { %5448 = vmatprep.subr.bf16.mxu1 %v6591_v40  ;;  %v3164_v9 = vpack.c.bf16 %v2696_v51, %v2696_v51 }
 0xa9a   : > { %5445 = vmatmul.mubr.bf16.vlgmr.msra.gmra.mxu1 %v3164_v9 }
 0xa9b   : > { %5450 = vmatprep.mubr.msk.bf16.mxu1 %vm6592_vm4, %v6591_v40 }
 0xacd   : > { %v3143_v7 = vpop.f32.mrf.mxu1 }
 0xace   : > { %v3144_v17 = vadd.f32 %v3143_v7, %v2944_v56 }
 0xacf   : > { %v3145_v13 = vpop.f32.mrf.mxu1 }
 0xad0   : > { %v7226_v19 = vadd.f32 %v3145_v13, %v2948_v12 }
 0xad1   : > { %v3147_v18 = vpop.f32.mrf.mxu1 }
 0xad2   : > { %v3148_v20 = vadd.f32 %v3147_v18, %v2944_v56 }
 0xad3   : > { %v3149_v21 = vpop.f32.mrf.mxu1 }
 0xad4   : > { %v3170_v22 = vpack.c.bf16 %v3148_v20, %v3144_v17  ;;  %v7228_v23 = vadd.f32 %v3149_v21, %v2948_v12  ;;  %v2486_v20 = vrot.slane %v7181_v24, %v6954_v43  ;;  %v2925_v43 = vadd.f32 %v7208_v28, %v7188_v37 }
 0xad5   : > { %v3153_v26 = vpop.f32.mrf.mxu1 }
 0xad6   : > { %v3171_v25 = vpack.c.bf16 %v7228_v23, %v7226_v19  ;;  %v3154_v29 = vadd.f32 %v3153_v26, %v2944_v56  ;;  %5449 = vmatpush3.bf16.msra.mxu1 %v3170_v22  ;;  %v2496_v26 = vrot.slane %v2486_v20, %v6951_v42  ;;  %v5958_v20 = vld [vmem:[#allocation11 + $0x354] ss:$8 sps:$4 sm:$0xff]  }
 0xad7   : > { %v3155_v30 = vpop.f32.mrf.mxu1  ;;  %5454 = vmatprep.subr.bf16.mxu1 %v6591_v40 }
 0xad8   : > { %v7233_v31 = vadd.f32 %v3155_v30, %v2948_v12  ;;  %v2928_v30 = vpop.f32.mrf.mxu0  ;;  %v2698_v54 = vadd.f32 %v7222_v32, %v2496_v26 }
 0xad9   : > { %v3157_v35 = vpop.f32.mrf.mxu1 }
 0xada   : > { %v3158_v14 = vadd.f32 %v3157_v35, %v2944_v56  ;;  %v2694_v35 = vadd.f32 %v7211_v5, %v2496_v26  ;;  %v3165_v53 = vpack.c.bf16 %v2698_v54, %v2698_v54  ;;  %v5959_v26 = vld [vmem:[#allocation11 + $0x340] ss:$8 sps:$4 sm:$0xff]  }
 0xadb   : > { %v3159_v39 = vpop.f32.mrf.mxu1  ;;  %v5971_v54 = vld [vmem:[#allocation11 + $0x300] ss:$8 sps:$4 sm:$0xff]  }
 0xadc   : > { %v3172_v45 = vpack.c.bf16 %v3158_v14, %v3154_v29  ;;  %v7235_v46 = vadd.f32 %v3159_v39, %v2948_v12  ;;  %v2929_v14 = vadd.f32 %v2928_v30, %v7188_v37  ;;  %v3163_v39 = vpack.c.bf16 %v2694_v35, %v2694_v35  ;;  %v5962_v30 = vld [vmem:[#allocation11 + $0x330] ss:$8 sps:$4 sm:$0xff]   ;;  %v5967_v35 = vld [vmem:[#allocation11 + $0x324] ss:$8 sps:$4 sm:$0xff]  }
 0xade   : > { %v3173_v47 = vpack.c.bf16 %v7235_v46, %v7233_v31  ;;  %v5995_v31 = vld [vmem:[#allocation11 + $0x380] ss:$8 sps:$4 sm:$0xff]  }
 0xb52   : > { %v3208_v48 = vpop.f32.mrf.mxu1 }
 0xb53   : > { %v3254_v50 = vmul.f32 0.088388346, %v3208_v48 }
 0xb54   : > { %v5440_v55 = vpop.f32.mrf.mxu1 }
 0xb55   : > { %v3257_v16 = vsel %vm3256_vm12, %v3254_v50, -inf }
 0xb56   : > { %3258 = vmax.xlane.f32.xlu0 %v3257_v16  ;;  %v3211_v58 = vpop.f32.mrf.mxu1 }
 0xb58   : > { %v5441_v0 = vpop.f32.mrf.mxu1 }
 0xb5a   : > { %v3248_v57 = vpop.f32.mrf.mxu1 }
 0xb5b   : > { %v3255_v4 = vmul.f32 0.088388346, %v3248_v57 }
 0xb5c   : > { %v5446_v27 = vpop.f32.mrf.mxu1 }
 0xb5d   : > { %v3260_v60 = vsel %vm3256_vm12, %v3255_v4, -inf }
 0xb5e   : > { %3261 = vmax.xlane.f32.xlu1 %v3260_v60  ;;  %v3251_v38 = vpop.f32.mrf.mxu1 }
 0xb60   : > { %v5447_v61 = vpop.f32.mrf.mxu1 }
 0xbdf   : > { %v3259_v44 = vpop.xlane.xlu0 %3258 }
 0xbe0   : > { %v3263_v49 = vsub.f32 %v3254_v50, %v3259_v44 }
 0xbe2   : > { %v3265_v33 = vmul.f32 1.442695, %v3263_v49 }
 0xbe4   : > { %6222 = vpow2.f32 %v3265_v33 }
 0xbe7   : > { %v3262_v3 = vpop.xlane.xlu1 %3261 }
 0xbe8   : > { %v3264_v6 = vsub.f32 %v3255_v4, %v3262_v3 }
 0xbea   : > { %v3267_v51 = vmul.f32 1.442695, %v3264_v6 }
 0xbec   : > { %6224 = vpow2.f32 %v3267_v51 }
 0xbf1   : > { %v6223_v9 = vpop.eup %6222 }
 0xbf2   : > { %v3269_v10 = vsel %vm3256_vm12, %v6223_v9, 0.0 }
 0xbf3   : > { %3270 = vadd.xlane.f32.xlu0 %v3269_v10 }
 0xbf9   : > { %v6225_v11 = vpop.eup %6224 }
 0xbfa   : > { %v3272_v56 = vsel %vm3256_vm12, %v6225_v11, 0.0 }
 0xbfb   : > { %3273 = vadd.xlane.f32.xlu1 %v3272_v56 }
 0xc7c   : > { %v3271_v7 = vpop.xlane.xlu0 %3270 }
 0xc7d   : > { %6226 = vrcp.f32 %v3271_v7 }
 0xc84   : > { %v3274_v12 = vpop.xlane.xlu1 %3273 }
 0xc85   : > { %6228 = vrcp.f32 %v3274_v12  ;;  %v5950_v12 = vld [vmem:[#allocation11 + $0x370] ss:$8 sps:$4 sm:$0xff]  }
 0xc8a   : > { %v6227_v13 = vpop.eup %6226 }
 0xc8b   : > { %v3277_v17 = vmul.f32 %v6227_v13, %v6223_v9  ;;  %v5952_v13 = vld [vmem:[#allocation11 + $0x374] ss:$8 sps:$4 sm:$0xff]  }
 0xc8c   : > { %3739 = vmatprep.subr.bf16.mxu0 %v5952_v13  ;;  %v3568_v13 = vrot.slane %v7181_v24, %v2167_v15 }
 0xc8d   : > { %v3279_v18 = vpack.c.bf16 %v3277_v17, %v3277_v17  ;;  %v5955_v17 = vld [vmem:[#allocation11 + $0x364] ss:$8 sps:$4 sm:$0xff]   ;;  %3740 = vmatpush1.bf16.msra.mxu0 %v5950_v12  ;;  %v3564_v12 = vrot.slane %v7181_v24, %v7102_v52 }
 0xc8e   : > { %3741 = vmatprep.subr.bf16.mxu0 %v5955_v17 }
 0xc8f   : > { %5451 = vmatmul.mubr.msk.bf16.vlgmr.msra.gmra.mxu1 %vm3256_vm12, %v3279_v18  ;;  %v5953_v18 = vld [vmem:[#allocation11 + $0x360] ss:$8 sps:$4 sm:$0xff]   ;;  %v3574_v17 = vrot.slane %v3564_v12, %v7102_v52 }
 0xc90   : > { %5455 = vmatpush3.bf16.msra.mxu1 %v3172_v45  ;;  %5456 = vmatprep.mubr.msk.bf16.mxu1 %vm6592_vm4, %v6591_v40  ;;  %v3169_v45 = vpack.c.bf16 %v2929_v14, %v2925_v43  ;;  %v5965_v43 = vld [vmem:[#allocation11 + $0x320] ss:$8 sps:$4 sm:$0xff]   ;;  %v5970_v14 = vld [vmem:[#allocation11 + $0x314] ss:$8 sps:$4 sm:$0xff]  }
 0xc91   : > { %5460 = vmatprep.subr.bf16.mxu1 %v6591_v40  ;;  %3742 = vmatpush1.bf16.msra.mxu0 %v5953_v18  ;;  %v3578_v18 = vrot.slane %v3568_v13, %v7102_v52  ;;  %v6037_v12 = vld [vmem:[#allocation14 + $0x28] ss:$16 sps:$4 sm:$0xff]   ;;  %v6042_v13 = vld [vmem:[#allocation14 + $0x4] ss:$16 sps:$4 sm:$0xff]  }
 0xc92   : > { %v6229_v21 = vpop.eup %6228  ;;  %3743 = vmatprep.subr.bf16.mxu0 %v5958_v20 }
 0xc93   : > { %v3278_v22 = vmul.f32 %v6229_v21, %v6225_v11  ;;  %v5956_v21 = vld [vmem:[#allocation11 + $0x350] ss:$8 sps:$4 sm:$0xff]  }
 0xc95   : > { %v3280_v29 = vpack.c.bf16 %v3278_v22, %v3278_v22  ;;  %v5961_v22 = vld [vmem:[#allocation11 + $0x344] ss:$8 sps:$4 sm:$0xff]   ;;  %3744 = vmatpush1.bf16.msra.mxu0 %v5956_v21 }
 0xc96   : > { %3745 = vmatprep.subr.bf16.mxu0 %v5961_v22 }
 0xc97   : > { %5457 = vmatmul.mubr.msk.bf16.vlgmr.msra.gmra.mxu1 %vm3256_vm12, %v3280_v29  ;;  %v5964_v29 = vld [vmem:[#allocation11 + $0x334] ss:$8 sps:$4 sm:$0xff]  }
 0xc98   : > { %5461 = vmatpush3.bf16.xpose.msra.mxu1 %v3167_v59  ;;  %5462 = vmatprep.mubr.msk.bf16.mxu1 %vm6592_vm4, %v6591_v40 }
 0xc99   : > { %5466 = vmatprep.subr.bf16.mxu1 %v6591_v40  ;;  %3746 = vmatpush1.bf16.msra.mxu0 %v5959_v26 }
 0xc9a   : > { %3747 = vmatprep.subr.bf16.mxu0 %v5964_v29 }
 0xc9d   : > { %3748 = vmatpush1.bf16.msra.mxu0 %v5962_v30 }
 0xc9e   : > { %3749 = vmatprep.subr.bf16.mxu0 %v5967_v35 }
 0xc9f   : > { %5463 = vmatmul.mubr.bf16.vlgmr.msra.gmra.mxu1 %v3163_v39  ;;  %v5968_v39 = vld [vmem:[#allocation11 + $0x310] ss:$8 sps:$4 sm:$0xff]  }
 0xca0   : > { %5467 = vmatpush3.bf16.xpose.msra.mxu1 %v3169_v45  ;;  %5468 = vmatprep.mubr.msk.bf16.mxu1 %vm6592_vm4, %v6591_v40  ;;  %v5973_v45 = vld [vmem:[#allocation11 + $0x304] ss:$8 sps:$4 sm:$0xff]  }
 0xca1   : > { %5472 = vmatprep.subr.bf16.mxu1 %v6591_v40  ;;  %3750 = vmatpush1.bf16.msra.mxu0 %v5965_v43  ;;  %v5998_v43 = vld [vmem:[#allocation14 + $0xe0] ss:$16 sps:$4 sm:$0xff]  }
 0xca2   : > { %3751 = vmatprep.subr.bf16.mxu0 %v5970_v14  ;;  %v6001_v14 = vld [vmem:[#allocation14 + $0xe8] ss:$16 sps:$4 sm:$0xff]  }
 0xca5   : > { %3752 = vmatpush1.bf16.msra.mxu0 %v5968_v39  ;;  %v6003_v39 = vld [vmem:[#allocation14 + $0xec] ss:$16 sps:$4 sm:$0xff]  }
 0xca6   : > { %3753 = vmatprep.subr.bf16.mxu0 %v5973_v45  ;;  %v6006_v45 = vld [vmem:[#allocation14 + $0xc4] ss:$16 sps:$4 sm:$0xff]  }
 0xca7   : > { %5469 = vmatmul.mubr.bf16.vlgmr.msra.gmra.mxu1 %v3165_v53  ;;  %v5976_v53 = vld [vmem:[#allocation11 + $0x3f4] ss:$8 sps:$4 sm:$0xff]  }
 0xca8   : > { %5473 = vmatpush3.bf16.msra.mxu1 %v3171_v25  ;;  %5474 = vmatprep.mubr.msk.bf16.mxu1 %vm6592_vm4, %v6591_v40 }
 0xca9   : > { %5478 = vmatprep.subr.bf16.mxu1 %v6591_v40  ;;  %3754 = vmatpush1.bf16.msra.mxu0 %v5971_v54  ;;  %v6009_v54 = vld [vmem:[#allocation14 + $0xcc] ss:$16 sps:$4 sm:$0xff]  }
 0xcaa   : > { %3755 = vmatprep.subr.bf16.mxu0 %v5976_v53  ;;  %v6004_v53 = vld [vmem:[#allocation14 + $0xc0] ss:$16 sps:$4 sm:$0xff]  }
 0xd4f   : > { %v7271_v37 = vpop.f32.mrf.mxu1 }
 0xd51   : > { %v5452_v59 = vpop.f32.mrf.mxu1 }
 0xd52   : > { %v5974_v59 = vld [vmem:[#allocation11 + $0x3f0] ss:$8 sps:$4 sm:$0xff]  }
 0xd53   : > { %v3321_v28 = vpop.f32.mrf.mxu1  ;;  %3756 = vmatpush2.bf16.msra.mxu0 %v5974_v59  ;;  %v6015_v59 = vld [vmem:[#allocation14 + $0xac] ss:$16 sps:$4 sm:$0xff]  }
 0xd54   : > { %v5979_v28 = vld [vmem:[#allocation11 + $0x3e4] ss:$8 sps:$4 sm:$0xff]  }
 0xd55   : > { %v5453_v5 = vpop.f32.mrf.mxu1  ;;  %3757 = vmatprep.subr.bf16.mxu0 %v5979_v28  ;;  %v6010_v28 = vld [vmem:[#allocation14 + $0xa0] ss:$16 sps:$4 sm:$0xff]  }
 0xd56   : > { %v5977_v5 = vld [vmem:[#allocation11 + $0x3e0] ss:$8 sps:$4 sm:$0xff]  }
 0xd57   : > { %v7273_v48 = vpop.f32.mrf.mxu1  ;;  %3758 = vmatpush2.bf16.msra.mxu0 %v5977_v5  ;;  %v6013_v5 = vld [vmem:[#allocation14 + $0xa8] ss:$16 sps:$4 sm:$0xff]  }
 0xd58   : > { %v3559_v32 = vpack.c.bf16 %v7273_v48, %v7271_v37 }
 0xd59   : > { %v5458_v50 = vpop.f32.mrf.mxu1 }
 0xd5a   : > { %v5982_v50 = vld [vmem:[#allocation11 + $0x3d4] ss:$8 sps:$4 sm:$0xff]  }
 0xd5b   : > { %v3364_v55 = vpop.f32.mrf.mxu1  ;;  %3759 = vmatprep.subr.bf16.mxu0 %v5982_v50  ;;  %v6018_v50 = vld [vmem:[#allocation14 + $0x84] ss:$16 sps:$4 sm:$0xff]  }
 0xd5c   : > { %v5980_v55 = vld [vmem:[#allocation11 + $0x3d0] ss:$8 sps:$4 sm:$0xff]  }
 0xd5d   : > { %v5459_v16 = vpop.f32.mrf.mxu1  ;;  %3760 = vmatpush2.bf16.msra.mxu0 %v5980_v55  ;;  %v6021_v55 = vld [vmem:[#allocation14 + $0x8c] ss:$16 sps:$4 sm:$0xff]  }
 0xd5e   : > { %v5985_v16 = vld [vmem:[#allocation11 + $0x3c4] ss:$8 sps:$4 sm:$0xff]  }
 0xd5f   : > { %v3401_v19 = vpop.f32.mrf.mxu1  ;;  %3761 = vmatprep.subr.bf16.mxu0 %v5985_v16  ;;  %v6016_v16 = vld [vmem:[#allocation14 + $0x80] ss:$16 sps:$4 sm:$0xff]  }
 0xd60   : > { %v3447_v23 = vmul.f32 0.088388346, %v3401_v19  ;;  %v5983_v19 = vld [vmem:[#allocation11 + $0x3c0] ss:$8 sps:$4 sm:$0xff]  }
 0xd61   : > { %v5464_v25 = vpop.f32.mrf.mxu1  ;;  %3762 = vmatpush2.bf16.msra.mxu0 %v5983_v19  ;;  %v6019_v19 = vld [vmem:[#allocation14 + $0x88] ss:$16 sps:$4 sm:$0xff]  }
 0xd62   : > { %v3449_v58 = vsel %vm3256_vm12, %v3447_v23, -inf  ;;  %v5986_v25 = vld [vmem:[#allocation11 + $0x3b0] ss:$8 sps:$4 sm:$0xff]  }
 0xd63   : > { %3450 = vmax.xlane.f32.xlu0 %v3449_v58  ;;  %v3404_v0 = vpop.f32.mrf.mxu1 }
 0xd65   : > { %v5465_v57 = vpop.f32.mrf.mxu1 }
 0xd67   : > { %v3441_v4 = vpop.f32.mrf.mxu1 }
 0xd68   : > { %v3448_v27 = vmul.f32 0.088388346, %v3441_v4 }
 0xd69   : > { %v5470_v60 = vpop.f32.mrf.mxu1 }
 0xd6a   : > { %v3452_v38 = vsel %vm3256_vm12, %v3448_v27, -inf }
 0xd6b   : > { %3453 = vmax.xlane.f32.xlu1 %v3452_v38  ;;  %v3444_v61 = vpop.f32.mrf.mxu1 }
 0xd6d   : > { %v5471_v44 = vpop.f32.mrf.mxu1 }
 0xd6e   : > { %v5991_v44 = vld [vmem:[#allocation11 + $0x3a4] ss:$8 sps:$4 sm:$0xff]  }
 0xdec   : > { %v3451_v49 = vpop.xlane.xlu0 %3450 }
 0xded   : > { %v3455_v33 = vsub.f32 %v3447_v23, %v3451_v49  ;;  %v5988_v23 = vld [vmem:[#allocation11 + $0x3b4] ss:$8 sps:$4 sm:$0xff]   ;;  %v5989_v49 = vld [vmem:[#allocation11 + $0x3a0] ss:$8 sps:$4 sm:$0xff]  }
 0xdee   : > { %3763 = vmatprep.subr.bf16.mxu0 %v5988_v23  ;;  %v6024_v23 = vld [vmem:[#allocation14 + $0x64] ss:$16 sps:$4 sm:$0xff]  }
 0xdef   : > { %v3457_v3 = vmul.f32 1.442695, %v3455_v33  ;;  %3764 = vmatpush2.bf16.msra.mxu0 %v5986_v25  ;;  %v5994_v33 = vld [vmem:[#allocation11 + $0x394] ss:$8 sps:$4 sm:$0xff]  }
 0xdf0   : > { %3765 = vmatprep.subr.bf16.mxu0 %v5991_v44  ;;  %v6027_v25 = vld [vmem:[#allocation14 + $0x6c] ss:$16 sps:$4 sm:$0xff]  }
 0xdf1   : > { %6230 = vpow2.f32 %v3457_v3  ;;  %v5992_v3 = vld [vmem:[#allocation11 + $0x390] ss:$8 sps:$4 sm:$0xff]  }
 0xdf3   : > { %3766 = vmatpush2.bf16.msra.mxu0 %v5989_v49 }
 0xdf4   : > { %v3454_v6 = vpop.xlane.xlu1 %3453  ;;  %3767 = vmatprep.subr.bf16.mxu0 %v5994_v33 }
 0xdf5   : > { %v3456_v51 = vsub.f32 %v3448_v27, %v3454_v6  ;;  %v5997_v6 = vld [vmem:[#allocation11 + $0x384] ss:$8 sps:$4 sm:$0xff]  }
 0xdf7   : > { %v3459_v9 = vmul.f32 1.442695, %v3456_v51  ;;  %3768 = vmatpush2.bf16.msra.mxu0 %v5992_v3 }
 0xdf8   : > { %3769 = vmatprep.subr.bf16.mxu0 %v5997_v6 }
 0xdf9   : > { %6232 = vpow2.f32 %v3459_v9 }
 0xdfb   : > { %3770 = vmatpush2.bf16.msra.mxu0 %v5995_v31 }
 0xdfc   : > { %4262 = vmatprep.subr.bf16.mxu0 %v6003_v39  ;;  %v6064_v39 = vld [vmem:[#allocation14 + $0x180] ss:$16 sps:$4 sm:$0xff]  }
 0xdfe   : > { %v7279_v10 = vpop.eup %6230 }
 0xdff   : > { %v3461_v11 = vsel %vm3256_vm12, %v7279_v10, 0.0 }
 0xe00   : > { %3462 = vadd.xlane.f32.xlu0 %v3461_v11 }
 0xe06   : > { %v7283_v56 = vpop.eup %6232 }
 0xe07   : > { %v3464_v7 = vsel %vm3256_vm12, %v7283_v56, 0.0 }
 0xe08   : > { %3465 = vadd.xlane.f32.xlu1 %v3464_v7 }
 0xe89   : > { %v3463_v58 = vpop.xlane.xlu0 %3462 }
 0xe8a   : > { %6234 = vrcp.f32 %v3463_v58  ;;  %v6022_v58 = vld [vmem:[#allocation14 + $0x60] ss:$16 sps:$4 sm:$0xff]  }
 0xe91   : > { %v3466_v0 = vpop.xlane.xlu1 %3465 }
 0xe92   : > { %6236 = vrcp.f32 %v3466_v0  ;;  %v6025_v0 = vld [vmem:[#allocation14 + $0x68] ss:$16 sps:$4 sm:$0xff]  }
 0xe97   : > { %v6235_v57 = vpop.eup %6234 }
 0xe98   : > { %v3469_v4 = vmul.f32 %v6235_v57, %v7279_v10 }
 0xe9a   : > { %v3471_v27 = vpack.c.bf16 %v3469_v4, %v3469_v4 }
 0xe9c   : > { %5475 = vmatmul.mubr.msk.bf16.vlgmr.msra.gmra.mxu1 %vm3256_vm12, %v3471_v27 }
 0xe9d   : > { %5479 = vmatpush3.bf16.msra.mxu1 %v3173_v47  ;;  %5480 = vmatprep.mubr.msk.bf16.mxu1 %vm6592_vm4, %v6591_v40 }
 0xe9f   : > { %v6237_v60 = vpop.eup %6236 }
 0xea0   : > { %v3470_v38 = vmul.f32 %v6237_v60, %v7283_v56 }
 0xea2   : > { %v3472_v61 = vpack.c.bf16 %v3470_v38, %v3470_v38 }
 0xea4   : > { %5481 = vmatmul.mubr.msk.bf16.vlgmr.msra.gmra.mxu1 %vm3256_vm12, %v3472_v61 }
 0xf5c   : > { %v3510_v46 = vpop.f32.mrf.mxu1 }
 0xf5e   : > { %v5476_v40 = vpop.f32.mrf.mxu1 }
 0xf60   : > { %v3513_v47 = vpop.f32.mrf.mxu1 }
 0xf61   : > { %v6030_v47 = vld [vmem:[#allocation14 + $0x44] ss:$16 sps:$4 sm:$0xff]  }
 0xf62   : > { %v5477_v51 = vpop.f32.mrf.mxu1 }
 0xf63   : > { %v6033_v51 = vld [vmem:[#allocation14 + $0x4c] ss:$16 sps:$4 sm:$0xff]  }
 0xf64   : > { %v3553_v9 = vpop.f32.mrf.mxu1 }
 0xf65   : > { %v3560_v10 = vpack.c.bf16 %v3553_v9, %v3510_v46  ;;  %v6028_v9 = vld [vmem:[#allocation14 + $0x40] ss:$16 sps:$4 sm:$0xff]  }
 0xf66   : > { %v5482_v11 = vpop.f32.mrf.mxu1 }
 0xf67   : > { %3771 = vmatprep.mubr.bf16.mxu0 %v3560_v10  ;;  %v6031_v10 = vld [vmem:[#allocation14 + $0x48] ss:$16 sps:$4 sm:$0xff]   ;;  %v6036_v11 = vld [vmem:[#allocation14 + $0x24] ss:$16 sps:$4 sm:$0xff]  }
 0xf68   : > { %v3556_v56 = vpop.f32.mrf.mxu1  ;;  %3772 = vmatmul.mubr.bf16.vlgmr.msra.gmra.mxu0 %v3559_v32 }
 0xf69   : > { %4263 = vmatpush1.bf16.msra.mxu0 %v6001_v14  ;;  %v6039_v56 = vld [vmem:[#allocation14 + $0x2c] ss:$16 sps:$4 sm:$0xff]   ;;  %v6061_v14 = vld [vmem:[#allocation14 + $0x1a8] ss:$16 sps:$4 sm:$0xff]  }
 0xf6a   : > { %v5483_v7 = vpop.f32.mrf.mxu1  ;;  %4264 = vmatprep.subr.bf16.mxu0 %v6009_v54  ;;  %v6067_v54 = vld [vmem:[#allocation14 + $0x188] ss:$16 sps:$4 sm:$0xff]  }
 0xf6b   : > { %v6034_v7 = vld [vmem:[#allocation14 + $0x20] ss:$16 sps:$4 sm:$0xff]  }
0x1028   : > { %v3773_v20 = vpop.f32.mrf.mxu0 }
0x1029   : > { %v3774_v21 = vadd.f32 %v3773_v20, %v3574_v17  ;;  %v6043_v20 = vld [vmem:[#allocation14 + $0x8] ss:$16 sps:$4 sm:$0xff]  }
0x102a   : > { %v3775_v22 = vpop.f32.mrf.mxu0 }
0x102b   : > { %v3776_v26 = vadd.f32 %v3775_v22, %v3578_v18  ;;  %v7307_v37 = vadd.f32 %v3774_v21, %v7113_v62  ;;  %v6048_v21 = vld [vmem:[#allocation14 + $0x1e4] ss:$16 sps:$4 sm:$0xff]   ;;  %v6051_v22 = vld [vmem:[#allocation14 + $0x1ec] ss:$16 sps:$4 sm:$0xff]  }
0x102c   : > { %v3777_v29 = vpop.f32.mrf.mxu0 }
0x102d   : > { %v7310_v48 = vadd.f32 %v3776_v26, %v7116_v1  ;;  %v3778_v32 = vadd.f32 %v3777_v29, %v3574_v17  ;;  %v6000_v1 = vld [vmem:[#allocation14 + $0xe4] ss:$16 sps:$4 sm:$0xff]   ;;  %v6045_v17 = vld [vmem:[#allocation14 + $0xc] ss:$16 sps:$4 sm:$0xff]   ;;  %v6046_v26 = vld [vmem:[#allocation14 + $0x1e0] ss:$16 sps:$4 sm:$0xff]  }
0x102e   : > { %v3779_v30 = vpop.f32.mrf.mxu0  ;;  %4219 = vmatprep.subr.bf16.mxu1 %v6000_v1  ;;  %v6049_v29 = vld [vmem:[#allocation14 + $0x1e8] ss:$16 sps:$4 sm:$0xff]   ;;  %v6058_v1 = vld [vmem:[#allocation14 + $0x1a0] ss:$16 sps:$4 sm:$0xff]  }
0x102f   : > { %v3780_v36 = vadd.f32 %v3779_v30, %v3578_v18  ;;  %v3786_v15 = vadd.f32 %v7310_v48, %v7307_v37  ;;  %v7315_v24 = vadd.f32 %v3778_v32, %v7121_v34  ;;  %4220 = vmatpush1.bf16.msra.mxu1 %v5998_v43  ;;  %v6007_v34 = vld [vmem:[#allocation14 + $0xc8] ss:$16 sps:$4 sm:$0xff]   ;;  %v6040_v18 = vld [vmem:[#allocation14] ss:$16 sps:$4 sm:$0xff]   ;;  %v6054_v32 = vld [vmem:[#allocation14 + $0x1c4] ss:$16 sps:$4 sm:$0xff]  }
0x1030   : > { %4221 = vmatprep.subr.bf16.mxu1 %v6006_v45  ;;  %4265 = vmatpush1.bf16.msra.mxu0 %v6007_v34  ;;  %v6057_v30 = vld [vmem:[#allocation14 + $0x1cc] ss:$16 sps:$4 sm:$0xff]   ;;  %v6066_v45 = vld [vmem:[#allocation14 + $0x184] ss:$16 sps:$4 sm:$0xff]  }
0x1031   : > { %v7318_v35 = vadd.f32 %v3780_v36, %v7124_v8  ;;  %3787 = vadd.xlane.f32.xlu0 %v3786_v15  ;;  %v6012_v8 = vld [vmem:[#allocation14 + $0xa4] ss:$16 sps:$4 sm:$0xff]   ;;  %4266 = vmatprep.subr.bf16.mxu0 %v6015_v59  ;;  %v6052_v36 = vld [vmem:[#allocation14 + $0x1c0] ss:$16 sps:$4 sm:$0xff]   ;;  %v6055_v15 = vld [vmem:[#allocation14 + $0x1c8] ss:$16 sps:$4 sm:$0xff]  }
0x1032   : > { %v6063_v43 = vld [vmem:[#allocation14 + $0x1ac] ss:$16 sps:$4 sm:$0xff]   ;;  %v6072_v34 = vld [vmem:[#allocation14 + $0x164] ss:$16 sps:$4 sm:$0xff]   ;;  %v6070_v59 = vld [vmem:[#allocation14 + $0x160] ss:$16 sps:$4 sm:$0xff]  }
0x1033   : > { %v3789_v62 = vadd.f32 %v7318_v35, %v7315_v24  ;;  %4222 = vmatpush1.bf16.msra.mxu1 %v6004_v53  ;;  %v6069_v53 = vld [vmem:[#allocation14 + $0x18c] ss:$16 sps:$4 sm:$0xff]  }
0x1034   : > { %4223 = vmatprep.subr.bf16.mxu1 %v6012_v8  ;;  %4267 = vmatpush1.bf16.msra.mxu0 %v6013_v5  ;;  %v6075_v8 = vld [vmem:[#allocation14 + $0x16c] ss:$16 sps:$4 sm:$0xff]   ;;  %v6078_v5 = vld [vmem:[#allocation14 + $0x144] ss:$16 sps:$4 sm:$0xff]  }
0x1035   : > { %3790 = vadd.xlane.f32.xlu1 %v3789_v62  ;;  %4268 = vmatprep.subr.bf16.mxu0 %v6021_v55  ;;  %v6060_v62 = vld [vmem:[#allocation14 + $0x1a4] ss:$16 sps:$4 sm:$0xff]   ;;  %v6076_v55 = vld [vmem:[#allocation14 + $0x140] ss:$16 sps:$4 sm:$0xff]  }
0x1037   : > { %4224 = vmatpush1.bf16.msra.mxu1 %v6010_v28  ;;  %v6073_v28 = vld [vmem:[#allocation14 + $0x168] ss:$16 sps:$4 sm:$0xff]  }
0x1038   : > { %4225 = vmatprep.subr.bf16.mxu1 %v6018_v50  ;;  %4269 = vmatpush1.bf16.msra.mxu0 %v6019_v19  ;;  %v6081_v50 = vld [vmem:[#allocation14 + $0x14c] ss:$16 sps:$4 sm:$0xff]   ;;  %v6084_v19 = vld [vmem:[#allocation14 + $0x124] ss:$16 sps:$4 sm:$0xff]  }
0x1039   : > { %4270 = vmatprep.subr.bf16.mxu0 %v6027_v25  ;;  %v6082_v25 = vld [vmem:[#allocation14 + $0x120] ss:$16 sps:$4 sm:$0xff]  }
0x103b   : > { %4226 = vmatpush1.bf16.msra.mxu1 %v6016_v16  ;;  %v6079_v16 = vld [vmem:[#allocation14 + $0x148] ss:$16 sps:$4 sm:$0xff]  }
0x103c   : > { %4227 = vmatprep.subr.bf16.mxu1 %v6024_v23  ;;  %4271 = vmatpush1.bf16.msra.mxu0 %v6025_v0  ;;  %v6087_v23 = vld [vmem:[#allocation14 + $0x12c] ss:$16 sps:$4 sm:$0xff]   ;;  %v6090_v0 = vld [vmem:[#allocation14 + $0x104] ss:$16 sps:$4 sm:$0xff]  }
0x103d   : > { %4272 = vmatprep.subr.bf16.mxu0 %v6033_v51 }
0x103f   : > { %4228 = vmatpush1.bf16.msra.mxu1 %v6022_v58  ;;  %v6085_v58 = vld [vmem:[#allocation14 + $0x128] ss:$16 sps:$4 sm:$0xff]  }
0x1040   : > { %4229 = vmatprep.subr.bf16.mxu1 %v6030_v47  ;;  %4273 = vmatpush1.bf16.msra.mxu0 %v6031_v10 }
0x1041   : > { %4274 = vmatprep.subr.bf16.mxu0 %v6039_v56 }
0x1043   : > { %4230 = vmatpush1.bf16.msra.mxu1 %v6028_v9 }
0x1044   : > { %4231 = vmatprep.subr.bf16.mxu1 %v6036_v11  ;;  %4275 = vmatpush1.bf16.msra.mxu0 %v6037_v12 }
0x1045   : > { %4276 = vmatprep.subr.bf16.mxu0 %v6045_v17 }
0x1047   : > { %4232 = vmatpush1.bf16.msra.mxu1 %v6034_v7 }
0x1048   : > { %4233 = vmatprep.subr.bf16.mxu1 %v6042_v13  ;;  %4277 = vmatpush1.bf16.msra.mxu0 %v6043_v20  ;;  %v6252_v20 = vld [vmem:[#allocation7] sm:$0x77] }
0x1049   : > { %4278 = vmatprep.subr.bf16.mxu0 %v6051_v22  ;;  %v3835_v22 = vrot.slane %v6252_v20, %v7007_v2 }
0x104b   : > { %4234 = vmatpush1.bf16.msra.mxu1 %v6040_v18 }
0x104c   : > { %4235 = vmatprep.subr.bf16.mxu1 %v6048_v21  ;;  %4279 = vmatpush2.bf16.msra.mxu0 %v6049_v29  ;;  %v3831_v21 = vrot.slane %v6252_v20, %v7001_v63  ;;  %v3845_v29 = vrot.slane %v3835_v22, %v7001_v63  ;;  %v6144_v20 = vld [vmem:[#allocation16 + $0xf4] ss:$8 sps:$4 sm:$0xff]   ;;  %v6142_v22 = vld [vmem:[#allocation16 + $0xf0] ss:$8 sps:$4 sm:$0xff]  }
0x104d   : > { %4280 = vmatprep.subr.bf16.mxu0 %v6057_v30 }
0x104f   : > { %4236 = vmatpush2.bf16.msra.mxu1 %v6046_v26  ;;  %v3841_v26 = vrot.slane %v3831_v21, %v7001_v63  ;;  %v6147_v21 = vld [vmem:[#allocation16 + $0x1f4] ss:$8 sps:$4 sm:$0xff]  }
0x1050   : > { %4237 = vmatprep.subr.bf16.mxu1 %v6054_v32  ;;  %4281 = vmatpush2.bf16.msra.mxu0 %v6055_v15  ;;  %v6253_v32 = vld [vmem:[#allocation8] sm:$0x77] }
0x1051   : > { %4282 = vmatprep.subr.bf16.mxu0 %v6063_v43  ;;  %v3861_v30 = vrot.slane %v6253_v32, %v7007_v2 }
0x1053   : > { %4238 = vmatpush2.bf16.msra.mxu1 %v6052_v36  ;;  %v3857_v36 = vrot.slane %v6253_v32, %v7001_v63  ;;  %v6153_v32 = vld [vmem:[#allocation16 + $0x1e4] ss:$8 sps:$4 sm:$0xff]  }
0x1054   : > { %4239 = vmatprep.subr.bf16.mxu1 %v6060_v62  ;;  %4283 = vmatpush2.bf16.msra.mxu0 %v6061_v14 }
0x1055   : > { %4284 = vmatprep.subr.bf16.mxu0 %v6069_v53  ;;  %v3867_v53 = vrot.slane %v3857_v36, %v7001_v63  ;;  %v6151_v36 = vld [vmem:[#allocation16 + $0x1e0] ss:$8 sps:$4 sm:$0xff]  }
0x1057   : > { %4240 = vmatpush2.bf16.msra.mxu1 %v6058_v1 }
0x1058   : > { %4241 = vmatprep.subr.bf16.mxu1 %v6066_v45  ;;  %4285 = vmatpush2.bf16.msra.mxu0 %v6067_v54  ;;  %v3871_v45 = vrot.slane %v3861_v30, %v7001_v63  ;;  %v6148_v30 = vld [vmem:[#allocation16 + $0xe0] ss:$8 sps:$4 sm:$0xff]  }
0x1059   : > { %4286 = vmatprep.subr.bf16.mxu0 %v6075_v8 }
0x105b   : > { %4242 = vmatpush2.bf16.msra.mxu1 %v6064_v39 }
0x105c   : > { %4243 = vmatprep.subr.bf16.mxu1 %v6072_v34  ;;  %4287 = vmatpush2.bf16.msra.mxu0 %v6073_v28 }
0x105d   : > { %4288 = vmatprep.subr.bf16.mxu0 %v6081_v50 }
0x105f   : > { %4244 = vmatpush2.bf16.msra.mxu1 %v6070_v59 }
0x1060   : > { %4245 = vmatprep.subr.bf16.mxu1 %v6078_v5  ;;  %4289 = vmatpush2.bf16.msra.mxu0 %v6079_v16  ;;  %v6097_v16 = vld [vmem:[#allocation16 + $0x170] ss:$8 sps:$4 sm:$0xff]  }
0x1061   : > { %4290 = vmatprep.subr.bf16.mxu0 %v6087_v23  ;;  %v6103_v23 = vld [vmem:[#allocation16 + $0x160] ss:$8 sps:$4 sm:$0xff]  }
0x1063   : > { %4246 = vmatpush2.bf16.msra.mxu1 %v6076_v55 }
0x1064   : > { %4247 = vmatprep.subr.bf16.mxu1 %v6084_v19  ;;  %4291 = vmatpush2.bf16.msra.mxu0 %v6085_v58  ;;  %v6105_v19 = vld [vmem:[#allocation16 + $0x164] ss:$8 sps:$4 sm:$0xff]   ;;  %v6111_v58 = vld [vmem:[#allocation16 + $0x154] ss:$8 sps:$4 sm:$0xff]  }
0x1067   : > { %4248 = vmatpush2.bf16.msra.mxu1 %v6082_v25  ;;  %v6108_v25 = vld [vmem:[#allocation16 + $0x54] ss:$8 sps:$4 sm:$0xff]  }
0x1068   : > { %4249 = vmatprep.subr.bf16.mxu1 %v6090_v0  ;;  %v6106_v0 = vld [vmem:[#allocation16 + $0x50] ss:$8 sps:$4 sm:$0xff]  }
0x10ba   : > { %v3788_v57 = vpop.xlane.xlu0 %3787 }
0x10bb   : > { %v3792_v4 = vmul.f32 0.00390625, %v3788_v57  ;;  %v6093_v57 = vld [vmem:[#allocation14 + $0x10c] ss:$16 sps:$4 sm:$0xff]  }
0x10bc   : > { %4292 = vmatprep.subr.bf16.mxu0 %v6093_v57  ;;  %v6109_v57 = vld [vmem:[#allocation16 + $0x150] ss:$8 sps:$4 sm:$0xff]  }
0x10bd   : > { %v7323_v27 = vsub.f32 %v7307_v37, %v3792_v4  ;;  %v7326_v60 = vsub.f32 %v7310_v48, %v3792_v4  ;;  %v6088_v4 = vld [vmem:[#allocation14 + $0x100] ss:$16 sps:$4 sm:$0xff]  }
0x10be   : > { %v3791_v38 = vpop.xlane.xlu1 %3790  ;;  %4250 = vmatpush2.bf16.msra.mxu1 %v6088_v4  ;;  %v6114_v4 = vld [vmem:[#allocation16 + $0x44] ss:$8 sps:$4 sm:$0xff]  }
0x10bf   : > { %v3793_v61 = vmul.f32 0.00390625, %v3791_v38  ;;  %v3798_v44 = vmul.f32 %v7323_v27, %v7323_v27  ;;  %v3799_v49 = vmul.f32 %v7326_v60, %v7326_v60  ;;  %v6091_v38 = vld [vmem:[#allocation14 + $0x108] ss:$16 sps:$4 sm:$0xff]   ;;  %v3846_v62 = vmul.f32 %v3841_v26, %v7323_v27 }
0x10c0   : > { %4293 = vmatpush2.bf16.msra.mxu0 %v6091_v38  ;;  %v3847_v43 = vmul.f32 %v3845_v29, %v7326_v60  ;;  %v6094_v60 = vld [vmem:[#allocation16 + $0x70] ss:$8 sps:$4 sm:$0xff]   ;;  %v6117_v38 = vld [vmem:[#allocation16 + $0x144] ss:$8 sps:$4 sm:$0xff]  }
0x10c1   : > { %v7333_v33 = vsub.f32 %v7315_v24, %v3793_v61  ;;  %v7336_v3 = vsub.f32 %v7318_v35, %v3793_v61  ;;  %v3802_v6 = vadd.f32 %v3799_v49, %v3798_v44  ;;  %v6096_v61 = vld [vmem:[#allocation16 + $0x74] ss:$8 sps:$4 sm:$0xff]  }
0x10c2   : > { %v6099_v44 = vld [vmem:[#allocation16 + $0x174] ss:$8 sps:$4 sm:$0xff]   ;;  %4637 = vmatprep.subr.bf16.mxu1 %v6096_v61  ;;  %v6112_v61 = vld [vmem:[#allocation16 + $0x40] ss:$8 sps:$4 sm:$0xff]  }
0x10c3   : > { %v3800_v31 = vmul.f32 %v7333_v33, %v7333_v33  ;;  %v3801_v46 = vmul.f32 %v7336_v3, %v7336_v3  ;;  %3803 = vadd.xlane.f32.xlu0 %v3802_v6  ;;  %4680 = vmatprep.subr.bf16.mxu0 %v6099_v44  ;;  %v3848_v1 = vmul.f32 %v3841_v26, %v7333_v33  ;;  %v6102_v33 = vld [vmem:[#allocation16 + $0x64] ss:$8 sps:$4 sm:$0xff]   ;;  %v6115_v44 = vld [vmem:[#allocation16 + $0x140] ss:$8 sps:$4 sm:$0xff]   ;;  %v6145_v26 = vld [vmem:[#allocation16 + $0x1f0] ss:$8 sps:$4 sm:$0xff]  }
0x10c4   : > { %v3849_v14 = vmul.f32 %v3845_v29, %v7336_v3  ;;  %v6100_v3 = vld [vmem:[#allocation16 + $0x60] ss:$8 sps:$4 sm:$0xff]   ;;  %v6150_v29 = vld [vmem:[#allocation16 + $0xe4] ss:$8 sps:$4 sm:$0xff]  }
0x10c5   : > { %v3805_v40 = vadd.f32 %v3801_v46, %v3800_v31 }
0x10c7   : > { %3806 = vadd.xlane.f32.xlu1 %v3805_v40 }
0x114c   : > { %v3804_v49 = vpop.xlane.xlu0 %3803 }
0x114d   : > { %v3808_v6 = vmul.f32 0.003921569, %v3804_v49  ;;  %v6120_v49 = vld [vmem:[#allocation16 + $0x34] ss:$8 sps:$4 sm:$0xff]  }
0x114f   : > { %6238 = vrsqrt.f32 %v3808_v6  ;;  %vm3812_vm13 = vcmp.eq.f32.partialorder %v3808_v6, inf  ;;  %v3815_v51 = vand.u32 2147483648, %v3808_v6  ;;  %vm3814_vm14 = vcmp.eq.f32.partialorder %v3808_v6, 0.0 }
0x1150   : > { %v3807_v31 = vpop.xlane.xlu1 %3806 }
0x1151   : > { %v3809_v46 = vmul.f32 0.003921569, %v3807_v31  ;;  %v6118_v31 = vld [vmem:[#allocation16 + $0x30] ss:$8 sps:$4 sm:$0xff]  }
0x1153   : > { %6240 = vrsqrt.f32 %v3809_v46  ;;  %vm3819_vm15 = vcmp.eq.f32.partialorder %v3809_v46, inf  ;;  %v3822_v12 = vand.u32 2147483648, %v3809_v46  ;;  %vm3821_vm0 = vcmp.eq.f32.partialorder %v3809_v46, 0.0 }
0x115c   : > { %v6239_v40 = vpop.eup %6238 }
0x115d   : > { %v3811_v47 = vmul.f32 %v6239_v40, %v3808_v6  ;;  %v6126_v40 = vld [vmem:[#allocation16 + $0x24] ss:$8 sps:$4 sm:$0xff]  }
0x115f   : > { %v3813_v10 = vsel %vm3812_vm13, %v3808_v6, %v3811_v47  ;;  %v6123_v6 = vld [vmem:[#allocation16 + $0x134] ss:$8 sps:$4 sm:$0xff]   ;;  %v6129_v47 = vld [vmem:[#allocation16 + $0x124] ss:$8 sps:$4 sm:$0xff]  }
0x1160   : > { %v6241_v9 = vpop.eup %6240  ;;  %v3816_v11 = vsel %vm3814_vm14, %v3815_v51, %v3813_v10  ;;  %v6124_v51 = vld [vmem:[#allocation16 + $0x20] ss:$8 sps:$4 sm:$0xff]   ;;  %v6132_v10 = vld [vmem:[#allocation16 + $0x14] ss:$8 sps:$4 sm:$0xff]  }
0x1161   : > { %v3818_v56 = vmul.f32 %v6241_v9, %v3809_v46  ;;  %v3824_v7 = vadd.f32 1e-06, %v3816_v11  ;;  %v6127_v9 = vld [vmem:[#allocation16 + $0x120] ss:$8 sps:$4 sm:$0xff]   ;;  %v6135_v11 = vld [vmem:[#allocation16 + $0x114] ss:$8 sps:$4 sm:$0xff]  }
0x1163   : > { %v3820_v13 = vsel %vm3819_vm15, %v3809_v46, %v3818_v56  ;;  %6242 = vrcp.f32 %v3824_v7  ;;  %v6121_v46 = vld [vmem:[#allocation16 + $0x130] ss:$8 sps:$4 sm:$0xff]  }
0x1164   : > { %v3823_v17 = vsel %vm3821_vm0, %v3822_v12, %v3820_v13  ;;  %v6130_v56 = vld [vmem:[#allocation16 + $0x10] ss:$8 sps:$4 sm:$0xff]   ;;  %v6138_v12 = vld [vmem:[#allocation16 + $0x4] ss:$8 sps:$4 sm:$0xff]  }
0x1165   : > { %v3825_v18 = vadd.f32 1e-06, %v3823_v17  ;;  %v6133_v7 = vld [vmem:[#allocation16 + $0x110] ss:$8 sps:$4 sm:$0xff]   ;;  %v6141_v13 = vld [vmem:[#allocation16 + $0x104] ss:$8 sps:$4 sm:$0xff]  }
0x1166   : > { %v6136_v17 = vld [vmem:[#allocation16] ss:$8 sps:$4 sm:$0xff]  }
0x1167   : > { %6244 = vrcp.f32 %v3825_v18  ;;  %v6139_v18 = vld [vmem:[#allocation16 + $0x100] ss:$8 sps:$4 sm:$0xff]  }
0x1170   : > { %v6243_v15 = vpop.eup %6242 }
0x1171   : > { %v3851_v39 = vmul.f32 %v6243_v15, %v3847_v43  ;;  %v3850_v54 = vmul.f32 %v6243_v15, %v3846_v62  ;;  %v6156_v15 = vld [vmem:[#allocation16 + $0xd4] ss:$8 sps:$4 sm:$0xff]   ;;  %v6154_v43 = vld [vmem:[#allocation16 + $0xd0] ss:$8 sps:$4 sm:$0xff]  }
0x1172   : > { %v6159_v62 = vld [vmem:[#allocation16 + $0x1d4] ss:$8 sps:$4 sm:$0xff]  }
0x1173   : > { %v3873_v59 = vadd.f32 %v3871_v45, %v3851_v39  ;;  %v3872_v5 = vadd.f32 %v3867_v53, %v3850_v54  ;;  %v6165_v39 = vld [vmem:[#allocation16 + $0x1c4] ss:$8 sps:$4 sm:$0xff]   ;;  %v6163_v54 = vld [vmem:[#allocation16 + $0x1c0] ss:$8 sps:$4 sm:$0xff]  }
0x1174   : > { %v6245_v34 = vpop.eup %6244 }
0x1175   : > { %v3853_v8 = vmul.f32 %v6245_v34, %v3849_v14  ;;  %v3852_v2 = vmul.f32 %v6245_v34, %v3848_v1  ;;  %v6157_v1 = vld [vmem:[#allocation16 + $0x1d0] ss:$8 sps:$4 sm:$0xff]   ;;  %v6162_v14 = vld [vmem:[#allocation16 + $0xc4] ss:$8 sps:$4 sm:$0xff]   ;;  %v6171_v34 = vld [vmem:[#allocation16 + $0x1b4] ss:$8 sps:$4 sm:$0xff]  }
0x1177   : > { %v3875_v28 = vadd.f32 %v3871_v45, %v3853_v8  ;;  %v3874_v50 = vadd.f32 %v3867_v53, %v3852_v2  ;;  %v6160_v45 = vld [vmem:[#allocation16 + $0xc0] ss:$8 sps:$4 sm:$0xff]   ;;  %v6168_v53 = vld [vmem:[#allocation16 + $0xb4] ss:$8 sps:$4 sm:$0xff]   ;;  %v6166_v8 = vld [vmem:[#allocation16 + $0xb0] ss:$8 sps:$4 sm:$0xff]  }
0x1178   : > { %v6169_v2 = vld [vmem:[#allocation16 + $0x1b0] ss:$8 sps:$4 sm:$0xff]  }
0x1179   : > { %v3877_v27 = vpack.c.bf16 %v3875_v28, %v3873_v59  ;;  %v3876_v55 = vpack.c.bf16 %v3874_v50, %v3872_v5  ;;  %v6174_v59 = vld [vmem:[#allocation16 + $0xa4] ss:$8 sps:$4 sm:$0xff]   ;;  %v6172_v5 = vld [vmem:[#allocation16 + $0xa0] ss:$8 sps:$4 sm:$0xff]  }
0x117a   : > { %v6177_v28 = vld [vmem:[#allocation16 + $0x1a4] ss:$8 sps:$4 sm:$0xff]   ;;  %v6175_v50 = vld [vmem:[#allocation16 + $0x1a0] ss:$8 sps:$4 sm:$0xff]  }
0x117b   : > { %4251 = vmatprep.mubr.bf16.mxu1 %v3877_v27  ;;  %4294 = vmatprep.mubr.bf16.mxu0 %v3877_v27  ;;  %v6180_v27 = vld [vmem:[#allocation16 + $0x94] ss:$8 sps:$4 sm:$0xff]  }
0x117c   : > { %4252 = vmatmul.mubr.bf16.vlgmr.msra.gmra.mxu1 %v3876_v55  ;;  %4295 = vmatmul.mubr.bf16.vlgmr.msra.gmra.mxu0 %v3876_v55  ;;  %v6183_v55 = vld [vmem:[#allocation16 + $0x194] ss:$8 sps:$4 sm:$0xff]  }
0x117d   : > { %4638 = vmatpush1.bf16.msra.mxu1 %v6094_v60  ;;  %4681 = vmatpush1.bf16.msra.mxu0 %v6097_v16  ;;  %v6178_v60 = vld [vmem:[#allocation16 + $0x90] ss:$8 sps:$4 sm:$0xff]  }
0x117e   : > { %4639 = vmatprep.subr.bf16.mxu1 %v6102_v33  ;;  %4682 = vmatprep.subr.bf16.mxu0 %v6105_v19  ;;  %v6181_v16 = vld [vmem:[#allocation16 + $0x190] ss:$8 sps:$4 sm:$0xff]   ;;  %v6186_v33 = vld [vmem:[#allocation16 + $0x84] ss:$8 sps:$4 sm:$0xff]  }
0x117f   : > { %v6189_v19 = vld [vmem:[#allocation16 + $0x184] ss:$8 sps:$4 sm:$0xff]  }
0x1181   : > { %4640 = vmatpush1.bf16.msra.mxu1 %v6100_v3  ;;  %4683 = vmatpush1.bf16.msra.mxu0 %v6103_v23  ;;  %v6184_v3 = vld [vmem:[#allocation16 + $0x80] ss:$8 sps:$4 sm:$0xff]  }
0x1182   : > { %4641 = vmatprep.subr.bf16.mxu1 %v6108_v25  ;;  %4684 = vmatprep.subr.bf16.mxu0 %v6111_v58  ;;  %v6187_v23 = vld [vmem:[#allocation16 + $0x180] ss:$8 sps:$4 sm:$0xff]  }
0x1183   : > { %v909_v25 = vld [vmem:[%s7430_s9] sm:$0xf] }
0x1185   : > { %4642 = vmatpush1.bf16.msra.mxu1 %v6106_v0  ;;  %4685 = vmatpush1.bf16.msra.mxu0 %v6109_v57  ;;  %v3886_v57 = vrot.slane %v909_v25, %v6977_v41 }
0x1186   : > { %4643 = vmatprep.subr.bf16.mxu1 %v6114_v4  ;;  %4686 = vmatprep.subr.bf16.mxu0 %v6117_v38  ;;  %v3894_v4 = vrot.slane %v909_v25, %v7102_v52  ;;  %v3882_v38 = vrot.slane %v909_v25, %v6951_v42 }
0x1189   : > { %4644 = vmatpush1.bf16.msra.mxu1 %v6112_v61  ;;  %4687 = vmatpush1.bf16.msra.mxu0 %v6115_v44  ;;  %v3890_v61 = vrot.slane %v909_v25, %v7001_v63 }
0x118a   : > { %4645 = vmatprep.subr.bf16.mxu1 %v6120_v49  ;;  %4688 = vmatprep.subr.bf16.mxu0 %v6123_v6 }
0x118d   : > { %4646 = vmatpush1.bf16.msra.mxu1 %v6118_v31  ;;  %4689 = vmatpush1.bf16.msra.mxu0 %v6121_v46 }
0x118e   : > { %4647 = vmatprep.subr.bf16.mxu1 %v6126_v40  ;;  %4690 = vmatprep.subr.bf16.mxu0 %v6129_v47 }
0x1191   : > { %4648 = vmatpush1.bf16.msra.mxu1 %v6124_v51  ;;  %4691 = vmatpush1.bf16.msra.mxu0 %v6127_v9 }
0x1192   : > { %4649 = vmatprep.subr.bf16.mxu1 %v6132_v10  ;;  %4692 = vmatprep.subr.bf16.mxu0 %v6135_v11 }
0x1195   : > { %4650 = vmatpush1.bf16.msra.mxu1 %v6130_v56  ;;  %4693 = vmatpush1.bf16.msra.mxu0 %v6133_v7 }
0x1196   : > { %4651 = vmatprep.subr.bf16.mxu1 %v6138_v12  ;;  %4694 = vmatprep.subr.bf16.mxu0 %v6141_v13 }
0x1199   : > { %4652 = vmatpush1.bf16.msra.mxu1 %v6136_v17  ;;  %4695 = vmatpush1.bf16.msra.mxu0 %v6139_v18 }
0x119a   : > { %4653 = vmatprep.subr.bf16.mxu1 %v6144_v20  ;;  %4696 = vmatprep.subr.bf16.mxu0 %v6147_v21 }
0x119d   : > { %4654 = vmatpush2.bf16.msra.mxu1 %v6142_v22  ;;  %4697 = vmatpush2.bf16.msra.mxu0 %v6145_v26 }
0x119e   : > { %4655 = vmatprep.subr.bf16.mxu1 %v6150_v29  ;;  %4698 = vmatprep.subr.bf16.mxu0 %v6153_v32 }
0x11a1   : > { %4656 = vmatpush2.bf16.msra.mxu1 %v6148_v30  ;;  %4699 = vmatpush2.bf16.msra.mxu0 %v6151_v36  ;;  %v974_v36 = vld [vmem:[%s7432_s11] sm:$0x3] }
0x11a2   : > { %4657 = vmatprep.subr.bf16.mxu1 %v6156_v15  ;;  %4700 = vmatprep.subr.bf16.mxu0 %v6159_v62 }
0x11a5   : > { %4658 = vmatpush2.bf16.msra.mxu1 %v6154_v43  ;;  %4701 = vmatpush2.bf16.msra.mxu0 %v6157_v1  ;;  %v4731_v1 = vrot.slane %v974_v36, %v6951_v42 }
0x11a6   : > { %4659 = vmatprep.subr.bf16.mxu1 %v6162_v14  ;;  %4702 = vmatprep.subr.bf16.mxu0 %v6165_v39 }
0x11a9   : > { %4660 = vmatpush2.bf16.msra.mxu1 %v6160_v45  ;;  %4703 = vmatpush2.bf16.msra.mxu0 %v6163_v54 }
0x11aa   : > { %4661 = vmatprep.subr.bf16.mxu1 %v6168_v53  ;;  %4704 = vmatprep.subr.bf16.mxu0 %v6171_v34  ;;  %v4735_v53 = vrot.slane %v974_v36, %v6977_v41 }
0x11ad   : > { %4662 = vmatpush2.bf16.msra.mxu1 %v6166_v8  ;;  %4705 = vmatpush2.bf16.msra.mxu0 %v6169_v2 }
0x11ae   : > { %4663 = vmatprep.subr.bf16.mxu1 %v6174_v59  ;;  %4706 = vmatprep.subr.bf16.mxu0 %v6177_v28 }
0x11b1   : > { %4664 = vmatpush2.bf16.msra.mxu1 %v6172_v5  ;;  %4707 = vmatpush2.bf16.msra.mxu0 %v6175_v50 }
0x11b2   : > { %4665 = vmatprep.subr.bf16.mxu1 %v6180_v27  ;;  %4708 = vmatprep.subr.bf16.mxu0 %v6183_v55 }
0x11b5   : > { %4666 = vmatpush2.bf16.msra.mxu1 %v6178_v60  ;;  %4709 = vmatpush2.bf16.msra.mxu0 %v6181_v16 }
0x11b6   : > { %4667 = vmatprep.subr.bf16.mxu1 %v6186_v33  ;;  %4710 = vmatprep.subr.bf16.mxu0 %v6189_v19 }
0x11b9   : > { %4668 = vmatpush2.bf16.msra.mxu1 %v6184_v3  ;;  %4711 = vmatpush2.bf16.msra.mxu0 %v6187_v23 }
0x123c   : > { %v4253_v58 = vpop.f32.mrf.mxu1  ;;  %v4296_v0 = vpop.f32.mrf.mxu0 }
0x123d   : > { %v4254_v9 = vadd.f32 %v4253_v58, %v3882_v38  ;;  %v4297_v10 = vadd.f32 %v4296_v0, %v3890_v61 }
0x123e   : > { %v4255_v44 = vpop.f32.mrf.mxu1  ;;  %v4298_v49 = vpop.f32.mrf.mxu0 }
0x123f   : > { %v4256_v46 = vadd.f32 %v4255_v44, %v3886_v57  ;;  %v4299_v40 = vadd.f32 %v4298_v49, %v3894_v4  ;;  %v4305_v21 = vmax.f32 %v4254_v9, 0.0  ;;  %v4307_v22 = vmax.f32 %v4297_v10, 0.0 }
0x1240   : > { %v4257_v6 = vpop.f32.mrf.mxu1  ;;  %v4300_v31 = vpop.f32.mrf.mxu0 }
0x1241   : > { %v4258_v47 = vadd.f32 %v4257_v6, %v3882_v38  ;;  %v4301_v51 = vadd.f32 %v4300_v31, %v3890_v61  ;;  %v4306_v17 = vmax.f32 %v4256_v46, 0.0  ;;  %v4308_v18 = vmax.f32 %v4299_v40, 0.0 }
0x1242   : > { %v4259_v11 = vpop.f32.mrf.mxu1  ;;  %v4302_v56 = vpop.f32.mrf.mxu0 }
0x1243   : > { %v4260_v7 = vadd.f32 %v4259_v11, %v3886_v57  ;;  %v4303_v12 = vadd.f32 %v4302_v56, %v3894_v4  ;;  %v4309_v13 = vmax.f32 %v4258_v47, 0.0  ;;  %v4311_v52 = vmax.f32 %v4301_v51, 0.0 }
0x1245   : > { %v4310_v20 = vmax.f32 %v4260_v7, 0.0  ;;  %v4312_v63 = vmax.f32 %v4303_v12, 0.0  ;;  %v4313_v32 = vpack.c.bf16 %v4309_v13, %v4305_v21  ;;  %v4315_v30 = vpack.c.bf16 %v4311_v52, %v4307_v22 }
0x1247   : > { %v4314_v26 = vpack.c.bf16 %v4310_v20, %v4306_v17  ;;  %v4316_v29 = vpack.c.bf16 %v4312_v63, %v4308_v18 }
0x1249   : > { %4669 = vmatprep.mubr.bf16.mxu1 %v4314_v26  ;;  %4712 = vmatprep.mubr.bf16.mxu0 %v4316_v29 }
0x124a   : > { %4670 = vmatmul.mubr.bf16.vlgmr.msra.gmra.mxu1 %v4313_v32  ;;  %4713 = vmatmul.mubr.bf16.vlgmr.msra.gmra.mxu0 %v4315_v30 }
0x130a   : > { %v4671_v15 = vpop.f32.mrf.mxu1  ;;  %v4714_v62 = vpop.f32.mrf.mxu0 }
0x130b   : > { %v4715_v43 = vadd.f32 %v4714_v62, %v4671_v15 }
0x130c   : > { %v4673_v14 = vpop.f32.mrf.mxu1  ;;  %v4716_v39 = vpop.f32.mrf.mxu0 }
0x130d   : > { %v4723_v45 = vadd.f32 %v4715_v43, %v7307_v37  ;;  %v4717_v54 = vadd.f32 %v4716_v39, %v4673_v14 }
0x130e   : > { %v4675_v34 = vpop.f32.mrf.mxu1  ;;  %v4718_v8 = vpop.f32.mrf.mxu0 }
0x130f   : > { %v4738_v2 = vadd.f32 %v4731_v1, %v4723_v45  ;;  %v4724_v59 = vadd.f32 %v4717_v54, %v7310_v48  ;;  %v4719_v28 = vadd.f32 %v4718_v8, %v4675_v34 }
0x1310   : > { %v4677_v5 = vpop.f32.mrf.mxu1  ;;  %v4720_v42 = vpop.f32.mrf.mxu0 }
0x1311   : > { %4742 = vst [vmem:[%s568_s29] sm:$0xff] %v4738_v2  ;;  %v4739_v50 = vadd.f32 %v4735_v53, %v4724_v59  ;;  %v4725_v37 = vadd.f32 %v4719_v28, %v7315_v24  ;;  %v4721_v27 = vadd.f32 %v4720_v42, %v4677_v5 }
0x1313   : > { %4743 = vst [vmem:[%s568_s29 + $0x8] sm:$0xff] %v4739_v50  ;;  %v4740_v41 = vadd.f32 %v4731_v1, %v4725_v37  ;;  %v4726_v48 = vadd.f32 %v4721_v27, %v7318_v35 }
0x1315   : > { %4744 = vst [vmem:[%s568_s29 + $0x10] sm:$0xff] %v4740_v41  ;;  %v4741_v55 = vadd.f32 %v4735_v53, %v4726_v48 }
0x1317   : > { %4745 = vst [vmem:[%s568_s29 + $0x18] sm:$0xff] %v4741_v55 }
0x1318   : > { %6505 = shalt.err (!%p6502_p10)
}
0x1319   : > { %s6506_s30 = scalar_lea.hbm %s7378_s6, 512  ;;  %s6510_s14 = scalar_lea.hbm %s7433_s12, 1024 }
0x131a   : > { %p6507_p13 = scmp.ne.s32.totalorder %s7378_s6, %s6506_s30  ;;  %p6511_p0 = scmp.lt.s32.totalorder %s7378_s6, %s7433_s12 }
0x131b   : > { %p6512_p4 = scmp.lt.s32.totalorder %s6510_s14, %s6506_s30 }
0x131c   : > { %p6508_p1 = pnand %p6507_p13, %p7487_p11 }
0x131d   : > { %p6513_p8 = por %p6512_p4, %p6511_p0 }
0x131e   : > { %p6509_p3 = pneg %p6508_p1 }
0x1320   : > { %p6514_p9 = pnand %p6513_p8, %p6509_p3 }
0x1322   : > { %6517 = shalt.err (!%p6514_p9)
}
0x1323   : > { %s6594_s18 = smov 256   ;;  %s6595_s25 = smov 16  }
0x1324   : > { %5516 = dma.vmem_to_hbm [thread:$0]  (%p7487_p11), %s7372_s0, 512, %s7378_s6, %s4747_s2, %s6594_s18, %s6594_s18, %s6595_s25  }
0x1325 PF: > { %s4776_s29 = sand.u32 1, %s6564_s21   ;;  %p7488_p6 = scmp.ne.s32.totalorder %s7471_s19, 0 }
0x1326   : > { %p7489_p2 = scmp.ge.s32.totalorder %s6576_s24, 2  ;;  %s4777_s10 = scalar_lea.sflag [#allocation4], %s4776_s29 }
0x1328   : > { %p5548_p12 = pnand %p7489_p2, %p7488_p6 }
0x132a   : > { %p5549_p7 = pneg %p5548_p12 }
0x132c   : > { %6559 = dma.done.wait (%p5549_p7), %s4777_s10, 512  }
0x132d   : > { %6561 = vsyncadd (%p5549_p7), %s4777_s10, 4294966784  ;;  %s7490_s13 = sld [smem:[#allocation25_spill]]  ;;  %p31_p5 = scmp.ge.s32.totalorder %s6776_s16, 4  }
0x132e   : > { %s7491_s23 = sld [smem:[#allocation26_spill]]  ;;  %s7492_s21 = smov %s6568_s22 }
0x132f   : > { %s7494_s24 = smov %s6776_s16  ;;  %33 = sbr.rel (!%p31_p5) target bundleno = 19 (0x13), region = 154 }
0x1333   : > { %s7493_s22 = smov %s7490_s13 }
0x1334   :  { %4782 = vsyncpa [#allocation3], 1 }
0x1335   :  { %4784 = vsyncpa [#allocation3 + $0x1], 1 }
0x1336   :  { %4785 = vsyncpa [#allocation6], 1 }
0x1337   :  { %4787 = vsyncpa [#allocation6 + $0x1], 1 }
0x1338   :  { %4788 = vsyncpa [#allocation9], 1 }
0x1339   :  { %4789 = vsyncpa [#allocation12], 1 }
0x133a   :  { %4790 = vsyncpa [#allocation15], 1 }
0x133b   :  { %4791 = vsyncpa [#allocation4], 1 }
0x133c   :  { %4793 = vsyncpa [#allocation4 + $0x1], 1 }

</bundles_post_ra>
